<compile_context>
chip_gen: v7x
topology: tpu7x:2x2x1
jax: 0.10.0
libtpu: 0.0.40
codegen_flags: <defaults>
</compile_context>

<pallas_src>
import functools

import jax
import jax.numpy as jnp
from jax.experimental import pallas as pl
from jax.experimental.pallas import tpu as pltpu

NEG_SLOPE = 0.01            # F.leaky_relu default
EPS = 1e-5                  # BatchNorm default eps

# TODO(synk): BatchNorm layers use inference-mode running statistics (mean=0, var=1 as at
#             nn.BatchNorm init); training-mode batch-statistic computation is not implemented.


def _round_up(x, m):
    return ((x + m - 1) // m) * m


def _pick_tile(m, t_max):
    """Row-tile size: multiple of 8, and >=2 grid programs when possible (v7x megacore)."""
    if m <= 8:
        return m
    return max(8, min(t_max, _round_up(-(-m // 2), 8)))


@functools.lru_cache(maxsize=None)
def _vmem_limit_bytes():
    # Generation-aware scoped-VMEM limit (v5e/v6e: 128 MiB physical, v7x: 64 MiB).
    cap = 64 * 1024 * 1024
    try:
        cap = int(getattr(pltpu.get_tpu_info(), "vmem_capacity_bytes", cap))
    except Exception:
        pass
    return int(min(cap * 3 // 4, 96 * 1024 * 1024))


def _leaky_relu(y):
    return jnp.where(y >= 0, y, NEG_SLOPE * y)


def _bn_scale_shift(p):
    s = p["gamma"] * jax.lax.rsqrt(p["var"] + EPS)
    shift = (p["b"] - p["mean"]) * s + p["beta"]
    return s.astype(jnp.float32), shift.astype(jnp.float32)


# ------------- conv3x3 + BN + LeakyReLU + 2x2 maxpool (one kernel, one matmul) -------------

def _conv_pool_kernel(p_ref, w_ref, shift_ref, o_ref):
    # p_ref: (4, TM, Kp) bf16 — im2col rows of the 4 corners of every 2x2 pool window.
    # One MXU matmul over all 4 corners (leading-dim merge is layout-free since TM % 8 == 0),
    # max over corners == maxpool, then BN shift + LeakyReLU (scale already folded into w).
    c, tm, kp = p_ref.shape
    y = jnp.dot(p_ref[...].reshape(c * tm, kp), w_ref[...],
                preferred_element_type=jnp.float32)          # (4*TM, Np) f32
    y = jnp.max(y.reshape(c, tm, -1), axis=0)                # 2x2 maxpool
    o_ref[...] = _leaky_relu(y + shift_ref[...]).astype(o_ref.dtype)


def conv_bn_lrelu_pool(x_nhwc, p, *, tm_max=512):
    """Conv2d(3x3, stride 1, pad 1) + BatchNorm2d (eval stats) + LeakyReLU + MaxPool2d(2, 2)."""
    B, H, W, Cin = x_nhwc.shape
    Ho, Wo = H // 2, W // 2                      # floor pooling: trailing row/col dropped
    w = p["w"]                                   # torch layout (Cout, Cin, 3, 3)
    Cout = w.shape[0]
    Np = max(_round_up(Cout, 128), 128)          # lane-dense output channels
    K = 9 * Cin
    Kp = K if K <= 128 else _round_up(K, 128)    # lane-dense K for the wider convs

    # im2col (kh, kw, cin ordering), then ONE relayout to corner-major (4, M, K).
    xp = jnp.pad(x_nhwc, ((0, 0), (1, 1), (1, 1), (0, 0)))
    cols = [xp[:, kh:kh + H, kw:kw + W, :] for kh in range(3) for kw in range(3)]
    full = jnp.stack(cols, axis=3).reshape(B, H, W, K)
    full = full[:, :2 * Ho, :2 * Wo, :].reshape(B, Ho, 2, Wo, 2, K)
    patches = jnp.transpose(full, (2, 4, 0, 1, 3, 5)).reshape(4, B * Ho * Wo, K)
    patches = patches.astype(jnp.bfloat16)

    M = B * Ho * Wo
    Mp = _round_up(M, 8)
    patches = jnp.pad(patches, ((0, 0), (0, Mp - M), (0, Kp - K)))

    # Fold the BN scale into the weight columns (f32, before the bf16 cast).
    scale, shift = _bn_scale_shift(p)
    w_mat = jnp.transpose(w, (2, 3, 1, 0)).reshape(K, Cout).astype(jnp.float32)
    w_mat = w_mat * scale[None, :]
    w_mat = jnp.pad(w_mat, ((0, Kp - K), (0, Np - Cout))).astype(jnp.bfloat16)
    shift_p = jnp.pad(shift, (0, Np - Cout)).reshape(1, Np)

    tm = _pick_tile(Mp, tm_max)
    grid = (pl.cdiv(Mp, tm),)

    cost = pl.CostEstimate(
        flops=2 * 4 * Mp * Kp * Np,
        transcendentals=0,
        bytes_accessed=4 * Mp * Kp * 2 + Kp * Np * 2 + 4 * Np + Mp * Np * 2,
    )

    out = pl.pallas_call(
        _conv_pool_kernel,
        out_shape=jax.ShapeDtypeStruct((Mp, Np), jnp.bfloat16),
        grid=grid,
        in_specs=[
            pl.BlockSpec((4, tm, Kp), lambda i: (0, i, 0)),
            pl.BlockSpec((Kp, Np), lambda i: (0, 0)),
            pl.BlockSpec((1, Np), lambda i: (0, 0)),
        ],
        out_specs=pl.BlockSpec((tm, Np), lambda i: (i, 0)),
        compiler_params=pltpu.CompilerParams(
            dimension_semantics=("parallel",), vmem_limit_bytes=_vmem_limit_bytes()),
        cost_estimate=cost,
    )(patches, w_mat, shift_p)
    return out[:M, :Cout].reshape(B, Ho, Wo, Cout)


# --------------------- fused fc1 + bn_fc1 + fc2 + bn_fc2 + fc3 (one kernel) ---------------------

def _fc_fused_kernel(x_ref, w1_ref, b1_ref, w2_ref, b2_ref, w3_ref, b3_ref, o_ref):
    # BN scales are pre-folded into w1/w2 columns; only shift-add + LeakyReLU remain.
    h = jnp.dot(x_ref[...], w1_ref[...], preferred_element_type=jnp.float32)
    h = _leaky_relu(h + b1_ref[...])
    h = jnp.dot(h.astype(jnp.bfloat16), w2_ref[...], preferred_element_type=jnp.float32)
    h = _leaky_relu(h + b2_ref[...])
    h = jnp.dot(h.astype(jnp.bfloat16), w3_ref[...], preferred_element_type=jnp.float32)
    o_ref[...] = h + b3_ref[...]


def fc_stack(x_nhwc, p1, p2, p3, *, tb_max=256):
    """Linear+BN+LeakyReLU -> Linear+BN+LeakyReLU -> Linear, fused in one kernel.

    Takes the NHWC conv output; the torch NCHW-flatten permutation is baked into fc1's
    weight rows so no activation transpose is required.
    """
    B, Hh, Ww, Cc = x_nhwc.shape
    K1 = Hh * Ww * Cc
    x = x_nhwc.reshape(B, K1).astype(jnp.bfloat16)

    N1 = p1["w"].shape[0]
    N2 = p2["w"].shape[0]
    num_classes = p3["w"].shape[0]
    N3 = _round_up(max(num_classes, 128), 128)   # lane-dense padded logits

    s1, b1v = _bn_scale_shift(p1)
    s2, b2v = _bn_scale_shift(p2)

    # Reorder fc1 columns from torch (c, h, w) flatten order to our (h, w, c) order,
    # then fold the BN scale into the columns (f32) before the bf16 cast.
    w1 = p1["w"].reshape(N1, Cc, Hh, Ww).transpose(0, 2, 3, 1).reshape(N1, K1)
    w1 = (jnp.transpose(w1).astype(jnp.float32) * s1[None, :]).astype(jnp.bfloat16)   # (K1, N1)
    w2 = (jnp.transpose(p2["w"]).astype(jnp.float32) * s2[None, :]).astype(jnp.bfloat16)  # (N1, N2)
    w3 = jnp.pad(jnp.transpose(p3["w"]),
                 ((0, 0), (0, N3 - num_classes))).astype(jnp.bfloat16)                 # (N2, N3)
    b1 = b1v.reshape(1, N1)
    b2 = b2v.reshape(1, N2)
    b3 = jnp.pad(p3["b"], (0, N3 - num_classes)).reshape(1, N3).astype(jnp.float32)

    tb = _pick_tile(B, tb_max)
    grid = (pl.cdiv(B, tb),)

    cost = pl.CostEstimate(
        flops=2 * B * (K1 * N1 + N1 * N2 + N2 * N3),
        transcendentals=0,
        bytes_accessed=(B * K1 * 2 + K1 * N1 * 2 + N1 * N2 * 2 + N2 * N3 * 2
                        + 4 * (N1 + N2 + N3) + B * N3 * 4),
    )

    out = pl.pallas_call(
        _fc_fused_kernel,
        out_shape=jax.ShapeDtypeStruct((B, N3), jnp.float32),
        grid=grid,
        in_specs=[
            pl.BlockSpec((tb, K1), lambda i: (i, 0)),
            pl.BlockSpec((K1, N1), lambda i: (0, 0)),
            pl.BlockSpec((1, N1), lambda i: (0, 0)),
            pl.BlockSpec((N1, N2), lambda i: (0, 0)),
            pl.BlockSpec((1, N2), lambda i: (0, 0)),
            pl.BlockSpec((N2, N3), lambda i: (0, 0)),
            pl.BlockSpec((1, N3), lambda i: (0, 0)),
        ],
        out_specs=pl.BlockSpec((tb, N3), lambda i: (i, 0)),
        compiler_params=pltpu.CompilerParams(
            dimension_semantics=("parallel",), vmem_limit_bytes=_vmem_limit_bytes()),
        cost_estimate=cost,
    )(x, w1, b1, w2, b2, w3, b3)
    return out[:, :num_classes]


# --------------------------------------- forward ---------------------------------------

def simple_cnn_forward(x, params):
    x = x.reshape(-1, 1, 28, 28).astype(jnp.float32)           # x.view(-1, 1, 28, 28)
    x = jnp.transpose(x, (0, 2, 3, 1)).astype(jnp.bfloat16)    # NCHW -> NHWC (Cin=1: free)
    x = conv_bn_lrelu_pool(x, params["conv1"])                 # (B, 14, 14, 32)
    x = conv_bn_lrelu_pool(x, params["conv2"])                 # (B, 7, 7, 64)
    x = conv_bn_lrelu_pool(x, params["conv3"])                 # (B, 3, 3, 128)
    return fc_stack(x, params["fc1"], params["fc2"], params["fc3"])   # (B, num_classes) f32


# --------------------------------- deterministic params ---------------------------------

def _conv_params(key, cin, cout):
    k_w, k_b, k_g, k_be = jax.random.split(key, 4)
    fan_in = cin * 9
    return {
        "w": jax.random.normal(k_w, (cout, cin, 3, 3), jnp.float32) * (1.0 / jnp.sqrt(fan_in)),
        "b": jax.random.normal(k_b, (cout,), jnp.float32) * 0.05,
        "gamma": 1.0 + 0.1 * jax.random.normal(k_g, (cout,), jnp.float32),
        "beta": 0.05 * jax.random.normal(k_be, (cout,), jnp.float32),
        "mean": jnp.zeros((cout,), jnp.float32),
        "var": jnp.ones((cout,), jnp.float32),
    }


def _fc_params(key, fin, fout, with_bn=True):
    k_w, k_b, k_g, k_be = jax.random.split(key, 4)
    p = {
        "w": jax.random.normal(k_w, (fout, fin), jnp.float32) * (1.0 / jnp.sqrt(fin)),
        "b": jax.random.normal(k_b, (fout,), jnp.float32) * 0.05,
    }
    if with_bn:
        p.update({
            "gamma": 1.0 + 0.1 * jax.random.normal(k_g, (fout,), jnp.float32),
            "beta": 0.05 * jax.random.normal(k_be, (fout,), jnp.float32),
            "mean": jnp.zeros((fout,), jnp.float32),
            "var": jnp.ones((fout,), jnp.float32),
        })
    return p


def init_params(key, num_classes):
    keys = jax.random.split(key, 6)
    return {
        "conv1": _conv_params(keys[0], 1, 32),
        "conv2": _conv_params(keys[1], 32, 64),
        "conv3": _conv_params(keys[2], 64, 128),
        "fc1": _fc_params(keys[3], 128 * 3 * 3, 1024, with_bn=True),
        "fc2": _fc_params(keys[4], 1024, 512, with_bn=True),
        "fc3": _fc_params(keys[5], 512, num_classes, with_bn=False),
    }


if __name__ == "__main__":
    num_classes = 10
    params = init_params(jax.random.PRNGKey(42), num_classes)
    x = jax.random.normal(jax.random.PRNGKey(0), (2, 1, 28, 28), dtype=jnp.float32)

    fwd = jax.jit(simple_cnn_forward)
    out = fwd(x, params)
    out = jax.block_until_ready(out)

    assert out.shape == (2, num_classes), out.shape
    assert out.dtype == jnp.float32
    assert bool(jnp.all(jnp.isfinite(out)))
    print("KERNEL_OK")
</pallas_src>

<mosaic_0001>
module attributes {stable_mosaic.version = 11 : i64} {
  func.func @_conv_pool_kernel(%arg0: i32, %arg1: memref<4x200x9xbf16, #tpu.memory_space<vmem>>, %arg2: memref<9x128xbf16, #tpu.memory_space<vmem>>, %arg3: memref<1x128xf32, #tpu.memory_space<vmem>>, %arg4: memref<200x128xbf16, #tpu.memory_space<vmem>>) attributes {dimension_semantics = [#tpu.dimension_semantics<parallel>], iteration_bounds = array<i64: 2>, scalar_prefetch = 0 : i64, scratch_operands = 0 : i64, tpu.core_type = #tpu.core_type<tc>, window_params = [{transform_indices = @transform_0, window_bounds = array<i64: 4, 200, 9>}, {pipeline_mode = #tpu.pipeline_mode<synchronous>, transform_indices = @transform_1, window_bounds = array<i64: 9, 128>}, {pipeline_mode = #tpu.pipeline_mode<synchronous>, transform_indices = @transform_2, window_bounds = array<i64: 1, 128>}, {transform_indices = @transform_3, window_bounds = array<i64: 200, 128>}]} {
    %c0 = arith.constant 0 : index
    %c0_0 = arith.constant 0 : index
    %c0_1 = arith.constant 0 : index
    %0 = vector.load %arg1[%c0, %c0_0, %c0_1] : memref<4x200x9xbf16, #tpu.memory_space<vmem>>, vector<4x200x9xbf16>
    %1 = vector.shape_cast %0 : vector<4x200x9xbf16> to vector<800x9xbf16>
    %c0_2 = arith.constant 0 : index
    %c0_3 = arith.constant 0 : index
    %2 = vector.load %arg2[%c0_2, %c0_3] : memref<9x128xbf16, #tpu.memory_space<vmem>>, vector<9x128xbf16>
    %cst = arith.constant dense<0.000000e+00> : vector<800x128xf32>
    %3 = tpu.matmul %1, %2, %cst {dimension_numbers = #tpu.dot_dimension_numbers<[1], [0], [0], [1], [0, 0, 1, 1], [], []>} : vector<800x9xbf16>, vector<9x128xbf16>, vector<800x128xf32> -> vector<800x128xf32>
    %4 = vector.shape_cast %3 : vector<800x128xf32> to vector<4x200x128xf32>
    %cst_4 = arith.constant dense<0xFF800000> : vector<200x128xf32>
    %5 = vector.multi_reduction <maximumf>, %4, %cst_4 [0] : vector<4x200x128xf32> to vector<200x128xf32>
    %c0_5 = arith.constant 0 : index
    %c0_6 = arith.constant 0 : index
    %6 = vector.load %arg3[%c0_5, %c0_6] : memref<1x128xf32, #tpu.memory_space<vmem>>, vector<1x128xf32>
    %7 = vector.broadcast %6 : vector<1x128xf32> to vector<200x128xf32>
    %8 = arith.addf %5, %7 : vector<200x128xf32>
    %cst_7 = arith.constant 0.000000e+00 : f32
    %9 = vector.broadcast %cst_7 : f32 to vector<200x128xf32>
    %10 = arith.cmpf oge, %8, %9 : vector<200x128xf32>
    %cst_8 = arith.constant 0.00999999977 : f32
    %11 = vector.broadcast %cst_8 : f32 to vector<200x128xf32>
    %12 = arith.mulf %11, %8 : vector<200x128xf32>
    %13 = arith.select %10, %8, %12 : vector<200x128xi1>, vector<200x128xf32>
    %14 = arith.truncf %13 : vector<200x128xf32> to vector<200x128xbf16>
    %c0_9 = arith.constant 0 : index
    %c0_10 = arith.constant 0 : index
    %15 = vector.load %arg4[%c0_9, %c0_10] : memref<200x128xbf16, #tpu.memory_space<vmem>>, vector<200x128xbf16>
    tpu.vector_store %arg4[%c0_9, %c0_10], %14 {strides = array<i32>} : memref<200x128xbf16, #tpu.memory_space<vmem>>, vector<200x128xbf16>,
    return
  }
  func.func @transform_0(%arg0: i32) -> (i32, i32, i32) {
    %c0_i32 = arith.constant 0 : i32
    %c0_i32_0 = arith.constant 0 : i32
    %c0_i32_1 = arith.constant 0 : i32
    return %c0_i32, %arg0, %c0_i32_0 : i32, i32, i32
  }
  func.func @transform_1(%arg0: i32) -> (i32, i32) {
    %c0_i32 = arith.constant 0 : i32
    %c0_i32_0 = arith.constant 0 : i32
    %c0_i32_1 = arith.constant 0 : i32
    return %c0_i32, %c0_i32_0 : i32, i32
  }
  func.func @transform_2(%arg0: i32) -> (i32, i32) {
    %c0_i32 = arith.constant 0 : i32
    %c0_i32_0 = arith.constant 0 : i32
    %c0_i32_1 = arith.constant 0 : i32
    return %c0_i32, %c0_i32_0 : i32, i32
  }
  func.func @transform_3(%arg0: i32) -> (i32, i32) {
    %c0_i32 = arith.constant 0 : i32
    %c0_i32_0 = arith.constant 0 : i32
    return %arg0, %c0_i32 : i32, i32
  }
}

module attributes {stable_mosaic.version = 11 : i64} {
  func.func @_conv_pool_kernel(%arg0: i32, %arg1: memref<4x56x384xbf16, #tpu.memory_space<vmem>>, %arg2: memref<384x128xbf16, #tpu.memory_space<vmem>>, %arg3: memref<1x128xf32, #tpu.memory_space<vmem>>, %arg4: memref<56x128xbf16, #tpu.memory_space<vmem>>) attributes {dimension_semantics = [#tpu.dimension_semantics<parallel>], iteration_bounds = array<i64: 2>, scalar_prefetch = 0 : i64, scratch_operands = 0 : i64, tpu.core_type = #tpu.core_type<tc>, window_params = [{transform_indices = @transform_0, window_bounds = array<i64: 4, 56, 384>}, {pipeline_mode = #tpu.pipeline_mode<synchronous>, transform_indices = @transform_1, window_bounds = array<i64: 384, 128>}, {pipeline_mode = #tpu.pipeline_mode<synchronous>, transform_indices = @transform_2, window_bounds = array<i64: 1, 128>}, {transform_indices = @transform_3, window_bounds = array<i64: 56, 128>}]} {
    %c0 = arith.constant 0 : index
    %c0_0 = arith.constant 0 : index
    %c0_1 = arith.constant 0 : index
    %0 = vector.load %arg1[%c0, %c0_0, %c0_1] : memref<4x56x384xbf16, #tpu.memory_space<vmem>>, vector<4x56x384xbf16>
    %1 = vector.shape_cast %0 : vector<4x56x384xbf16> to vector<224x384xbf16>
    %c0_2 = arith.constant 0 : index
    %c0_3 = arith.constant 0 : index
    %2 = vector.load %arg2[%c0_2, %c0_3] : memref<384x128xbf16, #tpu.memory_space<vmem>>, vector<384x128xbf16>
    %cst = arith.constant dense<0.000000e+00> : vector<224x128xf32>
    %3 = tpu.matmul %1, %2, %cst {dimension_numbers = #tpu.dot_dimension_numbers<[1], [0], [0], [1], [0, 0, 1, 1], [], []>} : vector<224x384xbf16>, vector<384x128xbf16>, vector<224x128xf32> -> vector<224x128xf32>
    %4 = vector.shape_cast %3 : vector<224x128xf32> to vector<4x56x128xf32>
    %cst_4 = arith.constant dense<0xFF800000> : vector<56x128xf32>
    %5 = vector.multi_reduction <maximumf>, %4, %cst_4 [0] : vector<4x56x128xf32> to vector<56x128xf32>
    %c0_5 = arith.constant 0 : index
    %c0_6 = arith.constant 0 : index
    %6 = vector.load %arg3[%c0_5, %c0_6] : memref<1x128xf32, #tpu.memory_space<vmem>>, vector<1x128xf32>
    %7 = vector.broadcast %6 : vector<1x128xf32> to vector<56x128xf32>
    %8 = arith.addf %5, %7 : vector<56x128xf32>
    %cst_7 = arith.constant 0.000000e+00 : f32
    %9 = vector.broadcast %cst_7 : f32 to vector<56x128xf32>
    %10 = arith.cmpf oge, %8, %9 : vector<56x128xf32>
    %cst_8 = arith.constant 0.00999999977 : f32
    %11 = vector.broadcast %cst_8 : f32 to vector<56x128xf32>
    %12 = arith.mulf %11, %8 : vector<56x128xf32>
    %13 = arith.select %10, %8, %12 : vector<56x128xi1>, vector<56x128xf32>
    %14 = arith.truncf %13 : vector<56x128xf32> to vector<56x128xbf16>
    %c0_9 = arith.constant 0 : index
    %c0_10 = arith.constant 0 : index
    %15 = vector.load %arg4[%c0_9, %c0_10] : memref<56x128xbf16, #tpu.memory_space<vmem>>, vector<56x128xbf16>
    tpu.vector_store %arg4[%c0_9, %c0_10], %14 {strides = array<i32>} : memref<56x128xbf16, #tpu.memory_space<vmem>>, vector<56x128xbf16>,
    return
  }
  func.func @transform_0(%arg0: i32) -> (i32, i32, i32) {
    %c0_i32 = arith.constant 0 : i32
    %c0_i32_0 = arith.constant 0 : i32
    %c0_i32_1 = arith.constant 0 : i32
    return %c0_i32, %arg0, %c0_i32_0 : i32, i32, i32
  }
  func.func @transform_1(%arg0: i32) -> (i32, i32) {
    %c0_i32 = arith.constant 0 : i32
    %c0_i32_0 = arith.constant 0 : i32
    %c0_i32_1 = arith.constant 0 : i32
    return %c0_i32, %c0_i32_0 : i32, i32
  }
  func.func @transform_2(%arg0: i32) -> (i32, i32) {
    %c0_i32 = arith.constant 0 : i32
    %c0_i32_0 = arith.constant 0 : i32
    %c0_i32_1 = arith.constant 0 : i32
    return %c0_i32, %c0_i32_0 : i32, i32
  }
  func.func @transform_3(%arg0: i32) -> (i32, i32) {
    %c0_i32 = arith.constant 0 : i32
    %c0_i32_0 = arith.constant 0 : i32
    return %arg0, %c0_i32 : i32, i32
  }
}

module attributes {stable_mosaic.version = 11 : i64} {
  func.func @_conv_pool_kernel(%arg0: i32, %arg1: memref<4x16x640xbf16, #tpu.memory_space<vmem>>, %arg2: memref<640x128xbf16, #tpu.memory_space<vmem>>, %arg3: memref<1x128xf32, #tpu.memory_space<vmem>>, %arg4: memref<16x128xbf16, #tpu.memory_space<vmem>>) attributes {dimension_semantics = [#tpu.dimension_semantics<parallel>], iteration_bounds = array<i64: 2>, scalar_prefetch = 0 : i64, scratch_operands = 0 : i64, tpu.core_type = #tpu.core_type<tc>, window_params = [{transform_indices = @transform_0, window_bounds = array<i64: 4, 16, 640>}, {pipeline_mode = #tpu.pipeline_mode<synchronous>, transform_indices = @transform_1, window_bounds = array<i64: 640, 128>}, {pipeline_mode = #tpu.pipeline_mode<synchronous>, transform_indices = @transform_2, window_bounds = array<i64: 1, 128>}, {transform_indices = @transform_3, window_bounds = array<i64: 16, 128>}]} {
    %c0 = arith.constant 0 : index
    %c0_0 = arith.constant 0 : index
    %c0_1 = arith.constant 0 : index
    %0 = vector.load %arg1[%c0, %c0_0, %c0_1] : memref<4x16x640xbf16, #tpu.memory_space<vmem>>, vector<4x16x640xbf16>
    %1 = vector.shape_cast %0 : vector<4x16x640xbf16> to vector<64x640xbf16>
    %c0_2 = arith.constant 0 : index
    %c0_3 = arith.constant 0 : index
    %2 = vector.load %arg2[%c0_2, %c0_3] : memref<640x128xbf16, #tpu.memory_space<vmem>>, vector<640x128xbf16>
    %cst = arith.constant dense<0.000000e+00> : vector<64x128xf32>
    %3 = tpu.matmul %1, %2, %cst {dimension_numbers = #tpu.dot_dimension_numbers<[1], [0], [0], [1], [0, 0, 1, 1], [], []>} : vector<64x640xbf16>, vector<640x128xbf16>, vector<64x128xf32> -> vector<64x128xf32>
    %4 = vector.shape_cast %3 : vector<64x128xf32> to vector<4x16x128xf32>
    %cst_4 = arith.constant dense<0xFF800000> : vector<16x128xf32>
    %5 = vector.multi_reduction <maximumf>, %4, %cst_4 [0] : vector<4x16x128xf32> to vector<16x128xf32>
    %c0_5 = arith.constant 0 : index
    %c0_6 = arith.constant 0 : index
    %6 = vector.load %arg3[%c0_5, %c0_6] : memref<1x128xf32, #tpu.memory_space<vmem>>, vector<1x128xf32>
    %7 = vector.broadcast %6 : vector<1x128xf32> to vector<16x128xf32>
    %8 = arith.addf %5, %7 : vector<16x128xf32>
    %cst_7 = arith.constant 0.000000e+00 : f32
    %9 = vector.broadcast %cst_7 : f32 to vector<16x128xf32>
    %10 = arith.cmpf oge, %8, %9 : vector<16x128xf32>
    %cst_8 = arith.constant 0.00999999977 : f32
    %11 = vector.broadcast %cst_8 : f32 to vector<16x128xf32>
    %12 = arith.mulf %11, %8 : vector<16x128xf32>
    %13 = arith.select %10, %8, %12 : vector<16x128xi1>, vector<16x128xf32>
    %14 = arith.truncf %13 : vector<16x128xf32> to vector<16x128xbf16>
    %c0_9 = arith.constant 0 : index
    %c0_10 = arith.constant 0 : index
    %15 = vector.load %arg4[%c0_9, %c0_10] : memref<16x128xbf16, #tpu.memory_space<vmem>>, vector<16x128xbf16>
    tpu.vector_store %arg4[%c0_9, %c0_10], %14 {strides = array<i32>} : memref<16x128xbf16, #tpu.memory_space<vmem>>, vector<16x128xbf16>,
    return
  }
  func.func @transform_0(%arg0: i32) -> (i32, i32, i32) {
    %c0_i32 = arith.constant 0 : i32
    %c0_i32_0 = arith.constant 0 : i32
    %c0_i32_1 = arith.constant 0 : i32
    return %c0_i32, %arg0, %c0_i32_0 : i32, i32, i32
  }
  func.func @transform_1(%arg0: i32) -> (i32, i32) {
    %c0_i32 = arith.constant 0 : i32
    %c0_i32_0 = arith.constant 0 : i32
    %c0_i32_1 = arith.constant 0 : i32
    return %c0_i32, %c0_i32_0 : i32, i32
  }
  func.func @transform_2(%arg0: i32) -> (i32, i32) {
    %c0_i32 = arith.constant 0 : i32
    %c0_i32_0 = arith.constant 0 : i32
    %c0_i32_1 = arith.constant 0 : i32
    return %c0_i32, %c0_i32_0 : i32, i32
  }
  func.func @transform_3(%arg0: i32) -> (i32, i32) {
    %c0_i32 = arith.constant 0 : i32
    %c0_i32_0 = arith.constant 0 : i32
    return %arg0, %c0_i32 : i32, i32
  }
}

module attributes {stable_mosaic.version = 11 : i64} {
  func.func @_fc_fused_kernel(%arg0: i32, %arg1: memref<2x1152xbf16, #tpu.memory_space<vmem>>, %arg2: memref<1152x1024xbf16, #tpu.memory_space<vmem>>, %arg3: memref<1x1024xf32, #tpu.memory_space<vmem>>, %arg4: memref<1024x512xbf16, #tpu.memory_space<vmem>>, %arg5: memref<1x512xf32, #tpu.memory_space<vmem>>, %arg6: memref<512x128xbf16, #tpu.memory_space<vmem>>, %arg7: memref<1x128xf32, #tpu.memory_space<vmem>>, %arg8: memref<2x128xf32, #tpu.memory_space<vmem>>) attributes {dimension_semantics = [#tpu.dimension_semantics<parallel>], iteration_bounds = array<i64: 1>, scalar_prefetch = 0 : i64, scratch_operands = 0 : i64, tpu.core_type = #tpu.core_type<tc>, window_params = [{transform_indices = @transform_0, window_bounds = array<i64: 2, 1152>}, {pipeline_mode = #tpu.pipeline_mode<synchronous>, transform_indices = @transform_1, window_bounds = array<i64: 1152, 1024>}, {pipeline_mode = #tpu.pipeline_mode<synchronous>, transform_indices = @transform_2, window_bounds = array<i64: 1, 1024>}, {pipeline_mode = #tpu.pipeline_mode<synchronous>, transform_indices = @transform_3, window_bounds = array<i64: 1024, 512>}, {pipeline_mode = #tpu.pipeline_mode<synchronous>, transform_indices = @transform_4, window_bounds = array<i64: 1, 512>}, {pipeline_mode = #tpu.pipeline_mode<synchronous>, transform_indices = @transform_5, window_bounds = array<i64: 512, 128>}, {pipeline_mode = #tpu.pipeline_mode<synchronous>, transform_indices = @transform_6, window_bounds = array<i64: 1, 128>}, {transform_indices = @transform_7, window_bounds = array<i64: 2, 128>}]} {
    %c0 = arith.constant 0 : index
    %c0_0 = arith.constant 0 : index
    %0 = vector.load %arg1[%c0, %c0_0] : memref<2x1152xbf16, #tpu.memory_space<vmem>>, vector<2x1152xbf16>
    %c0_1 = arith.constant 0 : index
    %c0_2 = arith.constant 0 : index
    %1 = vector.load %arg2[%c0_1, %c0_2] : memref<1152x1024xbf16, #tpu.memory_space<vmem>>, vector<1152x1024xbf16>
    %cst = arith.constant dense<0.000000e+00> : vector<2x1024xf32>
    %2 = tpu.matmul %0, %1, %cst {dimension_numbers = #tpu.dot_dimension_numbers<[1], [0], [0], [1], [0, 0, 1, 1], [], []>} : vector<2x1152xbf16>, vector<1152x1024xbf16>, vector<2x1024xf32> -> vector<2x1024xf32>
    %c0_3 = arith.constant 0 : index
    %c0_4 = arith.constant 0 : index
    %3 = vector.load %arg3[%c0_3, %c0_4] : memref<1x1024xf32, #tpu.memory_space<vmem>>, vector<1x1024xf32>
    %4 = vector.broadcast %3 : vector<1x1024xf32> to vector<2x1024xf32>
    %5 = arith.addf %2, %4 : vector<2x1024xf32>
    %cst_5 = arith.constant 0.000000e+00 : f32
    %6 = vector.broadcast %cst_5 : f32 to vector<2x1024xf32>
    %7 = arith.cmpf oge, %5, %6 : vector<2x1024xf32>
    %cst_6 = arith.constant 0.00999999977 : f32
    %8 = vector.broadcast %cst_6 : f32 to vector<2x1024xf32>
    %9 = arith.mulf %8, %5 : vector<2x1024xf32>
    %10 = arith.select %7, %5, %9 : vector<2x1024xi1>, vector<2x1024xf32>
    %11 = arith.truncf %10 : vector<2x1024xf32> to vector<2x1024xbf16>
    %c0_7 = arith.constant 0 : index
    %c0_8 = arith.constant 0 : index
    %12 = vector.load %arg4[%c0_7, %c0_8] : memref<1024x512xbf16, #tpu.memory_space<vmem>>, vector<1024x512xbf16>
    %cst_9 = arith.constant dense<0.000000e+00> : vector<2x512xf32>
    %13 = tpu.matmul %11, %12, %cst_9 {dimension_numbers = #tpu.dot_dimension_numbers<[1], [0], [0], [1], [0, 0, 1, 1], [], []>} : vector<2x1024xbf16>, vector<1024x512xbf16>, vector<2x512xf32> -> vector<2x512xf32>
    %c0_10 = arith.constant 0 : index
    %c0_11 = arith.constant 0 : index
    %14 = vector.load %arg5[%c0_10, %c0_11] : memref<1x512xf32, #tpu.memory_space<vmem>>, vector<1x512xf32>
    %15 = vector.broadcast %14 : vector<1x512xf32> to vector<2x512xf32>
    %16 = arith.addf %13, %15 : vector<2x512xf32>
    %cst_12 = arith.constant 0.000000e+00 : f32
    %17 = vector.broadcast %cst_12 : f32 to vector<2x512xf32>
    %18 = arith.cmpf oge, %16, %17 : vector<2x512xf32>
    %cst_13 = arith.constant 0.00999999977 : f32
    %19 = vector.broadcast %cst_13 : f32 to vector<2x512xf32>
    %20 = arith.mulf %19, %16 : vector<2x512xf32>
    %21 = arith.select %18, %16, %20 : vector<2x512xi1>, vector<2x512xf32>
    %22 = arith.truncf %21 : vector<2x512xf32> to vector<2x512xbf16>
    %c0_14 = arith.constant 0 : index
    %c0_15 = arith.constant 0 : index
    %23 = vector.load %arg6[%c0_14, %c0_15] : memref<512x128xbf16, #tpu.memory_space<vmem>>, vector<512x128xbf16>
    %cst_16 = arith.constant dense<0.000000e+00> : vector<2x128xf32>
    %24 = tpu.matmul %22, %23, %cst_16 {dimension_numbers = #tpu.dot_dimension_numbers<[1], [0], [0], [1], [0, 0, 1, 1], [], []>} : vector<2x512xbf16>, vector<512x128xbf16>, vector<2x128xf32> -> vector<2x128xf32>
    %c0_17 = arith.constant 0 : index
    %c0_18 = arith.constant 0 : index
    %25 = vector.load %arg7[%c0_17, %c0_18] : memref<1x128xf32, #tpu.memory_space<vmem>>, vector<1x128xf32>
    %26 = vector.broadcast %25 : vector<1x128xf32> to vector<2x128xf32>
    %27 = arith.addf %24, %26 : vector<2x128xf32>
    %c0_19 = arith.constant 0 : index
    %c0_20 = arith.constant 0 : index
    %28 = vector.load %arg8[%c0_19, %c0_20] : memref<2x128xf32, #tpu.memory_space<vmem>>, vector<2x128xf32>
    tpu.vector_store %arg8[%c0_19, %c0_20], %27 {strides = array<i32>} : memref<2x128xf32, #tpu.memory_space<vmem>>, vector<2x128xf32>,
    return
  }
  func.func @transform_0(%arg0: i32) -> (i32, i32) {
    %c0_i32 = arith.constant 0 : i32
    %c0_i32_0 = arith.constant 0 : i32
    return %arg0, %c0_i32 : i32, i32
  }
  func.func @transform_1(%arg0: i32) -> (i32, i32) {
    %c0_i32 = arith.constant 0 : i32
    %c0_i32_0 = arith.constant 0 : i32
    %c0_i32_1 = arith.constant 0 : i32
    return %c0_i32, %c0_i32_0 : i32, i32
  }
  func.func @transform_2(%arg0: i32) -> (i32, i32) {
    %c0_i32 = arith.constant 0 : i32
    %c0_i32_0 = arith.constant 0 : i32
    %c0_i32_1 = arith.constant 0 : i32
    return %c0_i32, %c0_i32_0 : i32, i32
  }
  func.func @transform_3(%arg0: i32) -> (i32, i32) {
    %c0_i32 = arith.constant 0 : i32
    %c0_i32_0 = arith.constant 0 : i32
    %c0_i32_1 = arith.constant 0 : i32
    return %c0_i32, %c0_i32_0 : i32, i32
  }
  func.func @transform_4(%arg0: i32) -> (i32, i32) {
    %c0_i32 = arith.constant 0 : i32
    %c0_i32_0 = arith.constant 0 : i32
    %c0_i32_1 = arith.constant 0 : i32
    return %c0_i32, %c0_i32_0 : i32, i32
  }
  func.func @transform_5(%arg0: i32) -> (i32, i32) {
    %c0_i32 = arith.constant 0 : i32
    %c0_i32_0 = arith.constant 0 : i32
    %c0_i32_1 = arith.constant 0 : i32
    return %c0_i32, %c0_i32_0 : i32, i32
  }
  func.func @transform_6(%arg0: i32) -> (i32, i32) {
    %c0_i32 = arith.constant 0 : i32
    %c0_i32_0 = arith.constant 0 : i32
    %c0_i32_1 = arith.constant 0 : i32
    return %c0_i32, %c0_i32_0 : i32, i32
  }
  func.func @transform_7(%arg0: i32) -> (i32, i32) {
    %c0_i32 = arith.constant 0 : i32
    %c0_i32_0 = arith.constant 0 : i32
    return %arg0, %c0_i32 : i32, i32
  }
}

</mosaic_0001>

<bundles_post_ra>
// kernel: simple_cnn_forward.4
= control target key start
LH: loop header
LB: loop body
LE: loop exit
PB: predicated region body
PF: predicated region fallthrough
CT: control target
= control target key end

     0   :  { %s3019_s12 = smov 0   ;;  %s3021_s13 = smov 0   ;;  %s3721_s0 = inlined_call_operand.vmem [shape: bf16[4,392,9], index: 0, kind: input, shape index: {}]   ;;  %s3722_s1 = inlined_call_operand.vmem [shape: bf16[9,128], index: 1, kind: input, shape index: {}]   ;;  %s3723_s2 = inlined_call_operand.vmem [shape: f32[1,128], index: 2, kind: input, shape index: {}]   ;;  %s3724_s3 = inlined_call_operand.vmem [shape: bf16[392,128], index: 3, kind: output, shape index: {}]  }
   0x1   :  { %s3023_s14 = smov 0  }
   0x2 LB: > { %s3035_s15 = sadd.s32 4294967295, %s2932_s14   ;;  %s3038_s16 = sadd.s32 1, %s2932_s14   ;;  %s2932_s14 = sphi %s3023_s14, %s3751_s14   ;;  %s2928_s13 = sphi %s3021_s13, %s3750_s13   ;;  %s2924_s12 = sphi %s3019_s12, %s3749_s12  }
   0x3   : > { %s17_s17 = ssub.s32 %s2932_s14, %s3038_s16  ;;  %s20_s18 = sadd.s32 1, %s2928_s13 }
   0x4   : > { %p18_p0 = scmp.eq.s32.totalorder %s17_s17, 0  ;;  %p27_p1 = scmp.ne.s32.totalorder %s2928_s13, %s2924_s12 }
   0x5   : > { %p28_p2 = scmp.eq.s32.totalorder %s2932_s14, 0  ;;  %p99_p3 = scmp.eq.s32.totalorder %s3035_s15, 1 }
   0x6   : > { %s3048_s19 = scalar_select %p18_p0, %s2928_s13, %s20_s18  }
   0x7   : > { %p29_p4 = por %p28_p2, %p27_p1  ;;  %p3050_p5 = por %p99_p3, %p27_p1 }
   0x8   : > { %p2225_p6 = scmp.ge.s32.totalorder %s2932_s14, 2 }
   0xa   : > { %127 = sbr.rel (%p2225_p6) target bundleno = 119 (0x77), region = 24 }
  0x11   : > { %130 = sbr.rel (!%p29_p4) target bundleno = 119 (0x77), region = 28  ;;  %s132_s21 = sand.u32 (%p29_p4), 1, %s2928_s13  }
  0x12   : > { %s135_s22 = smul.u32 (%p29_p4), 25, %s2932_s14 }
  0x13   : > { %s2634_s23 = smul.u32 (%p29_p4), 400, %s132_s21 }
  0x14   : > { %s136_s24 = ssub.s32 (%p29_p4), 49, %s135_s22  ;;  %s2379_s25 = smul.u32 (%p29_p4), 100, %s2932_s14 }
  0x15   : > { %p137_p7 = scmp.lt.s32.totalorder (%p29_p4), %s136_s24, 25  ;;  %s3066_s30 = scalar_lea.vmem (%p29_p4), [#allocation2], %s2634_s23  }
  0x16   : > { %s3061_s28 = scalar_lea.vmem (%p29_p4), %s3721_s0, %s2379_s25  }
  0x18   : > { %s3753_s24 = smov (!%p137_p7, %s136_s24), 25 }
  0x19   : > { %s2226_s29 = sshll.u32 %s3753_s24, 8 }
  0x1a   : > { %p2229_p8 = scmp.eq.s32.totalorder %s2226_s29, 0 }
  0x1b   : > { %s3069_s4 = sshrl.u32 (!%p2229_p8), %s3753_s24, 4 }
  0x1c   : > { %145 = sbr.rel (%p2229_p8) target bundleno = 119 (0x77), region = 32  ;;  %p2230_p9 = scmp.le.s32.totalorder (!%p2229_p8), %s3069_s4, 0 }
  0x23   : > { %2151 = sbr.rel (%p2230_p9) target bundleno = 94 (0x5e), region = 193  ;;  %s3727_s5 = smov (!%p2230_p9), %s3066_s30 }
  0x24   : > { %s3728_s6 = smov (!%p2230_p9), %s3061_s28  ;;  %s3078_s7 = smov (!%p2230_p9), 0  }
  0x25   : > { %s3080_s8 = smov (!%p2230_p9), 0  }
  0x2a LB: >> { %v161_v0 = vld [vmem:[%s2940_s6] sm:$0xf]  ;;  %v163_v1 = vld [vmem:[%s2940_s6 + $0x4] sm:$0xf]  ;;  %v165_v2 = vld [vmem:[%s2940_s6 + $0x8] sm:$0xf]  ;;  %s2948_s8 = sphi %s3080_s8, %s155_s8   ;;  %s2944_s7 = sphi %s3078_s7, %s3729_s7   ;;  %s2940_s6 = sphi %s3728_s6, %s294_s6   ;;  %s2936_s5 = sphi %s3727_s5, %s295_s5  }
  0x2b   : >> { %162 = vst [vmem:[%s2936_s5] sm:$0xf] %v161_v0  ;;  %164 = vst [vmem:[%s2936_s5 + $0x4] sm:$0xf] %v163_v1  ;;  %v167_v3 = vld [vmem:[%s2940_s6 + $0xc] sm:$0xf]  ;;  %s289_s9 = sadd.s32 1, %s2944_s7 }
  0x2c   : >> { %166 = vst [vmem:[%s2936_s5 + $0x8] sm:$0xf] %v165_v2  ;;  %v169_v4 = vld [vmem:[%s2940_s6 + $0x10] sm:$0xf]  ;;  %v171_v5 = vld [vmem:[%s2940_s6 + $0x14] sm:$0xf]  ;;  %p290_p10 = scmp.ge.s32.totalorder %s289_s9, %s3069_s4 }
  0x2d   : >> { %168 = vst [vmem:[%s2936_s5 + $0xc] sm:$0xf] %v167_v3  ;;  %170 = vst [vmem:[%s2936_s5 + $0x10] sm:$0xf] %v169_v4  ;;  %v173_v6 = vld [vmem:[%s2940_s6 + $0x18] sm:$0xf] }
  0x2e   : >> { %172 = vst [vmem:[%s2936_s5 + $0x14] sm:$0xf] %v171_v5  ;;  %v175_v7 = vld [vmem:[%s2940_s6 + $0x1c] sm:$0xf]  ;;  %v177_v8 = vld [vmem:[%s2940_s6 + $0x20] sm:$0xf] }
  0x2f   : >> { %174 = vst [vmem:[%s2936_s5 + $0x18] sm:$0xf] %v173_v6  ;;  %176 = vst [vmem:[%s2936_s5 + $0x1c] sm:$0xf] %v175_v7  ;;  %v179_v9 = vld [vmem:[%s2940_s6 + $0x24] sm:$0xf] }
  0x30   : >> { %178 = vst [vmem:[%s2936_s5 + $0x20] sm:$0xf] %v177_v8  ;;  %v181_v10 = vld [vmem:[%s2940_s6 + $0x28] sm:$0xf]  ;;  %v183_v11 = vld [vmem:[%s2940_s6 + $0x2c] sm:$0xf] }
  0x31   : >> { %180 = vst [vmem:[%s2936_s5 + $0x24] sm:$0xf] %v179_v9  ;;  %182 = vst [vmem:[%s2936_s5 + $0x28] sm:$0xf] %v181_v10  ;;  %v185_v12 = vld [vmem:[%s2940_s6 + $0x30] sm:$0xf] }
  0x32   : >> { %184 = vst [vmem:[%s2936_s5 + $0x2c] sm:$0xf] %v183_v11  ;;  %v187_v13 = vld [vmem:[%s2940_s6 + $0x34] sm:$0xf]  ;;  %v189_v14 = vld [vmem:[%s2940_s6 + $0x38] sm:$0xf] }
  0x33   : >> { %186 = vst [vmem:[%s2936_s5 + $0x30] sm:$0xf] %v185_v12  ;;  %188 = vst [vmem:[%s2936_s5 + $0x34] sm:$0xf] %v187_v13  ;;  %v191_v15 = vld [vmem:[%s2940_s6 + $0x3c] sm:$0xf] }
  0x34   : >> { %190 = vst [vmem:[%s2936_s5 + $0x38] sm:$0xf] %v189_v14  ;;  %v193_v16 = vld [vmem:[%s2940_s6 + $0xc4] sm:$0xf]  ;;  %v195_v17 = vld [vmem:[%s2940_s6 + $0xc8] sm:$0xf] }
  0x35   : >> { %192 = vst [vmem:[%s2936_s5 + $0x3c] sm:$0xf] %v191_v15  ;;  %194 = vst [vmem:[%s2936_s5 + $0x64] sm:$0xf] %v193_v16  ;;  %v197_v18 = vld [vmem:[%s2940_s6 + $0xcc] sm:$0xf] }
  0x36   : >> { %196 = vst [vmem:[%s2936_s5 + $0x68] sm:$0xf] %v195_v17  ;;  %v199_v19 = vld [vmem:[%s2940_s6 + $0xd0] sm:$0xf]  ;;  %v201_v20 = vld [vmem:[%s2940_s6 + $0xd4] sm:$0xf] }
  0x37   : >> { %198 = vst [vmem:[%s2936_s5 + $0x6c] sm:$0xf] %v197_v18  ;;  %200 = vst [vmem:[%s2936_s5 + $0x70] sm:$0xf] %v199_v19  ;;  %v203_v21 = vld [vmem:[%s2940_s6 + $0xd8] sm:$0xf] }
  0x38   : >> { %202 = vst [vmem:[%s2936_s5 + $0x74] sm:$0xf] %v201_v20  ;;  %v205_v22 = vld [vmem:[%s2940_s6 + $0xdc] sm:$0xf]  ;;  %v207_v23 = vld [vmem:[%s2940_s6 + $0xe0] sm:$0xf] }
  0x39   : >> { %204 = vst [vmem:[%s2936_s5 + $0x78] sm:$0xf] %v203_v21  ;;  %206 = vst [vmem:[%s2936_s5 + $0x7c] sm:$0xf] %v205_v22  ;;  %v209_v24 = vld [vmem:[%s2940_s6 + $0xe4] sm:$0xf] }
  0x3a   : >> { %208 = vst [vmem:[%s2936_s5 + $0x80] sm:$0xf] %v207_v23  ;;  %v211_v25 = vld [vmem:[%s2940_s6 + $0xe8] sm:$0xf]  ;;  %v213_v26 = vld [vmem:[%s2940_s6 + $0xec] sm:$0xf] }
  0x3b   : >> { %210 = vst [vmem:[%s2936_s5 + $0x84] sm:$0xf] %v209_v24  ;;  %212 = vst [vmem:[%s2936_s5 + $0x88] sm:$0xf] %v211_v25  ;;  %v215_v27 = vld [vmem:[%s2940_s6 + $0xf0] sm:$0xf] }
  0x3c   : >> { %214 = vst [vmem:[%s2936_s5 + $0x8c] sm:$0xf] %v213_v26  ;;  %v217_v28 = vld [vmem:[%s2940_s6 + $0xf4] sm:$0xf]  ;;  %v219_v29 = vld [vmem:[%s2940_s6 + $0xf8] sm:$0xf] }
  0x3d   : >> { %216 = vst [vmem:[%s2936_s5 + $0x90] sm:$0xf] %v215_v27  ;;  %218 = vst [vmem:[%s2936_s5 + $0x94] sm:$0xf] %v217_v28  ;;  %v221_v30 = vld [vmem:[%s2940_s6 + $0xfc] sm:$0xf] }
  0x3e   : >> { %220 = vst [vmem:[%s2936_s5 + $0x98] sm:$0xf] %v219_v29  ;;  %v223_v31 = vld [vmem:[%s2940_s6 + $0x100] sm:$0xf]  ;;  %v225_v32 = vld [vmem:[%s2940_s6 + $0x188] sm:$0xf] }
  0x3f   : >> { %222 = vst [vmem:[%s2936_s5 + $0x9c] sm:$0xf] %v221_v30  ;;  %224 = vst [vmem:[%s2936_s5 + $0xa0] sm:$0xf] %v223_v31  ;;  %v227_v33 = vld [vmem:[%s2940_s6 + $0x18c] sm:$0xf] }
  0x40   : >> { %226 = vst [vmem:[%s2936_s5 + $0xc8] sm:$0xf] %v225_v32  ;;  %v229_v34 = vld [vmem:[%s2940_s6 + $0x190] sm:$0xf]  ;;  %v231_v35 = vld [vmem:[%s2940_s6 + $0x194] sm:$0xf] }
  0x41   : >> { %228 = vst [vmem:[%s2936_s5 + $0xcc] sm:$0xf] %v227_v33  ;;  %230 = vst [vmem:[%s2936_s5 + $0xd0] sm:$0xf] %v229_v34  ;;  %v233_v36 = vld [vmem:[%s2940_s6 + $0x198] sm:$0xf] }
  0x42   : >> { %232 = vst [vmem:[%s2936_s5 + $0xd4] sm:$0xf] %v231_v35  ;;  %v235_v37 = vld [vmem:[%s2940_s6 + $0x19c] sm:$0xf]  ;;  %v237_v38 = vld [vmem:[%s2940_s6 + $0x1a0] sm:$0xf] }
  0x43   : >> { %234 = vst [vmem:[%s2936_s5 + $0xd8] sm:$0xf] %v233_v36  ;;  %236 = vst [vmem:[%s2936_s5 + $0xdc] sm:$0xf] %v235_v37  ;;  %v239_v39 = vld [vmem:[%s2940_s6 + $0x1a4] sm:$0xf] }
  0x44   : >> { %238 = vst [vmem:[%s2936_s5 + $0xe0] sm:$0xf] %v237_v38  ;;  %v241_v40 = vld [vmem:[%s2940_s6 + $0x1a8] sm:$0xf]  ;;  %v243_v41 = vld [vmem:[%s2940_s6 + $0x1ac] sm:$0xf] }
  0x45   : >> { %240 = vst [vmem:[%s2936_s5 + $0xe4] sm:$0xf] %v239_v39  ;;  %242 = vst [vmem:[%s2936_s5 + $0xe8] sm:$0xf] %v241_v40  ;;  %v245_v42 = vld [vmem:[%s2940_s6 + $0x1b0] sm:$0xf] }
  0x46   : >> { %244 = vst [vmem:[%s2936_s5 + $0xec] sm:$0xf] %v243_v41  ;;  %v247_v43 = vld [vmem:[%s2940_s6 + $0x1b4] sm:$0xf]  ;;  %v249_v44 = vld [vmem:[%s2940_s6 + $0x1b8] sm:$0xf] }
  0x47   : >> { %246 = vst [vmem:[%s2936_s5 + $0xf0] sm:$0xf] %v245_v42  ;;  %248 = vst [vmem:[%s2936_s5 + $0xf4] sm:$0xf] %v247_v43  ;;  %v251_v45 = vld [vmem:[%s2940_s6 + $0x1bc] sm:$0xf] }
  0x48   : >> { %250 = vst [vmem:[%s2936_s5 + $0xf8] sm:$0xf] %v249_v44  ;;  %v253_v46 = vld [vmem:[%s2940_s6 + $0x1c0] sm:$0xf]  ;;  %v255_v47 = vld [vmem:[%s2940_s6 + $0x1c4] sm:$0xf] }
  0x49   : >> { %252 = vst [vmem:[%s2936_s5 + $0xfc] sm:$0xf] %v251_v45  ;;  %254 = vst [vmem:[%s2936_s5 + $0x100] sm:$0xf] %v253_v46  ;;  %v257_v48 = vld [vmem:[%s2940_s6 + $0x24c] sm:$0xf] }
  0x4a   : >> { %256 = vst [vmem:[%s2936_s5 + $0x104] sm:$0xf] %v255_v47  ;;  %v259_v49 = vld [vmem:[%s2940_s6 + $0x250] sm:$0xf]  ;;  %v261_v50 = vld [vmem:[%s2940_s6 + $0x254] sm:$0xf] }
  0x4b   : >> { %258 = vst [vmem:[%s2936_s5 + $0x12c] sm:$0xf] %v257_v48  ;;  %260 = vst [vmem:[%s2936_s5 + $0x130] sm:$0xf] %v259_v49  ;;  %v263_v51 = vld [vmem:[%s2940_s6 + $0x258] sm:$0xf] }
  0x4c   : >> { %262 = vst [vmem:[%s2936_s5 + $0x134] sm:$0xf] %v261_v50  ;;  %v265_v52 = vld [vmem:[%s2940_s6 + $0x25c] sm:$0xf]  ;;  %v267_v53 = vld [vmem:[%s2940_s6 + $0x260] sm:$0xf] }
  0x4d   : >> { %264 = vst [vmem:[%s2936_s5 + $0x138] sm:$0xf] %v263_v51  ;;  %266 = vst [vmem:[%s2936_s5 + $0x13c] sm:$0xf] %v265_v52  ;;  %v269_v54 = vld [vmem:[%s2940_s6 + $0x264] sm:$0xf] }
  0x4e   : >> { %268 = vst [vmem:[%s2936_s5 + $0x140] sm:$0xf] %v267_v53  ;;  %v271_v55 = vld [vmem:[%s2940_s6 + $0x268] sm:$0xf]  ;;  %v273_v56 = vld [vmem:[%s2940_s6 + $0x26c] sm:$0xf] }
  0x4f   : >> { %270 = vst [vmem:[%s2936_s5 + $0x144] sm:$0xf] %v269_v54  ;;  %272 = vst [vmem:[%s2936_s5 + $0x148] sm:$0xf] %v271_v55  ;;  %v275_v57 = vld [vmem:[%s2940_s6 + $0x270] sm:$0xf] }
  0x50   : >> { %274 = vst [vmem:[%s2936_s5 + $0x14c] sm:$0xf] %v273_v56  ;;  %v277_v58 = vld [vmem:[%s2940_s6 + $0x274] sm:$0xf]  ;;  %v279_v59 = vld [vmem:[%s2940_s6 + $0x278] sm:$0xf] }
  0x51   : >> { %276 = vst [vmem:[%s2936_s5 + $0x150] sm:$0xf] %v275_v57  ;;  %278 = vst [vmem:[%s2936_s5 + $0x154] sm:$0xf] %v277_v58  ;;  %v281_v60 = vld [vmem:[%s2940_s6 + $0x27c] sm:$0xf] }
  0x52   : >> { %280 = vst [vmem:[%s2936_s5 + $0x158] sm:$0xf] %v279_v59  ;;  %v283_v61 = vld [vmem:[%s2940_s6 + $0x280] sm:$0xf]  ;;  %v285_v62 = vld [vmem:[%s2940_s6 + $0x284] sm:$0xf] }
  0x53   : >> { %282 = vst [vmem:[%s2936_s5 + $0x15c] sm:$0xf] %v281_v60  ;;  %284 = vst [vmem:[%s2936_s5 + $0x160] sm:$0xf] %v283_v61  ;;  %v287_v63 = vld [vmem:[%s2940_s6 + $0x288] sm:$0xf] }
  0x54   : >> { %286 = vst [vmem:[%s2936_s5 + $0x164] sm:$0xf] %v285_v62  ;;  %288 = vst [vmem:[%s2936_s5 + $0x168] sm:$0xf] %v287_v63  ;;  %s3755_s9 = smov (%p290_p10, %s289_s9), 0  ;;  %s155_s8 = sadd.s32 1, %s2948_s8  }
  0x55   : >> { %s2231_s10 = sshll.u32 %s3755_s9, 6  ;;  %p154_p11 = scmp.ge.s32.totalorder %s155_s8, %s3069_s4 }
  0x56   : >> { %s294_s6 = scalar_lea.vmem %s3061_s28, %s2231_s10   ;;  %s295_s5 = scalar_lea.vmem %s3066_s30, %s2231_s10 [#allocation2]  }
  0x57   : >> { %s3729_s7 = smov %s3755_s9  ;;  %157 = sbr.rel (!%p154_p11) target bundleno = 42 (0x2a), region = 199 }
  0x5e PF: > { %s3237_s11 = sand.u32 15, %s3753_s24   ;;  %s2380_s17 = sshll.u32 %s3069_s4, 6 }
  0x5f   : > { %s3241_s18 = scalar_lea.vmem %s3061_s28, %s2380_s17   ;;  %s3244_s21 = scalar_lea.vmem %s3066_s30, %s2380_s17 [#allocation2]  }
  0x60   : > { %p2236_p12 = scmp.le.s32.totalorder %s3237_s11, 0 }
  0x61   : > { %s3730_s22 = smov (!%p2236_p12), %s3244_s21  ;;  %s3731_s23 = smov (!%p2236_p12), %s3241_s18 }
  0x62   : > { %2165 = sbr.rel (%p2236_p12) target bundleno = 119 (0x77), region = 204  ;;  %s2958_s25 = smov (!%p2236_p12), 0  }
  0x63   : > { %s2962_s26 = smov (!%p2236_p12), 0  }
  0x69 LB: >> { %v312_v0 = vld [vmem:[%s2956_s23] sm:$0xf]  ;;  %v314_v1 = vld [vmem:[%s2956_s23 + $0xc4] sm:$0xf]  ;;  %v316_v2 = vld [vmem:[%s2956_s23 + $0x188] sm:$0xf]  ;;  %s2964_s26 = sphi %s2962_s26, %s306_s26   ;;  %s2960_s25 = sphi %s2958_s25, %s2959_s25   ;;  %s2956_s23 = sphi %s3731_s23, %s325_s23   ;;  %s2952_s22 = sphi %s3730_s22, %s326_s22  }
  0x6a   : >> { %313 = vst [vmem:[%s2952_s22] sm:$0xf] %v312_v0  ;;  %315 = vst [vmem:[%s2952_s22 + $0x64] sm:$0xf] %v314_v1  ;;  %v318_v3 = vld [vmem:[%s2956_s23 + $0x24c] sm:$0xf]  ;;  %s320_s24 = sadd.s32 1, %s2960_s25 }
  0x6b   : >> { %317 = vst [vmem:[%s2952_s22 + $0xc8] sm:$0xf] %v316_v2  ;;  %319 = vst [vmem:[%s2952_s22 + $0x12c] sm:$0xf] %v318_v3  ;;  %p321_p13 = scmp.ge.s32.totalorder %s320_s24, %s3237_s11  ;;  %s306_s26 = sadd.s32 1, %s2964_s26  }
  0x6c   : >> { %p305_p0 = scmp.ge.s32.totalorder %s306_s26, %s3237_s11 }
  0x6d   : >> { %s3757_s24 = smov (%p321_p13, %s320_s24), 0 }
  0x6e   : >> { %s2237_s27 = sshll.u32 %s3757_s24, 2  ;;  %s2959_s25 = smov %s3757_s24  }
  0x6f   : >> { %s325_s23 = scalar_lea.vmem %s3241_s18, %s2237_s27   ;;  %s326_s22 = scalar_lea.vmem %s3244_s21, %s2237_s27 [#allocation2]  }
  0x70   : > { %308 = sbr.rel (!%p305_p0) target bundleno = 105 (0x69), region = 210 }
  0x77 PF: > { %p2239_p1 = scmp.ge.s32.totalorder %s2932_s14, 1  ;;  %p549_p2 = scmp.lt.s32.totalorder %s2932_s14, 3 }
  0x79   : > { %p550_p3 = pnand %p2239_p1, %p549_p2 }
  0x7b   : > { %553 = sbr.rel (%p550_p3) target bundleno = 544 (0x220), region = 90 }
  0x82   : > { %v2791_v4 = vld [vmem:[%s3722_s1] sm:$0x1f]   ;;  %vm1097_vm0 = vcmask 1043456   ;;  %vm1098_vm1 = vcmask 1044480   ;;  %s556_s30 = sand.u32 1, %s2924_s12   ;;  %v2998_v5 = vmov 65535  }
  0x83   : > { %v1099_v6 = vsel %vm1097_vm0, 4294967295, %v2998_v5  ;;  %s2635_s4 = smul.u32 400, %s556_s30  ;;  %vm946_vm2 = vcmask 72704  }
  0x84   : > { %v1100_v7 = vsel %vm1098_vm1, %v1099_v6, 0  ;;  %s3493_s7 = smul.u32 100, %s556_s30 }
  0x85   : > { %v1102_v8 = vand.u32 %v2791_v4, %v1100_v7  ;;  %s3271_s5 = scalar_lea.vmem [#allocation2], %s2635_s4  ;;  %s1852_s8 = smul.u32 (%p3050_p5), 25, %s3035_s15 }
  0x86   : > { %v2792_v9 = vld [vmem:[%s3271_s5] sm:$0xff]   ;;  %v2793_v10 = vld [vmem:[%s3271_s5 + $0x8] sm:$0xff]   ;;  %v2794_v11 = vld [vmem:[%s3271_s5 + $0xd0] sm:$0xff]   ;;  %s3510_s12 = scalar_lea.vmem [#allocation3], %s3493_s7   ;;  %s2407_s9 = smul.u32 (%p3050_p5), 100, %s3035_s15 }
  0x87   : > { %2530 = vmatprep.subr.bf16.mxu0 %v1102_v8  ;;  %2632 = vmatprep.subr.bf16.mxu1 %v1102_v8  ;;  %v2795_v12 = vld [vmem:[%s3271_s5 + $0xd8] sm:$0xff]   ;;  %v2796_v13 = vld [vmem:[%s3271_s5 + $0x10] sm:$0xff]   ;;  %v2798_v14 = vld [vmem:[%s3271_s5 + $0xe0] sm:$0xff]   ;;  %s1853_s10 = ssub.s32 (%p3050_p5), 49, %s1852_s8 }
  0x88   : > { %2531 = vmatpush3.bf16.msra.mxu0 %v1102_v8  ;;  %2532 = vmatprep.mubr.msk.bf16.mxu0 %vm946_vm2, %v2792_v9  ;;  %v2797_v15 = vld [vmem:[%s3271_s5 + $0x18] sm:$0xff]   ;;  %v2799_v16 = vld [vmem:[%s3271_s5 + $0xe8] sm:$0xff]   ;;  %v2800_v17 = vld [vmem:[%s3271_s5 + $0x20] sm:$0xff]   ;;  %p1854_p4 = scmp.lt.s32.totalorder (%p3050_p5), %s1853_s10, 25  ;;  %s3612_s18 = scalar_lea.vmem (%p3050_p5), %s3724_s3, %s2407_s9  }
  0x89   : > { %2633 = vmatpush3.bf16.msra.mxu1 %v1102_v8  ;;  %2584 = vmatprep.mubr.msk.bf16.mxu1 %vm946_vm2, %v2794_v11  ;;  %v2802_v18 = vld [vmem:[%s3271_s5 + $0xf0] sm:$0xff]   ;;  %v2801_v19 = vld [vmem:[%s3271_s5 + $0x28] sm:$0xff]   ;;  %v2803_v20 = vld [vmem:[%s3271_s5 + $0xf8] sm:$0xff]  }
  0x8a   : > { %v2804_v21 = vld [vmem:[%s3271_s5 + $0x30] sm:$0xff]   ;;  %v2806_v22 = vld [vmem:[%s3271_s5 + $0x100] sm:$0xff]   ;;  %v2805_v23 = vld [vmem:[%s3271_s5 + $0x38] sm:$0xff]  }
  0x8b   : > { %2533 = vmatmul.mubr.msk.bf16.vlgmr.msra.gmra.mrb[0].mxu0 %vm946_vm2, %v2793_v10  ;;  %v2807_v24 = vld [vmem:[%s3271_s5 + $0x108] sm:$0xff]   ;;  %v2808_v25 = vld [vmem:[%s3271_s5 + $0x40] sm:$0xff]   ;;  %v2810_v26 = vld [vmem:[%s3271_s5 + $0x110] sm:$0xff]  }
  0x8c   : > { %2585 = vmatmul.mubr.msk.bf16.vlgmr.msra.gmra.mrb[0].mxu1 %vm946_vm2, %v2795_v12  ;;  %2536 = vmatprep.mubr.msk.bf16.mxu0 %vm946_vm2, %v2796_v13  ;;  %v2809_v27 = vld [vmem:[%s3271_s5 + $0x48] sm:$0xff]   ;;  %v2811_v28 = vld [vmem:[%s3271_s5 + $0x118] sm:$0xff]   ;;  %v2812_v29 = vld [vmem:[%s3271_s5 + $0x50] sm:$0xff]  }
  0x8d   : > { %2588 = vmatprep.mubr.msk.bf16.mxu1 %vm946_vm2, %v2798_v14  ;;  %v2814_v30 = vld [vmem:[%s3271_s5 + $0x120] sm:$0xff]   ;;  %v2813_v31 = vld [vmem:[%s3271_s5 + $0x58] sm:$0xff]   ;;  %v2815_v32 = vld [vmem:[%s3271_s5 + $0x128] sm:$0xff]  }
  0x8e   : > { %v2816_v33 = vld [vmem:[%s3271_s5 + $0x60] sm:$0xff]   ;;  %v2818_v34 = vld [vmem:[%s3271_s5 + $0x130] sm:$0xff]   ;;  %v2817_v35 = vld [vmem:[%s3271_s5 + $0x68] sm:$0xff]  }
  0x8f   : > { %v2819_v36 = vld [vmem:[%s3271_s5 + $0x138] sm:$0xff]   ;;  %v2820_v37 = vld [vmem:[%s3271_s5 + $0x70] sm:$0xff]   ;;  %v2822_v38 = vld [vmem:[%s3271_s5 + $0x140] sm:$0xff]  }
  0x90   : > { %v2821_v39 = vld [vmem:[%s3271_s5 + $0x78] sm:$0xff]   ;;  %v2823_v40 = vld [vmem:[%s3271_s5 + $0x148] sm:$0xff]   ;;  %v2824_v41 = vld [vmem:[%s3271_s5 + $0x80] sm:$0xff]  }
  0x91   : > { %v2826_v42 = vld [vmem:[%s3271_s5 + $0x150] sm:$0xff]   ;;  %v2825_v43 = vld [vmem:[%s3271_s5 + $0x88] sm:$0xff]   ;;  %v2827_v44 = vld [vmem:[%s3271_s5 + $0x158] sm:$0xff]  }
  0x92   : > { %v2828_v45 = vld [vmem:[%s3271_s5 + $0x90] sm:$0xff]   ;;  %v2830_v46 = vld [vmem:[%s3271_s5 + $0x160] sm:$0xff]   ;;  %v2829_v47 = vld [vmem:[%s3271_s5 + $0x98] sm:$0xff]  }
  0x93   : > { %2537 = vmatmul.mubr.msk.bf16.gmra.mrb[4].mxu0 %vm946_vm2, %v2797_v15  ;;  %v2831_v48 = vld [vmem:[%s3271_s5 + $0x168] sm:$0xff]   ;;  %v2832_v49 = vld [vmem:[%s3271_s5 + $0xa0] sm:$0xff]   ;;  %v2834_v50 = vld [vmem:[%s3271_s5 + $0x170] sm:$0xff]  }
  0x94   : > { %2589 = vmatmul.mubr.msk.bf16.gmra.mrb[4].mxu1 %vm946_vm2, %v2799_v16  ;;  %2540 = vmatprep.mubr.msk.bf16.mxu0 %vm946_vm2, %v2800_v17  ;;  %v2833_v51 = vld [vmem:[%s3271_s5 + $0xa8] sm:$0xff]   ;;  %v2835_v52 = vld [vmem:[%s3271_s5 + $0x178] sm:$0xff]   ;;  %v2836_v53 = vld [vmem:[%s3271_s5 + $0xb0] sm:$0xff]  }
  0x95   : > { %2592 = vmatprep.mubr.msk.bf16.mxu1 %vm946_vm2, %v2802_v18  ;;  %v2838_v54 = vld [vmem:[%s3271_s5 + $0x180] sm:$0xff]   ;;  %v2837_v55 = vld [vmem:[%s3271_s5 + $0xb8] sm:$0xff]   ;;  %v2839_v56 = vld [vmem:[%s3271_s5 + $0x188] sm:$0xff]  }
  0x96   : > { %v2840_v57 = vld [vmem:[%s3271_s5 + $0xc0] sm:$0xff]   ;;  %v2841_v58 = vld [vmem:[%s3271_s5 + $0xc8] sm:$0xff]  }
  0x9b   : > { %2541 = vmatmul.mubr.msk.bf16.gmra.mrb[8].mxu0 %vm946_vm2, %v2801_v19 }
  0x9c   : > { %2593 = vmatmul.mubr.msk.bf16.gmra.mrb[8].mxu1 %vm946_vm2, %v2803_v20  ;;  %2544 = vmatprep.mubr.msk.bf16.mxu0 %vm946_vm2, %v2804_v21 }
  0x9d   : > { %2596 = vmatprep.mubr.msk.bf16.mxu1 %vm946_vm2, %v2806_v22 }
  0xa3   : > { %2545 = vmatmul.mubr.msk.bf16.gmra.mrb[12].mxu0 %vm946_vm2, %v2805_v23 }
  0xa4   : > { %2597 = vmatmul.mubr.msk.bf16.gmra.mrb[12].mxu1 %vm946_vm2, %v2807_v24  ;;  %2548 = vmatprep.mubr.msk.bf16.mxu0 %vm946_vm2, %v2808_v25 }
  0xa5   : > { %2600 = vmatprep.mubr.msk.bf16.mxu1 %vm946_vm2, %v2810_v26 }
  0xab   : > { %2549 = vmatmul.mubr.msk.bf16.gmra.mrb[16].mxu0 %vm946_vm2, %v2809_v27 }
  0xac   : > { %2601 = vmatmul.mubr.msk.bf16.gmra.mrb[16].mxu1 %vm946_vm2, %v2811_v28  ;;  %2552 = vmatprep.mubr.msk.bf16.mxu0 %vm946_vm2, %v2812_v29 }
  0xad   : > { %2604 = vmatprep.mubr.msk.bf16.mxu1 %vm946_vm2, %v2814_v30 }
  0xb3   : > { %2553 = vmatmul.mubr.msk.bf16.gmra.mrb[20].mxu0 %vm946_vm2, %v2813_v31 }
  0xb4   : > { %2605 = vmatmul.mubr.msk.bf16.gmra.mrb[20].mxu1 %vm946_vm2, %v2815_v32  ;;  %2556 = vmatprep.mubr.msk.bf16.mxu0 %vm946_vm2, %v2816_v33 }
  0xb5   : > { %2608 = vmatprep.mubr.msk.bf16.mxu1 %vm946_vm2, %v2818_v34 }
  0xbb   : > { %2557 = vmatmul.mubr.msk.bf16.gmra.mrb[24].mxu0 %vm946_vm2, %v2817_v35 }
  0xbc   : > { %2609 = vmatmul.mubr.msk.bf16.gmra.mrb[24].mxu1 %vm946_vm2, %v2819_v36  ;;  %2560 = vmatprep.mubr.msk.bf16.mxu0 %vm946_vm2, %v2820_v37 }
  0xbd   : > { %2612 = vmatprep.mubr.msk.bf16.mxu1 %vm946_vm2, %v2822_v38 }
  0xc3   : > { %2561 = vmatmul.mubr.msk.bf16.gmra.mrb[28].mxu0 %vm946_vm2, %v2821_v39 }
  0xc4   : > { %2613 = vmatmul.mubr.msk.bf16.gmra.mrb[28].mxu1 %vm946_vm2, %v2823_v40  ;;  %2564 = vmatprep.mubr.msk.bf16.mxu0 %vm946_vm2, %v2824_v41 }
  0xc5   : > { %2616 = vmatprep.mubr.msk.bf16.mxu1 %vm946_vm2, %v2826_v42 }
  0xcb   : > { %2565 = vmatmul.mubr.msk.bf16.gmra.mrb[32].mxu0 %vm946_vm2, %v2825_v43 }
  0xcc   : > { %2617 = vmatmul.mubr.msk.bf16.gmra.mrb[32].mxu1 %vm946_vm2, %v2827_v44  ;;  %2568 = vmatprep.mubr.msk.bf16.mxu0 %vm946_vm2, %v2828_v45 }
  0xcd   : > { %2620 = vmatprep.mubr.msk.bf16.mxu1 %vm946_vm2, %v2830_v46 }
  0xd3   : > { %2569 = vmatmul.mubr.msk.bf16.gmra.mrb[36].mxu0 %vm946_vm2, %v2829_v47 }
  0xd4   : > { %2621 = vmatmul.mubr.msk.bf16.gmra.mrb[36].mxu1 %vm946_vm2, %v2831_v48  ;;  %2572 = vmatprep.mubr.msk.bf16.mxu0 %vm946_vm2, %v2832_v49 }
  0xd5   : > { %2624 = vmatprep.mubr.msk.bf16.mxu1 %vm946_vm2, %v2834_v50 }
  0xdb   : > { %2573 = vmatmul.mubr.msk.bf16.gmra.mrb[40].mxu0 %vm946_vm2, %v2833_v51 }
  0xdc   : > { %2625 = vmatmul.mubr.msk.bf16.gmra.mrb[40].mxu1 %vm946_vm2, %v2835_v52  ;;  %2576 = vmatprep.mubr.msk.bf16.mxu0 %vm946_vm2, %v2836_v53 }
  0xdd   : > { %2628 = vmatprep.mubr.msk.bf16.mxu1 %vm946_vm2, %v2838_v54 }
  0xe3   : > { %2577 = vmatmul.mubr.msk.bf16.gmra.mrb[44].mxu0 %vm946_vm2, %v2837_v55 }
  0xe4   : > { %2629 = vmatmul.mubr.msk.bf16.gmra.mrb[44].mxu1 %vm946_vm2, %v2839_v56  ;;  %2580 = vmatprep.mubr.msk.bf16.mxu0 %vm946_vm2, %v2840_v57  ;;  %v3478_v56 = vld [vmem:[%s3723_s2] ss:$0 sm:$0xff] }
  0xeb   : > { %2581 = vmatmul.mubr.msk.bf16.gmra.mrb[48].mxu0 %vm946_vm2, %v2841_v58 }
 0x15e   : > { %v2534_v59 = vpop.f32.mrb[0].mxu0 }
 0x15f   : > { %v3373_v60 = vpop.f32.mrb[1].mxu0  ;;  %v3375_v61 = vpop.f32.mrb[0].mxu1 }
 0x160   : > { %v3377_v62 = vpop.f32.mrb[2].mxu0  ;;  %v1346_v63 = vpop.f32.mrb[1].mxu1 }
 0x161   : > { %v3379_v0 = vpop.f32.mrb[3].mxu0  ;;  %v3381_v1 = vpop.f32.mrb[2].mxu1 }
 0x162   : > { %v3383_v2 = vpop.f32.mrb[3].mxu1 }
 0x166   : > { %v3385_v3 = vpop.f32.mrb[4].mxu0 }
 0x167   : > { %v3387_v4 = vpop.f32.mrb[5].mxu0  ;;  %v3389_v5 = vpop.f32.mrb[4].mxu1 }
 0x168   : > { %v3391_v6 = vpop.f32.mrb[6].mxu0  ;;  %v3393_v7 = vpop.f32.mrb[5].mxu1 }
 0x169   : > { %v1157_v8 = vpop.f32.mrb[7].mxu0  ;;  %v3395_v9 = vpop.f32.mrb[6].mxu1 }
 0x16a   : > { %v3397_v10 = vpop.f32.mrb[7].mxu1 }
 0x16e   : > { %v3399_v11 = vpop.f32.mrb[8].mxu0 }
 0x16f   : > { %v3401_v12 = vpop.f32.mrb[9].mxu0  ;;  %v3403_v13 = vpop.f32.mrb[8].mxu1 }
 0x170   : > { %v3405_v14 = vpop.f32.mrb[10].mxu0  ;;  %v3407_v15 = vpop.f32.mrb[9].mxu1 }
 0x171   : > { %v3409_v16 = vpop.f32.mrb[11].mxu0  ;;  %v3411_v17 = vpop.f32.mrb[10].mxu1 }
 0x172   : > { %v3413_v18 = vpop.f32.mrb[11].mxu1 }
 0x176   : > { %v3415_v19 = vpop.f32.mrb[12].mxu0 }
 0x177   : > { %v3417_v20 = vpop.f32.mrb[13].mxu0  ;;  %v3419_v21 = vpop.f32.mrb[12].mxu1 }
 0x178   : > { %v3421_v22 = vpop.f32.mrb[14].mxu0  ;;  %v3423_v23 = vpop.f32.mrb[13].mxu1 }
 0x179   : > { %v3425_v24 = vpop.f32.mrb[15].mxu0  ;;  %v3427_v25 = vpop.f32.mrb[14].mxu1 }
 0x17a   : > { %v3429_v26 = vpop.f32.mrb[15].mxu1 }
 0x17e   : > { %v3431_v27 = vpop.f32.mrb[16].mxu0 }
 0x17f   : > { %v3433_v28 = vpop.f32.mrb[17].mxu0  ;;  %v3435_v29 = vpop.f32.mrb[16].mxu1 }
 0x180   : > { %v3437_v30 = vpop.f32.mrb[18].mxu0  ;;  %v3439_v31 = vpop.f32.mrb[17].mxu1 }
 0x181   : > { %v3441_v32 = vpop.f32.mrb[19].mxu0  ;;  %v3443_v33 = vpop.f32.mrb[18].mxu1 }
 0x182   : > { %v3445_v34 = vpop.f32.mrb[19].mxu1 }
 0x186   : > { %v3447_v35 = vpop.f32.mrb[20].mxu0 }
 0x187   : > { %v3449_v36 = vpop.f32.mrb[21].mxu0  ;;  %v3451_v37 = vpop.f32.mrb[20].mxu1 }
 0x188   : > { %3732 = vst [vmem:[#allocation4_spill] sm:$0xff] %v3451_v37  ;;  %v3453_v38 = vpop.f32.mrb[22].mxu0  ;;  %v3455_v39 = vpop.f32.mrb[21].mxu1 }
 0x189   : > { %v3457_v40 = vpop.f32.mrb[23].mxu0  ;;  %v3459_v41 = vpop.f32.mrb[22].mxu1 }
 0x18a   : > { %3733 = vst [vmem:[#allocation5_spill] sm:$0xff] %v3459_v41  ;;  %v3461_v42 = vpop.f32.mrb[23].mxu1 }
 0x18b   : > { %3734 = vst [vmem:[#allocation6_spill] sm:$0xff] %v3461_v42 }
 0x18e   : > { %v3463_v43 = vpop.f32.mrb[24].mxu0 }
 0x18f   : > { %3735 = vst [vmem:[#allocation7_spill] sm:$0xff] %v3463_v43  ;;  %v3467_v45 = vpop.f32.mrb[25].mxu0  ;;  %v2610_v46 = vpop.f32.mrb[24].mxu1 }
 0x190   : > { %3736 = vst [vmem:[#allocation8_spill] sm:$0xff] %v3467_v45  ;;  %v2559_v47 = vpop.f32.mrb[26].mxu0  ;;  %v3469_v48 = vpop.f32.mrb[25].mxu1 }
 0x191   : > { %3737 = vst [vmem:[#allocation9_spill] sm:$0xff] %v3469_v48  ;;  %v1543_v49 = vmax.f32 %v2534_v59, %v2559_v47  ;;  %v3471_v50 = vpop.f32.mrb[27].mxu0  ;;  %v2611_v51 = vpop.f32.mrb[26].mxu1 }
 0x192   : > { %v1445_v53 = vpop.f32.mrb[27].mxu1 }
 0x193   : > { %v1544_v54 = vmax.f32 %v1543_v49, %v1346_v63 }
 0x195   : > { %v1545_v55 = vmax.f32 %v1544_v54, %v1445_v53 }
 0x196   : > { %v2562_v57 = vpop.f32.mrb[28].mxu0 }
 0x197   : > { %v1552_v58 = vmax.f32 %v1157_v8, %v2562_v57  ;;  %v1250_v44 = vpop.f32.mrb[29].mxu0  ;;  %v2614_v37 = vpop.f32.mrb[28].mxu1  ;;  %v1621_v48 = vadd.f32 %v3478_v56, %v1545_v55 }
 0x198   : > { %v1546_v59 = vmax.f32 %v3377_v62, %v1250_v44  ;;  %v2563_v47 = vpop.f32.mrb[30].mxu0  ;;  %v1458_v45 = vpop.f32.mrb[29].mxu1 }
 0x199   : > { %v1555_v52 = vmax.f32 %v3385_v3, %v2563_v47  ;;  %v1253_v63 = vpop.f32.mrb[31].mxu0  ;;  %v1553_v49 = vmax.f32 %v1552_v58, %v3381_v1  ;;  %v3484_v53 = vpop.f32.mrb[30].mxu1  ;;  %v1671_v55 = vmul.f32 0.01, %v1621_v48  ;;  %vm1646_vm3 = vcmp.ge.f32.partialorder %v1621_v48, 0.0 }
 0x19a   : > { %v1547_v54 = vmax.f32 %v1546_v59, %v3383_v2  ;;  %v1549_v8 = vmax.f32 %v3387_v4, %v1253_v63  ;;  %v1461_v57 = vpop.f32.mrb[31].mxu1 }
 0x19b   : > { %v1554_v42 = vmax.f32 %v1553_v49, %v1458_v45  ;;  %v1556_v62 = vmax.f32 %v1555_v52, %v3393_v7  ;;  %v1696_v63 = vsel %vm1646_vm3, %v1621_v48, %v1671_v55 }
 0x19c   : > { %v1548_v44 = vmax.f32 %v1547_v54, %v2610_v46  ;;  %v1550_v41 = vmax.f32 %v1549_v8, %v3375_v61 }
 0x19d   : > { %v1624_v43 = vadd.f32 %v3478_v56, %v1554_v42  ;;  %v1557_v3 = vmax.f32 %v1556_v62, %v1461_v57 }
 0x19e   : > { %v1622_v1 = vadd.f32 %v3478_v56, %v1548_v44  ;;  %v1551_v2 = vmax.f32 %v1550_v41, %v2611_v51  ;;  %v2566_v58 = vpop.f32.mrb[32].mxu0 }
 0x19f   : > { %v1674_v4 = vmul.f32 0.01, %v1624_v43  ;;  %v1564_v45 = vmax.f32 %v3409_v16, %v2566_v58  ;;  %v1266_v59 = vpop.f32.mrb[33].mxu0  ;;  %v3497_v7 = vpop.f32.mrb[32].mxu1  ;;  %vm1649_vm5 = vcmp.ge.f32.partialorder %v1624_v43, 0.0  ;;  %v1625_v49 = vadd.f32 %v3478_v56, %v1557_v3 }
 0x1a0   : > { %vm1647_vm4 = vcmp.ge.f32.partialorder %v1622_v1, 0.0  ;;  %v1672_v61 = vmul.f32 0.01, %v1622_v1  ;;  %v1623_v46 = vadd.f32 %v3478_v56, %v1551_v2  ;;  %v1558_v42 = vmax.f32 %v3391_v6, %v1266_v59  ;;  %v2567_v52 = vpop.f32.mrb[34].mxu0  ;;  %v1474_v47 = vpop.f32.mrb[33].mxu1 }
 0x1a1   : > { %v1567_v41 = vmax.f32 %v3399_v11, %v2567_v52  ;;  %v1269_v51 = vpop.f32.mrb[35].mxu0  ;;  %v3503_v16 = vpop.f32.mrb[34].mxu1  ;;  %v1565_v48 = vmax.f32 %v1564_v45, %v3395_v9  ;;  %v1699_v2 = vsel %vm1649_vm5, %v1624_v43, %v1674_v4  ;;  %v1675_v59 = vmul.f32 0.01, %v1625_v49 }
 0x1a2   : > { %v1697_v54 = vsel %vm1647_vm4, %v1622_v1, %v1672_v61  ;;  %vm1648_vm6 = vcmp.ge.f32.partialorder %v1623_v46, 0.0  ;;  %v1673_v8 = vmul.f32 0.01, %v1623_v46  ;;  %v1559_v57 = vmax.f32 %v1558_v42, %v3397_v10  ;;  %v1477_v62 = vpop.f32.mrb[35].mxu1 }
 0x1a3   : > { %v2416_v44 = vpack.c.bf16 %v1697_v54, %v1696_v63  ;;  %v1561_v6 = vmax.f32 %v3401_v12, %v1269_v51  ;;  %v1568_v58 = vmax.f32 %v1567_v41, %v3407_v15  ;;  %v1566_v10 = vmax.f32 %v1565_v48, %v1474_v47 }
 0x1a4   : > { %v1698_v55 = vsel %vm1648_vm6, %v1623_v46, %v1673_v8  ;;  %v1560_v3 = vmax.f32 %v1559_v57, %v2614_v37  ;;  %vm1650_vm7 = vcmp.ge.f32.partialorder %v1625_v49, 0.0 }
 0x1a5   : > { %2468 = vst [vmem:[%s3510_s12 + $0x8] sm:$0xff] %v2416_v44   ;;  %v2421_v11 = vpack.c.bf16 %v1699_v2, %v1698_v55  ;;  %v1562_v1 = vmax.f32 %v1561_v6, %v3389_v5  ;;  %v1569_v12 = vmax.f32 %v1568_v58, %v1477_v62  ;;  %v1628_v15 = vadd.f32 %v3478_v56, %v1566_v10 }
 0x1a6   : > { %v1626_v61 = vadd.f32 %v3478_v56, %v1560_v3  ;;  %v2570_v42 = vpop.f32.mrb[36].mxu0 }
 0x1a7   : > { %2469 = vst [vmem:[%s3510_s12 + $0x10] sm:$0xff] %v2421_v11   ;;  %v1563_v9 = vmax.f32 %v1562_v1, %v3484_v53  ;;  %v1576_v37 = vmax.f32 %v3425_v24, %v2570_v42  ;;  %v1282_v43 = vpop.f32.mrb[37].mxu0  ;;  %v3519_v4 = vpop.f32.mrb[36].mxu1  ;;  %v1678_v63 = vmul.f32 0.01, %v1628_v15  ;;  %v1629_v41 = vadd.f32 %v3478_v56, %v1569_v12 }
 0x1a8   : > { %vm1651_vm8 = vcmp.ge.f32.partialorder %v1626_v61, 0.0  ;;  %v1676_v45 = vmul.f32 0.01, %v1626_v61  ;;  %v1570_v5 = vmax.f32 %v3405_v14, %v1282_v43  ;;  %v2571_v46 = vpop.f32.mrb[38].mxu0  ;;  %v1490_v52 = vpop.f32.mrb[37].mxu1  ;;  %v1700_v24 = vsel %vm1650_vm7, %v1625_v49, %v1675_v59 }
 0x1a9   : > { %v1627_v47 = vadd.f32 %v3478_v56, %v1563_v9  ;;  %v1579_v53 = vmax.f32 %v3415_v19, %v2571_v46  ;;  %v1285_v51 = vpop.f32.mrb[39].mxu0  ;;  %v3525_v54 = vpop.f32.mrb[38].mxu1  ;;  %vm1653_vm9 = vcmp.ge.f32.partialorder %v1628_v15, 0.0  ;;  %v1577_v55 = vmax.f32 %v1576_v37, %v3411_v17 }
 0x1aa   : > { %v1701_v8 = vsel %vm1651_vm8, %v1626_v61, %v1676_v45  ;;  %v1571_v57 = vmax.f32 %v1570_v5, %v3413_v18  ;;  %v1493_v14 = vpop.f32.mrb[39].mxu1  ;;  %v1573_v48 = vmax.f32 %v3417_v20, %v1285_v51  ;;  %v1703_v2 = vsel %vm1653_vm9, %v1628_v15, %v1678_v63 }
 0x1ab   : > { %v2426_v62 = vpack.c.bf16 %v1701_v8, %v1700_v24  ;;  %vm1652_vm10 = vcmp.ge.f32.partialorder %v1627_v47, 0.0  ;;  %v1677_v44 = vmul.f32 0.01, %v1627_v47  ;;  %v1679_v3 = vmul.f32 0.01, %v1629_v41 }
 0x1ac   : > { %v1572_v6 = vmax.f32 %v1571_v57, %v3497_v7  ;;  %v1580_v49 = vmax.f32 %v1579_v53, %v3423_v23  ;;  %v1574_v11 = vmax.f32 %v1573_v48, %v3403_v13  ;;  %v1578_v1 = vmax.f32 %v1577_v55, %v1490_v52 }
 0x1ad   : > { %2470 = vst [vmem:[%s3510_s12 + $0x18] sm:$0xff] %v2426_v62   ;;  %v1702_v19 = vsel %vm1652_vm10, %v1627_v47, %v1677_v44  ;;  %vm1654_vm11 = vcmp.ge.f32.partialorder %v1629_v41, 0.0 }
 0x1ae   : > { %v2431_v58 = vpack.c.bf16 %v1703_v2, %v1702_v19  ;;  %v1630_v18 = vadd.f32 %v3478_v56, %v1572_v6  ;;  %v2574_v10 = vpop.f32.mrb[40].mxu0  ;;  %v1581_v7 = vmax.f32 %v1580_v49, %v1493_v14  ;;  %v1575_v12 = vmax.f32 %v1574_v11, %v3503_v16 }
 0x1af   : > { %v1588_v20 = vmax.f32 %v3441_v32, %v2574_v10  ;;  %v1298_v59 = vpop.f32.mrb[41].mxu0  ;;  %v3537_v17 = vpop.f32.mrb[40].mxu1  ;;  %v1632_v23 = vadd.f32 %v3478_v56, %v1578_v1  ;;  %v1704_v5 = vsel %vm1654_vm11, %v1629_v41, %v1679_v3 }
 0x1b0   : > { %2471 = vst [vmem:[%s3510_s12 + $0x20] sm:$0xff] %v2431_v58   ;;  %vm1655_vm12 = vcmp.ge.f32.partialorder %v1630_v18, 0.0  ;;  %v1680_v61 = vmul.f32 0.01, %v1630_v18  ;;  %v2575_v42 = vpop.f32.mrb[42].mxu0  ;;  %v1506_v9 = vpop.f32.mrb[41].mxu1  ;;  %v1633_v13 = vadd.f32 %v3478_v56, %v1581_v7  ;;  %v1582_v15 = vmax.f32 %v3421_v22, %v1298_v59 }
 0x1b1   : > { %v1591_v37 = vmax.f32 %v3431_v27, %v2575_v42  ;;  %v1301_v32 = vpop.f32.mrb[43].mxu0  ;;  %v1589_v43 = vmax.f32 %v1588_v20, %v3427_v25  ;;  %v3546_v45 = vpop.f32.mrb[42].mxu1  ;;  %v1631_v16 = vadd.f32 %v3478_v56, %v1575_v12  ;;  %v1682_v52 = vmul.f32 0.01, %v1632_v23 }
 0x1b2   : > { %v1705_v46 = vsel %vm1655_vm12, %v1630_v18, %v1680_v61  ;;  %v1509_v47 = vpop.f32.mrb[43].mxu1  ;;  %vm1657_vm13 = vcmp.ge.f32.partialorder %v1632_v23, 0.0  ;;  %v1583_v53 = vmax.f32 %v1582_v15, %v3429_v26  ;;  %v1585_v27 = vmax.f32 %v3433_v28, %v1301_v32 }
 0x1b3   : > { %v2436_v63 = vpack.c.bf16 %v1705_v46, %v1704_v5  ;;  %vm1656_vm14 = vcmp.ge.f32.partialorder %v1631_v16, 0.0  ;;  %v1681_v22 = vmul.f32 0.01, %v1631_v16  ;;  %v1683_v51 = vmul.f32 0.01, %v1633_v13 }
 0x1b4   : > { %v1584_v25 = vmax.f32 %v1583_v53, %v3519_v4  ;;  %v1590_v24 = vmax.f32 %v1589_v43, %v1506_v9  ;;  %v1592_v41 = vmax.f32 %v1591_v37, %v3439_v31  ;;  %v1707_v57 = vsel %vm1657_vm13, %v1632_v23, %v1682_v52  ;;  %v3739_v53 = vld [vmem:[#allocation7_spill] sm:$0xff] }
 0x1b5   : > { %2472 = vst [vmem:[%s3510_s12 + $0x28] sm:$0xff] %v2436_v63   ;;  %v1706_v8 = vsel %vm1656_vm14, %v1631_v16, %v1681_v22  ;;  %vm1658_vm15 = vcmp.ge.f32.partialorder %v1633_v13, 0.0  ;;  %v1586_v14 = vmax.f32 %v1585_v27, %v3419_v21  ;;  %v3740_v22 = vmax.f32 %v3379_v0, %v3739_v53 }
 0x1b6   : > { %v2578_v62 = vpop.f32.mrb[44].mxu0  ;;  %v2441_v44 = vpack.c.bf16 %v1707_v57, %v1706_v8  ;;  %v1634_v26 = vadd.f32 %v3478_v56, %v1584_v25  ;;  %v1636_v6 = vadd.f32 %v3478_v56, %v1590_v24  ;;  %v1593_v28 = vmax.f32 %v1592_v41, %v1509_v47  ;;  %v3742_v41 = vld [vmem:[#allocation6_spill] sm:$0xff] }
 0x1b7   : > { %v1314_v48 = vpop.f32.mrb[45].mxu0  ;;  %v3558_v55 = vpop.f32.mrb[44].mxu1  ;;  %v1587_v4 = vmax.f32 %v1586_v14, %v3525_v54  ;;  %v1600_v31 = vmax.f32 %v3457_v40, %v2578_v62  ;;  %v1708_v21 = vsel %vm1658_vm15, %v1633_v13, %v1683_v51 }
 0x1b8   : > { %v1594_v19 = vmax.f32 %v3437_v30, %v1314_v48  ;;  %v2579_v2 = vpop.f32.mrb[46].mxu0  ;;  %v1522_v3 = vpop.f32.mrb[45].mxu1  ;;  %2473 = vst [vmem:[%s3510_s12 + $0x30] sm:$0xff] %v2441_v44   ;;  %vm1659_vm0 = vcmp.ge.f32.partialorder %v1634_v26, 0.0  ;;  %v1684_v49 = vmul.f32 0.01, %v1634_v26  ;;  %v1637_v11 = vadd.f32 %v3478_v56, %v1593_v28 }
 0x1b9   : > { %v1686_v58 = vmul.f32 0.01, %v1636_v6  ;;  %v1635_v18 = vadd.f32 %v3478_v56, %v1587_v4  ;;  %v1603_v10 = vmax.f32 %v3447_v35, %v2579_v2  ;;  %v1317_v54 = vpop.f32.mrb[47].mxu0  ;;  %v3568_v40 = vpop.f32.mrb[46].mxu1  ;;  %vm1661_vm1 = vcmp.ge.f32.partialorder %v1636_v6, 0.0  ;;  %v3744_v48 = vld [vmem:[#allocation8_spill] sm:$0xff] }
 0x1ba   : > { %v1595_v1 = vmax.f32 %v1594_v19, %v3445_v34  ;;  %v1709_v30 = vsel %vm1659_vm0, %v1634_v26, %v1684_v49  ;;  %v1597_v7 = vmax.f32 %v3449_v36, %v1317_v54  ;;  %v1601_v20 = vmax.f32 %v1600_v31, %v3443_v33  ;;  %v1525_v59 = vpop.f32.mrb[47].mxu1  ;;  %v3743_v26 = vld [vmem:[#allocation9_spill] sm:$0xff] }
 0x1bb   : > { %v2446_v61 = vpack.c.bf16 %v1709_v30, %v1708_v21  ;;  %vm1660_vm2 = vcmp.ge.f32.partialorder %v1635_v18, 0.0  ;;  %v1685_v12 = vmul.f32 0.01, %v1635_v18  ;;  %vm1662_vm3 = vcmp.ge.f32.partialorder %v1637_v11, 0.0  ;;  %v3745_v21 = vld [vmem:[#allocation4_spill] sm:$0xff] }
 0x1bc   : > { %v1687_v23 = vmul.f32 0.01, %v1637_v11  ;;  %v1596_v34 = vmax.f32 %v1595_v1, %v3537_v17  ;;  %v1598_v35 = vmax.f32 %v1597_v7, %v3435_v29  ;;  %v1602_v42 = vmax.f32 %v1601_v20, %v1522_v3 }
 0x1bd   : > { %2474 = vst [vmem:[%s3510_s12 + $0x38] sm:$0xff] %v2446_v61   ;;  %v1710_v9 = vsel %vm1660_vm2, %v1635_v18, %v1685_v12  ;;  %v1711_v13 = vsel %vm1661_vm1, %v1636_v6, %v1686_v58  ;;  %v1604_v15 = vmax.f32 %v1603_v10, %v3455_v39  ;;  %v3738_v29 = vmax.f32 %v3373_v60, %v3471_v50  ;;  %v3741_v60 = vld [vmem:[#allocation5_spill] sm:$0xff] }
 0x1be   : > { %v2582_v36 = vpop.f32.mrb[48].mxu0  ;;  %v2451_v37 = vpack.c.bf16 %v1711_v13, %v1710_v9  ;;  %v1712_v33 = vsel %vm1662_vm3, %v1637_v11, %v1687_v23  ;;  %v1638_v32 = vadd.f32 %v3478_v56, %v1596_v34  ;;  %v1599_v43 = vmax.f32 %v1598_v35, %v3546_v45 }
 0x1bf   : > { %v1330_v5 = vpop.f32.mrb[49].mxu0  ;;  %v1640_v46 = vadd.f32 %v3478_v56, %v1602_v42  ;;  %v1605_v17 = vmax.f32 %v1604_v15, %v1525_v59  ;;  %v1538_v16 = vmax.f32 %v3738_v29, %v2582_v36 }
 0x1c0   : > { %v1606_v52 = vmax.f32 %v3453_v38, %v1330_v5  ;;  %v2583_v47 = vpop.f32.mrb[50].mxu0  ;;  %2475 = vst [vmem:[%s3510_s12 + $0x40] sm:$0xff] %v2451_v37   ;;  %vm1663_vm4 = vcmp.ge.f32.partialorder %v1638_v32, 0.0  ;;  %v1688_v39 = vmul.f32 0.01, %v1638_v32  ;;  %v1639_v63 = vadd.f32 %v3478_v56, %v1599_v43 }
 0x1c1   : > { %v1541_v45 = vmax.f32 %v3740_v22, %v2583_v47  ;;  %v1333_v27 = vpop.f32.mrb[51].mxu0  ;;  %vm1665_vm5 = vcmp.ge.f32.partialorder %v1640_v46, 0.0  ;;  %v1690_v51 = vmul.f32 0.01, %v1640_v46  ;;  %v1641_v25 = vadd.f32 %v3478_v56, %v1605_v17 }
 0x1c2   : > { %v1539_v50 = vmax.f32 %v1538_v16, %v3741_v60  ;;  %v1713_v24 = vsel %vm1663_vm4, %v1638_v32, %v1688_v39  ;;  %vm1664_vm6 = vcmp.ge.f32.partialorder %v1639_v63, 0.0  ;;  %v1689_v38 = vmul.f32 0.01, %v1639_v63 }
 0x1c3   : > { %v1607_v8 = vmax.f32 %v1606_v52, %v3742_v41  ;;  %v2456_v57 = vpack.c.bf16 %v1713_v24, %v1712_v33  ;;  %v1715_v14 = vsel %vm1665_vm5, %v1640_v46, %v1690_v51  ;;  %v1542_v6 = vmax.f32 %v1541_v45, %v3743_v26 }
 0x1c4   : > { %v1714_v62 = vsel %vm1664_vm6, %v1639_v63, %v1689_v38  ;;  %v1619_v0 = vadd.f32 %v3478_v56, %v1539_v50  ;;  %v1609_v4 = vmax.f32 %v3744_v48, %v1333_v27  ;;  %v1691_v31 = vmul.f32 0.01, %v1641_v25 }
 0x1c5   : > { %v1608_v44 = vmax.f32 %v1607_v8, %v3558_v55  ;;  %2476 = vst [vmem:[%s3510_s12 + $0x48] sm:$0xff] %v2456_v57   ;;  %v2461_v28 = vpack.c.bf16 %v1715_v14, %v1714_v62  ;;  %v1620_v2 = vadd.f32 %v3478_v56, %v1542_v6  ;;  %vm1666_vm7 = vcmp.ge.f32.partialorder %v1641_v25, 0.0 }
 0x1c6   : > { %v1669_v3 = vmul.f32 0.01, %v1619_v0  ;;  %v1610_v49 = vmax.f32 %v1609_v4, %v3745_v21  ;;  %vm1644_vm8 = vcmp.ge.f32.partialorder %v1619_v0, 0.0  ;;  %v1716_v11 = vsel %vm1666_vm7, %v1641_v25, %v1691_v31 }
 0x1c7   : > { %v1642_v19 = vadd.f32 %v3478_v56, %v1608_v44  ;;  %2477 = vst [vmem:[%s3510_s12 + $0x50] sm:$0xff] %v2461_v28   ;;  %vm1645_vm10 = vcmp.ge.f32.partialorder %v1620_v2, 0.0  ;;  %v1670_v58 = vmul.f32 0.01, %v1620_v2 }
 0x1c8   : > { %v1611_v18 = vmax.f32 %v1610_v49, %v3568_v40  ;;  %v1694_v10 = vsel %vm1644_vm8, %v1619_v0, %v1669_v3 }
 0x1c9   : > { %vm1667_vm9 = vcmp.ge.f32.partialorder %v1642_v19, 0.0  ;;  %v1692_v55 = vmul.f32 0.01, %v1642_v19  ;;  %v1695_v30 = vsel %vm1645_vm10, %v1620_v2, %v1670_v58 }
 0x1ca   : > { %v1643_v7 = vadd.f32 %v3478_v56, %v1611_v18  ;;  %v2411_v20 = vpack.c.bf16 %v1695_v30, %v1694_v10 }
 0x1cb   : > { %v1717_v1 = vsel %vm1667_vm9, %v1642_v19, %v1692_v55  ;;  %1851 = sbr.rel (!%p3050_p5) target bundleno = 544 (0x220), region = 98 }
 0x1cc   : > { %v2466_v54 = vpack.c.bf16 %v1717_v1, %v1716_v11  ;;  %vm1668_vm11 = vcmp.ge.f32.partialorder %v1643_v7, 0.0  ;;  %v1693_v59 = vmul.f32 0.01, %v1643_v7  ;;  %2412 = vst [vmem:[%s3510_s12] sm:$0xff] %v2411_v20  }
 0x1ce   : > { %2478 = vst [vmem:[%s3510_s12 + $0x58] sm:$0xff] %v2466_v54   ;;  %v1718_v61 = vsel %vm1668_vm11, %v1643_v7, %v1693_v59 }
 0x1cf   : > { %v2406_v12 = vpack.c.bf16 %v1718_v61, %v1718_v61 }
 0x1d1   : > { %1844 = vst [vmem:[%s3510_s12 + $0x60] sm:$0xf] %v2406_v12 }
 0x1d2   : > { %s3759_s10 = smov (!%p1854_p4, %s1853_s10), 25 }
 0x1d3   : > { %s2367_s21 = sshll.u32 %s3759_s10, 6 }
 0x1d4   : > { %p2370_p6 = scmp.eq.s32.totalorder %s2367_s21, 0 }
 0x1d5   : > { %2842 = sdivrem.u32 (!%p2370_p6), %s3759_s10, 25 }
 0x1d6   : > { %1862 = sbr.rel (%p2370_p6) target bundleno = 544 (0x220), region = 102 }
 0x1de   : > { %s3618_s20 = spop.drf %2842 }
 0x1df   : > { %p2371_p5 = scmp.le.s32.totalorder %s3618_s20, 0 }
 0x1e0   : > { %s3746_s15 = smov (!%p2371_p5), %s3612_s18  ;;  %s3747_s22 = smov (!%p2371_p5), %s3510_s12 }
 0x1e1   : > { %2179 = sbr.rel (%p2371_p5) target bundleno = 515 (0x203), region = 215  ;;  %s3627_s23 = smov (!%p2371_p5), 0  }
 0x1e2   : > { %s3629_s25 = smov (!%p2371_p5), 0  }
 0x1e8 LB: >> { %v1879_v56 = vld [vmem:[%s2972_s22] sm:$0xf]  ;;  %v1881_v40 = vld [vmem:[%s2972_s22 + $0x4] sm:$0xf]  ;;  %v1883_v23 = vld [vmem:[%s2972_s22 + $0x8] sm:$0xf]  ;;  %s2980_s25 = sphi %s3629_s25, %s1873_s25   ;;  %s2976_s23 = sphi %s3627_s23, %s3748_s23   ;;  %s2972_s22 = sphi %s3747_s22, %s1934_s22   ;;  %s2968_s15 = sphi %s3746_s15, %s1935_s15  }
 0x1e9   : >> { %1880 = vst [vmem:[%s2968_s15] sm:$0xf] %v1879_v56  ;;  %1882 = vst [vmem:[%s2968_s15 + $0x4] sm:$0xf] %v1881_v40  ;;  %v1885_v34 = vld [vmem:[%s2972_s22 + $0xc] sm:$0xf]  ;;  %s1929_s26 = sadd.s32 1, %s2976_s23 }
 0x1ea   : >> { %1884 = vst [vmem:[%s2968_s15 + $0x8] sm:$0xf] %v1883_v23  ;;  %v1887_v35 = vld [vmem:[%s2972_s22 + $0x10] sm:$0xf]  ;;  %v1889_v42 = vld [vmem:[%s2972_s22 + $0x14] sm:$0xf]  ;;  %p1930_p7 = scmp.ge.s32.totalorder %s1929_s26, %s3618_s20 }
 0x1eb   : >> { %1886 = vst [vmem:[%s2968_s15 + $0xc] sm:$0xf] %v1885_v34  ;;  %1888 = vst [vmem:[%s2968_s15 + $0x10] sm:$0xf] %v1887_v35  ;;  %v1891_v9 = vld [vmem:[%s2972_s22 + $0x18] sm:$0xf] }
 0x1ec   : >> { %1890 = vst [vmem:[%s2968_s15 + $0x14] sm:$0xf] %v1889_v42  ;;  %v1893_v13 = vld [vmem:[%s2972_s22 + $0x1c] sm:$0xf]  ;;  %v1895_v15 = vld [vmem:[%s2972_s22 + $0x20] sm:$0xf] }
 0x1ed   : >> { %1892 = vst [vmem:[%s2968_s15 + $0x18] sm:$0xf] %v1891_v9  ;;  %1894 = vst [vmem:[%s2968_s15 + $0x1c] sm:$0xf] %v1893_v13  ;;  %v1897_v36 = vld [vmem:[%s2972_s22 + $0x24] sm:$0xf] }
 0x1ee   : >> { %1896 = vst [vmem:[%s2968_s15 + $0x20] sm:$0xf] %v1895_v15  ;;  %v1899_v37 = vld [vmem:[%s2972_s22 + $0x28] sm:$0xf]  ;;  %v1901_v33 = vld [vmem:[%s2972_s22 + $0x2c] sm:$0xf] }
 0x1ef   : >> { %1898 = vst [vmem:[%s2968_s15 + $0x24] sm:$0xf] %v1897_v36  ;;  %1900 = vst [vmem:[%s2968_s15 + $0x28] sm:$0xf] %v1899_v37  ;;  %v1903_v32 = vld [vmem:[%s2972_s22 + $0x30] sm:$0xf] }
 0x1f0   : >> { %1902 = vst [vmem:[%s2968_s15 + $0x2c] sm:$0xf] %v1901_v33  ;;  %v1905_v43 = vld [vmem:[%s2972_s22 + $0x34] sm:$0xf]  ;;  %v1907_v5 = vld [vmem:[%s2972_s22 + $0x38] sm:$0xf] }
 0x1f1   : >> { %1904 = vst [vmem:[%s2968_s15 + $0x30] sm:$0xf] %v1903_v32  ;;  %1906 = vst [vmem:[%s2968_s15 + $0x34] sm:$0xf] %v1905_v43  ;;  %v1909_v46 = vld [vmem:[%s2972_s22 + $0x3c] sm:$0xf] }
 0x1f2   : >> { %1908 = vst [vmem:[%s2968_s15 + $0x38] sm:$0xf] %v1907_v5  ;;  %v1911_v17 = vld [vmem:[%s2972_s22 + $0x40] sm:$0xf]  ;;  %v1913_v29 = vld [vmem:[%s2972_s22 + $0x44] sm:$0xf] }
 0x1f3   : >> { %1910 = vst [vmem:[%s2968_s15 + $0x3c] sm:$0xf] %v1909_v46  ;;  %1912 = vst [vmem:[%s2968_s15 + $0x40] sm:$0xf] %v1911_v17  ;;  %v1915_v16 = vld [vmem:[%s2972_s22 + $0x48] sm:$0xf] }
 0x1f4   : >> { %1914 = vst [vmem:[%s2968_s15 + $0x44] sm:$0xf] %v1913_v29  ;;  %v1917_v52 = vld [vmem:[%s2972_s22 + $0x4c] sm:$0xf]  ;;  %v1919_v47 = vld [vmem:[%s2972_s22 + $0x50] sm:$0xf] }
 0x1f5   : >> { %1916 = vst [vmem:[%s2968_s15 + $0x48] sm:$0xf] %v1915_v16  ;;  %1918 = vst [vmem:[%s2968_s15 + $0x4c] sm:$0xf] %v1917_v52  ;;  %v1921_v39 = vld [vmem:[%s2972_s22 + $0x54] sm:$0xf] }
 0x1f6   : >> { %1920 = vst [vmem:[%s2968_s15 + $0x50] sm:$0xf] %v1919_v47  ;;  %v1923_v63 = vld [vmem:[%s2972_s22 + $0x58] sm:$0xf]  ;;  %v1925_v53 = vld [vmem:[%s2972_s22 + $0x5c] sm:$0xf] }
 0x1f7   : >> { %1922 = vst [vmem:[%s2968_s15 + $0x54] sm:$0xf] %v1921_v39  ;;  %1924 = vst [vmem:[%s2968_s15 + $0x58] sm:$0xf] %v1923_v63  ;;  %v1927_v22 = vld [vmem:[%s2972_s22 + $0x60] sm:$0xf] }
 0x1f8   : >> { %1926 = vst [vmem:[%s2968_s15 + $0x5c] sm:$0xf] %v1925_v53  ;;  %1928 = vst [vmem:[%s2968_s15 + $0x60] sm:$0xf] %v1927_v22  ;;  %s3761_s26 = smov (%p1930_p7, %s1929_s26), 0  ;;  %s1873_s25 = sadd.s32 1, %s2980_s25  }
 0x1f9   : >> { %s1932_s24 = smul.u32 100, %s3761_s26  ;;  %p1872_p8 = scmp.ge.s32.totalorder %s1873_s25, %s3618_s20 }
 0x1fa   : >> { %s3748_s23 = smov %s3761_s26 }
 0x1fb   : >> { %s1934_s22 = scalar_lea.vmem %s3510_s12, %s1932_s24 [#allocation3]   ;;  %s1935_s15 = scalar_lea.vmem %s3612_s18, %s1932_s24  }
 0x1fc   : > { %1875 = sbr.rel (!%p1872_p8) target bundleno = 488 (0x1e8), region = 221 }
 0x203 PF: > { %2844 = sdivrem.u32 %s3759_s10, 25 }
 0x204   : > { %s2372_s27 = smul.u32 100, %s3618_s20 }
 0x206   : > { %s1940_s28 = scalar_lea.vmem %s3510_s12, %s2372_s27 [#allocation3]   ;;  %s1942_s29 = scalar_lea.vmem %s3612_s18, %s2372_s27  }
 0x20c   : > { %s2845_s30 = spop.drf %2844 }
 0x20d   : > { %p2374_p9 = scmp.le.s32.totalorder %s2845_s30, 0 }
 0x20e   : > { %s2982_s4 = smov (!%p2374_p9), %s1942_s29   ;;  %s2986_s5 = smov (!%p2374_p9), %s1940_s28  }
 0x20f   : > { %2193 = sbr.rel (%p2374_p9) target bundleno = 544 (0x220), region = 226  ;;  %s2990_s14 = smov (!%p2374_p9), 0  }
 0x210   : > { %s2994_s6 = smov (!%p2374_p9), 0  }
 0x216 LB: >> { %v1952_v45 = vld [vmem:[%s2988_s5] sm:$0xf]  ;;  %s1954_s7 = sadd.s32 1, %s2992_s14  ;;  %s1946_s6 = sadd.s32 1, %s2996_s6   ;;  %s2996_s6 = sphi %s2994_s6, %s1946_s6   ;;  %s2992_s14 = sphi %s2990_s14, %s2991_s14   ;;  %s2988_s5 = sphi %s2986_s5, %s1959_s5   ;;  %s2984_s4 = sphi %s2982_s4, %s1960_s4  }
 0x217   : >> { %1953 = vst [vmem:[%s2984_s4] sm:$0xf] %v1952_v45  ;;  %p1955_p10 = scmp.ge.s32.totalorder %s1954_s7, %s2845_s30  ;;  %p1945_p11 = scmp.ge.s32.totalorder %s1946_s6, %s2845_s30 }
 0x219   : >> { %s3763_s7 = smov (%p1955_p10, %s1954_s7), 0  ;;  %1948 = sbr.rel (!%p1945_p11) target bundleno = 534 (0x216), region = 232 }
 0x21a   : >> { %s2375_s12 = sshll.u32 %s3763_s7, 2  ;;  %s2991_s14 = smov %s3763_s7  }
 0x21b   : >> { %s1959_s5 = scalar_lea.vmem %s1940_s28, %s2375_s12 [#allocation3]   ;;  %s1960_s4 = scalar_lea.vmem %s1942_s29, %s2375_s12  }
 0x220 PF: > { %p10_p12 = scmp.ge.s32.totalorder %s3038_s16, 4   ;;  %s3749_s12 = smov %s2928_s13 }
 0x221   : > { %s3750_s13 = smov %s3048_s19  ;;  %s3751_s14 = smov %s3038_s16 }
 0x222   :  { %12 = sbr.rel (!%p10_p12) target bundleno = 2 (0x2), region = 243 }

// kernel: simple_cnn_forward.5
= control target key start
LH: loop header
LB: loop body
LE: loop exit
PB: predicated region body
PF: predicated region fallthrough
CT: control target
= control target key end

     0   :  { %s2427_s12 = smov 0   ;;  %s2429_s13 = smov 0   ;;  %s2966_s0 = inlined_call_operand.vmem [shape: bf16[4,104,384], index: 0, kind: input, shape index: {}]   ;;  %s2967_s1 = inlined_call_operand.vmem [shape: bf16[384,128], index: 1, kind: input, shape index: {}]   ;;  %s2968_s2 = inlined_call_operand.vmem [shape: f32[1,128], index: 2, kind: input, shape index: {}]   ;;  %s2969_s3 = inlined_call_operand.vmem [shape: bf16[104,128], index: 3, kind: output, shape index: {}]  }
   0x1   :  { %s2431_s14 = smov 0  }
   0x2 LB: > { %s2443_s15 = sadd.s32 4294967295, %s2309_s14   ;;  %s2446_s16 = sadd.s32 1, %s2309_s14   ;;  %s2309_s14 = sphi %s2431_s14, %s2986_s14   ;;  %s2305_s13 = sphi %s2429_s13, %s2985_s13   ;;  %s2301_s12 = sphi %s2427_s12, %s2984_s12  }
   0x3   : > { %s17_s17 = ssub.s32 %s2309_s14, %s2446_s16  ;;  %s20_s18 = sadd.s32 1, %s2305_s13 }
   0x4   : > { %p18_p0 = scmp.eq.s32.totalorder %s17_s17, 0  ;;  %p27_p1 = scmp.ne.s32.totalorder %s2305_s13, %s2301_s12 }
   0x5   : > { %p28_p2 = scmp.eq.s32.totalorder %s2309_s14, 0  ;;  %p99_p3 = scmp.eq.s32.totalorder %s2443_s15, 1 }
   0x6   : > { %s2456_s19 = scalar_select %p18_p0, %s2305_s13, %s20_s18  }
   0x7   : > { %p29_p4 = por %p28_p2, %p27_p1  ;;  %p2458_p5 = por %p99_p3, %p27_p1 }
   0x8   : > { %p1590_p6 = scmp.ge.s32.totalorder %s2309_s14, 2 }
   0xa   : > { %127 = sbr.rel (%p1590_p6) target bundleno = 151 (0x97), region = 24 }
  0x11   : > { %130 = sbr.rel (!%p29_p4) target bundleno = 151 (0x97), region = 28  ;;  %s132_s21 = sand.u32 (%p29_p4), 1, %s2305_s13  }
  0x12   : > { %s135_s22 = smul.u32 (%p29_p4), 7, %s2309_s14 }
  0x13   : > { %s1880_s23 = smul.u32 (%p29_p4), 336, %s132_s21 }
  0x14   : > { %s136_s24 = ssub.s32 (%p29_p4), 13, %s135_s22  ;;  %s1884_s25 = smul.u32 (%p29_p4), 84, %s2309_s14 }
  0x15   : > { %p137_p7 = scmp.lt.s32.totalorder (%p29_p4), %s136_s24, 7  ;;  %s2474_s30 = scalar_lea.vmem (%p29_p4), [#allocation2], %s1880_s23  }
  0x16   : > { %s2469_s28 = scalar_lea.vmem (%p29_p4), %s2966_s0, %s1884_s25  }
  0x18   : > { %s2988_s24 = smov (!%p137_p7, %s136_s24), 7 }
  0x19   : > { %s1592_s29 = smul.u32 768, %s2988_s24 }
  0x1b   : > { %p1595_p8 = scmp.eq.s32.totalorder %s1592_s29, 0 }
  0x1c   : > { %s150_s4 = scalar_lea.vmem (!%p1595_p8), %s2469_s28, 8   ;;  %s151_s5 = scalar_lea.vmem (!%p1595_p8), %s2474_s30, 8 [#allocation2]  }
  0x1d   : > { %147 = sbr.rel (%p1595_p8) target bundleno = 151 (0x97), region = 32 }
  0x1e   : > { %2103 = sdivrem.u32 (!%p1595_p8), %s2988_s24, 7 }
  0x27   : > { %s2479_s6 = spop.drf %2103 }
  0x28   : > { %p1596_p9 = scmp.le.s32.totalorder %s2479_s6, 0 }
  0x29   : > { %s2971_s7 = smov (!%p1596_p9), %s2474_s30  ;;  %s2972_s8 = smov (!%p1596_p9), %s2469_s28 }
  0x2a   : > { %1488 = sbr.rel (%p1596_p9) target bundleno = 64 (0x40), region = 167  ;;  %s2490_s9 = smov (!%p1596_p9), 0  }
  0x2b   : > { %s2492_s10 = smov (!%p1596_p9), 0  }
  0x31 LB: >> { %v163_v0 = vld [vmem:[%s2317_s8] sm:$0xff]  ;;  %v165_v1 = vld [vmem:[%s2317_s8 + $0xc] sm:$0xff]  ;;  %v167_v2 = vld [vmem:[%s2317_s8 + $0x18] sm:$0xff]  ;;  %s219_s11 = sadd.s32 1, %s2321_s9  ;;  %s157_s10 = sadd.s32 1, %s2325_s10   ;;  %s2325_s10 = sphi %s2492_s10, %s157_s10   ;;  %s2321_s9 = sphi %s2490_s9, %s2975_s9   ;;  %s2317_s8 = sphi %s2972_s8, %s2974_s8   ;;  %s2313_s7 = sphi %s2971_s7, %s2973_s7  }
  0x32   : >> { %164 = vst [vmem:[%s2313_s7] sm:$0xff] %v163_v0  ;;  %166 = vst [vmem:[%s2313_s7 + $0xc] sm:$0xff] %v165_v1  ;;  %v169_v3 = vld [vmem:[%s2317_s8 + $0x24] sm:$0xff]  ;;  %v171_v4 = vld [vmem:[%s2317_s8 + $0x30] sm:$0xff]  ;;  %p220_p10 = scmp.ge.s32.totalorder %s219_s11, %s2479_s6  ;;  %p156_p11 = scmp.ge.s32.totalorder %s157_s10, %s2479_s6 }
  0x33   : >> { %168 = vst [vmem:[%s2313_s7 + $0x18] sm:$0xff] %v167_v2  ;;  %v173_v5 = vld [vmem:[%s2317_s8 + $0x3c] sm:$0xff]  ;;  %170 = vst [vmem:[%s2313_s7 + $0x24] sm:$0xff] %v169_v3  ;;  %v175_v6 = vld [vmem:[%s2317_s8 + $0x48] sm:$0xff] }
  0x34   : >> { %172 = vst [vmem:[%s2313_s7 + $0x30] sm:$0xff] %v171_v4  ;;  %174 = vst [vmem:[%s2313_s7 + $0x3c] sm:$0xff] %v173_v5  ;;  %v177_v7 = vld [vmem:[%s2317_s8 + $0x9c] sm:$0xff]  ;;  %v179_v8 = vld [vmem:[%s2317_s8 + $0xa8] sm:$0xff]  ;;  %s2990_s11 = smov (%p220_p10, %s219_s11), 0 }
  0x35   : >> { %176 = vst [vmem:[%s2313_s7 + $0x48] sm:$0xff] %v175_v6  ;;  %178 = vst [vmem:[%s2313_s7 + $0x54] sm:$0xff] %v177_v7  ;;  %v181_v9 = vld [vmem:[%s2317_s8 + $0xb4] sm:$0xff]  ;;  %v183_v10 = vld [vmem:[%s2317_s8 + $0xc0] sm:$0xff]  ;;  %s222_s17 = smul.u32 84, %s2990_s11  ;;  %s2975_s9 = smov %s2990_s11 }
  0x36   : >> { %180 = vst [vmem:[%s2313_s7 + $0x60] sm:$0xff] %v179_v8  ;;  %v185_v11 = vld [vmem:[%s2317_s8 + $0xcc] sm:$0xff]  ;;  %182 = vst [vmem:[%s2313_s7 + $0x6c] sm:$0xff] %v181_v9  ;;  %v187_v12 = vld [vmem:[%s2317_s8 + $0xd8] sm:$0xff] }
  0x37   : >> { %184 = vst [vmem:[%s2313_s7 + $0x78] sm:$0xff] %v183_v10  ;;  %186 = vst [vmem:[%s2313_s7 + $0x84] sm:$0xff] %v185_v11  ;;  %v189_v13 = vld [vmem:[%s2317_s8 + $0xe4] sm:$0xff]  ;;  %v191_v14 = vld [vmem:[%s2317_s8 + $0x138] sm:$0xff]  ;;  %s224_s18 = scalar_lea.vmem %s2469_s28, %s222_s17   ;;  %s225_s21 = scalar_lea.vmem %s2474_s30, %s222_s17 [#allocation2]  }
  0x38   : >> { %188 = vst [vmem:[%s2313_s7 + $0x90] sm:$0xff] %v187_v12  ;;  %190 = vst [vmem:[%s2313_s7 + $0x9c] sm:$0xff] %v189_v13  ;;  %v193_v15 = vld [vmem:[%s2317_s8 + $0x144] sm:$0xff]  ;;  %v195_v16 = vld [vmem:[%s2317_s8 + $0x150] sm:$0xff] }
  0x39   : >> { %192 = vst [vmem:[%s2313_s7 + $0xa8] sm:$0xff] %v191_v14  ;;  %v197_v17 = vld [vmem:[%s2317_s8 + $0x15c] sm:$0xff]  ;;  %194 = vst [vmem:[%s2313_s7 + $0xb4] sm:$0xff] %v193_v15  ;;  %v199_v18 = vld [vmem:[%s2317_s8 + $0x168] sm:$0xff]  ;;  %159 = sbr.rel (!%p156_p11) target bundleno = 49 (0x31), region = 173 }
  0x3a   : >> { %196 = vst [vmem:[%s2313_s7 + $0xc0] sm:$0xff] %v195_v16  ;;  %198 = vst [vmem:[%s2313_s7 + $0xcc] sm:$0xff] %v197_v17  ;;  %v201_v19 = vld [vmem:[%s2317_s8 + $0x174] sm:$0xff]  ;;  %v203_v20 = vld [vmem:[%s2317_s8 + $0x180] sm:$0xff] }
  0x3b   : >> { %200 = vst [vmem:[%s2313_s7 + $0xd8] sm:$0xff] %v199_v18  ;;  %202 = vst [vmem:[%s2313_s7 + $0xe4] sm:$0xff] %v201_v19  ;;  %v205_v21 = vld [vmem:[%s2317_s8 + $0x1d4] sm:$0xff]  ;;  %v207_v22 = vld [vmem:[%s2317_s8 + $0x1e0] sm:$0xff] }
  0x3c   : >> { %204 = vst [vmem:[%s2313_s7 + $0xf0] sm:$0xff] %v203_v20  ;;  %v209_v23 = vld [vmem:[%s2317_s8 + $0x1ec] sm:$0xff]  ;;  %206 = vst [vmem:[%s2313_s7 + $0xfc] sm:$0xff] %v205_v21  ;;  %v211_v24 = vld [vmem:[%s2317_s8 + $0x1f8] sm:$0xff] }
  0x3d   : >> { %208 = vst [vmem:[%s2313_s7 + $0x108] sm:$0xff] %v207_v22  ;;  %210 = vst [vmem:[%s2313_s7 + $0x114] sm:$0xff] %v209_v23  ;;  %v213_v25 = vld [vmem:[%s2317_s8 + $0x204] sm:$0xff]  ;;  %v215_v26 = vld [vmem:[%s2317_s8 + $0x210] sm:$0xff] }
  0x3e   : >> { %212 = vst [vmem:[%s2313_s7 + $0x120] sm:$0xff] %v211_v24  ;;  %214 = vst [vmem:[%s2313_s7 + $0x12c] sm:$0xff] %v213_v25  ;;  %v217_v27 = vld [vmem:[%s2317_s8 + $0x21c] sm:$0xff]  ;;  %s2974_s8 = smov %s224_s18 }
  0x3f   : >> { %216 = vst [vmem:[%s2313_s7 + $0x138] sm:$0xff] %v215_v26  ;;  %218 = vst [vmem:[%s2313_s7 + $0x144] sm:$0xff] %v217_v27  ;;  %s2973_s7 = smov %s225_s21 }
  0x40 PF: > { %2105 = sdivrem.u32 %s2988_s24, 7 }
  0x41   : > { %s1597_s22 = smul.u32 84, %s2479_s6 }
  0x43   : > { %s2580_s23 = scalar_lea.vmem %s2469_s28, %s1597_s22   ;;  %s2583_s25 = scalar_lea.vmem %s2474_s30, %s1597_s22 [#allocation2]  }
  0x49   : > { %s2585_s26 = spop.drf %2105 }
  0x4a   : > { %p1599_p12 = scmp.le.s32.totalorder %s2585_s26, 0 }
  0x4b   : > { %s2976_s27 = smov (!%p1599_p12), %s2583_s25  ;;  %s2977_s29 = smov (!%p1599_p12), %s2580_s23 }
  0x4c   : > { %1502 = sbr.rel (%p1599_p12) target bundleno = 93 (0x5d), region = 178  ;;  %s2596_s7 = smov (!%p1599_p12), 0  }
  0x4d   : > { %s2339_s24 = smov (!%p1599_p12), 0  }
  0x53 LB: >> { %v242_v28 = vld [vmem:[%s2333_s29] sm:$0xff]  ;;  %v246_v30 = vld [vmem:[%s2333_s29 + $0x138] sm:$0xff]  ;;  %s250_s8 = sadd.s32 1, %s2337_s7  ;;  %s236_s24 = sadd.s32 1, %s2341_s24   ;;  %s2341_s24 = sphi %s2339_s24, %s236_s24   ;;  %s2337_s7 = sphi %s2596_s7, %s2978_s7   ;;  %s2333_s29 = sphi %s2977_s29, %s255_s29   ;;  %s2329_s27 = sphi %s2976_s27, %s256_s27  }
  0x54   : >> { %v244_v29 = vld [vmem:[%s2333_s29 + $0x9c] sm:$0xff]  ;;  %243 = vst [vmem:[%s2329_s27] sm:$0xff] %v242_v28  ;;  %247 = vst [vmem:[%s2329_s27 + $0xa8] sm:$0xff] %v246_v30  ;;  %v248_v31 = vld [vmem:[%s2333_s29 + $0x1d4] sm:$0xff]  ;;  %p251_p13 = scmp.ge.s32.totalorder %s250_s8, %s2585_s26  ;;  %p235_p0 = scmp.ge.s32.totalorder %s236_s24, %s2585_s26 }
  0x55   : >> { %245 = vst [vmem:[%s2329_s27 + $0x54] sm:$0xff] %v244_v29  ;;  %249 = vst [vmem:[%s2329_s27 + $0xfc] sm:$0xff] %v248_v31 }
  0x56   : >> { %s2992_s8 = smov (%p251_p13, %s250_s8), 0  ;;  %238 = sbr.rel (!%p235_p0) target bundleno = 83 (0x53), region = 184 }
  0x57   : >> { %s253_s9 = smul.u32 12, %s2992_s8  ;;  %s2978_s7 = smov %s2992_s8 }
  0x59   : >> { %s255_s29 = scalar_lea.vmem %s2580_s23, %s253_s9   ;;  %s256_s27 = scalar_lea.vmem %s2583_s25, %s253_s9 [#allocation2]  }
  0x5d PF: > { %1516 = sbr.rel (%p1596_p9) target bundleno = 130 (0x82), region = 189  ;;  %s2621_s10 = smov (!%p1596_p9), 0  }
  0x5e   : > { %s2623_s11 = smov (!%p1596_p9), 0  }
  0x64 LB: >> { %v269_v32 = vld [vmem:[%s2349_s4] sm:$0xf]  ;;  %v271_v33 = vld [vmem:[%s2349_s4 + $0xc] sm:$0xf]  ;;  %v273_v34 = vld [vmem:[%s2349_s4 + $0x18] sm:$0xf]  ;;  %s2357_s11 = sphi %s2623_s11, %s263_s11   ;;  %s2353_s10 = sphi %s2621_s10, %s2979_s10   ;;  %s2349_s4 = sphi %s150_s4, %s1431_s4   ;;  %s2345_s5 = sphi %s151_s5, %s1434_s5  }
  0x65   : >> { %270 = vst [vmem:[%s2345_s5] sm:$0xf] %v269_v32  ;;  %272 = vst [vmem:[%s2345_s5 + $0xc] sm:$0xf] %v271_v33  ;;  %v275_v35 = vld [vmem:[%s2349_s4 + $0x24] sm:$0xf]  ;;  %s325_s17 = sadd.s32 1, %s2353_s10 }
  0x66   : >> { %274 = vst [vmem:[%s2345_s5 + $0x18] sm:$0xf] %v273_v34  ;;  %v277_v36 = vld [vmem:[%s2349_s4 + $0x30] sm:$0xf]  ;;  %v279_v37 = vld [vmem:[%s2349_s4 + $0x3c] sm:$0xf]  ;;  %p326_p1 = scmp.ge.s32.totalorder %s325_s17, %s2479_s6 }
  0x67   : >> { %276 = vst [vmem:[%s2345_s5 + $0x24] sm:$0xf] %v275_v35  ;;  %278 = vst [vmem:[%s2345_s5 + $0x30] sm:$0xf] %v277_v36  ;;  %v281_v38 = vld [vmem:[%s2349_s4 + $0x48] sm:$0xf] }
  0x68   : >> { %280 = vst [vmem:[%s2345_s5 + $0x3c] sm:$0xf] %v279_v37  ;;  %v283_v39 = vld [vmem:[%s2349_s4 + $0x9c] sm:$0xf]  ;;  %v285_v40 = vld [vmem:[%s2349_s4 + $0xa8] sm:$0xf] }
  0x69   : >> { %282 = vst [vmem:[%s2345_s5 + $0x48] sm:$0xf] %v281_v38  ;;  %284 = vst [vmem:[%s2345_s5 + $0x54] sm:$0xf] %v283_v39  ;;  %v287_v41 = vld [vmem:[%s2349_s4 + $0xb4] sm:$0xf] }
  0x6a   : >> { %286 = vst [vmem:[%s2345_s5 + $0x60] sm:$0xf] %v285_v40  ;;  %v289_v42 = vld [vmem:[%s2349_s4 + $0xc0] sm:$0xf]  ;;  %v291_v43 = vld [vmem:[%s2349_s4 + $0xcc] sm:$0xf] }
  0x6b   : >> { %288 = vst [vmem:[%s2345_s5 + $0x6c] sm:$0xf] %v287_v41  ;;  %290 = vst [vmem:[%s2345_s5 + $0x78] sm:$0xf] %v289_v42  ;;  %v293_v44 = vld [vmem:[%s2349_s4 + $0xd8] sm:$0xf] }
  0x6c   : >> { %292 = vst [vmem:[%s2345_s5 + $0x84] sm:$0xf] %v291_v43  ;;  %v295_v45 = vld [vmem:[%s2349_s4 + $0xe4] sm:$0xf]  ;;  %v297_v46 = vld [vmem:[%s2349_s4 + $0x138] sm:$0xf] }
  0x6d   : >> { %294 = vst [vmem:[%s2345_s5 + $0x90] sm:$0xf] %v293_v44  ;;  %296 = vst [vmem:[%s2345_s5 + $0x9c] sm:$0xf] %v295_v45  ;;  %v299_v47 = vld [vmem:[%s2349_s4 + $0x144] sm:$0xf] }
  0x6e   : >> { %298 = vst [vmem:[%s2345_s5 + $0xa8] sm:$0xf] %v297_v46  ;;  %v301_v48 = vld [vmem:[%s2349_s4 + $0x150] sm:$0xf]  ;;  %v303_v49 = vld [vmem:[%s2349_s4 + $0x15c] sm:$0xf] }
  0x6f   : >> { %300 = vst [vmem:[%s2345_s5 + $0xb4] sm:$0xf] %v299_v47  ;;  %302 = vst [vmem:[%s2345_s5 + $0xc0] sm:$0xf] %v301_v48  ;;  %v305_v50 = vld [vmem:[%s2349_s4 + $0x168] sm:$0xf] }
  0x70   : >> { %304 = vst [vmem:[%s2345_s5 + $0xcc] sm:$0xf] %v303_v49  ;;  %v307_v51 = vld [vmem:[%s2349_s4 + $0x174] sm:$0xf]  ;;  %v309_v52 = vld [vmem:[%s2349_s4 + $0x180] sm:$0xf] }
  0x71   : >> { %306 = vst [vmem:[%s2345_s5 + $0xd8] sm:$0xf] %v305_v50  ;;  %308 = vst [vmem:[%s2345_s5 + $0xe4] sm:$0xf] %v307_v51  ;;  %v311_v53 = vld [vmem:[%s2349_s4 + $0x1d4] sm:$0xf] }
  0x72   : >> { %310 = vst [vmem:[%s2345_s5 + $0xf0] sm:$0xf] %v309_v52  ;;  %v313_v54 = vld [vmem:[%s2349_s4 + $0x1e0] sm:$0xf]  ;;  %v315_v55 = vld [vmem:[%s2349_s4 + $0x1ec] sm:$0xf] }
  0x73   : >> { %312 = vst [vmem:[%s2345_s5 + $0xfc] sm:$0xf] %v311_v53  ;;  %314 = vst [vmem:[%s2345_s5 + $0x108] sm:$0xf] %v313_v54  ;;  %v317_v56 = vld [vmem:[%s2349_s4 + $0x1f8] sm:$0xf] }
  0x74   : >> { %316 = vst [vmem:[%s2345_s5 + $0x114] sm:$0xf] %v315_v55  ;;  %v319_v57 = vld [vmem:[%s2349_s4 + $0x204] sm:$0xf]  ;;  %v321_v58 = vld [vmem:[%s2349_s4 + $0x210] sm:$0xf] }
  0x75   : >> { %318 = vst [vmem:[%s2345_s5 + $0x120] sm:$0xf] %v317_v56  ;;  %320 = vst [vmem:[%s2345_s5 + $0x12c] sm:$0xf] %v319_v57  ;;  %v323_v59 = vld [vmem:[%s2349_s4 + $0x21c] sm:$0xf] }
  0x76   : >> { %322 = vst [vmem:[%s2345_s5 + $0x138] sm:$0xf] %v321_v58  ;;  %324 = vst [vmem:[%s2345_s5 + $0x144] sm:$0xf] %v323_v59  ;;  %s2994_s17 = smov (%p326_p1, %s325_s17), 0  ;;  %s263_s11 = sadd.s32 1, %s2357_s11  }
  0x77   : >> { %s1429_s18 = smul.u32 84, %s2994_s17  ;;  %p262_p2 = scmp.ge.s32.totalorder %s263_s11, %s2479_s6 }
  0x78   : >> { %s2979_s10 = smov %s2994_s17 }
  0x79   : >> { %s1430_s21 = scalar_lea.vmem %s2469_s28, %s1429_s18  ;;  %s1433_s22 = scalar_lea.vmem %s2474_s30, %s1429_s18 [#allocation2] }
  0x7a   : >> { %s1431_s4 = scalar_lea.vmem %s1430_s21, 8   ;;  %s1434_s5 = scalar_lea.vmem %s1433_s22, 8 [#allocation2]  }
  0x7b   : > { %265 = sbr.rel (!%p262_p2) target bundleno = 100 (0x64), region = 195 }
  0x82 PF: > { %s1437_s27 = scalar_lea.vmem %s2580_s23, 8   ;;  %s1440_s29 = scalar_lea.vmem %s2583_s25, 8 [#allocation2]  }
  0x83   : > { %1530 = sbr.rel (%p1599_p12) target bundleno = 151 (0x97), region = 200  ;;  %s2715_s7 = smov (!%p1599_p12), 0  }
  0x84   : > { %s2371_s24 = smov (!%p1599_p12), 0  }
  0x8a LB: >> { %v348_v60 = vld [vmem:[%s2365_s27] sm:$0xf]  ;;  %v350_v61 = vld [vmem:[%s2365_s27 + $0x9c] sm:$0xf]  ;;  %v352_v62 = vld [vmem:[%s2365_s27 + $0x138] sm:$0xf]  ;;  %s2373_s24 = sphi %s2371_s24, %s342_s24   ;;  %s2369_s7 = sphi %s2715_s7, %s2980_s7   ;;  %s2365_s27 = sphi %s1437_s27, %s1443_s27   ;;  %s2361_s29 = sphi %s1440_s29, %s1446_s29  }
  0x8b   : >> { %349 = vst [vmem:[%s2361_s29] sm:$0xf] %v348_v60  ;;  %351 = vst [vmem:[%s2361_s29 + $0x54] sm:$0xf] %v350_v61  ;;  %v354_v63 = vld [vmem:[%s2365_s27 + $0x1d4] sm:$0xf]  ;;  %s356_s28 = sadd.s32 1, %s2369_s7 }
  0x8c   : >> { %353 = vst [vmem:[%s2361_s29 + $0xa8] sm:$0xf] %v352_v62  ;;  %355 = vst [vmem:[%s2361_s29 + $0xfc] sm:$0xf] %v354_v63  ;;  %p357_p3 = scmp.ge.s32.totalorder %s356_s28, %s2585_s26  ;;  %s342_s24 = sadd.s32 1, %s2373_s24  }
  0x8d   : >> { %p341_p4 = scmp.ge.s32.totalorder %s342_s24, %s2585_s26 }
  0x8e   : >> { %s2996_s28 = smov (%p357_p3, %s356_s28), 0 }
  0x8f   : >> { %s1441_s30 = smul.u32 12, %s2996_s28  ;;  %s2980_s7 = smov %s2996_s28 }
  0x90   : > { %344 = sbr.rel (!%p341_p4) target bundleno = 138 (0x8a), region = 206 }
  0x91   : >> { %s1442_s4 = scalar_lea.vmem %s2580_s23, %s1441_s30  ;;  %s1445_s5 = scalar_lea.vmem %s2583_s25, %s1441_s30 [#allocation2] }
  0x92   : >> { %s1443_s27 = scalar_lea.vmem %s1442_s4, 8   ;;  %s1446_s29 = scalar_lea.vmem %s1445_s5, 8 [#allocation2]  }
  0x97 PF: > { %p1602_p6 = scmp.ge.s32.totalorder %s2309_s14, 1  ;;  %p365_p7 = scmp.lt.s32.totalorder %s2309_s14, 3 }
  0x99   : > { %p366_p8 = pnand %p1602_p6, %p365_p7 }
  0x9a   : > { %v2107_v0 = vld [vmem:[%s2967_s1 + $0x40] sm:$0xff] (!%p366_p8)   ;;  %v2110_v3 = vld [vmem:[%s2967_s1 + $0x48] sm:$0xff] (!%p366_p8)   ;;  %v2113_v6 = vld [vmem:[%s2967_s1 + $0x50] sm:$0xff] (!%p366_p8)   ;;  %s372_s17 = sand.u32 (!%p366_p8), 1, %s2301_s12  }
  0x9b   : > { %369 = sbr.rel (%p366_p8) target bundleno = 586 (0x24a), region = 68  ;;  %v2108_v1 = vld [vmem:[%s2967_s1] sm:$0xff] (!%p366_p8)   ;;  %1714 = vmatprep.subr.bf16.mxu0 (!%p366_p8), %v2107_v0  ;;  %v2111_v4 = vld [vmem:[%s2967_s1 + $0x8] sm:$0xff] (!%p366_p8)   ;;  %v2114_v7 = vld [vmem:[%s2967_s1 + $0x10] sm:$0xff] (!%p366_p8)  }
  0x9c   : > { %v2109_v2 = vld [vmem:[%s2967_s1 + $0x80] sm:$0xff] (!%p366_p8)   ;;  %1715 = vmatpush3.bf16.msra.mxu0 (!%p366_p8), %v2108_v1  ;;  %v2112_v5 = vld [vmem:[%s2967_s1 + $0x88] sm:$0xff] (!%p366_p8)   ;;  %v2115_v8 = vld [vmem:[%s2967_s1 + $0x90] sm:$0xff] (!%p366_p8)   ;;  %s1882_s29 = smul.u32 (!%p366_p8), 336, %s372_s17 }
  0x9d   : > { %1836 = vmatprep.subr.bf16.mxu1 (!%p366_p8), %v2109_v2  ;;  %1716 = vmatprep.subr.bf16.mxu0 (!%p366_p8), %v2110_v3  ;;  %v2116_v9 = vld [vmem:[%s2967_s1 + $0x58] sm:$0xff] (!%p366_p8)   ;;  %v2119_v12 = vld [vmem:[%s2967_s1 + $0x60] sm:$0xff] (!%p366_p8)   ;;  %v2122_v15 = vld [vmem:[%s2967_s1 + $0x68] sm:$0xff] (!%p366_p8)   ;;  %s1883_s22 = smul.u32 (!%p366_p8), 28, %s372_s17 }
  0x9e   : > { %1837 = vmatpush3.bf16.msra.mxu1 (!%p366_p8), %v2109_v2  ;;  %v2117_v10 = vld [vmem:[%s2967_s1 + $0x18] sm:$0xff] (!%p366_p8)   ;;  %v2121_v13 = vld [vmem:[%s2967_s1 + $0xa0] sm:$0xff] (!%p366_p8)   ;;  %v2124_v16 = vld [vmem:[%s2967_s1 + $0xa8] sm:$0xff] (!%p366_p8)   ;;  %s2804_s25 = scalar_lea.vmem (!%p366_p8), [#allocation2], %s1882_s29 }
  0x9f   : > { %1838 = vmatprep.subr.bf16.mxu1 (!%p366_p8), %v2112_v5  ;;  %v2118_v11 = vld [vmem:[%s2967_s1 + $0x98] sm:$0xff] (!%p366_p8)   ;;  %v2120_v14 = vld [vmem:[%s2967_s1 + $0x20] sm:$0xff] (!%p366_p8)   ;;  %v2123_v17 = vld [vmem:[%s2967_s1 + $0x28] sm:$0xff] (!%p366_p8)   ;;  %s2900_s12 = scalar_lea.vmem (!%p366_p8), [#allocation3], %s1883_s22  }
  0xa0   : > { %1717 = vmatpush3.bf16.msra.mxu0 (!%p366_p8), %v2111_v4  ;;  %v2125_v18 = vld [vmem:[%s2967_s1 + $0x70] sm:$0xff] (!%p366_p8)   ;;  %v2128_v21 = vld [vmem:[%s2967_s1 + $0x78] sm:$0xff] (!%p366_p8)  }
  0xa1   : > { %1718 = vmatprep.subr.bf16.mxu0 (!%p366_p8), %v2113_v6  ;;  %v2126_v19 = vld [vmem:[%s2967_s1 + $0x30] sm:$0xff] (!%p366_p8)   ;;  %v2130_v22 = vld [vmem:[%s2967_s1 + $0xb8] sm:$0xff] (!%p366_p8)  }
  0xa2   : > { %1839 = vmatpush3.bf16.msra.mxu1 %v2112_v5  ;;  %v2127_v20 = vld [vmem:[%s2967_s1 + $0xb0] sm:$0xff]   ;;  %v2129_v25 = vld [vmem:[%s2967_s1 + $0x38] sm:$0xff]   ;;  %s1267_s17 = smul.u32 (%p2458_p5), 7, %s2443_s15 }
  0xa3   : > { %1840 = vmatprep.subr.bf16.mxu1 %v2115_v8  ;;  %v2133_v23 = vld [vmem:[%s2804_s25 + $0x4] ss:$12 sps:$4 sm:$0xff]   ;;  %v2134_v24 = vld [vmem:[%s2804_s25 + $0x8] ss:$12 sps:$4 sm:$0xff]   ;;  %v2131_v26 = vld [vmem:[%s2804_s25] ss:$12 sps:$4 sm:$0xff]  }
  0xa4   : > { %1719 = vmatpush3.bf16.msra.mxu0 %v2114_v7  ;;  %910 = vmatprep.mubr.bf16.mxu0 %v2133_v23  ;;  %v2136_v27 = vld [vmem:[%s2804_s25 + $0x1c] ss:$12 sps:$4 sm:$0xff]   ;;  %v2135_v28 = vld [vmem:[%s2804_s25 + $0x20] ss:$12 sps:$4 sm:$0xff]   ;;  %v2142_v29 = vld [vmem:[%s2804_s25 + $0x38] ss:$12 sps:$4 sm:$0xff]  }
  0xa5   : > { %1720 = vmatprep.subr.bf16.mxu0 %v2116_v9  ;;  %1852 = vmatprep.mubr.bf16.mxu1 %v2134_v24  ;;  %v2138_v30 = vld [vmem:[%s2804_s25 + $0x18] ss:$12 sps:$4 sm:$0xff]   ;;  %v2139_v31 = vld [vmem:[%s2804_s25 + $0x34] ss:$12 sps:$4 sm:$0xff]   ;;  %v2143_v32 = vld [vmem:[%s2804_s25 + $0x50] ss:$12 sps:$4 sm:$0xff]  }
  0xa6   : > { %1841 = vmatpush3.bf16.msra.mxu1 %v2115_v8  ;;  %v2150_v33 = vld [vmem:[%s2804_s25 + $0x68] ss:$12 sps:$4 sm:$0xff]   ;;  %v2141_v34 = vld [vmem:[%s2804_s25 + $0x30] ss:$12 sps:$4 sm:$0xff]   ;;  %v2144_v35 = vld [vmem:[%s2804_s25 + $0x4c] ss:$12 sps:$4 sm:$0xff]  }
  0xa7   : > { %1842 = vmatprep.subr.bf16.mxu1 %v2118_v11  ;;  %v2151_v36 = vld [vmem:[%s2804_s25 + $0x80] ss:$12 sps:$4 sm:$0xff]   ;;  %v2158_v37 = vld [vmem:[%s2804_s25 + $0x98] ss:$12 sps:$4 sm:$0xff]   ;;  %v2146_v38 = vld [vmem:[%s2804_s25 + $0x48] ss:$12 sps:$4 sm:$0xff]  }
  0xa8   : > { %1721 = vmatpush3.bf16.msra.mxu0 %v2117_v10  ;;  %v2147_v39 = vld [vmem:[%s2804_s25 + $0x64] ss:$12 sps:$4 sm:$0xff]   ;;  %v2166_v41 = vld [vmem:[%s2804_s25 + $0xc8] ss:$12 sps:$4 sm:$0xff]   ;;  %v2149_v42 = vld [vmem:[%s2804_s25 + $0x60] ss:$12 sps:$4 sm:$0xff]  }
  0xa9   : > { %1722 = vmatprep.subr.bf16.mxu0 %v2119_v12  ;;  %v2159_v40 = vld [vmem:[%s2804_s25 + $0xb0] ss:$12 sps:$4 sm:$0xff]   ;;  %v2167_v44 = vld [vmem:[%s2804_s25 + $0xe0] ss:$12 sps:$4 sm:$0xff]   ;;  %v2174_v45 = vld [vmem:[%s2804_s25 + $0xf8] ss:$12 sps:$4 sm:$0xff]  }
  0xaa   : > { %1843 = vmatpush3.bf16.msra.mxu1 %v2118_v11  ;;  %v2152_v43 = vld [vmem:[%s2804_s25 + $0x7c] ss:$12 sps:$4 sm:$0xff]   ;;  %v2154_v46 = vld [vmem:[%s2804_s25 + $0x78] ss:$12 sps:$4 sm:$0xff]   ;;  %v2155_v47 = vld [vmem:[%s2804_s25 + $0x94] ss:$12 sps:$4 sm:$0xff]  }
  0xab   : > { %1844 = vmatprep.subr.bf16.mxu1 %v2121_v13  ;;  %v2175_v48 = vld [vmem:[%s2804_s25 + $0x110] ss:$12 sps:$4 sm:$0xff]   ;;  %v2182_v49 = vld [vmem:[%s2804_s25 + $0x128] ss:$12 sps:$4 sm:$0xff]   ;;  %v2160_v51 = vld [vmem:[%s2804_s25 + $0xac] ss:$12 sps:$4 sm:$0xff]  }
  0xac   : > { %1723 = vmatpush3.bf16.msra.mxu0 %v2120_v14  ;;  %v2157_v50 = vld [vmem:[%s2804_s25 + $0x90] ss:$12 sps:$4 sm:$0xff]   ;;  %v2183_v52 = vld [vmem:[%s2804_s25 + $0x140] ss:$12 sps:$4 sm:$0xff]   ;;  %v2162_v53 = vld [vmem:[%s2804_s25 + $0xa8] ss:$12 sps:$4 sm:$0xff]  }
  0xad   : > { %1724 = vmatprep.subr.bf16.mxu0 %v2122_v15  ;;  %v2163_v54 = vld [vmem:[%s2804_s25 + $0xc4] ss:$12 sps:$4 sm:$0xff]   ;;  %v2165_v55 = vld [vmem:[%s2804_s25 + $0xc0] ss:$12 sps:$4 sm:$0xff]   ;;  %v2168_v56 = vld [vmem:[%s2804_s25 + $0xdc] ss:$12 sps:$4 sm:$0xff]  }
  0xae   : > { %1845 = vmatpush3.bf16.msra.mxu1 %v2121_v13  ;;  %v2170_v57 = vld [vmem:[%s2804_s25 + $0xd8] ss:$12 sps:$4 sm:$0xff]   ;;  %v2171_v58 = vld [vmem:[%s2804_s25 + $0xf4] ss:$12 sps:$4 sm:$0xff]   ;;  %v2173_v59 = vld [vmem:[%s2804_s25 + $0xf0] ss:$12 sps:$4 sm:$0xff]  }
  0xaf   : > { %1846 = vmatprep.subr.bf16.mxu1 %v2124_v16  ;;  %v2176_v60 = vld [vmem:[%s2804_s25 + $0x10c] ss:$12 sps:$4 sm:$0xff]   ;;  %v2178_v61 = vld [vmem:[%s2804_s25 + $0x108] ss:$12 sps:$4 sm:$0xff]   ;;  %v2179_v62 = vld [vmem:[%s2804_s25 + $0x124] ss:$12 sps:$4 sm:$0xff]  }
  0xb0   : > { %1725 = vmatpush3.bf16.msra.mxu0 %v2123_v17  ;;  %v2181_v63 = vld [vmem:[%s2804_s25 + $0x120] ss:$12 sps:$4 sm:$0xff]   ;;  %v2184_v0 = vld [vmem:[%s2804_s25 + $0x13c] ss:$12 sps:$4 sm:$0xff]   ;;  %v2186_v1 = vld [vmem:[%s2804_s25 + $0x138] ss:$12 sps:$4 sm:$0xff]  }
  0xb1   : > { %1726 = vmatprep.subr.bf16.mxu0 %v2125_v18  ;;  %s1696_s27 = smul.u32 (%p2458_p5), 28, %s2443_s15  ;;  %s1268_s29 = ssub.s32 (%p2458_p5), 13, %s1267_s17 }
  0xb2   : > { %1847 = vmatpush3.bf16.msra.mxu1 %v2124_v16  ;;  %p1269_p9 = scmp.lt.s32.totalorder (%p2458_p5), %s1268_s29, 7 }
  0xb3   : > { %1848 = vmatprep.subr.bf16.mxu1 %v2127_v20  ;;  %s2917_s28 = scalar_lea.vmem (%p2458_p5), %s2969_s3, %s1696_s27  }
  0xb4   : > { %1727 = vmatpush3.bf16.msra.mxu0 %v2126_v19 }
  0xb5   : > { %1728 = vmatprep.subr.bf16.mxu0 %v2128_v21 }
  0xb6   : > { %1849 = vmatpush3.bf16.msra.mxu1 %v2127_v20 }
  0xb7   : > { %1850 = vmatprep.subr.bf16.mxu1 %v2130_v22 }
  0xb8   : > { %1729 = vmatpush3.bf16.msra.mxu0 %v2129_v25 }
  0xba   : > { %1851 = vmatpush3.bf16.msra.mxu1 %v2130_v22 }
  0xbb   : > { %911 = vmatmul.mubr.bf16.vlgmr.msra.gmra.mrb[0].mxu0 %v2131_v26 }
  0xbc   : > { %918 = vmatprep.mubr.bf16.mxu0 %v2136_v27 }
  0xbd   : > { %1853 = vmatmul.mubr.bf16.vlgmr.msra.gmra.mrb[0].mxu1 %v2135_v28 }
  0xbe   : > { %1856 = vmatprep.mubr.bf16.mxu1 %v2142_v29 }
  0xc3   : > { %919 = vmatmul.mubr.bf16.gmra.mrb[4].mxu0 %v2138_v30 }
  0xc4   : > { %926 = vmatprep.mubr.bf16.mxu0 %v2139_v31 }
  0xc5   : > { %1857 = vmatmul.mubr.bf16.gmra.mrb[4].mxu1 %v2143_v32 }
  0xc6   : > { %1860 = vmatprep.mubr.bf16.mxu1 %v2150_v33 }
  0xcb   : > { %927 = vmatmul.mubr.bf16.gmra.mrb[8].mxu0 %v2141_v34 }
  0xcc   : > { %934 = vmatprep.mubr.bf16.mxu0 %v2144_v35 }
  0xcd   : > { %1861 = vmatmul.mubr.bf16.gmra.mrb[8].mxu1 %v2151_v36 }
  0xce   : > { %1864 = vmatprep.mubr.bf16.mxu1 %v2158_v37 }
  0xd3   : > { %935 = vmatmul.mubr.bf16.gmra.mrb[12].mxu0 %v2146_v38 }
  0xd4   : > { %942 = vmatprep.mubr.bf16.mxu0 %v2147_v39 }
  0xd5   : > { %1865 = vmatmul.mubr.bf16.gmra.mrb[12].mxu1 %v2159_v40 }
  0xd6   : > { %1868 = vmatprep.mubr.bf16.mxu1 %v2166_v41 }
  0xdb   : > { %943 = vmatmul.mubr.bf16.gmra.mrb[16].mxu0 %v2149_v42 }
  0xdc   : > { %950 = vmatprep.mubr.bf16.mxu0 %v2152_v43 }
  0xdd   : > { %1869 = vmatmul.mubr.bf16.gmra.mrb[16].mxu1 %v2167_v44 }
  0xde   : > { %1872 = vmatprep.mubr.bf16.mxu1 %v2174_v45 }
  0xe3   : > { %951 = vmatmul.mubr.bf16.gmra.mrb[20].mxu0 %v2154_v46 }
  0xe4   : > { %958 = vmatprep.mubr.bf16.mxu0 %v2155_v47 }
  0xe5   : > { %1873 = vmatmul.mubr.bf16.gmra.mrb[20].mxu1 %v2175_v48 }
  0xe6   : > { %1876 = vmatprep.mubr.bf16.mxu1 %v2182_v49 }
  0xeb   : > { %959 = vmatmul.mubr.bf16.gmra.mrb[24].mxu0 %v2157_v50 }
  0xec   : > { %966 = vmatprep.mubr.bf16.mxu0 %v2160_v51 }
  0xed   : > { %1877 = vmatmul.mubr.bf16.gmra.mrb[24].mxu1 %v2183_v52 }
  0xf3   : > { %967 = vmatmul.mubr.bf16.gmra.mrb[28].mxu0 %v2162_v53 }
  0xf4   : > { %974 = vmatprep.mubr.bf16.mxu0 %v2163_v54 }
  0xfb   : > { %975 = vmatmul.mubr.bf16.gmra.mrb[32].mxu0 %v2165_v55 }
  0xfc   : > { %982 = vmatprep.mubr.bf16.mxu0 %v2168_v56 }
 0x103   : > { %983 = vmatmul.mubr.bf16.gmra.mrb[36].mxu0 %v2170_v57 }
 0x104   : > { %990 = vmatprep.mubr.bf16.mxu0 %v2171_v58 }
 0x10b   : > { %991 = vmatmul.mubr.bf16.gmra.mrb[40].mxu0 %v2173_v59 }
 0x10c   : > { %998 = vmatprep.mubr.bf16.mxu0 %v2176_v60 }
 0x113   : > { %999 = vmatmul.mubr.bf16.gmra.mrb[44].mxu0 %v2178_v61 }
 0x114   : > { %1006 = vmatprep.mubr.bf16.mxu0 %v2179_v62 }
 0x11b   : > { %1007 = vmatmul.mubr.bf16.gmra.mrb[48].mxu0 %v2181_v63 }
 0x11c   : > { %1014 = vmatprep.mubr.bf16.mxu0 %v2184_v0 }
 0x123   : > { %1015 = vmatmul.mubr.bf16.gmra.mrb[52].mxu0 %v2186_v1 }
 0x18e   : > { %v1730_v2 = vpop.f32.mrb[0].mxu0 }
 0x18f   : > { %v1731_v3 = vpop.f32.mrb[1].mxu0 }
 0x190   : > { %v1732_v4 = vadd.f32 %v1731_v3, %v1730_v2  ;;  %v1733_v5 = vpop.f32.mrb[2].mxu0  ;;  %v1854_v6 = vpop.f32.mrb[0].mxu1 }
 0x191   : > { %v1734_v7 = vpop.f32.mrb[3].mxu0  ;;  %v1057_v8 = vpop.f32.mrb[1].mxu1 }
 0x192   : > { %v1735_v9 = vadd.f32 %v1734_v7, %v1733_v5  ;;  %v2851_v10 = vadd.f32 %v1732_v4, %v1057_v8  ;;  %v1855_v11 = vpop.f32.mrb[2].mxu1 }
 0x193   : > { %v1060_v12 = vpop.f32.mrb[3].mxu1 }
 0x194   : > { %v2853_v13 = vadd.f32 %v1735_v9, %v1060_v12 }
 0x196   : > { %v1736_v14 = vpop.f32.mrb[4].mxu0 }
 0x197   : > { %v1737_v15 = vpop.f32.mrb[5].mxu0 }
 0x198   : > { %v1738_v16 = vadd.f32 %v1737_v15, %v1736_v14  ;;  %v1739_v17 = vpop.f32.mrb[6].mxu0  ;;  %v1858_v18 = vpop.f32.mrb[4].mxu1 }
 0x199   : > { %v1740_v19 = vpop.f32.mrb[7].mxu0  ;;  %v1073_v20 = vpop.f32.mrb[5].mxu1 }
 0x19a   : > { %v2855_v21 = vadd.f32 %v1854_v6, %v1738_v16  ;;  %v1741_v22 = vadd.f32 %v1740_v19, %v1739_v17  ;;  %v1859_v23 = vpop.f32.mrb[6].mxu1 }
 0x19b   : > { %v1076_v24 = vpop.f32.mrb[7].mxu1 }
 0x19c   : > { %v2857_v25 = vadd.f32 %v1855_v11, %v1741_v22 }
 0x19e   : > { %v1742_v26 = vpop.f32.mrb[8].mxu0 }
 0x19f   : > { %v1743_v27 = vpop.f32.mrb[9].mxu0 }
 0x1a0   : > { %v1744_v28 = vadd.f32 %v1743_v27, %v1742_v26  ;;  %v1745_v29 = vpop.f32.mrb[10].mxu0  ;;  %v1862_v30 = vpop.f32.mrb[8].mxu1 }
 0x1a1   : > { %v1746_v31 = vpop.f32.mrb[11].mxu0  ;;  %v1089_v32 = vpop.f32.mrb[9].mxu1 }
 0x1a2   : > { %v1747_v33 = vadd.f32 %v1746_v31, %v1745_v29  ;;  %v2859_v34 = vadd.f32 %v1744_v28, %v1073_v20  ;;  %v1863_v35 = vpop.f32.mrb[10].mxu1 }
 0x1a3   : > { %v1092_v36 = vpop.f32.mrb[11].mxu1 }
 0x1a4   : > { %v2861_v37 = vadd.f32 %v1747_v33, %v1076_v24 }
 0x1a6   : > { %v1748_v38 = vpop.f32.mrb[12].mxu0 }
 0x1a7   : > { %v1749_v39 = vpop.f32.mrb[13].mxu0 }
 0x1a8   : > { %v1750_v40 = vadd.f32 %v1749_v39, %v1748_v38  ;;  %v1751_v41 = vpop.f32.mrb[14].mxu0  ;;  %v1866_v42 = vpop.f32.mrb[12].mxu1 }
 0x1a9   : > { %v1752_v43 = vpop.f32.mrb[15].mxu0  ;;  %v1105_v44 = vpop.f32.mrb[13].mxu1 }
 0x1aa   : > { %v2863_v45 = vadd.f32 %v1858_v18, %v1750_v40  ;;  %v1753_v46 = vadd.f32 %v1752_v43, %v1751_v41  ;;  %v1867_v47 = vpop.f32.mrb[14].mxu1 }
 0x1ab   : > { %v1108_v48 = vpop.f32.mrb[15].mxu1 }
 0x1ac   : > { %v1085_v49 = vadd.f32 %v1859_v23, %v1753_v46 }
 0x1ae   : > { %v1168_v50 = vmax.f32 %v2851_v10, %v1085_v49  ;;  %v1754_v51 = vpop.f32.mrb[16].mxu0 }
 0x1af   : > { %v1755_v52 = vpop.f32.mrb[17].mxu0 }
 0x1b0   : > { %v1756_v53 = vadd.f32 %v1755_v52, %v1754_v51  ;;  %v1757_v54 = vpop.f32.mrb[18].mxu0  ;;  %v2866_v55 = vpop.f32.mrb[16].mxu1 }
 0x1b1   : > { %v1758_v56 = vpop.f32.mrb[19].mxu0  ;;  %v1121_v57 = vpop.f32.mrb[17].mxu1 }
 0x1b2   : > { %v1759_v58 = vadd.f32 %v1758_v56, %v1757_v54  ;;  %v1090_v59 = vadd.f32 %v1756_v53, %v1089_v32  ;;  %v1871_v60 = vpop.f32.mrb[18].mxu1 }
 0x1b3   : > { %v1124_v61 = vpop.f32.mrb[19].mxu1 }
 0x1b4   : > { %v1171_v62 = vmax.f32 %v2853_v13, %v1090_v59  ;;  %v1093_v63 = vadd.f32 %v1759_v58, %v1092_v36 }
 0x1b6   : > { %v1174_v0 = vmax.f32 %v2855_v21, %v1093_v63  ;;  %v1760_v1 = vpop.f32.mrb[20].mxu0 }
 0x1b7   : > { %v1761_v2 = vpop.f32.mrb[21].mxu0 }
 0x1b8   : > { %v1762_v3 = vadd.f32 %v1761_v2, %v1760_v1  ;;  %v1763_v4 = vpop.f32.mrb[22].mxu0  ;;  %v2870_v5 = vpop.f32.mrb[20].mxu1 }
 0x1b9   : > { %v1764_v6 = vpop.f32.mrb[23].mxu0  ;;  %v1137_v7 = vpop.f32.mrb[21].mxu1 }
 0x1ba   : > { %v1098_v8 = vadd.f32 %v1862_v30, %v1762_v3  ;;  %v1765_v9 = vadd.f32 %v1764_v6, %v1763_v4  ;;  %v2872_v10 = vpop.f32.mrb[22].mxu1 }
 0x1bb   : > { %v1140_v11 = vpop.f32.mrb[23].mxu1 }
 0x1bc   : > { %v1101_v12 = vadd.f32 %v1863_v35, %v1765_v9  ;;  %v1177_v14 = vmax.f32 %v2857_v25, %v1098_v8 }
 0x1be   : > { %v1180_v13 = vmax.f32 %v2859_v34, %v1101_v12  ;;  %v1766_v15 = vpop.f32.mrb[24].mxu0 }
 0x1bf   : > { %v1767_v16 = vpop.f32.mrb[25].mxu0 }
 0x1c0   : > { %v1768_v17 = vadd.f32 %v1767_v16, %v1766_v15  ;;  %v1769_v18 = vpop.f32.mrb[26].mxu0  ;;  %v2876_v19 = vpop.f32.mrb[24].mxu1 }
 0x1c1   : > { %v1770_v20 = vpop.f32.mrb[27].mxu0  ;;  %v2878_v21 = vpop.f32.mrb[25].mxu1 }
 0x1c2   : > { %v1771_v22 = vadd.f32 %v1770_v20, %v1769_v18  ;;  %v1106_v23 = vadd.f32 %v1768_v17, %v1105_v44  ;;  %v2880_v24 = vpop.f32.mrb[26].mxu1 }
 0x1c3   : > { %v2882_v26 = vpop.f32.mrb[27].mxu1 }
 0x1c4   : > { %v1183_v27 = vmax.f32 %v2861_v37, %v1106_v23  ;;  %v1109_v25 = vadd.f32 %v1771_v22, %v1108_v48 }
 0x1c6   : > { %v1186_v28 = vmax.f32 %v2863_v45, %v1109_v25  ;;  %v1772_v29 = vpop.f32.mrb[28].mxu0 }
 0x1c7   : > { %v1773_v30 = vpop.f32.mrb[29].mxu0 }
 0x1c8   : > { %v1774_v31 = vadd.f32 %v1773_v30, %v1772_v29  ;;  %v1775_v32 = vpop.f32.mrb[30].mxu0 }
 0x1c9   : > { %v1776_v33 = vpop.f32.mrb[31].mxu0 }
 0x1ca   : > { %v1114_v34 = vadd.f32 %v1866_v42, %v1774_v31  ;;  %v1777_v35 = vadd.f32 %v1776_v33, %v1775_v32 }
 0x1cc   : > { %v1117_v36 = vadd.f32 %v1867_v47, %v1777_v35  ;;  %v1169_v38 = vmax.f32 %v1168_v50, %v1114_v34 }
 0x1ce   : > { %v1172_v39 = vmax.f32 %v1171_v62, %v1117_v36  ;;  %v1778_v40 = vpop.f32.mrb[32].mxu0 }
 0x1cf   : > { %v1779_v41 = vpop.f32.mrb[33].mxu0 }
 0x1d0   : > { %v1780_v43 = vadd.f32 %v1779_v41, %v1778_v40  ;;  %v1781_v44 = vpop.f32.mrb[34].mxu0 }
 0x1d1   : > { %v1782_v46 = vpop.f32.mrb[35].mxu0 }
 0x1d2   : > { %v1783_v49 = vadd.f32 %v1782_v46, %v1781_v44  ;;  %v1122_v37 = vadd.f32 %v1780_v43, %v1121_v57 }
 0x1d4   : > { %v1175_v48 = vmax.f32 %v1174_v0, %v1122_v37  ;;  %v1125_v51 = vadd.f32 %v1783_v49, %v1124_v61 }
 0x1d6   : > { %v1178_v45 = vmax.f32 %v1177_v14, %v1125_v51  ;;  %v1784_v52 = vpop.f32.mrb[36].mxu0 }
 0x1d7   : > { %v1785_v53 = vpop.f32.mrb[37].mxu0 }
 0x1d8   : > { %v1786_v54 = vadd.f32 %v1785_v53, %v1784_v52  ;;  %v1787_v56 = vpop.f32.mrb[38].mxu0 }
 0x1d9   : > { %v1788_v58 = vpop.f32.mrb[39].mxu0 }
 0x1da   : > { %v1130_v42 = vadd.f32 %v2866_v55, %v1786_v54  ;;  %v1789_v47 = vadd.f32 %v1788_v58, %v1787_v56  ;;  %v1669_v55 = vld [vmem:[%s2968_s2] ss:$0 sm:$0xff] }
 0x1dc   : > { %v1133_v50 = vadd.f32 %v1871_v60, %v1789_v47  ;;  %v1181_v59 = vmax.f32 %v1180_v13, %v1130_v42 }
 0x1de   : > { %v2887_v62 = vmax.f32 %v1183_v27, %v1133_v50  ;;  %v1790_v63 = vpop.f32.mrb[40].mxu0 }
 0x1df   : > { %v1791_v1 = vpop.f32.mrb[41].mxu0 }
 0x1e0   : > { %v1792_v2 = vadd.f32 %v1791_v1, %v1790_v63  ;;  %v1793_v3 = vpop.f32.mrb[42].mxu0 }
 0x1e1   : > { %v1794_v57 = vpop.f32.mrb[43].mxu0 }
 0x1e2   : > { %v1795_v0 = vadd.f32 %v1794_v57, %v1793_v3  ;;  %v1138_v61 = vadd.f32 %v1792_v2, %v1137_v7 }
 0x1e4   : > { %v2889_v4 = vmax.f32 %v1186_v28, %v1138_v61  ;;  %v1141_v6 = vadd.f32 %v1795_v0, %v1140_v11 }
 0x1e6   : > { %v1170_v8 = vmax.f32 %v1169_v38, %v1141_v6  ;;  %v1796_v9 = vpop.f32.mrb[44].mxu0 }
 0x1e7   : > { %v1797_v60 = vpop.f32.mrb[45].mxu0 }
 0x1e8   : > { %v1798_v12 = vadd.f32 %v1797_v60, %v1796_v9  ;;  %v1799_v14 = vpop.f32.mrb[46].mxu0  ;;  %v1196_v15 = vadd.f32 %v1669_v55, %v1170_v8 }
 0x1e9   : > { %v1800_v13 = vpop.f32.mrb[47].mxu0 }
 0x1ea   : > { %v1146_v16 = vadd.f32 %v2870_v5, %v1798_v12  ;;  %v1801_v17 = vadd.f32 %v1800_v13, %v1799_v14  ;;  %v1210_v20 = vmul.f32 0.01, %v1196_v15  ;;  %vm1203_vm0 = vcmp.ge.f32.partialorder %v1196_v15, 0.0 }
 0x1ec   : > { %v1173_v18 = vmax.f32 %v1172_v39, %v1146_v16  ;;  %v1149_v7 = vadd.f32 %v2872_v10, %v1801_v17  ;;  %v1217_v31 = vsel %vm1203_vm0, %v1196_v15, %v1210_v20 }
 0x1ee   : > { %v1197_v11 = vadd.f32 %v1669_v55, %v1173_v18  ;;  %v1176_v22 = vmax.f32 %v1175_v48, %v1149_v7  ;;  %v1802_v23 = vpop.f32.mrb[48].mxu0 }
 0x1ef   : > { %v1803_v27 = vpop.f32.mrb[49].mxu0 }
 0x1f0   : > { %vm1204_vm1 = vcmp.ge.f32.partialorder %v1197_v11, 0.0  ;;  %v1211_v25 = vmul.f32 0.01, %v1197_v11  ;;  %v1804_v28 = vadd.f32 %v1803_v27, %v1802_v23  ;;  %v1805_v29 = vpop.f32.mrb[50].mxu0  ;;  %v1198_v34 = vadd.f32 %v1669_v55, %v1176_v22 }
 0x1f1   : > { %v1806_v30 = vpop.f32.mrb[51].mxu0 }
 0x1f2   : > { %v1218_v32 = vsel %vm1204_vm1, %v1197_v11, %v1211_v25  ;;  %v1807_v5 = vadd.f32 %v1806_v30, %v1805_v29  ;;  %v1154_v10 = vadd.f32 %v1804_v28, %v2878_v21  ;;  %v1212_v40 = vmul.f32 0.01, %v1198_v34 }
 0x1f3   : > { %v1700_v33 = vpack.c.bf16 %v1218_v32, %v1217_v31  ;;  %vm1205_vm2 = vcmp.ge.f32.partialorder %v1198_v34, 0.0 }
 0x1f4   : > { %v1157_v35 = vadd.f32 %v1807_v5, %v2882_v26  ;;  %v1179_v36 = vmax.f32 %v1178_v45, %v1154_v10  ;;  %v1219_v51 = vsel %vm1205_vm2, %v1198_v34, %v1212_v40 }
 0x1f5   : > { %1701 = vst [vmem:[%s2900_s12] sm:$0xff] %v1700_v33  }
 0x1f6   : > { %v1182_v38 = vmax.f32 %v1181_v59, %v1157_v35  ;;  %v1808_v39 = vpop.f32.mrb[52].mxu0  ;;  %v1199_v41 = vadd.f32 %v1669_v55, %v1179_v36 }
 0x1f7   : > { %v1809_v43 = vpop.f32.mrb[53].mxu0 }
 0x1f8   : > { %v1810_v44 = vadd.f32 %v1809_v43, %v1808_v39  ;;  %v1811_v46 = vpop.f32.mrb[54].mxu0  ;;  %vm1206_vm3 = vcmp.ge.f32.partialorder %v1199_v41, 0.0  ;;  %v1213_v49 = vmul.f32 0.01, %v1199_v41  ;;  %v1200_v21 = vadd.f32 %v1669_v55, %v1182_v38 }
 0x1f9   : > { %v1812_v37 = vpop.f32.mrb[55].mxu0 }
 0x1fa   : > { %v1162_v26 = vadd.f32 %v2876_v19, %v1810_v44  ;;  %v1813_v48 = vadd.f32 %v1812_v37, %v1811_v46  ;;  %v1220_v52 = vsel %vm1206_vm3, %v1199_v41, %v1213_v49  ;;  %v1214_v56 = vmul.f32 0.01, %v1200_v21 }
 0x1fb   : > { %v1705_v53 = vpack.c.bf16 %v1220_v52, %v1219_v51  ;;  %vm1207_vm4 = vcmp.ge.f32.partialorder %v1200_v21, 0.0 }
 0x1fc   : > { %v1185_v45 = vmax.f32 %v2887_v62, %v1162_v26  ;;  %v1165_v54 = vadd.f32 %v2880_v24, %v1813_v48  ;;  %v1221_v19 = vsel %vm1207_vm4, %v1200_v21, %v1214_v56 }
 0x1fd   : > { %1712 = vst [vmem:[%s2900_s12 + $0x8] sm:$0xff] %v1705_v53  }
 0x1fe   : > { %v1201_v58 = vadd.f32 %v1669_v55, %v1185_v45  ;;  %v1188_v42 = vmax.f32 %v2889_v4, %v1165_v54 }
 0x200   : > { %vm1208_vm5 = vcmp.ge.f32.partialorder %v1201_v58, 0.0  ;;  %v1215_v47 = vmul.f32 0.01, %v1201_v58  ;;  %v1202_v50 = vadd.f32 %v1669_v55, %v1188_v42 }
 0x201   : > { %1266 = sbr.rel (!%p2458_p5) target bundleno = 586 (0x24a), region = 76 }
 0x202   : > { %v1222_v59 = vsel %vm1208_vm5, %v1201_v58, %v1215_v47  ;;  %vm1209_vm6 = vcmp.ge.f32.partialorder %v1202_v50, 0.0  ;;  %v1216_v63 = vmul.f32 0.01, %v1202_v50 }
 0x203   : > { %v1710_v1 = vpack.c.bf16 %v1222_v59, %v1221_v19 }
 0x204   : > { %v1223_v2 = vsel %vm1209_vm6, %v1202_v50, %v1216_v63 }
 0x205   : > { %1713 = vst [vmem:[%s2900_s12 + $0x10] sm:$0xff] %v1710_v1   ;;  %v1695_v62 = vpack.c.bf16 %v1223_v2, %v1223_v2 }
 0x207   : > { %1259 = vst [vmem:[%s2900_s12 + $0x18] sm:$0xf] %v1695_v62 }
 0x208   : > { %s2998_s29 = smov (!%p1269_p9, %s1268_s29), 7 }
 0x209   : > { %s1677_s30 = sshll.u32 %s2998_s29, 6 }
 0x20a   : > { %p1680_p10 = scmp.eq.s32.totalorder %s1677_s30, 0 }
 0x20b   : > { %2187 = sdivrem.u32 (!%p1680_p10), %s2998_s29, 7 }
 0x20c   : > { %1277 = sbr.rel (%p1680_p10) target bundleno = 586 (0x24a), region = 80 }
 0x214   : > { %s2923_s20 = spop.drf %2187 }
 0x215   : > { %p1681_p5 = scmp.le.s32.totalorder %s2923_s20, 0 }
 0x216   : > { %s2981_s15 = smov (!%p1681_p5), %s2917_s28  ;;  %s2982_s4 = smov (!%p1681_p5), %s2900_s12 }
 0x217   : > { %1544 = sbr.rel (%p1681_p5) target bundleno = 557 (0x22d), region = 211  ;;  %s2932_s5 = smov (!%p1681_p5), 0  }
 0x218   : > { %s2934_s6 = smov (!%p1681_p5), 0  }
 0x21e LB: >> { %v1294_v24 = vld [vmem:[%s2381_s4] sm:$0xf]  ;;  %v1296_v3 = vld [vmem:[%s2381_s4 + $0x4] sm:$0xf]  ;;  %v1298_v57 = vld [vmem:[%s2381_s4 + $0x8] sm:$0xf]  ;;  %s2389_s6 = sphi %s2934_s6, %s1288_s6   ;;  %s2385_s5 = sphi %s2932_s5, %s2983_s5   ;;  %s2381_s4 = sphi %s2982_s4, %s1313_s4   ;;  %s2377_s15 = sphi %s2981_s15, %s1314_s15  }
 0x21f   : >> { %1295 = vst [vmem:[%s2377_s15] sm:$0xf] %v1294_v24  ;;  %1297 = vst [vmem:[%s2377_s15 + $0x4] sm:$0xf] %v1296_v3  ;;  %v1300_v0 = vld [vmem:[%s2381_s4 + $0xc] sm:$0xf]  ;;  %s1308_s8 = sadd.s32 1, %s2385_s5 }
 0x220   : >> { %1299 = vst [vmem:[%s2377_s15 + $0x8] sm:$0xf] %v1298_v57  ;;  %v1302_v61 = vld [vmem:[%s2381_s4 + $0x10] sm:$0xf]  ;;  %v1304_v4 = vld [vmem:[%s2381_s4 + $0x14] sm:$0xf]  ;;  %p1309_p11 = scmp.ge.s32.totalorder %s1308_s8, %s2923_s20 }
 0x221   : >> { %1301 = vst [vmem:[%s2377_s15 + $0xc] sm:$0xf] %v1300_v0  ;;  %1303 = vst [vmem:[%s2377_s15 + $0x10] sm:$0xf] %v1302_v61  ;;  %v1306_v6 = vld [vmem:[%s2381_s4 + $0x18] sm:$0xf] }
 0x222   : >> { %1305 = vst [vmem:[%s2377_s15 + $0x14] sm:$0xf] %v1304_v4  ;;  %1307 = vst [vmem:[%s2377_s15 + $0x18] sm:$0xf] %v1306_v6  ;;  %s3000_s8 = smov (%p1309_p11, %s1308_s8), 0  ;;  %s1288_s6 = sadd.s32 1, %s2389_s6  }
 0x223   : >> { %s1311_s9 = smul.u32 28, %s3000_s8  ;;  %p1287_p12 = scmp.ge.s32.totalorder %s1288_s6, %s2923_s20 }
 0x224   : >> { %s2983_s5 = smov %s3000_s8 }
 0x225   : >> { %s1313_s4 = scalar_lea.vmem %s2900_s12, %s1311_s9 [#allocation3]   ;;  %s1314_s15 = scalar_lea.vmem %s2917_s28, %s1311_s9  }
 0x226   : > { %1290 = sbr.rel (!%p1287_p12) target bundleno = 542 (0x21e), region = 217 }
 0x22d PF: > { %2189 = sdivrem.u32 %s2998_s29, 7 }
 0x22e   : > { %s1682_s10 = smul.u32 28, %s2923_s20 }
 0x230   : > { %s1319_s11 = scalar_lea.vmem %s2900_s12, %s1682_s10 [#allocation3]   ;;  %s1321_s23 = scalar_lea.vmem %s2917_s28, %s1682_s10  }
 0x236   : > { %s2190_s25 = spop.drf %2189 }
 0x237   : > { %p1684_p13 = scmp.le.s32.totalorder %s2190_s25, 0 }
 0x238   : > { %s2391_s26 = smov (!%p1684_p13), %s1321_s23   ;;  %s2395_s14 = smov (!%p1684_p13), %s1319_s11  }
 0x239   : > { %1558 = sbr.rel (%p1684_p13) target bundleno = 586 (0x24a), region = 222  ;;  %s2399_s18 = smov (!%p1684_p13), 0  }
 0x23a   : > { %s2403_s21 = smov (!%p1684_p13), 0  }
 0x240 LB: >> { %v1331_v8 = vld [vmem:[%s2397_s14] sm:$0xf]  ;;  %s1333_s22 = sadd.s32 1, %s2401_s18  ;;  %s1325_s21 = sadd.s32 1, %s2405_s21   ;;  %s2405_s21 = sphi %s2403_s21, %s1325_s21   ;;  %s2401_s18 = sphi %s2399_s18, %s2400_s18   ;;  %s2397_s14 = sphi %s2395_s14, %s1338_s14   ;;  %s2393_s26 = sphi %s2391_s26, %s1339_s26  }
 0x241   : >> { %1332 = vst [vmem:[%s2393_s26] sm:$0xf] %v1331_v8  ;;  %p1334_p0 = scmp.ge.s32.totalorder %s1333_s22, %s2190_s25  ;;  %p1324_p1 = scmp.ge.s32.totalorder %s1325_s21, %s2190_s25 }
 0x243   : >> { %s3002_s22 = smov (%p1334_p0, %s1333_s22), 0  ;;  %1327 = sbr.rel (!%p1324_p1) target bundleno = 576 (0x240), region = 228 }
 0x244   : >> { %s1685_s12 = sshll.u32 %s3002_s22, 2  ;;  %s2400_s18 = smov %s3002_s22  }
 0x245   : >> { %s1338_s14 = scalar_lea.vmem %s1319_s11, %s1685_s12 [#allocation3]   ;;  %s1339_s26 = scalar_lea.vmem %s1321_s23, %s1685_s12  }
 0x24a PF: > { %p10_p2 = scmp.ge.s32.totalorder %s2446_s16, 4   ;;  %s2984_s12 = smov %s2305_s13 }
 0x24b   : > { %s2985_s13 = smov %s2456_s19  ;;  %s2986_s14 = smov %s2446_s16 }
 0x24c   :  { %12 = sbr.rel (!%p10_p2) target bundleno = 2 (0x2), region = 239 }

// kernel: simple_cnn_forward.6
= control target key start
LH: loop header
LB: loop body
LE: loop exit
PB: predicated region body
PF: predicated region fallthrough
CT: control target
= control target key end

     0   :  { %s2092_s12 = smov 0   ;;  %s2094_s13 = smov 0   ;;  %s2505_s0 = inlined_call_operand.vmem [shape: bf16[4,24,640], index: 0, kind: input, shape index: {}]   ;;  %s2506_s1 = inlined_call_operand.vmem [shape: bf16[640,128], index: 1, kind: input, shape index: {}]   ;;  %s2507_s2 = inlined_call_operand.vmem [shape: f32[1,128], index: 2, kind: input, shape index: {}]   ;;  %s2508_s3 = inlined_call_operand.vmem [shape: bf16[24,128], index: 3, kind: output, shape index: {}]  }
   0x1   :  { %s2096_s14 = smov 0  }
   0x2 LB: > { %s2108_s15 = sadd.s32 4294967295, %s1974_s14   ;;  %s2111_s16 = sadd.s32 1, %s1974_s14   ;;  %s1974_s14 = sphi %s2096_s14, %s2520_s14   ;;  %s1970_s13 = sphi %s2094_s13, %s2519_s13   ;;  %s1966_s12 = sphi %s2092_s12, %s2518_s12  }
   0x3   : > { %s17_s17 = ssub.s32 %s1974_s14, %s2111_s16  ;;  %s20_s18 = sadd.s32 1, %s1970_s13 }
   0x4   : > { %p18_p0 = scmp.eq.s32.totalorder %s17_s17, 0  ;;  %p27_p1 = scmp.ne.s32.totalorder %s1970_s13, %s1966_s12 }
   0x5   : > { %p28_p2 = scmp.eq.s32.totalorder %s1974_s14, 0  ;;  %p99_p3 = scmp.eq.s32.totalorder %s2108_s15, 1 }
   0x6   : > { %s2121_s19 = scalar_select %p18_p0, %s1970_s13, %s20_s18  }
   0x7   : > { %p29_p4 = por %p28_p2, %p27_p1  ;;  %p2123_p5 = por %p99_p3, %p27_p1 }
   0x8   : > { %p1330_p6 = scmp.ge.s32.totalorder %s1974_s14, 2 }
   0xa   : > { %127 = sbr.rel (%p1330_p6) target bundleno = 118 (0x76), region = 24 }
  0x11   : > { %130 = sbr.rel (!%p29_p4) target bundleno = 118 (0x76), region = 28  ;;  %s132_s21 = sand.u32 (%p29_p4), 1, %s1970_s13  }
  0x12   : > { %s1331_s22 = sshll.u32 (%p29_p4), %s1974_s14, 1  ;;  %s1569_s23 = smul.u32 (%p29_p4), 160, %s132_s21 }
  0x13   : > { %s136_s24 = ssub.s32 (%p29_p4), 3, %s1331_s22  ;;  %s1570_s25 = smul.u32 (%p29_p4), 40, %s1974_s14 }
  0x14   : > { %p137_p7 = scmp.lt.s32.totalorder (%p29_p4), %s136_s24, 2  ;;  %s2139_s30 = scalar_lea.vmem (%p29_p4), [#allocation2], %s1569_s23  }
  0x15   : > { %s2136_s28 = scalar_lea.vmem (%p29_p4), %s2505_s0, %s1570_s25  }
  0x18   : > { %s2522_s24 = smov (!%p137_p7, %s136_s24), 2 }
  0x19   : > { %s1333_s29 = smul.u32 1280, %s2522_s24 }
  0x1b   : > { %p1337_p8 = scmp.eq.s32.totalorder %s1333_s29, 0 }
  0x1c   : > { %s150_s4 = scalar_lea.vmem (!%p1337_p8), %s2136_s28, 16   ;;  %s151_s5 = scalar_lea.vmem (!%p1337_p8), %s2139_s30, 16 [#allocation2]  }
  0x1d   : > { %147 = sbr.rel (%p1337_p8) target bundleno = 118 (0x76), region = 32  ;;  %s2144_s6 = sshrl.u32 (!%p1337_p8), %s2522_s24, 1 }
  0x1e   : > { %p1338_p9 = scmp.le.s32.totalorder (!%p1337_p8), %s2144_s6, 0 }
  0x24   : > { %1228 = sbr.rel (%p1338_p9) target bundleno = 53 (0x35), region = 167  ;;  %s2510_s7 = smov (!%p1338_p9), %s2139_s30 }
  0x25   : > { %s2511_s8 = smov (!%p1338_p9), %s2136_s28  ;;  %s2155_s9 = smov (!%p1338_p9), 0  }
  0x26   : > { %s2157_s10 = smov (!%p1338_p9), 0  }
  0x2b LB: >> { %v162_v0 = vld [vmem:[%s1982_s8] sm:$0xff]  ;;  %v164_v1 = vld [vmem:[%s1982_s8 + $0x14] sm:$0xff]  ;;  %v166_v2 = vld [vmem:[%s1982_s8 + $0x8] sm:$0xff]  ;;  %s194_s11 = sadd.s32 1, %s1986_s9  ;;  %s156_s10 = sadd.s32 1, %s1990_s10   ;;  %s1990_s10 = sphi %s2157_s10, %s156_s10   ;;  %s1986_s9 = sphi %s2155_s9, %s2512_s9   ;;  %s1982_s8 = sphi %s2511_s8, %s199_s8   ;;  %s1978_s7 = sphi %s2510_s7, %s200_s7  }
  0x2c   : >> { %163 = vst [vmem:[%s1978_s7] sm:$0xff] %v162_v0  ;;  %165 = vst [vmem:[%s1978_s7 + $0x14] sm:$0xff] %v164_v1  ;;  %v168_v3 = vld [vmem:[%s1982_s8 + $0x1c] sm:$0xff]  ;;  %v172_v5 = vld [vmem:[%s1982_s8 + $0x50] sm:$0xff]  ;;  %p195_p10 = scmp.ge.s32.totalorder %s194_s11, %s2144_s6  ;;  %p155_p11 = scmp.ge.s32.totalorder %s156_s10, %s2144_s6 }
  0x2d   : >> { %167 = vst [vmem:[%s1978_s7 + $0x8] sm:$0xff] %v166_v2  ;;  %v170_v4 = vld [vmem:[%s1982_s8 + $0x3c] sm:$0xff]  ;;  %169 = vst [vmem:[%s1978_s7 + $0x1c] sm:$0xff] %v168_v3  ;;  %v174_v6 = vld [vmem:[%s1982_s8 + $0x44] sm:$0xff] }
  0x2e   : >> { %171 = vst [vmem:[%s1978_s7 + $0x28] sm:$0xff] %v170_v4  ;;  %173 = vst [vmem:[%s1978_s7 + $0x3c] sm:$0xff] %v172_v5  ;;  %v176_v7 = vld [vmem:[%s1982_s8 + $0x58] sm:$0xff]  ;;  %v180_v9 = vld [vmem:[%s1982_s8 + $0x8c] sm:$0xff]  ;;  %s2524_s11 = smov (%p195_p10, %s194_s11), 0  ;;  %158 = sbr.rel (!%p155_p11) target bundleno = 43 (0x2b), region = 173 }
  0x2f   : >> { %v178_v8 = vld [vmem:[%s1982_s8 + $0x78] sm:$0xff]  ;;  %175 = vst [vmem:[%s1978_s7 + $0x30] sm:$0xff] %v174_v6  ;;  %177 = vst [vmem:[%s1978_s7 + $0x44] sm:$0xff] %v176_v7  ;;  %v182_v10 = vld [vmem:[%s1982_s8 + $0x80] sm:$0xff]  ;;  %s197_s17 = smul.u32 40, %s2524_s11  ;;  %s2512_s9 = smov %s2524_s11 }
  0x30   : >> { %179 = vst [vmem:[%s1978_s7 + $0x50] sm:$0xff] %v178_v8  ;;  %v184_v11 = vld [vmem:[%s1982_s8 + $0x94] sm:$0xff]  ;;  %181 = vst [vmem:[%s1978_s7 + $0x64] sm:$0xff] %v180_v9  ;;  %v188_v13 = vld [vmem:[%s1982_s8 + $0xc8] sm:$0xff] }
  0x31   : >> { %183 = vst [vmem:[%s1978_s7 + $0x58] sm:$0xff] %v182_v10  ;;  %185 = vst [vmem:[%s1978_s7 + $0x6c] sm:$0xff] %v184_v11  ;;  %v186_v12 = vld [vmem:[%s1982_s8 + $0xb4] sm:$0xff]  ;;  %v190_v14 = vld [vmem:[%s1982_s8 + $0xbc] sm:$0xff] }
  0x32   : >> { %187 = vst [vmem:[%s1978_s7 + $0x78] sm:$0xff] %v186_v12  ;;  %189 = vst [vmem:[%s1978_s7 + $0x8c] sm:$0xff] %v188_v13  ;;  %v192_v15 = vld [vmem:[%s1982_s8 + $0xd0] sm:$0xff]  ;;  %s199_s8 = scalar_lea.vmem %s2136_s28, %s197_s17  }
  0x33   : >> { %191 = vst [vmem:[%s1978_s7 + $0x80] sm:$0xff] %v190_v14  ;;  %193 = vst [vmem:[%s1978_s7 + $0x94] sm:$0xff] %v192_v15  ;;  %s200_s7 = scalar_lea.vmem %s2139_s30, %s197_s17 [#allocation2]  }
  0x35 PF: > { %s2215_s18 = sand.u32 1, %s2522_s24   ;;  %s1340_s21 = smul.u32 40, %s2144_s6 }
  0x36   : > { %p1342_p12 = scmp.le.s32.totalorder %s2215_s18, 0 }
  0x37   : > { %s2219_s22 = scalar_lea.vmem %s2136_s28, %s1340_s21   ;;  %s2222_s23 = scalar_lea.vmem %s2139_s30, %s1340_s21 [#allocation2]  }
  0x38   : > { %1242 = sbr.rel (%p1342_p12) target bundleno = 73 (0x49), region = 178  ;;  %s2513_s25 = smov (!%p1342_p12), %s2222_s23 }
  0x39   : > { %s2514_s26 = smov (!%p1342_p12), %s2219_s22  ;;  %s2233_s27 = smov (!%p1342_p12), 0  }
  0x3a   : > { %s2235_s24 = smov (!%p1342_p12), 0  }
  0x3f LB: >> { %v217_v16 = vld [vmem:[%s1998_s26] sm:$0xff]  ;;  %v219_v17 = vld [vmem:[%s1998_s26 + $0x8] sm:$0xff]  ;;  %s233_s29 = sadd.s32 1, %s2002_s27  ;;  %v225_v20 = vld [vmem:[%s1998_s26 + $0x78] sm:$0xff]  ;;  %s211_s24 = sadd.s32 1, %s2006_s24   ;;  %s2006_s24 = sphi %s2235_s24, %s211_s24   ;;  %s2002_s27 = sphi %s2233_s27, %s2515_s27   ;;  %s1998_s26 = sphi %s2514_s26, %s238_s26   ;;  %s1994_s25 = sphi %s2513_s25, %s239_s25  }
  0x40   : >> { %v221_v18 = vld [vmem:[%s1998_s26 + $0x3c] sm:$0xff]  ;;  %218 = vst [vmem:[%s1994_s25] sm:$0xff] %v217_v16  ;;  %220 = vst [vmem:[%s1994_s25 + $0x8] sm:$0xff] %v219_v17  ;;  %v223_v19 = vld [vmem:[%s1998_s26 + $0x44] sm:$0xff]  ;;  %p234_p13 = scmp.ge.s32.totalorder %s233_s29, %s2215_s18  ;;  %p210_p0 = scmp.ge.s32.totalorder %s211_s24, %s2215_s18 }
  0x41   : >> { %222 = vst [vmem:[%s1994_s25 + $0x28] sm:$0xff] %v221_v18  ;;  %v227_v21 = vld [vmem:[%s1998_s26 + $0x80] sm:$0xff]  ;;  %224 = vst [vmem:[%s1994_s25 + $0x30] sm:$0xff] %v223_v19  ;;  %v229_v22 = vld [vmem:[%s1998_s26 + $0xb4] sm:$0xff] }
  0x42   : >> { %226 = vst [vmem:[%s1994_s25 + $0x50] sm:$0xff] %v225_v20  ;;  %228 = vst [vmem:[%s1994_s25 + $0x58] sm:$0xff] %v227_v21  ;;  %v231_v23 = vld [vmem:[%s1998_s26 + $0xbc] sm:$0xff]  ;;  %s2526_s29 = smov (%p234_p13, %s233_s29), 0  ;;  %213 = sbr.rel (!%p210_p0) target bundleno = 63 (0x3f), region = 184 }
  0x43   : >> { %230 = vst [vmem:[%s1994_s25 + $0x78] sm:$0xff] %v229_v22  ;;  %232 = vst [vmem:[%s1994_s25 + $0x80] sm:$0xff] %v231_v23  ;;  %s236_s7 = smul.u32 20, %s2526_s29  ;;  %s2515_s27 = smov %s2526_s29 }
  0x45   : >> { %s238_s26 = scalar_lea.vmem %s2219_s22, %s236_s7   ;;  %s239_s25 = scalar_lea.vmem %s2222_s23, %s236_s7 [#allocation2]  }
  0x49 PF: > { %1256 = sbr.rel (%p1338_p9) target bundleno = 97 (0x61), region = 189  ;;  %s2263_s8 = smov (!%p1338_p9), 0  }
  0x4a   : > { %s2265_s9 = smov (!%p1338_p9), 0  }
  0x50 LB: >> { %v251_v24 = vld [vmem:[%s2014_s4] sm:$0xf]  ;;  %v253_v25 = vld [vmem:[%s2014_s4 + $0x14] sm:$0xf]  ;;  %v255_v26 = vld [vmem:[%s2014_s4 + $0x3c] sm:$0xf]  ;;  %s2022_s9 = sphi %s2265_s9, %s245_s9   ;;  %s2018_s8 = sphi %s2263_s8, %s2516_s8   ;;  %s2014_s4 = sphi %s150_s4, %s1171_s4   ;;  %s2010_s5 = sphi %s151_s5, %s1174_s5  }
  0x51   : >> { %252 = vst [vmem:[%s2010_s5] sm:$0xf] %v251_v24  ;;  %254 = vst [vmem:[%s2010_s5 + $0x14] sm:$0xf] %v253_v25  ;;  %v257_v27 = vld [vmem:[%s2014_s4 + $0x50] sm:$0xf]  ;;  %s267_s10 = sadd.s32 1, %s2018_s8 }
  0x52   : >> { %256 = vst [vmem:[%s2010_s5 + $0x28] sm:$0xf] %v255_v26  ;;  %v259_v28 = vld [vmem:[%s2014_s4 + $0x78] sm:$0xf]  ;;  %v261_v29 = vld [vmem:[%s2014_s4 + $0x8c] sm:$0xf]  ;;  %p268_p1 = scmp.ge.s32.totalorder %s267_s10, %s2144_s6 }
  0x53   : >> { %258 = vst [vmem:[%s2010_s5 + $0x3c] sm:$0xf] %v257_v27  ;;  %260 = vst [vmem:[%s2010_s5 + $0x50] sm:$0xf] %v259_v28  ;;  %v263_v30 = vld [vmem:[%s2014_s4 + $0xb4] sm:$0xf] }
  0x54   : >> { %262 = vst [vmem:[%s2010_s5 + $0x64] sm:$0xf] %v261_v29  ;;  %v265_v31 = vld [vmem:[%s2014_s4 + $0xc8] sm:$0xf]  ;;  %264 = vst [vmem:[%s2010_s5 + $0x78] sm:$0xf] %v263_v30 }
  0x55   : >> { %266 = vst [vmem:[%s2010_s5 + $0x8c] sm:$0xf] %v265_v31  ;;  %s2528_s10 = smov (%p268_p1, %s267_s10), 0  ;;  %s245_s9 = sadd.s32 1, %s2022_s9  }
  0x56   : >> { %s1169_s11 = smul.u32 40, %s2528_s10  ;;  %p244_p2 = scmp.ge.s32.totalorder %s245_s9, %s2144_s6 }
  0x57   : >> { %s2516_s8 = smov %s2528_s10 }
  0x58   : >> { %s1170_s17 = scalar_lea.vmem %s2136_s28, %s1169_s11  ;;  %s1173_s21 = scalar_lea.vmem %s2139_s30, %s1169_s11 [#allocation2] }
  0x59   : >> { %s1171_s4 = scalar_lea.vmem %s1170_s17, 16   ;;  %s1174_s5 = scalar_lea.vmem %s1173_s21, 16 [#allocation2]  }
  0x5a   : > { %247 = sbr.rel (!%p244_p2) target bundleno = 80 (0x50), region = 195 }
  0x61 PF: > { %s1177_s25 = scalar_lea.vmem %s2219_s22, 16   ;;  %s1180_s26 = scalar_lea.vmem %s2222_s23, 16 [#allocation2]  }
  0x62   : > { %1270 = sbr.rel (%p1342_p12) target bundleno = 118 (0x76), region = 200  ;;  %s2294_s27 = smov (!%p1342_p12), 0  }
  0x63   : > { %s2036_s24 = smov (!%p1342_p12), 0  }
  0x69 LB: >> { %v290_v32 = vld [vmem:[%s2030_s25] sm:$0xf]  ;;  %v292_v33 = vld [vmem:[%s2030_s25 + $0x3c] sm:$0xf]  ;;  %v294_v34 = vld [vmem:[%s2030_s25 + $0x78] sm:$0xf]  ;;  %s2038_s24 = sphi %s2036_s24, %s284_s24   ;;  %s2034_s27 = sphi %s2294_s27, %s2517_s27   ;;  %s2030_s25 = sphi %s1177_s25, %s1183_s25   ;;  %s2026_s26 = sphi %s1180_s26, %s1186_s26  }
  0x6a   : >> { %291 = vst [vmem:[%s2026_s26] sm:$0xf] %v290_v32  ;;  %293 = vst [vmem:[%s2026_s26 + $0x28] sm:$0xf] %v292_v33  ;;  %v296_v35 = vld [vmem:[%s2030_s25 + $0xb4] sm:$0xf]  ;;  %s298_s28 = sadd.s32 1, %s2034_s27 }
  0x6b   : >> { %295 = vst [vmem:[%s2026_s26 + $0x50] sm:$0xf] %v294_v34  ;;  %297 = vst [vmem:[%s2026_s26 + $0x78] sm:$0xf] %v296_v35  ;;  %p299_p3 = scmp.ge.s32.totalorder %s298_s28, %s2215_s18  ;;  %s284_s24 = sadd.s32 1, %s2038_s24  }
  0x6c   : >> { %p283_p4 = scmp.ge.s32.totalorder %s284_s24, %s2215_s18 }
  0x6d   : >> { %s2530_s28 = smov (%p299_p3, %s298_s28), 0 }
  0x6e   : >> { %s1181_s30 = smul.u32 20, %s2530_s28  ;;  %s2517_s27 = smov %s2530_s28 }
  0x6f   : > { %286 = sbr.rel (!%p283_p4) target bundleno = 105 (0x69), region = 206 }
  0x70   : >> { %s1182_s4 = scalar_lea.vmem %s2219_s22, %s1181_s30  ;;  %s1185_s5 = scalar_lea.vmem %s2222_s23, %s1181_s30 [#allocation2] }
  0x71   : >> { %s1183_s25 = scalar_lea.vmem %s1182_s4, 16   ;;  %s1186_s26 = scalar_lea.vmem %s1185_s5, 16 [#allocation2]  }
  0x76 PF: > { %p1345_p6 = scmp.ge.s32.totalorder %s1974_s14, 1  ;;  %p307_p7 = scmp.lt.s32.totalorder %s1974_s14, 3 }
  0x78   : > { %p308_p8 = pnand %p1345_p6, %p307_p7 }
  0x79   : > { %v1788_v36 = vld [vmem:[%s2506_s1 + $0x40] sm:$0xff] (!%p308_p8)   ;;  %v1792_v40 = vld [vmem:[%s2506_s1 + $0x48] sm:$0xff] (!%p308_p8)   ;;  %v1796_v44 = vld [vmem:[%s2506_s1 + $0x50] sm:$0xff] (!%p308_p8)   ;;  %s314_s9 = sand.u32 (!%p308_p8), 1, %s1966_s12  }
  0x7a   : > { %311 = sbr.rel (%p308_p8) target bundleno = 467 (0x1d3), region = 68  ;;  %v1789_v37 = vld [vmem:[%s2506_s1 + $0xc0] sm:$0xff] (!%p308_p8)   ;;  %1437 = vmatprep.subr.bf16.mxu0 (!%p308_p8), %v1788_v36  ;;  %v1793_v41 = vld [vmem:[%s2506_s1 + $0xc8] sm:$0xff] (!%p308_p8)   ;;  %v1797_v45 = vld [vmem:[%s2506_s1 + $0xd0] sm:$0xff] (!%p308_p8)   ;;  %s1346_s7 = sshll.u32 (!%p308_p8), %s314_s9, 3 }
  0x7b   : > { %v1790_v38 = vld [vmem:[%s2506_s1] sm:$0xff] (!%p308_p8)   ;;  %1477 = vmatprep.subr.bf16.mxu1 (!%p308_p8), %v1789_v37  ;;  %v1794_v42 = vld [vmem:[%s2506_s1 + $0x8] sm:$0xff] (!%p308_p8)   ;;  %v1798_v46 = vld [vmem:[%s2506_s1 + $0x10] sm:$0xff] (!%p308_p8)   ;;  %s1571_s17 = smul.u32 (!%p308_p8), 160, %s314_s9 }
  0x7c   : > { %v1791_v39 = vld [vmem:[%s2506_s1 + $0x80] sm:$0xff] (!%p308_p8)   ;;  %1438 = vmatpush3.bf16.msra.mxu0 (!%p308_p8), %v1790_v38  ;;  %v1795_v43 = vld [vmem:[%s2506_s1 + $0x88] sm:$0xff] (!%p308_p8)   ;;  %v1799_v47 = vld [vmem:[%s2506_s1 + $0x90] sm:$0xff] (!%p308_p8)  }
  0x7d   : > { %1478 = vmatpush3.bf16.msra.mxu1 (!%p308_p8), %v1791_v39  ;;  %1439 = vmatprep.subr.bf16.mxu0 (!%p308_p8), %v1792_v40  ;;  %v1800_v48 = vld [vmem:[%s2506_s1 + $0x58] sm:$0xff] (!%p308_p8)   ;;  %v1804_v52 = vld [vmem:[%s2506_s1 + $0x60] sm:$0xff] (!%p308_p8)   ;;  %v1808_v56 = vld [vmem:[%s2506_s1 + $0x68] sm:$0xff] (!%p308_p8)   ;;  %s2410_s8 = scalar_lea.vmem (!%p308_p8), [#allocation2], %s1571_s17 }
  0x7e   : > { %1479 = vmatprep.subr.bf16.mxu1 (!%p308_p8), %v1793_v41  ;;  %v1801_v49 = vld [vmem:[%s2506_s1 + $0xd8] sm:$0xff] (!%p308_p8)   ;;  %v1805_v53 = vld [vmem:[%s2506_s1 + $0xe0] sm:$0xff] (!%p308_p8)   ;;  %v1809_v57 = vld [vmem:[%s2506_s1 + $0xe8] sm:$0xff] (!%p308_p8)  }
  0x7f   : > { %v1802_v50 = vld [vmem:[%s2506_s1 + $0x18] sm:$0xff] (!%p308_p8)   ;;  %v1806_v54 = vld [vmem:[%s2506_s1 + $0x20] sm:$0xff] (!%p308_p8)   ;;  %v1810_v58 = vld [vmem:[%s2506_s1 + $0x28] sm:$0xff] (!%p308_p8)  }
  0x80   : > { %1440 = vmatpush3.bf16.msra.mxu0 (!%p308_p8), %v1794_v42  ;;  %v1803_v51 = vld [vmem:[%s2506_s1 + $0x98] sm:$0xff] (!%p308_p8)   ;;  %v1807_v55 = vld [vmem:[%s2506_s1 + $0xa0] sm:$0xff] (!%p308_p8)   ;;  %v1811_v59 = vld [vmem:[%s2506_s1 + $0xa8] sm:$0xff] (!%p308_p8)  }
  0x81   : > { %1480 = vmatpush3.bf16.msra.mxu1 %v1795_v43  ;;  %1441 = vmatprep.subr.bf16.mxu0 %v1796_v44  ;;  %v1812_v60 = vld [vmem:[%s2506_s1 + $0x70] sm:$0xff]   ;;  %v1816_v0 = vld [vmem:[%s2506_s1 + $0x78] sm:$0xff]   ;;  %v1825_v7 = vld [vmem:[%s2410_s8 + $0xc] ss:$20 sps:$4 sm:$0xff]   ;;  %s1411_s18 = sshll.u32 (%p2123_p5), %s2108_s15, 1  ;;  %s1429_s22 = sshll.u32 (%p2123_p5), %s2108_s15, 3 }
  0x82   : > { %1481 = vmatprep.subr.bf16.mxu1 %v1797_v45  ;;  %v1813_v61 = vld [vmem:[%s2506_s1 + $0xf0] sm:$0xff]   ;;  %v1817_v1 = vld [vmem:[%s2506_s1 + $0xf8] sm:$0xff]   ;;  %v1826_v8 = vld [vmem:[%s2506_s1 + $0x100] sm:$0xff]   ;;  %893 = vmatprep.mubr.bf16.mxu1 %v1825_v7  ;;  %s1030_s23 = ssub.s32 (%p2123_p5), 3, %s1411_s18  ;;  %s2471_s9 = scalar_lea.vmem (%p2123_p5), %s2508_s3, %s1429_s22  }
  0x83   : > { %v1814_v62 = vld [vmem:[%s2506_s1 + $0x30] sm:$0xff]   ;;  %v1818_v2 = vld [vmem:[%s2506_s1 + $0x38] sm:$0xff]   ;;  %v1827_v9 = vld [vmem:[%s2506_s1 + $0x108] sm:$0xff]   ;;  %p1031_p9 = scmp.lt.s32.totalorder (%p2123_p5), %s1030_s23, 2 }
  0x84   : > { %1442 = vmatpush3.bf16.msra.mxu0 %v1798_v46  ;;  %v1815_v63 = vld [vmem:[%s2506_s1 + $0xb0] sm:$0xff]   ;;  %v1819_v3 = vld [vmem:[%s2506_s1 + $0xb8] sm:$0xff]   ;;  %v1828_v10 = vld [vmem:[%s2410_s8 + $0x2c] ss:$20 sps:$4 sm:$0xff]  }
  0x85   : > { %1482 = vmatpush3.bf16.msra.mxu1 %v1799_v47  ;;  %1443 = vmatprep.subr.bf16.mxu0 %v1800_v48  ;;  %v1820_v4 = vld [vmem:[%s2410_s8] ss:$20 sps:$4 sm:$0xff]   ;;  %v1822_v5 = vld [vmem:[%s2410_s8 + $0x4] ss:$20 sps:$4 sm:$0xff]   ;;  %v1823_v6 = vld [vmem:[%s2410_s8 + $0x8] ss:$20 sps:$4 sm:$0xff]  }
  0x86   : > { %1483 = vmatprep.subr.bf16.mxu1 %v1801_v49  ;;  %828 = vmatprep.mubr.bf16.mxu0 %v1822_v5  ;;  %v1830_v11 = vld [vmem:[%s2410_s8 + $0x34] ss:$20 sps:$4 sm:$0xff]   ;;  %v1833_v14 = vld [vmem:[%s2410_s8 + $0x30] ss:$20 sps:$4 sm:$0xff]   ;;  %v1835_v16 = vld [vmem:[%s2506_s1 + $0x118] sm:$0xff]  }
  0x87   : > { %v1832_v12 = vld [vmem:[%s2410_s8 + $0x28] ss:$20 sps:$4 sm:$0xff]   ;;  %v1834_v13 = vld [vmem:[%s2506_s1 + $0x110] sm:$0xff]   ;;  %v1842_v18 = vld [vmem:[%s2506_s1 + $0x120] sm:$0xff]  }
  0x88   : > { %1444 = vmatpush3.bf16.msra.mxu0 %v1802_v50  ;;  %v1836_v15 = vld [vmem:[%s2410_s8 + $0x54] ss:$20 sps:$4 sm:$0xff]   ;;  %v1838_v17 = vld [vmem:[%s2410_s8 + $0x5c] ss:$20 sps:$4 sm:$0xff]   ;;  %v1841_v20 = vld [vmem:[%s2410_s8 + $0x58] ss:$20 sps:$4 sm:$0xff]  }
  0x89   : > { %1484 = vmatpush3.bf16.msra.mxu1 %v1803_v51  ;;  %1445 = vmatprep.subr.bf16.mxu0 %v1804_v52  ;;  %v1840_v19 = vld [vmem:[%s2410_s8 + $0x50] ss:$20 sps:$4 sm:$0xff]   ;;  %v1843_v23 = vld [vmem:[%s2506_s1 + $0x128] sm:$0xff]   ;;  %v1849_v26 = vld [vmem:[%s2410_s8 + $0x80] ss:$20 sps:$4 sm:$0xff]  }
  0x8a   : > { %1485 = vmatprep.subr.bf16.mxu1 %v1805_v53  ;;  %v1844_v21 = vld [vmem:[%s2410_s8 + $0x7c] ss:$20 sps:$4 sm:$0xff]   ;;  %v1846_v22 = vld [vmem:[%s2410_s8 + $0x84] ss:$20 sps:$4 sm:$0xff]   ;;  %v1853_v28 = vld [vmem:[%s2410_s8 + $0x60] ss:$20 sps:$4 sm:$0xff]  }
  0x8b   : > { %v1850_v24 = vld [vmem:[%s2506_s1 + $0x130] sm:$0xff]   ;;  %v1848_v25 = vld [vmem:[%s2410_s8 + $0x78] ss:$20 sps:$4 sm:$0xff]   ;;  %v1855_v31 = vld [vmem:[%s2410_s8 + $0x88] ss:$20 sps:$4 sm:$0xff]  }
  0x8c   : > { %1446 = vmatpush3.bf16.msra.mxu0 %v1806_v54  ;;  %v1852_v27 = vld [vmem:[%s2410_s8 + $0x10] ss:$20 sps:$4 sm:$0xff]   ;;  %v1851_v29 = vld [vmem:[%s2506_s1 + $0x138] sm:$0xff]  }
  0x8d   : > { %1486 = vmatpush3.bf16.msra.mxu1 %v1807_v55  ;;  %1447 = vmatprep.subr.bf16.mxu0 %v1808_v56  ;;  %v1854_v30 = vld [vmem:[%s2410_s8 + $0x38] ss:$20 sps:$4 sm:$0xff]   ;;  %s2461_s8 = scalar_lea.vmem [#allocation3], %s1346_s7  }
  0x8e   : > { %1487 = vmatprep.subr.bf16.mxu1 %v1809_v57 }
  0x90   : > { %1448 = vmatpush3.bf16.msra.mxu0 %v1810_v58 }
  0x91   : > { %1488 = vmatpush3.bf16.msra.mxu1 %v1811_v59  ;;  %1449 = vmatprep.subr.bf16.mxu0 %v1812_v60 }
  0x92   : > { %1489 = vmatprep.subr.bf16.mxu1 %v1813_v61 }
  0x94   : > { %1450 = vmatpush3.bf16.msra.mxu0 %v1814_v62 }
  0x95   : > { %1490 = vmatpush3.bf16.msra.mxu1 %v1815_v63  ;;  %1451 = vmatprep.subr.bf16.mxu0 %v1816_v0 }
  0x96   : > { %1491 = vmatprep.subr.bf16.mxu1 %v1817_v1 }
  0x98   : > { %1452 = vmatpush3.bf16.msra.mxu0 %v1818_v2 }
  0x99   : > { %1492 = vmatpush3.bf16.msra.mxu1 %v1819_v3  ;;  %1529 = vmatprep.subr.bf16.mxu0 %v1826_v8 }
  0x9a   : > { %1553 = vmatprep.subr.bf16.mxu1 %v1826_v8 }
  0x9b   : > { %829 = vmatmul.mubr.bf16.vlgmr.msra.gmra.mrb[0].mxu0 %v1820_v4 }
  0x9c   : > { %894 = vmatmul.mubr.bf16.vlgmr.msra.gmra.mrb[0].mxu1 %v1823_v6  ;;  %1530 = vmatpush3.bf16.msra.mxu0 %v1826_v8 }
  0x9d   : > { %1561 = vmatpush3.bf16.msra.mxu1 %v1826_v8  ;;  %1531 = vmatprep.subr.bf16.mxu0 %v1827_v9 }
  0x9e   : > { %1554 = vmatprep.subr.bf16.mxu1 %v1827_v9  ;;  %836 = vmatprep.mubr.bf16.mxu0 %v1828_v10 }
  0x9f   : > { %901 = vmatprep.mubr.bf16.mxu1 %v1830_v11 }
  0xa0   : > { %1532 = vmatpush3.bf16.msra.mxu0 %v1827_v9 }
  0xa1   : > { %1562 = vmatpush3.bf16.msra.mxu1 %v1827_v9  ;;  %1533 = vmatprep.subr.bf16.mxu0 %v1834_v13 }
  0xa2   : > { %1555 = vmatprep.subr.bf16.mxu1 %v1834_v13 }
  0xa3   : > { %837 = vmatmul.mubr.bf16.gmra.mrb[4].mxu0 %v1832_v12 }
  0xa4   : > { %902 = vmatmul.mubr.bf16.gmra.mrb[4].mxu1 %v1833_v14  ;;  %844 = vmatprep.mubr.bf16.mxu0 %v1836_v15 }
  0xa5   : > { %1534 = vmatpush3.bf16.msra.mxu0 %v1834_v13  ;;  %909 = vmatprep.mubr.bf16.mxu1 %v1838_v17 }
  0xa6   : > { %1563 = vmatpush3.bf16.msra.mxu1 %v1834_v13  ;;  %1535 = vmatprep.subr.bf16.mxu0 %v1835_v16 }
  0xa7   : > { %1556 = vmatprep.subr.bf16.mxu1 %v1835_v16 }
  0xa9   : > { %1536 = vmatpush3.bf16.msra.mxu0 %v1835_v16 }
  0xaa   : > { %1564 = vmatpush3.bf16.msra.mxu1 %v1835_v16  ;;  %1537 = vmatprep.subr.bf16.mxu0 %v1842_v18 }
  0xab   : > { %845 = vmatmul.mubr.bf16.gmra.mrb[8].mxu0 %v1840_v19  ;;  %1557 = vmatprep.subr.bf16.mxu1 %v1842_v18 }
  0xac   : > { %910 = vmatmul.mubr.bf16.gmra.mrb[8].mxu1 %v1841_v20  ;;  %852 = vmatprep.mubr.bf16.mxu0 %v1844_v21 }
  0xad   : > { %1538 = vmatpush3.bf16.msra.mxu0 %v1842_v18  ;;  %917 = vmatprep.mubr.bf16.mxu1 %v1846_v22 }
  0xae   : > { %1565 = vmatpush3.bf16.msra.mxu1 %v1842_v18  ;;  %1539 = vmatprep.subr.bf16.mxu0 %v1843_v23 }
  0xaf   : > { %1558 = vmatprep.subr.bf16.mxu1 %v1843_v23 }
  0xb1   : > { %1540 = vmatpush3.bf16.msra.mxu0 %v1843_v23 }
  0xb2   : > { %1566 = vmatpush3.bf16.msra.mxu1 %v1843_v23  ;;  %1541 = vmatprep.subr.bf16.mxu0 %v1850_v24 }
  0xb3   : > { %853 = vmatmul.mubr.bf16.gmra.mrb[12].mxu0 %v1848_v25  ;;  %1559 = vmatprep.subr.bf16.mxu1 %v1850_v24 }
  0xb4   : > { %918 = vmatmul.mubr.bf16.gmra.mrb[12].mxu1 %v1849_v26  ;;  %1545 = vmatprep.mubr.bf16.mxu0 %v1852_v27 }
  0xb5   : > { %1542 = vmatpush3.bf16.msra.mxu0 %v1850_v24  ;;  %1549 = vmatprep.mubr.bf16.mxu1 %v1853_v28 }
  0xb6   : > { %1567 = vmatpush3.bf16.msra.mxu1 %v1850_v24  ;;  %1543 = vmatprep.subr.bf16.mxu0 %v1851_v29 }
  0xb7   : > { %1560 = vmatprep.subr.bf16.mxu1 %v1851_v29 }
  0xb9   : > { %1544 = vmatpush3.bf16.msra.mxu0 %v1851_v29 }
  0xba   : > { %1568 = vmatpush3.bf16.msra.mxu1 %v1851_v29 }
  0xbc   : > { %1546 = vmatmul.mubr.bf16.vlgmr.msra.gmra.mrb[16].mxu0 %v1854_v30 }
  0xbd   : > { %1550 = vmatmul.mubr.bf16.vlgmr.msra.gmra.mrb[16].mxu1 %v1855_v31 }
 0x16e   : > { %v1453_v32 = vpop.f32.mrb[0].mxu0 }
 0x16f   : > { %v1493_v33 = vpop.f32.mrb[0].mxu1  ;;  %v1454_v34 = vpop.f32.mrb[1].mxu0 }
 0x170   : > { %v1455_v35 = vadd.f32 %v1454_v34, %v1453_v32  ;;  %v1494_v36 = vpop.f32.mrb[1].mxu1  ;;  %v1456_v37 = vpop.f32.mrb[2].mxu0 }
 0x171   : > { %v1495_v38 = vadd.f32 %v1494_v36, %v1493_v33  ;;  %v1496_v39 = vpop.f32.mrb[2].mxu1  ;;  %v1457_v40 = vpop.f32.mrb[3].mxu0 }
 0x172   : > { %v1458_v41 = vadd.f32 %v1457_v40, %v1456_v37  ;;  %v1497_v42 = vpop.f32.mrb[3].mxu1 }
 0x173   : > { %v1498_v43 = vadd.f32 %v1497_v42, %v1496_v39  ;;  %v896_v44 = vadd.f32 %v1495_v38, %v1455_v35  ;;  %v1407_v42 = vld [vmem:[%s2507_s2] ss:$0 sm:$0xff] }
 0x175   : > { %v899_v45 = vadd.f32 %v1498_v43, %v1458_v41 }
 0x176   : > { %v1459_v46 = vpop.f32.mrb[4].mxu0 }
 0x177   : > { %v1499_v47 = vpop.f32.mrb[4].mxu1  ;;  %v1460_v48 = vpop.f32.mrb[5].mxu0 }
 0x178   : > { %v1461_v49 = vadd.f32 %v1460_v48, %v1459_v46  ;;  %v1500_v50 = vpop.f32.mrb[5].mxu1  ;;  %v1462_v51 = vpop.f32.mrb[6].mxu0 }
 0x179   : > { %v1501_v52 = vadd.f32 %v1500_v50, %v1499_v47  ;;  %v1502_v53 = vpop.f32.mrb[6].mxu1  ;;  %v1463_v54 = vpop.f32.mrb[7].mxu0 }
 0x17a   : > { %v1464_v55 = vadd.f32 %v1463_v54, %v1462_v51  ;;  %v1503_v56 = vpop.f32.mrb[7].mxu1 }
 0x17b   : > { %v1504_v57 = vadd.f32 %v1503_v56, %v1502_v53  ;;  %v904_v58 = vadd.f32 %v1501_v52, %v1461_v49 }
 0x17d   : > { %v907_v59 = vadd.f32 %v1504_v57, %v1464_v55 }
 0x17e   : > { %v1465_v60 = vpop.f32.mrb[8].mxu0 }
 0x17f   : > { %v1505_v61 = vpop.f32.mrb[8].mxu1  ;;  %v1466_v62 = vpop.f32.mrb[9].mxu0 }
 0x180   : > { %v1467_v63 = vadd.f32 %v1466_v62, %v1465_v60  ;;  %v1506_v0 = vpop.f32.mrb[9].mxu1  ;;  %v1468_v1 = vpop.f32.mrb[10].mxu0 }
 0x181   : > { %v1507_v2 = vadd.f32 %v1506_v0, %v1505_v61  ;;  %v1508_v3 = vpop.f32.mrb[10].mxu1  ;;  %v1469_v4 = vpop.f32.mrb[11].mxu0 }
 0x182   : > { %v1470_v5 = vadd.f32 %v1469_v4, %v1468_v1  ;;  %v1509_v6 = vpop.f32.mrb[11].mxu1 }
 0x183   : > { %v1510_v7 = vadd.f32 %v1509_v6, %v1508_v3  ;;  %v912_v8 = vadd.f32 %v1507_v2, %v1467_v63 }
 0x185   : > { %v915_v9 = vadd.f32 %v1510_v7, %v1470_v5 }
 0x186   : > { %v1471_v10 = vpop.f32.mrb[12].mxu0 }
 0x187   : > { %v1511_v11 = vpop.f32.mrb[12].mxu1  ;;  %v1472_v12 = vpop.f32.mrb[13].mxu0 }
 0x188   : > { %v1473_v13 = vadd.f32 %v1472_v12, %v1471_v10  ;;  %v1512_v14 = vpop.f32.mrb[13].mxu1  ;;  %v1474_v15 = vpop.f32.mrb[14].mxu0 }
 0x189   : > { %v1513_v16 = vadd.f32 %v1512_v14, %v1511_v11  ;;  %v1514_v17 = vpop.f32.mrb[14].mxu1  ;;  %v1475_v18 = vpop.f32.mrb[15].mxu0 }
 0x18a   : > { %v1476_v19 = vadd.f32 %v1475_v18, %v1474_v15  ;;  %v1515_v20 = vpop.f32.mrb[15].mxu1 }
 0x18b   : > { %v1516_v21 = vadd.f32 %v1515_v20, %v1514_v17  ;;  %v920_v22 = vadd.f32 %v1513_v16, %v1473_v13 }
 0x18d   : > { %v923_v23 = vadd.f32 %v1516_v21, %v1476_v19 }
 0x18f   : > { %v1547_v24 = vpop.f32.mrb[16].mxu0 }
 0x190   : > { %v969_v25 = vadd.f32 %v1547_v24, %v904_v58  ;;  %v1551_v26 = vpop.f32.mrb[16].mxu1  ;;  %v960_v27 = vpop.f32.mrb[17].mxu0 }
 0x191   : > { %v985_v28 = vadd.f32 %v1551_v26, %v920_v22  ;;  %v961_v29 = vadd.f32 %v960_v27, %v896_v44  ;;  %v976_v30 = vpop.f32.mrb[17].mxu1  ;;  %v1548_v31 = vpop.f32.mrb[18].mxu0 }
 0x192   : > { %v977_v32 = vadd.f32 %v976_v30, %v912_v8  ;;  %v972_v33 = vadd.f32 %v1548_v31, %v907_v59  ;;  %v1552_v34 = vpop.f32.mrb[18].mxu1  ;;  %v963_v35 = vpop.f32.mrb[19].mxu0 }
 0x193   : > { %v992_v36 = vmax.f32 %v969_v25, %v985_v28  ;;  %v988_v37 = vadd.f32 %v1552_v34, %v923_v23  ;;  %v964_v38 = vadd.f32 %v963_v35, %v899_v45  ;;  %v979_v39 = vpop.f32.mrb[19].mxu1 }
 0x194   : > { %v991_v40 = vmax.f32 %v961_v29, %v977_v32  ;;  %v980_v41 = vadd.f32 %v979_v39, %v915_v9 }
 0x195   : > { %v995_v43 = vmax.f32 %v972_v33, %v988_v37 }
 0x196   : > { %v993_v46 = vmax.f32 %v991_v40, %v992_v36  ;;  %v994_v44 = vmax.f32 %v964_v38, %v980_v41 }
 0x198   : > { %v1004_v47 = vadd.f32 %v1407_v42, %v993_v46  ;;  %v996_v48 = vmax.f32 %v994_v44, %v995_v43 }
 0x19a   : > { %v1008_v49 = vmul.f32 0.01, %v1004_v47  ;;  %v1005_v50 = vadd.f32 %v1407_v42, %v996_v48  ;;  %vm1006_vm0 = vcmp.ge.f32.partialorder %v1004_v47, 0.0 }
 0x19b   : > { %1028 = sbr.rel (!%p2123_p5) target bundleno = 467 (0x1d3), region = 76 }
 0x19c   : > { %vm1007_vm1 = vcmp.ge.f32.partialorder %v1005_v50, 0.0  ;;  %v1009_v51 = vmul.f32 0.01, %v1005_v50  ;;  %v1010_v45 = vsel %vm1006_vm0, %v1004_v47, %v1008_v49 }
 0x19e   : > { %v1011_v52 = vsel %vm1007_vm1, %v1005_v50, %v1009_v51 }
 0x19f   : > { %v1435_v53 = vpack.c.bf16 %v1011_v52, %v1010_v45 }
 0x1a1   : > { %1436 = vst [vmem:[%s2461_s8] sm:$0xff] %v1435_v53  }
 0x1a2   : > { %s2532_s23 = smov (!%p1031_p9, %s1030_s23), 2 }
 0x1a3   : > { %s1412_s10 = sshll.u32 %s2532_s23, 6 }
 0x1a4   : > { %p1415_p10 = scmp.eq.s32.totalorder %s1412_s10, 0 }
 0x1a5   : > { %s2477_s20 = sshrl.u32 (!%p1415_p10), %s2532_s23, 1 }
 0x1a6   : > { %1039 = sbr.rel (%p1415_p10) target bundleno = 467 (0x1d3), region = 80  ;;  %p1416_p5 = scmp.le.s32.totalorder (!%p1415_p10), %s2477_s20, 0 }
 0x1ad   : > { %1284 = sbr.rel (%p1416_p5) target bundleno = 446 (0x1be), region = 211  ;;  %s2040_s15 = smov (!%p1416_p5), %s2471_s9  }
 0x1ae   : > { %s2044_s11 = smov (!%p1416_p5), %s2461_s8   ;;  %s2048_s17 = smov (!%p1416_p5), 0  }
 0x1af   : > { %s2052_s21 = smov (!%p1416_p5), 0  }
 0x1b4 LB: >> { %v1055_v54 = vld [vmem:[%s2046_s11] sm:$0xf]  ;;  %v1057_v55 = vld [vmem:[%s2046_s11 + $0x4] sm:$0xf]  ;;  %s1059_s25 = sadd.s32 1, %s2050_s17  ;;  %s1049_s21 = sadd.s32 1, %s2054_s21   ;;  %s2054_s21 = sphi %s2052_s21, %s1049_s21   ;;  %s2050_s17 = sphi %s2048_s17, %s2049_s17   ;;  %s2046_s11 = sphi %s2044_s11, %s1064_s11   ;;  %s2042_s15 = sphi %s2040_s15, %s1065_s15  }
 0x1b5   : >> { %1056 = vst [vmem:[%s2042_s15] sm:$0xf] %v1055_v54  ;;  %1058 = vst [vmem:[%s2042_s15 + $0x4] sm:$0xf] %v1057_v55  ;;  %p1060_p11 = scmp.ge.s32.totalorder %s1059_s25, %s2477_s20  ;;  %p1048_p12 = scmp.ge.s32.totalorder %s1049_s21, %s2477_s20 }
 0x1b7   : >> { %s2534_s25 = smov (%p1060_p11, %s1059_s25), 0  ;;  %1051 = sbr.rel (!%p1048_p12) target bundleno = 436 (0x1b4), region = 217 }
 0x1b8   : >> { %s1417_s26 = sshll.u32 %s2534_s25, 3  ;;  %s2049_s17 = smov %s2534_s25  }
 0x1b9   : >> { %s1064_s11 = scalar_lea.vmem %s2461_s8, %s1417_s26 [#allocation3]   ;;  %s1065_s15 = scalar_lea.vmem %s2471_s9, %s1417_s26  }
 0x1be PF: > { %s2487_s27 = sand.u32 1, %s2532_s23   ;;  %s1430_s24 = sshll.u32 %s2477_s20, 3 }
 0x1bf   : > { %s1070_s28 = scalar_lea.vmem %s2461_s8, %s1430_s24 [#allocation3]   ;;  %s1072_s30 = scalar_lea.vmem %s2471_s9, %s1430_s24  }
 0x1c0   : > { %p1422_p13 = scmp.le.s32.totalorder %s2487_s27, 0 }
 0x1c1   : > { %s2056_s4 = smov (!%p1422_p13), %s1072_s30   ;;  %s2060_s5 = smov (!%p1422_p13), %s1070_s28  }
 0x1c2   : > { %1298 = sbr.rel (%p1422_p13) target bundleno = 467 (0x1d3), region = 222  ;;  %s2064_s6 = smov (!%p1422_p13), 0  }
 0x1c3   : > { %s2068_s29 = smov (!%p1422_p13), 0  }
 0x1c9 LB: >> { %v1082_v56 = vld [vmem:[%s2062_s5] sm:$0xf]  ;;  %s1084_s7 = sadd.s32 1, %s2066_s6  ;;  %s1076_s29 = sadd.s32 1, %s2070_s29   ;;  %s2070_s29 = sphi %s2068_s29, %s1076_s29   ;;  %s2066_s6 = sphi %s2064_s6, %s2065_s6   ;;  %s2062_s5 = sphi %s2060_s5, %s1089_s5   ;;  %s2058_s4 = sphi %s2056_s4, %s1090_s4  }
 0x1ca   : >> { %1083 = vst [vmem:[%s2058_s4] sm:$0xf] %v1082_v56  ;;  %p1085_p0 = scmp.ge.s32.totalorder %s1084_s7, %s2487_s27  ;;  %p1075_p1 = scmp.ge.s32.totalorder %s1076_s29, %s2487_s27 }
 0x1cc   : >> { %s2536_s7 = smov (%p1085_p0, %s1084_s7), 0  ;;  %1078 = sbr.rel (!%p1075_p1) target bundleno = 457 (0x1c9), region = 228 }
 0x1cd   : >> { %s1423_s8 = sshll.u32 %s2536_s7, 2  ;;  %s2065_s6 = smov %s2536_s7  }
 0x1ce   : >> { %s1089_s5 = scalar_lea.vmem %s1070_s28, %s1423_s8 [#allocation3]   ;;  %s1090_s4 = scalar_lea.vmem %s1072_s30, %s1423_s8  }
 0x1d3 PF: > { %p10_p2 = scmp.ge.s32.totalorder %s2111_s16, 4   ;;  %s2518_s12 = smov %s1970_s13 }
 0x1d4   : > { %s2519_s13 = smov %s2121_s19  ;;  %s2520_s14 = smov %s2111_s16 }
 0x1d5   :  { %12 = sbr.rel (!%p10_p2) target bundleno = 2 (0x2), region = 239 }

// kernel: simple_cnn_forward.7
= control target key start
LH: loop header
LB: loop body
LE: loop exit
PB: predicated region body
PF: predicated region fallthrough
CT: control target
= control target key end

     0   :  { %v608_v32 = vlaneseq  ;;  %v8169_v33 = vmov 1966171168   ;;  %s10975_s0 = inlined_call_operand.vmem [shape: bf16[2,1152], index: 0, kind: input, shape index: {}]   ;;  %s10976_s1 = inlined_call_operand.vmem [shape: bf16[1152,1024], index: 1, kind: input, shape index: {}]   ;;  %s10977_s2 = inlined_call_operand.vmem [shape: f32[1,1024], index: 2, kind: input, shape index: {}]   ;;  %s10978_s3 = inlined_call_operand.vmem [shape: bf16[1024,512], index: 3, kind: input, shape index: {}]   ;;  %s10979_s4 = inlined_call_operand.vmem [shape: f32[1,512], index: 4, kind: input, shape index: {}]   ;;  %s10980_s5 = inlined_call_operand.vmem [shape: bf16[512,128], index: 5, kind: input, shape index: {}]   ;;  %s10981_s6 = inlined_call_operand.vmem [shape: f32[1,128], index: 6, kind: input, shape index: {}]   ;;  %s10982_s7 = inlined_call_operand.hbm [shape: f32[2,128], index: 7, kind: output, shape index: {}]  }
   0x1   :  { %v30_v0 = vld [vmem:[%s10976_s1] sm:$0xff]  ;;  %v31_v2 = vld [vmem:[%s10976_s1 + $0x8] sm:$0xff]  ;;  %v652_v34 = vunpack.c.l.s4 %v8169_v33 }
   0x2   :  { %v34_v1 = vld [vmem:[%s10976_s1 + $0x20] sm:$0xff]  ;;  %v35_v4 = vld [vmem:[%s10976_s1 + $0x28] sm:$0xff]  ;;  %v8278_v43 = vshrl.u32 %v608_v32, 7 }
   0x3   :  { %v6716_v3 = vcombine.high %v30_v0, %v34_v1  ;;  %v6715_v5 = vcombine.low %v30_v0, %v34_v1  ;;  %v38_v6 = vld [vmem:[%s10976_s1 + $0x40] sm:$0xff]  ;;  %v6718_v8 = vcombine.high %v31_v2, %v35_v4  ;;  %v6717_v9 = vcombine.low %v31_v2, %v35_v4  ;;  %v39_v11 = vld [vmem:[%s10976_s1 + $0x48] sm:$0xff] }
   0x4   :  { %v42_v7 = vld [vmem:[%s10976_s1 + $0x60] sm:$0xff]  ;;  %v43_v12 = vld [vmem:[%s10976_s1 + $0x68] sm:$0xff]  ;;  %v653_v44 = vunpack.c.0.s8 %v652_v34 }
   0x5   :  { %v6724_v10 = vcombine.high %v38_v6, %v42_v7  ;;  %v46_v13 = vld [vmem:[%s10976_s1 + $0x80] sm:$0xff]  ;;  %3602 = vmatprep.subr.bf16.mxu0 %v6716_v3  ;;  %v6726_v14 = vcombine.high %v39_v11, %v43_v12  ;;  %v47_v16 = vld [vmem:[%s10976_s1 + $0x88] sm:$0xff]  ;;  %3807 = vmatprep.subr.bf16.mxu1 %v6718_v8  ;;  %v6723_v18 = vcombine.low %v38_v6, %v42_v7 }
   0x6   :  { %v50_v15 = vld [vmem:[%s10976_s1 + $0xa0] sm:$0xff]  ;;  %v51_v17 = vld [vmem:[%s10976_s1 + $0xa8] sm:$0xff]  ;;  %3603 = vmatpush1.bf16.msra.mxu0 %v6715_v5  ;;  %3808 = vmatpush1.bf16.msra.mxu1 %v6717_v9  ;;  %v6725_v19 = vcombine.low %v39_v11, %v43_v12  ;;  %v8293_v53 = vsub.s32 %v653_v44, %v8278_v43 }
   0x7   :  { %3604 = vmatprep.subr.bf16.mxu0 %v6724_v10  ;;  %v6732_v20 = vcombine.high %v46_v13, %v50_v15  ;;  %3809 = vmatprep.subr.bf16.mxu1 %v6726_v14  ;;  %v6734_v21 = vcombine.high %v47_v16, %v51_v17  ;;  %v54_v22 = vld [vmem:[%s10976_s1 + $0xc0] sm:$0xff]  ;;  %v55_v24 = vld [vmem:[%s10976_s1 + $0xc8] sm:$0xff]  ;;  %v6731_v26 = vcombine.low %v46_v13, %v50_v15 }
   0x8   :  { %v58_v23 = vld [vmem:[%s10976_s1 + $0xe0] sm:$0xff]  ;;  %v59_v25 = vld [vmem:[%s10976_s1 + $0xe8] sm:$0xff]  ;;  %v6733_v27 = vcombine.low %v47_v16, %v51_v17 }
   0x9   :  { %v6740_v28 = vcombine.high %v54_v22, %v58_v23  ;;  %v6742_v29 = vcombine.high %v55_v24, %v59_v25  ;;  %v62_v30 = vld [vmem:[%s10976_s1 + $0x100] sm:$0xff]  ;;  %v63_v35 = vld [vmem:[%s10976_s1 + $0x108] sm:$0xff]  ;;  %v6739_v37 = vcombine.low %v54_v22, %v58_v23  ;;  %v6741_v38 = vcombine.low %v55_v24, %v59_v25 }
   0xa   :  { %3605 = vmatpush1.bf16.msra.mxu0 %v6723_v18  ;;  %3810 = vmatpush1.bf16.msra.mxu1 %v6725_v19  ;;  %v66_v31 = vld [vmem:[%s10976_s1 + $0x120] sm:$0xff]  ;;  %v67_v36 = vld [vmem:[%s10976_s1 + $0x128] sm:$0xff] }
   0xb   :  { %3606 = vmatprep.subr.bf16.mxu0 %v6732_v20  ;;  %3811 = vmatprep.subr.bf16.mxu1 %v6734_v21  ;;  %v6748_v39 = vcombine.high %v62_v30, %v66_v31  ;;  %v6750_v40 = vcombine.high %v63_v35, %v67_v36  ;;  %v70_v41 = vld [vmem:[%s10976_s1 + $0x140] sm:$0xff]  ;;  %v71_v45 = vld [vmem:[%s10976_s1 + $0x148] sm:$0xff]  ;;  %v6747_v47 = vcombine.low %v62_v30, %v66_v31 }
   0xc   :  { %v74_v42 = vld [vmem:[%s10976_s1 + $0x160] sm:$0xff]  ;;  %v75_v46 = vld [vmem:[%s10976_s1 + $0x168] sm:$0xff]  ;;  %v6749_v48 = vcombine.low %v63_v35, %v67_v36 }
   0xd   :  { %v6756_v49 = vcombine.high %v70_v41, %v74_v42  ;;  %v6758_v50 = vcombine.high %v71_v45, %v75_v46  ;;  %v78_v51 = vld [vmem:[%s10976_s1 + $0x180] sm:$0xff]  ;;  %v79_v54 = vld [vmem:[%s10976_s1 + $0x188] sm:$0xff]  ;;  %v6755_v56 = vcombine.low %v70_v41, %v74_v42  ;;  %v6757_v57 = vcombine.low %v71_v45, %v75_v46 }
   0xe   :  { %3607 = vmatpush1.bf16.msra.mxu0 %v6731_v26  ;;  %3812 = vmatpush1.bf16.msra.mxu1 %v6733_v27  ;;  %v82_v52 = vld [vmem:[%s10976_s1 + $0x1a0] sm:$0xff]  ;;  %v83_v55 = vld [vmem:[%s10976_s1 + $0x1a8] sm:$0xff] }
   0xf   :  { %3608 = vmatprep.subr.bf16.mxu0 %v6740_v28  ;;  %3813 = vmatprep.subr.bf16.mxu1 %v6742_v29  ;;  %v6764_v58 = vcombine.high %v78_v51, %v82_v52  ;;  %v8304_v59 = vld [vmem:[%s10975_s0] sm:$0xff]  ;;  %v6766_v60 = vcombine.high %v79_v54, %v83_v55  ;;  %v87_v0 = vld [vmem:[%s10976_s1 + $0x1c8] sm:$0xff]  ;;  %v6763_v2 = vcombine.low %v78_v51, %v82_v52 }
  0x10   :  { %v86_v61 = vld [vmem:[%s10976_s1 + $0x1c0] sm:$0xff]  ;;  %v8314_v63 = vrot.slane %v8304_v59, %v8293_v53  ;;  %v91_v1 = vld [vmem:[%s10976_s1 + $0x1e8] sm:$0xff]  ;;  %v6765_v4 = vcombine.low %v79_v54, %v83_v55 }
  0x11   :  { %v90_v62 = vld [vmem:[%s10976_s1 + $0x1e0] sm:$0xff]  ;;  %v6774_v6 = vcombine.high %v87_v0, %v91_v1  ;;  %v95_v10 = vld [vmem:[%s10976_s1 + $0x208] sm:$0xff]  ;;  %v6773_v13 = vcombine.low %v87_v0, %v91_v1 }
  0x12   :  { %3609 = vmatpush1.bf16.msra.mxu0 %v6739_v37  ;;  %3814 = vmatpush1.bf16.msra.mxu1 %v6741_v38  ;;  %v665_v3 = vcombine.high %v8314_v63, %v8314_v63  ;;  %v6772_v5 = vcombine.high %v86_v61, %v90_v62  ;;  %v94_v7 = vld [vmem:[%s10976_s1 + $0x200] sm:$0xff]  ;;  %v99_v11 = vld [vmem:[%s10976_s1 + $0x228] sm:$0xff]  ;;  %v6771_v12 = vcombine.low %v86_v61, %v90_v62 }
  0x13   :  { %3610 = vmatprep.subr.bf16.mxu0 %v6748_v39  ;;  %3815 = vmatprep.subr.bf16.mxu1 %v6750_v40  ;;  %v98_v8 = vld [vmem:[%s10976_s1 + $0x220] sm:$0xff]  ;;  %v6782_v15 = vcombine.high %v95_v10, %v99_v11  ;;  %v103_v18 = vld [vmem:[%s10976_s1 + $0x248] sm:$0xff]  ;;  %v6781_v21 = vcombine.low %v95_v10, %v99_v11 }
  0x14   :  { %v8331_v9 = vrot.slane %v665_v3, %v8293_v53  ;;  %v6780_v14 = vcombine.high %v94_v7, %v98_v8  ;;  %v102_v16 = vld [vmem:[%s10976_s1 + $0x240] sm:$0xff]  ;;  %v107_v19 = vld [vmem:[%s10976_s1 + $0x268] sm:$0xff]  ;;  %v6779_v20 = vcombine.low %v94_v7, %v98_v8 }
  0x15   :  { %v106_v17 = vld [vmem:[%s10976_s1 + $0x260] sm:$0xff]  ;;  %v6790_v23 = vcombine.high %v103_v18, %v107_v19  ;;  %v111_v26 = vld [vmem:[%s10976_s1 + $0x288] sm:$0xff]  ;;  %v6789_v29 = vcombine.low %v103_v18, %v107_v19 }
  0x16   :  { %3611 = vmatpush1.bf16.msra.mxu0 %v6747_v47  ;;  %3816 = vmatpush1.bf16.msra.mxu1 %v6749_v48  ;;  %v6788_v22 = vcombine.high %v102_v16, %v106_v17  ;;  %v110_v24 = vld [vmem:[%s10976_s1 + $0x280] sm:$0xff]  ;;  %v115_v27 = vld [vmem:[%s10976_s1 + $0x2a8] sm:$0xff]  ;;  %v6787_v28 = vcombine.low %v102_v16, %v106_v17 }
  0x17   :  { %3612 = vmatprep.subr.bf16.mxu0 %v6756_v49  ;;  %3817 = vmatprep.subr.bf16.mxu1 %v6758_v50  ;;  %v114_v25 = vld [vmem:[%s10976_s1 + $0x2a0] sm:$0xff]  ;;  %v6798_v31 = vcombine.high %v111_v26, %v115_v27  ;;  %v119_v34 = vld [vmem:[%s10976_s1 + $0x2c8] sm:$0xff]  ;;  %v6797_v37 = vcombine.low %v111_v26, %v115_v27 }
  0x18   :  { %3634 = vmatprep.mubr.bf16.mxu0 %v8331_v9  ;;  %3839 = vmatprep.mubr.bf16.mxu1 %v8331_v9  ;;  %v6796_v30 = vcombine.high %v110_v24, %v114_v25  ;;  %v118_v32 = vld [vmem:[%s10976_s1 + $0x2c0] sm:$0xff]  ;;  %v123_v35 = vld [vmem:[%s10976_s1 + $0x2e8] sm:$0xff]  ;;  %v6795_v36 = vcombine.low %v110_v24, %v114_v25 }
  0x19   :  { %v122_v33 = vld [vmem:[%s10976_s1 + $0x2e0] sm:$0xff]  ;;  %v6806_v39 = vcombine.high %v119_v34, %v123_v35  ;;  %v127_v42 = vld [vmem:[%s10976_s1 + $0x308] sm:$0xff]  ;;  %v6805_v46 = vcombine.low %v119_v34, %v123_v35 }
  0x1a   :  { %3613 = vmatpush1.bf16.msra.mxu0 %v6755_v56  ;;  %3818 = vmatpush1.bf16.msra.mxu1 %v6757_v57  ;;  %v6804_v38 = vcombine.high %v118_v32, %v122_v33  ;;  %v126_v40 = vld [vmem:[%s10976_s1 + $0x300] sm:$0xff]  ;;  %v131_v44 = vld [vmem:[%s10976_s1 + $0x328] sm:$0xff]  ;;  %v6803_v45 = vcombine.low %v118_v32, %v122_v33  ;;  %v8467_v33 = vcombine.high %v8331_v9, %v8331_v9 }
  0x1b   :  { %3614 = vmatprep.subr.bf16.mxu0 %v6764_v58  ;;  %3819 = vmatprep.subr.bf16.mxu1 %v6766_v60  ;;  %v130_v41 = vld [vmem:[%s10976_s1 + $0x320] sm:$0xff]  ;;  %v6814_v48 = vcombine.high %v127_v42, %v131_v44  ;;  %v135_v51 = vld [vmem:[%s10976_s1 + $0x348] sm:$0xff]  ;;  %v6813_v55 = vcombine.low %v127_v42, %v131_v44 }
  0x1c   :  { %v6812_v47 = vcombine.high %v126_v40, %v130_v41  ;;  %v134_v49 = vld [vmem:[%s10976_s1 + $0x340] sm:$0xff]  ;;  %v139_v52 = vld [vmem:[%s10976_s1 + $0x368] sm:$0xff]  ;;  %v6811_v54 = vcombine.low %v126_v40, %v130_v41 }
  0x1d   :  { %v138_v50 = vld [vmem:[%s10976_s1 + $0x360] sm:$0xff]  ;;  %v6822_v57 = vcombine.high %v135_v51, %v139_v52  ;;  %v143_v61 = vld [vmem:[%s10976_s1 + $0x388] sm:$0xff]  ;;  %v6821_v1 = vcombine.low %v135_v51, %v139_v52 }
  0x1e   :  { %3615 = vmatpush1.bf16.msra.mxu0 %v6763_v2  ;;  %3820 = vmatpush1.bf16.msra.mxu1 %v6765_v4  ;;  %v6820_v56 = vcombine.high %v134_v49, %v138_v50  ;;  %v142_v58 = vld [vmem:[%s10976_s1 + $0x380] sm:$0xff]  ;;  %v147_v62 = vld [vmem:[%s10976_s1 + $0x3a8] sm:$0xff]  ;;  %v6819_v0 = vcombine.low %v134_v49, %v138_v50 }
  0x1f   :  { %3616 = vmatprep.subr.bf16.mxu0 %v6772_v5  ;;  %3821 = vmatprep.subr.bf16.mxu1 %v6774_v6  ;;  %v146_v60 = vld [vmem:[%s10976_s1 + $0x3a0] sm:$0xff]  ;;  %v6830_v3 = vcombine.high %v143_v61, %v147_v62  ;;  %v151_v6 = vld [vmem:[%s10976_s1 + $0x3c8] sm:$0xff]  ;;  %v6829_v10 = vcombine.low %v143_v61, %v147_v62 }
  0x20   :  { %v6828_v2 = vcombine.high %v142_v58, %v146_v60  ;;  %v150_v4 = vld [vmem:[%s10976_s1 + $0x3c0] sm:$0xff]  ;;  %v155_v7 = vld [vmem:[%s10976_s1 + $0x3e8] sm:$0xff]  ;;  %v6827_v8 = vcombine.low %v142_v58, %v146_v60 }
  0x21   :  { %v154_v5 = vld [vmem:[%s10976_s1 + $0x3e0] sm:$0xff]  ;;  %v163_v16 = vld [vmem:[%s10976_s1 + $0x428] sm:$0xff]  ;;  %v6837_v18 = vcombine.low %v151_v6, %v155_v7 }
  0x22   :  { %3617 = vmatpush1.bf16.msra.mxu0 %v6771_v12  ;;  %3822 = vmatpush1.bf16.msra.mxu1 %v6773_v13  ;;  %v6836_v11 = vcombine.high %v150_v4, %v154_v5  ;;  %v6838_v12 = vcombine.high %v151_v6, %v155_v7  ;;  %v158_v13 = vld [vmem:[%s10976_s1 + $0x400] sm:$0xff]  ;;  %v6835_v17 = vcombine.low %v150_v4, %v154_v5  ;;  %v167_v24 = vld [vmem:[%s10976_s1 + $0x448] sm:$0xff] }
  0x23   :  { %3618 = vmatprep.subr.bf16.mxu0 %v6780_v14  ;;  %3823 = vmatprep.subr.bf16.mxu1 %v6782_v15  ;;  %v162_v14 = vld [vmem:[%s10976_s1 + $0x420] sm:$0xff]  ;;  %v159_v15 = vld [vmem:[%s10976_s1 + $0x408] sm:$0xff] }
  0x24   :  { %v6844_v19 = vcombine.high %v158_v13, %v162_v14  ;;  %v171_v25 = vld [vmem:[%s10976_s1 + $0x468] sm:$0xff]  ;;  %v6843_v26 = vcombine.low %v158_v13, %v162_v14  ;;  %v6845_v27 = vcombine.low %v159_v15, %v163_v16 }
  0x25   :  { %v179_v32 = vld [vmem:[%s10976_s1 + $0x4a8] sm:$0xff]  ;;  %v6853_v35 = vcombine.low %v167_v24, %v171_v25 }
  0x26   :  { %3619 = vmatpush1.bf16.msra.mxu0 %v6779_v20  ;;  %3824 = vmatpush1.bf16.msra.mxu1 %v6781_v21  ;;  %v6846_v20 = vcombine.high %v159_v15, %v163_v16  ;;  %v166_v21 = vld [vmem:[%s10976_s1 + $0x440] sm:$0xff]  ;;  %v187_v41 = vld [vmem:[%s10976_s1 + $0x4e8] sm:$0xff] }
  0x27   :  { %3620 = vmatprep.subr.bf16.mxu0 %v6788_v22  ;;  %3825 = vmatprep.subr.bf16.mxu1 %v6790_v23  ;;  %v170_v22 = vld [vmem:[%s10976_s1 + $0x460] sm:$0xff]  ;;  %v8445_v23 = vrot.slane %v8314_v63, %v8293_v53  ;;  %v195_v50 = vld [vmem:[%s10976_s1 + $0x528] sm:$0xff] }
  0x28   :  { %v178_v63 = vld [vmem:[%s10976_s1 + $0x4a0] sm:$0xff]  ;;  %v6851_v34 = vcombine.low %v166_v21, %v170_v22  ;;  %v203_v60 = vld [vmem:[%s10976_s1 + $0x568] sm:$0xff] }
  0x29   :  { %v211_v5 = vld [vmem:[%s10976_s1 + $0x5a8] sm:$0xff] }
  0x2a   :  { %3621 = vmatpush1.bf16.msra.mxu0 %v6787_v28  ;;  %3826 = vmatpush1.bf16.msra.mxu1 %v6789_v29  ;;  %v6852_v28 = vcombine.high %v166_v21, %v170_v22  ;;  %v174_v29 = vld [vmem:[%s10976_s1 + $0x480] sm:$0xff]  ;;  %v219_v14 = vld [vmem:[%s10976_s1 + $0x5e8] sm:$0xff] }
  0x2b   :  { %3622 = vmatprep.subr.bf16.mxu0 %v6796_v30  ;;  %3827 = vmatprep.subr.bf16.mxu1 %v6798_v31  ;;  %v175_v30 = vld [vmem:[%s10976_s1 + $0x488] sm:$0xff]  ;;  %v6854_v31 = vcombine.high %v167_v24, %v171_v25  ;;  %v6859_v42 = vcombine.low %v174_v29, %v178_v63 }
  0x2c   :  { %v6862_v40 = vcombine.high %v175_v30, %v179_v32  ;;  %v6861_v44 = vcombine.low %v175_v30, %v179_v32  ;;  %v227_v22 = vld [vmem:[%s10976_s1 + $0x628] sm:$0xff] }
  0x2d   :  { %v235_v30 = vld [vmem:[%s10976_s1 + $0x668] sm:$0xff] }
  0x2e   :  { %3623 = vmatpush1.bf16.msra.mxu0 %v6795_v36  ;;  %3828 = vmatpush1.bf16.msra.mxu1 %v6797_v37  ;;  %v6860_v36 = vcombine.high %v174_v29, %v178_v63  ;;  %v182_v37 = vld [vmem:[%s10976_s1 + $0x4c0] sm:$0xff]  ;;  %v231_v29 = vld [vmem:[%s10976_s1 + $0x648] sm:$0xff] }
  0x2f   :  { %3624 = vmatprep.subr.bf16.mxu0 %v6804_v38  ;;  %3829 = vmatprep.subr.bf16.mxu1 %v6806_v39  ;;  %v186_v38 = vld [vmem:[%s10976_s1 + $0x4e0] sm:$0xff]  ;;  %v183_v39 = vld [vmem:[%s10976_s1 + $0x4c8] sm:$0xff] }
  0x30   :  { %v6870_v49 = vcombine.high %v183_v39, %v187_v41  ;;  %v6867_v51 = vcombine.low %v182_v37, %v186_v38  ;;  %v6869_v52 = vcombine.low %v183_v39, %v187_v41  ;;  %v243_v39 = vld [vmem:[%s10976_s1 + $0x6a8] sm:$0xff]  ;;  %v6917_v41 = vcombine.low %v231_v29, %v235_v30 }
  0x32   :  { %3625 = vmatpush1.bf16.msra.mxu0 %v6803_v45  ;;  %3830 = vmatpush1.bf16.msra.mxu1 %v6805_v46  ;;  %v6868_v45 = vcombine.high %v182_v37, %v186_v38  ;;  %v190_v46 = vld [vmem:[%s10976_s1 + $0x500] sm:$0xff]  ;;  %v239_v37 = vld [vmem:[%s10976_s1 + $0x688] sm:$0xff]  ;;  %v6918_v38 = vcombine.high %v231_v29, %v235_v30 }
  0x33   :  { %3626 = vmatprep.subr.bf16.mxu0 %v6812_v47  ;;  %3831 = vmatprep.subr.bf16.mxu1 %v6814_v48  ;;  %v194_v47 = vld [vmem:[%s10976_s1 + $0x520] sm:$0xff]  ;;  %v191_v48 = vld [vmem:[%s10976_s1 + $0x508] sm:$0xff] }
  0x34   :  { %v6878_v58 = vcombine.high %v191_v48, %v195_v50  ;;  %v6875_v61 = vcombine.low %v190_v46, %v194_v47  ;;  %v6877_v62 = vcombine.low %v191_v48, %v195_v50  ;;  %v251_v48 = vld [vmem:[%s10976_s1 + $0x6e8] sm:$0xff]  ;;  %v6925_v50 = vcombine.low %v239_v37, %v243_v39 }
  0x35   :  { %v291_v29 = vld [vmem:[%s10976_s1 + $0x828] sm:$0xff] }
  0x36   :  { %3627 = vmatpush1.bf16.msra.mxu0 %v6811_v54  ;;  %3832 = vmatpush1.bf16.msra.mxu1 %v6813_v55  ;;  %v6876_v54 = vcombine.high %v190_v46, %v194_v47  ;;  %v198_v55 = vld [vmem:[%s10976_s1 + $0x540] sm:$0xff]  ;;  %v247_v46 = vld [vmem:[%s10976_s1 + $0x6c8] sm:$0xff]  ;;  %v6926_v47 = vcombine.high %v239_v37, %v243_v39 }
  0x37   :  { %3628 = vmatprep.subr.bf16.mxu0 %v6820_v56  ;;  %3833 = vmatprep.subr.bf16.mxu1 %v6822_v57  ;;  %v202_v56 = vld [vmem:[%s10976_s1 + $0x560] sm:$0xff]  ;;  %v199_v57 = vld [vmem:[%s10976_s1 + $0x548] sm:$0xff] }
  0x38   :  { %v6886_v4 = vcombine.high %v199_v57, %v203_v60  ;;  %v6883_v6 = vcombine.low %v198_v55, %v202_v56  ;;  %v6885_v7 = vcombine.low %v199_v57, %v203_v60  ;;  %v259_v57 = vld [vmem:[%s10976_s1 + $0x728] sm:$0xff]  ;;  %v6933_v60 = vcombine.low %v247_v46, %v251_v48 }
  0x3a   :  { %3629 = vmatpush1.bf16.msra.mxu0 %v6819_v0  ;;  %3834 = vmatpush1.bf16.msra.mxu1 %v6821_v1  ;;  %v6884_v0 = vcombine.high %v198_v55, %v202_v56  ;;  %v206_v1 = vld [vmem:[%s10976_s1 + $0x580] sm:$0xff]  ;;  %v255_v55 = vld [vmem:[%s10976_s1 + $0x708] sm:$0xff]  ;;  %v6934_v56 = vcombine.high %v247_v46, %v251_v48 }
  0x3b   :  { %3630 = vmatprep.subr.bf16.mxu0 %v6828_v2  ;;  %3835 = vmatprep.subr.bf16.mxu1 %v6830_v3  ;;  %v210_v2 = vld [vmem:[%s10976_s1 + $0x5a0] sm:$0xff]  ;;  %v207_v3 = vld [vmem:[%s10976_s1 + $0x588] sm:$0xff] }
  0x3c   :  { %v6894_v13 = vcombine.high %v207_v3, %v211_v5  ;;  %v6891_v15 = vcombine.low %v206_v1, %v210_v2  ;;  %v6893_v16 = vcombine.low %v207_v3, %v211_v5  ;;  %v267_v3 = vld [vmem:[%s10976_s1 + $0x768] sm:$0xff]  ;;  %v6941_v5 = vcombine.low %v255_v55, %v259_v57  ;;  %v306_v46 = vld [vmem:[%s10976_s1 + $0x8a0] sm:$0xff] }
  0x3e   :  { %3631 = vmatpush1.bf16.msra.mxu0 %v6827_v8  ;;  %3836 = vmatpush1.bf16.msra.mxu1 %v6829_v10  ;;  %v6892_v8 = vcombine.high %v206_v1, %v210_v2  ;;  %v214_v10 = vld [vmem:[%s10976_s1 + $0x5c0] sm:$0xff]  ;;  %v263_v1 = vld [vmem:[%s10976_s1 + $0x748] sm:$0xff]  ;;  %v6942_v2 = vcombine.high %v255_v55, %v259_v57 }
  0x3f   :  { %3632 = vmatprep.subr.bf16.mxu0 %v6836_v11  ;;  %3837 = vmatprep.subr.bf16.mxu1 %v6838_v12  ;;  %v218_v11 = vld [vmem:[%s10976_s1 + $0x5e0] sm:$0xff]  ;;  %v215_v12 = vld [vmem:[%s10976_s1 + $0x5c8] sm:$0xff] }
  0x40   :  { %v6902_v21 = vcombine.high %v215_v12, %v219_v14  ;;  %v6899_v24 = vcombine.low %v214_v10, %v218_v11  ;;  %v6901_v25 = vcombine.low %v215_v12, %v219_v14  ;;  %v275_v12 = vld [vmem:[%s10976_s1 + $0x7a8] sm:$0xff]  ;;  %v6949_v14 = vcombine.low %v263_v1, %v267_v3  ;;  %v310_v55 = vld [vmem:[%s10976_s1 + $0x8c0] sm:$0xff] }
  0x41   :  { %v311_v57 = vld [vmem:[%s10976_s1 + $0x8c8] sm:$0xff] }
  0x42   :  { %3633 = vmatpush1.bf16.msra.mxu0 %v6835_v17  ;;  %3838 = vmatpush1.bf16.msra.mxu1 %v6837_v18  ;;  %v6900_v17 = vcombine.high %v214_v10, %v218_v11  ;;  %v222_v18 = vld [vmem:[%s10976_s1 + $0x600] sm:$0xff]  ;;  %v271_v10 = vld [vmem:[%s10976_s1 + $0x788] sm:$0xff]  ;;  %v6950_v11 = vcombine.high %v263_v1, %v267_v3 }
  0x43   :  { %3643 = vmatprep.subr.bf16.mxu0 %v6844_v19  ;;  %3848 = vmatprep.subr.bf16.mxu1 %v6846_v20  ;;  %v226_v19 = vld [vmem:[%s10976_s1 + $0x620] sm:$0xff]  ;;  %v223_v20 = vld [vmem:[%s10976_s1 + $0x608] sm:$0xff] }
  0x44   :  { %v6910_v63 = vcombine.high %v223_v20, %v227_v22  ;;  %v6909_v32 = vcombine.low %v223_v20, %v227_v22  ;;  %v283_v20 = vld [vmem:[%s10976_s1 + $0x7e8] sm:$0xff]  ;;  %v318_v1 = vld [vmem:[%s10976_s1 + $0x900] sm:$0xff] }
  0x45   :  { %3635 = vmatmul.mubr.bf16.vlgmr.msra.gmra.mrb[0].mxu0 %v8445_v23  ;;  %3840 = vmatmul.mubr.bf16.vlgmr.msra.gmra.mrb[0].mxu1 %v8445_v23  ;;  %v319_v3 = vld [vmem:[%s10976_s1 + $0x908] sm:$0xff] }
  0x46   :  { %3644 = vmatpush1.bf16.msra.mxu0 %v6843_v26  ;;  %3849 = vmatpush1.bf16.msra.mxu1 %v6845_v27  ;;  %v6908_v26 = vcombine.high %v222_v18, %v226_v19  ;;  %v230_v27 = vld [vmem:[%s10976_s1 + $0x640] sm:$0xff] }
  0x47   :  { %3645 = vmatprep.subr.bf16.mxu0 %v6852_v28  ;;  %3850 = vmatprep.subr.bf16.mxu1 %v6854_v31  ;;  %v234_v28 = vld [vmem:[%s10976_s1 + $0x660] sm:$0xff]  ;;  %v6907_v31 = vcombine.low %v222_v18, %v226_v19  ;;  %v279_v18 = vld [vmem:[%s10976_s1 + $0x7c8] sm:$0xff]  ;;  %v6958_v19 = vcombine.high %v271_v10, %v275_v12 }
  0x48   :  { %3675 = vmatprep.mubr.bf16.mxu0 %v8467_v33  ;;  %3880 = vmatprep.mubr.bf16.mxu1 %v8467_v33 }
  0x4a   :  { %3646 = vmatpush1.bf16.msra.mxu0 %v6851_v34  ;;  %3851 = vmatpush1.bf16.msra.mxu1 %v6853_v35  ;;  %v6916_v34 = vcombine.high %v230_v27, %v234_v28  ;;  %v238_v35 = vld [vmem:[%s10976_s1 + $0x680] sm:$0xff] }
  0x4b   :  { %3647 = vmatprep.subr.bf16.mxu0 %v6860_v36  ;;  %3852 = vmatprep.subr.bf16.mxu1 %v6862_v40  ;;  %v242_v36 = vld [vmem:[%s10976_s1 + $0x6a0] sm:$0xff]  ;;  %v6915_v40 = vcombine.low %v230_v27, %v234_v28  ;;  %v287_v28 = vld [vmem:[%s10976_s1 + $0x808] sm:$0xff] }
  0x4c   :  { %v290_v27 = vld [vmem:[%s10976_s1 + $0x820] sm:$0xff]  ;;  %v6974_v37 = vcombine.high %v287_v28, %v291_v29 }
  0x4e   :  { %3648 = vmatpush1.bf16.msra.mxu0 %v6859_v42  ;;  %3853 = vmatpush1.bf16.msra.mxu1 %v6861_v44  ;;  %v6924_v42 = vcombine.high %v238_v35, %v242_v36  ;;  %v246_v44 = vld [vmem:[%s10976_s1 + $0x6c0] sm:$0xff] }
  0x4f   :  { %3649 = vmatprep.subr.bf16.mxu0 %v6868_v45  ;;  %3854 = vmatprep.subr.bf16.mxu1 %v6870_v49  ;;  %v250_v45 = vld [vmem:[%s10976_s1 + $0x6e0] sm:$0xff]  ;;  %v6923_v49 = vcombine.low %v238_v35, %v242_v36  ;;  %v295_v36 = vld [vmem:[%s10976_s1 + $0x848] sm:$0xff] }
  0x50   :  { %v298_v35 = vld [vmem:[%s10976_s1 + $0x860] sm:$0xff] }
  0x52   :  { %3650 = vmatpush1.bf16.msra.mxu0 %v6867_v51  ;;  %3855 = vmatpush1.bf16.msra.mxu1 %v6869_v52  ;;  %v6932_v51 = vcombine.high %v246_v44, %v250_v45  ;;  %v254_v52 = vld [vmem:[%s10976_s1 + $0x700] sm:$0xff] }
  0x53   :  { %3651 = vmatprep.subr.bf16.mxu0 %v6876_v54  ;;  %3856 = vmatprep.subr.bf16.mxu1 %v6878_v58  ;;  %v258_v54 = vld [vmem:[%s10976_s1 + $0x720] sm:$0xff]  ;;  %v6931_v58 = vcombine.low %v246_v44, %v250_v45 }
  0x54   :  { %v302_v45 = vld [vmem:[%s10976_s1 + $0x880] sm:$0xff] }
  0x56   :  { %3652 = vmatpush1.bf16.msra.mxu0 %v6875_v61  ;;  %3857 = vmatpush1.bf16.msra.mxu1 %v6877_v62  ;;  %v6940_v61 = vcombine.high %v254_v52, %v258_v54  ;;  %v262_v62 = vld [vmem:[%s10976_s1 + $0x740] sm:$0xff] }
  0x57   :  { %3653 = vmatprep.subr.bf16.mxu0 %v6884_v0  ;;  %3858 = vmatprep.subr.bf16.mxu1 %v6886_v4  ;;  %v266_v0 = vld [vmem:[%s10976_s1 + $0x760] sm:$0xff]  ;;  %v6939_v4 = vcombine.low %v254_v52, %v258_v54  ;;  %v6988_v54 = vcombine.high %v302_v45, %v306_v46 }
  0x5a   :  { %3654 = vmatpush1.bf16.msra.mxu0 %v6883_v6  ;;  %3859 = vmatpush1.bf16.msra.mxu1 %v6885_v7  ;;  %v6948_v6 = vcombine.high %v262_v62, %v266_v0  ;;  %v270_v7 = vld [vmem:[%s10976_s1 + $0x780] sm:$0xff] }
  0x5b   :  { %3655 = vmatprep.subr.bf16.mxu0 %v6892_v8  ;;  %3860 = vmatprep.subr.bf16.mxu1 %v6894_v13  ;;  %v274_v8 = vld [vmem:[%s10976_s1 + $0x7a0] sm:$0xff]  ;;  %v6947_v13 = vcombine.low %v262_v62, %v266_v0 }
  0x5c   :  { %v6955_v22 = vcombine.low %v270_v7, %v274_v8 }
  0x5e   :  { %3656 = vmatpush1.bf16.msra.mxu0 %v6891_v15  ;;  %3861 = vmatpush1.bf16.msra.mxu1 %v6893_v16  ;;  %v6956_v15 = vcombine.high %v270_v7, %v274_v8  ;;  %v278_v16 = vld [vmem:[%s10976_s1 + $0x7c0] sm:$0xff] }
  0x5f   :  { %3657 = vmatprep.subr.bf16.mxu0 %v6900_v17  ;;  %3862 = vmatprep.subr.bf16.mxu1 %v6902_v21  ;;  %v282_v17 = vld [vmem:[%s10976_s1 + $0x7e0] sm:$0xff]  ;;  %v650_v21 = vcombine.high %v8304_v59, %v8304_v59  ;;  %v6966_v59 = vcombine.high %v279_v18, %v283_v20 }
  0x60   :  { %v6963_v30 = vcombine.low %v278_v16, %v282_v17 }
  0x62   :  { %3658 = vmatpush1.bf16.msra.mxu0 %v6899_v24  ;;  %3863 = vmatpush1.bf16.msra.mxu1 %v6901_v25  ;;  %v6957_v24 = vcombine.low %v271_v10, %v275_v12  ;;  %v6964_v25 = vcombine.high %v278_v16, %v282_v17  ;;  %v326_v10 = vld [vmem:[%s10976_s1 + $0x940] sm:$0xff]  ;;  %v327_v12 = vld [vmem:[%s10976_s1 + $0x948] sm:$0xff] }
  0x63   :  { %3659 = vmatprep.subr.bf16.mxu0 %v6908_v26  ;;  %3864 = vmatprep.subr.bf16.mxu1 %v6910_v63  ;;  %v286_v26 = vld [vmem:[%s10976_s1 + $0x800] sm:$0xff]  ;;  %v8644_v63 = vrot.slane %v650_v21, %v8293_v53 }
  0x65   :  { %v666_v39 = vcombine.high %v8644_v63, %v8644_v63 }
  0x66   :  { %3660 = vmatpush1.bf16.msra.mxu0 %v6907_v31  ;;  %3865 = vmatpush1.bf16.msra.mxu1 %v6909_v32  ;;  %v6965_v31 = vcombine.low %v279_v18, %v283_v20  ;;  %v6972_v32 = vcombine.high %v286_v26, %v290_v27  ;;  %v334_v18 = vld [vmem:[%s10976_s1 + $0x980] sm:$0xff]  ;;  %v335_v20 = vld [vmem:[%s10976_s1 + $0x988] sm:$0xff] }
  0x67   :  { %3661 = vmatprep.subr.bf16.mxu0 %v6916_v34  ;;  %3866 = vmatprep.subr.bf16.mxu1 %v6918_v38  ;;  %v294_v34 = vld [vmem:[%s10976_s1 + $0x840] sm:$0xff]  ;;  %v299_v38 = vld [vmem:[%s10976_s1 + $0x868] sm:$0xff] }
  0x68   :  { %v6980_v44 = vcombine.high %v294_v34, %v298_v35  ;;  %v6982_v48 = vcombine.high %v295_v36, %v299_v38  ;;  %v6981_v52 = vcombine.low %v295_v36, %v299_v38  ;;  %v354_v36 = vld [vmem:[%s10976_s1 + $0xa20] sm:$0xff] }
  0x6a   :  { %3662 = vmatpush1.bf16.msra.mxu0 %v6915_v40  ;;  %3867 = vmatpush1.bf16.msra.mxu1 %v6917_v41  ;;  %v8662_v40 = vcombine.high %v8445_v23, %v8445_v23  ;;  %v6971_v41 = vcombine.low %v286_v26, %v290_v27  ;;  %v342_v27 = vld [vmem:[%s10976_s1 + $0x9c0] sm:$0xff] }
  0x6b   :  { %3663 = vmatprep.subr.bf16.mxu0 %v6924_v42  ;;  %3868 = vmatprep.subr.bf16.mxu1 %v6926_v47  ;;  %v6973_v42 = vcombine.low %v287_v28, %v291_v29  ;;  %v303_v47 = vld [vmem:[%s10976_s1 + $0x888] sm:$0xff]  ;;  %v346_v28 = vld [vmem:[%s10976_s1 + $0x9e0] sm:$0xff] }
  0x6e   :  { %3664 = vmatpush1.bf16.msra.mxu0 %v6923_v49  ;;  %3869 = vmatpush1.bf16.msra.mxu1 %v6925_v50  ;;  %v307_v49 = vld [vmem:[%s10976_s1 + $0x8a8] sm:$0xff]  ;;  %v8677_v50 = vrot.slane %v666_v39, %v8293_v53 }
  0x6f   :  { %3665 = vmatprep.subr.bf16.mxu0 %v6932_v51  ;;  %3870 = vmatprep.subr.bf16.mxu1 %v6934_v56  ;;  %v6979_v51 = vcombine.low %v294_v34, %v298_v35  ;;  %v314_v56 = vld [vmem:[%s10976_s1 + $0x8e0] sm:$0xff]  ;;  %v6989_v62 = vcombine.low %v303_v47, %v307_v49  ;;  %v7028_v34 = vcombine.high %v342_v27, %v346_v28  ;;  %v355_v39 = vld [vmem:[%s10976_s1 + $0xa28] sm:$0xff] }
  0x70   :  { %v6996_v0 = vcombine.high %v310_v55, %v314_v56  ;;  %v350_v35 = vld [vmem:[%s10976_s1 + $0xa00] sm:$0xff] }
  0x72   :  { %3666 = vmatpush1.bf16.msra.mxu0 %v6931_v58  ;;  %3871 = vmatpush1.bf16.msra.mxu1 %v6933_v60  ;;  %v6990_v58 = vcombine.high %v303_v47, %v307_v49  ;;  %v315_v60 = vld [vmem:[%s10976_s1 + $0x8e8] sm:$0xff] }
  0x73   :  { %3667 = vmatprep.subr.bf16.mxu0 %v6940_v61  ;;  %3872 = vmatprep.subr.bf16.mxu1 %v6942_v2  ;;  %v6987_v61 = vcombine.low %v302_v45, %v306_v46  ;;  %v322_v2 = vld [vmem:[%s10976_s1 + $0x920] sm:$0xff]  ;;  %v6997_v7 = vcombine.low %v311_v57, %v315_v60  ;;  %v359_v47 = vld [vmem:[%s10976_s1 + $0xa48] sm:$0xff] }
  0x74   :  { %v7004_v8 = vcombine.high %v318_v1, %v322_v2  ;;  %v358_v45 = vld [vmem:[%s10976_s1 + $0xa40] sm:$0xff]  ;;  %v363_v49 = vld [vmem:[%s10976_s1 + $0xa68] sm:$0xff] }
  0x75   :  { %v362_v46 = vld [vmem:[%s10976_s1 + $0xa60] sm:$0xff] }
  0x76   :  { %3668 = vmatpush1.bf16.msra.mxu0 %v6939_v4  ;;  %3873 = vmatpush1.bf16.msra.mxu1 %v6941_v5  ;;  %v6998_v4 = vcombine.high %v311_v57, %v315_v60  ;;  %v323_v5 = vld [vmem:[%s10976_s1 + $0x928] sm:$0xff]  ;;  %v370_v57 = vld [vmem:[%s10976_s1 + $0xaa0] sm:$0xff] }
  0x77   :  { %3669 = vmatprep.subr.bf16.mxu0 %v6948_v6  ;;  %3874 = vmatprep.subr.bf16.mxu1 %v6950_v11  ;;  %v6995_v6 = vcombine.low %v310_v55, %v314_v56  ;;  %v330_v11 = vld [vmem:[%s10976_s1 + $0x960] sm:$0xff]  ;;  %v7005_v16 = vcombine.low %v319_v3, %v323_v5  ;;  %v7046_v56 = vcombine.high %v359_v47, %v363_v49  ;;  %v371_v60 = vld [vmem:[%s10976_s1 + $0xaa8] sm:$0xff] }
  0x78   :  { %v7012_v17 = vcombine.high %v326_v10, %v330_v11  ;;  %v366_v55 = vld [vmem:[%s10976_s1 + $0xa80] sm:$0xff] }
  0x7a   :  { %3670 = vmatpush1.bf16.msra.mxu0 %v6947_v13  ;;  %3875 = vmatpush1.bf16.msra.mxu1 %v6949_v14  ;;  %v7006_v13 = vcombine.high %v319_v3, %v323_v5  ;;  %v331_v14 = vld [vmem:[%s10976_s1 + $0x968] sm:$0xff] }
  0x7b   :  { %3671 = vmatprep.subr.bf16.mxu0 %v6956_v15  ;;  %3876 = vmatprep.subr.bf16.mxu1 %v6958_v19  ;;  %v7003_v15 = vcombine.low %v318_v1, %v322_v2  ;;  %v338_v19 = vld [vmem:[%s10976_s1 + $0x9a0] sm:$0xff]  ;;  %v7014_v21 = vcombine.high %v327_v12, %v331_v14  ;;  %v375_v3 = vld [vmem:[%s10976_s1 + $0xac8] sm:$0xff] }
  0x7c   :  { %v7020_v26 = vcombine.high %v334_v18, %v338_v19  ;;  %v374_v1 = vld [vmem:[%s10976_s1 + $0xac0] sm:$0xff]  ;;  %v379_v5 = vld [vmem:[%s10976_s1 + $0xae8] sm:$0xff] }
  0x7d   :  { %v378_v2 = vld [vmem:[%s10976_s1 + $0xae0] sm:$0xff] }
  0x7e   :  { %3672 = vmatpush1.bf16.msra.mxu0 %v6955_v22  ;;  %3877 = vmatpush1.bf16.msra.mxu1 %v6957_v24  ;;  %v339_v22 = vld [vmem:[%s10976_s1 + $0x9a8] sm:$0xff]  ;;  %v7011_v24 = vcombine.low %v326_v10, %v330_v11  ;;  %v382_v10 = vld [vmem:[%s10976_s1 + $0xb00] sm:$0xff] }
  0x7f   :  { %3673 = vmatprep.subr.bf16.mxu0 %v6964_v25  ;;  %3878 = vmatprep.subr.bf16.mxu1 %v6966_v59  ;;  %v7013_v25 = vcombine.low %v327_v12, %v331_v14  ;;  %v343_v59 = vld [vmem:[%s10976_s1 + $0x9c8] sm:$0xff]  ;;  %v7022_v29 = vcombine.high %v335_v20, %v339_v22  ;;  %v386_v11 = vld [vmem:[%s10976_s1 + $0xb20] sm:$0xff] }
  0x80   :  { %v383_v12 = vld [vmem:[%s10976_s1 + $0xb08] sm:$0xff] }
  0x81   :  { %v387_v14 = vld [vmem:[%s10976_s1 + $0xb28] sm:$0xff] }
  0x82   :  { %3674 = vmatpush1.bf16.msra.mxu0 %v6963_v30  ;;  %3879 = vmatpush1.bf16.msra.mxu1 %v6965_v31  ;;  %v347_v30 = vld [vmem:[%s10976_s1 + $0x9e8] sm:$0xff]  ;;  %v7019_v31 = vcombine.low %v334_v18, %v338_v19  ;;  %v390_v18 = vld [vmem:[%s10976_s1 + $0xb40] sm:$0xff] }
  0x83   :  { %3684 = vmatprep.subr.bf16.mxu0 %v6972_v32  ;;  %3889 = vmatprep.subr.bf16.mxu1 %v6974_v37  ;;  %v7021_v32 = vcombine.low %v335_v20, %v339_v22  ;;  %v351_v37 = vld [vmem:[%s10976_s1 + $0xa08] sm:$0xff]  ;;  %v7030_v38 = vcombine.high %v343_v59, %v347_v30  ;;  %v394_v19 = vld [vmem:[%s10976_s1 + $0xb60] sm:$0xff] }
  0x84   :  { %v391_v20 = vld [vmem:[%s10976_s1 + $0xb48] sm:$0xff] }
  0x85   :  { %3676 = vmatmul.mubr.bf16.vlgmr.msra.gmra.mrb[0].mxu0 %v8662_v40  ;;  %3881 = vmatmul.mubr.bf16.vlgmr.msra.gmra.mrb[0].mxu1 %v8662_v40  ;;  %v395_v22 = vld [vmem:[%s10976_s1 + $0xb68] sm:$0xff] }
  0x86   :  { %3685 = vmatpush1.bf16.msra.mxu0 %v6971_v41  ;;  %3890 = vmatpush1.bf16.msra.mxu1 %v6973_v42  ;;  %v7027_v41 = vcombine.low %v342_v27, %v346_v28  ;;  %v7029_v42 = vcombine.low %v343_v59, %v347_v30  ;;  %v398_v27 = vld [vmem:[%s10976_s1 + $0xb80] sm:$0xff]  ;;  %v399_v59 = vld [vmem:[%s10976_s1 + $0xb88] sm:$0xff] }
  0x87   :  { %3686 = vmatprep.subr.bf16.mxu0 %v6980_v44  ;;  %3891 = vmatprep.subr.bf16.mxu1 %v6982_v48  ;;  %v7036_v44 = vcombine.high %v350_v35, %v354_v36  ;;  %v7038_v48 = vcombine.high %v351_v37, %v355_v39  ;;  %v402_v28 = vld [vmem:[%s10976_s1 + $0xba0] sm:$0xff]  ;;  %v403_v30 = vld [vmem:[%s10976_s1 + $0xba8] sm:$0xff] }
  0x88   :  { %3716 = vmatprep.mubr.bf16.mxu0 %v8677_v50  ;;  %3921 = vmatprep.mubr.bf16.mxu1 %v8677_v50 }
  0x8a   :  { %3687 = vmatpush1.bf16.msra.mxu0 %v6979_v51  ;;  %3892 = vmatpush1.bf16.msra.mxu1 %v6981_v52  ;;  %v7035_v51 = vcombine.low %v350_v35, %v354_v36  ;;  %v7037_v52 = vcombine.low %v351_v37, %v355_v39  ;;  %v406_v35 = vld [vmem:[%s10976_s1 + $0xbc0] sm:$0xff]  ;;  %v407_v37 = vld [vmem:[%s10976_s1 + $0xbc8] sm:$0xff] }
  0x8b   :  { %3688 = vmatprep.subr.bf16.mxu0 %v6988_v54  ;;  %3893 = vmatprep.subr.bf16.mxu1 %v6990_v58  ;;  %v7044_v54 = vcombine.high %v358_v45, %v362_v46  ;;  %v367_v58 = vld [vmem:[%s10976_s1 + $0xa88] sm:$0xff]  ;;  %v410_v36 = vld [vmem:[%s10976_s1 + $0xbe0] sm:$0xff] }
  0x8c   :  { %v411_v39 = vld [vmem:[%s10976_s1 + $0xbe8] sm:$0xff] }
  0x8e   :  { %3689 = vmatpush1.bf16.msra.mxu0 %v6987_v61  ;;  %3894 = vmatpush1.bf16.msra.mxu1 %v6989_v62  ;;  %v7043_v61 = vcombine.low %v358_v45, %v362_v46  ;;  %v7045_v62 = vcombine.low %v359_v47, %v363_v49  ;;  %v414_v45 = vld [vmem:[%s10976_s1 + $0xc00] sm:$0xff]  ;;  %v415_v47 = vld [vmem:[%s10976_s1 + $0xc08] sm:$0xff] }
  0x8f   :  { %3690 = vmatprep.subr.bf16.mxu0 %v6996_v0  ;;  %3895 = vmatprep.subr.bf16.mxu1 %v6998_v4  ;;  %v7052_v0 = vcombine.high %v366_v55, %v370_v57  ;;  %v7054_v4 = vcombine.high %v367_v58, %v371_v60  ;;  %v418_v46 = vld [vmem:[%s10976_s1 + $0xc20] sm:$0xff]  ;;  %v419_v49 = vld [vmem:[%s10976_s1 + $0xc28] sm:$0xff] }
  0x92   :  { %3691 = vmatpush1.bf16.msra.mxu0 %v6995_v6  ;;  %3896 = vmatpush1.bf16.msra.mxu1 %v6997_v7  ;;  %v7051_v6 = vcombine.low %v366_v55, %v370_v57  ;;  %v7053_v7 = vcombine.low %v367_v58, %v371_v60  ;;  %v422_v55 = vld [vmem:[%s10976_s1 + $0xc40] sm:$0xff]  ;;  %v423_v57 = vld [vmem:[%s10976_s1 + $0xc48] sm:$0xff]  ;;  %v7102_v58 = vcombine.high %v415_v47, %v419_v49 }
  0x93   :  { %3692 = vmatprep.subr.bf16.mxu0 %v7004_v8  ;;  %3897 = vmatprep.subr.bf16.mxu1 %v7006_v13  ;;  %v7060_v8 = vcombine.high %v374_v1, %v378_v2  ;;  %v7062_v13 = vcombine.high %v375_v3, %v379_v5  ;;  %v427_v60 = vld [vmem:[%s10976_s1 + $0xc68] sm:$0xff] }
  0x96   :  { %3693 = vmatpush1.bf16.msra.mxu0 %v7003_v15  ;;  %3898 = vmatpush1.bf16.msra.mxu1 %v7005_v16  ;;  %v7059_v15 = vcombine.low %v374_v1, %v378_v2  ;;  %v7061_v16 = vcombine.low %v375_v3, %v379_v5  ;;  %v430_v2 = vld [vmem:[%s10976_s1 + $0xc80] sm:$0xff]  ;;  %v435_v5 = vld [vmem:[%s10976_s1 + $0xca8] sm:$0xff] }
  0x97   :  { %3694 = vmatprep.subr.bf16.mxu0 %v7012_v17  ;;  %3899 = vmatprep.subr.bf16.mxu1 %v7014_v21  ;;  %v7068_v17 = vcombine.high %v382_v10, %v386_v11  ;;  %v7070_v21 = vcombine.high %v383_v12, %v387_v14  ;;  %v434_v3 = vld [vmem:[%s10976_s1 + $0xca0] sm:$0xff] }
  0x9a   :  { %3695 = vmatpush1.bf16.msra.mxu0 %v7011_v24  ;;  %3900 = vmatpush1.bf16.msra.mxu1 %v7013_v25  ;;  %v7067_v24 = vcombine.low %v382_v10, %v386_v11  ;;  %v7069_v25 = vcombine.low %v383_v12, %v387_v14  ;;  %v7116_v10 = vcombine.high %v430_v2, %v434_v3  ;;  %v438_v11 = vld [vmem:[%s10976_s1 + $0xcc0] sm:$0xff] }
  0x9b   :  { %3696 = vmatprep.subr.bf16.mxu0 %v7020_v26  ;;  %3901 = vmatprep.subr.bf16.mxu1 %v7022_v29  ;;  %v7076_v26 = vcombine.high %v390_v18, %v394_v19  ;;  %v7078_v29 = vcombine.high %v391_v20, %v395_v22  ;;  %v442_v12 = vld [vmem:[%s10976_s1 + $0xce0] sm:$0xff] }
  0x9e   :  { %3697 = vmatpush1.bf16.msra.mxu0 %v7019_v31  ;;  %3902 = vmatpush1.bf16.msra.mxu1 %v7021_v32  ;;  %v7075_v31 = vcombine.low %v390_v18, %v394_v19  ;;  %v7077_v32 = vcombine.low %v391_v20, %v395_v22  ;;  %v7124_v18 = vcombine.high %v438_v11, %v442_v12  ;;  %v446_v19 = vld [vmem:[%s10976_s1 + $0xd00] sm:$0xff] }
  0x9f   :  { %3698 = vmatprep.subr.bf16.mxu0 %v7028_v34  ;;  %3903 = vmatprep.subr.bf16.mxu1 %v7030_v38  ;;  %v7084_v34 = vcombine.high %v398_v27, %v402_v28  ;;  %v7086_v38 = vcombine.high %v399_v59, %v403_v30  ;;  %v450_v20 = vld [vmem:[%s10976_s1 + $0xd20] sm:$0xff] }
  0xa2   :  { %3699 = vmatpush1.bf16.msra.mxu0 %v7027_v41  ;;  %3904 = vmatpush1.bf16.msra.mxu1 %v7029_v42  ;;  %v7083_v41 = vcombine.low %v398_v27, %v402_v28  ;;  %v7085_v42 = vcombine.low %v399_v59, %v403_v30  ;;  %v7132_v27 = vcombine.high %v446_v19, %v450_v20  ;;  %v454_v28 = vld [vmem:[%s10976_s1 + $0xd40] sm:$0xff] }
  0xa3   :  { %3700 = vmatprep.subr.bf16.mxu0 %v7036_v44  ;;  %3905 = vmatprep.subr.bf16.mxu1 %v7038_v48  ;;  %v7092_v44 = vcombine.high %v406_v35, %v410_v36  ;;  %v7094_v48 = vcombine.high %v407_v37, %v411_v39  ;;  %v458_v59 = vld [vmem:[%s10976_s1 + $0xd60] sm:$0xff] }
  0xa6   :  { %3701 = vmatpush1.bf16.msra.mxu0 %v7035_v51  ;;  %3906 = vmatpush1.bf16.msra.mxu1 %v7037_v52  ;;  %v7091_v51 = vcombine.low %v406_v35, %v410_v36  ;;  %v7093_v52 = vcombine.low %v407_v37, %v411_v39  ;;  %v7140_v35 = vcombine.high %v454_v28, %v458_v59  ;;  %v462_v36 = vld [vmem:[%s10976_s1 + $0xd80] sm:$0xff] }
  0xa7   :  { %3702 = vmatprep.subr.bf16.mxu0 %v7044_v54  ;;  %3907 = vmatprep.subr.bf16.mxu1 %v7046_v56  ;;  %v7100_v54 = vcombine.high %v414_v45, %v418_v46  ;;  %v426_v56 = vld [vmem:[%s10976_s1 + $0xc60] sm:$0xff] }
  0xa8   :  { %v7108_v1 = vcombine.high %v422_v55, %v426_v56  ;;  %v466_v37 = vld [vmem:[%s10976_s1 + $0xda0] sm:$0xff] }
  0xaa   :  { %3703 = vmatpush1.bf16.msra.mxu0 %v7043_v61  ;;  %3908 = vmatpush1.bf16.msra.mxu1 %v7045_v62  ;;  %v8865_v61 = vrot.slane %v8644_v63, %v8293_v53  ;;  %v7099_v62 = vcombine.low %v414_v45, %v418_v46  ;;  %v7110_v63 = vcombine.high %v423_v57, %v427_v60  ;;  %v470_v46 = vld [vmem:[%s10976_s1 + $0xdc0] sm:$0xff] }
  0xab   :  { %3704 = vmatprep.subr.bf16.mxu0 %v7052_v0  ;;  %3909 = vmatprep.subr.bf16.mxu1 %v7054_v4  ;;  %v7101_v0 = vcombine.low %v415_v47, %v419_v49  ;;  %v431_v4 = vld [vmem:[%s10976_s1 + $0xc88] sm:$0xff]  ;;  %v7148_v45 = vcombine.high %v462_v36, %v466_v37  ;;  %v474_v47 = vld [vmem:[%s10976_s1 + $0xde0] sm:$0xff] }
  0xac   :  { %v7118_v14 = vcombine.high %v431_v4, %v435_v5 }
  0xae   :  { %3705 = vmatpush1.bf16.msra.mxu0 %v7051_v6  ;;  %3910 = vmatpush1.bf16.msra.mxu1 %v7053_v7  ;;  %v8881_v6 = vcombine.high %v8677_v50, %v8677_v50  ;;  %v7107_v7 = vcombine.low %v422_v55, %v426_v56  ;;  %v7156_v55 = vcombine.high %v470_v46, %v474_v47  ;;  %v478_v56 = vld [vmem:[%s10976_s1 + $0xe00] sm:$0xff] }
  0xaf   :  { %3706 = vmatprep.subr.bf16.mxu0 %v7060_v8  ;;  %3911 = vmatprep.subr.bf16.mxu1 %v7062_v13  ;;  %v7109_v8 = vcombine.low %v423_v57, %v427_v60  ;;  %v439_v13 = vld [vmem:[%s10976_s1 + $0xcc8] sm:$0xff]  ;;  %v482_v57 = vld [vmem:[%s10976_s1 + $0xe20] sm:$0xff] }
  0xb2   :  { %3707 = vmatpush1.bf16.msra.mxu0 %v7059_v15  ;;  %3912 = vmatpush1.bf16.msra.mxu1 %v7061_v16  ;;  %v443_v15 = vld [vmem:[%s10976_s1 + $0xce8] sm:$0xff]  ;;  %v7115_v16 = vcombine.low %v430_v2, %v434_v3  ;;  %v7164_v2 = vcombine.high %v478_v56, %v482_v57  ;;  %v486_v3 = vld [vmem:[%s10976_s1 + $0xe40] sm:$0xff] }
  0xb3   :  { %3708 = vmatprep.subr.bf16.mxu0 %v7068_v17  ;;  %3913 = vmatprep.subr.bf16.mxu1 %v7070_v21  ;;  %v7117_v17 = vcombine.low %v431_v4, %v435_v5  ;;  %v447_v21 = vld [vmem:[%s10976_s1 + $0xd08] sm:$0xff]  ;;  %v7126_v22 = vcombine.high %v439_v13, %v443_v15  ;;  %v490_v4 = vld [vmem:[%s10976_s1 + $0xe60] sm:$0xff] }
  0xb6   :  { %3709 = vmatpush1.bf16.msra.mxu0 %v7067_v24  ;;  %3914 = vmatpush1.bf16.msra.mxu1 %v7069_v25  ;;  %v451_v24 = vld [vmem:[%s10976_s1 + $0xd28] sm:$0xff]  ;;  %v7123_v25 = vcombine.low %v438_v11, %v442_v12  ;;  %v7172_v11 = vcombine.high %v486_v3, %v490_v4 }
  0xb7   :  { %3710 = vmatprep.subr.bf16.mxu0 %v7076_v26  ;;  %3915 = vmatprep.subr.bf16.mxu1 %v7078_v29  ;;  %v7125_v26 = vcombine.low %v439_v13, %v443_v15  ;;  %v455_v29 = vld [vmem:[%s10976_s1 + $0xd48] sm:$0xff]  ;;  %v7134_v30 = vcombine.high %v447_v21, %v451_v24  ;;  %v494_v13 = vld [vmem:[%s10976_s1 + $0xe80] sm:$0xff] }
  0xba   :  { %3711 = vmatpush1.bf16.msra.mxu0 %v7075_v31  ;;  %3916 = vmatpush1.bf16.msra.mxu1 %v7077_v32  ;;  %v459_v31 = vld [vmem:[%s10976_s1 + $0xd68] sm:$0xff]  ;;  %v7131_v32 = vcombine.low %v446_v19, %v450_v20 }
  0xbb   :  { %3712 = vmatprep.subr.bf16.mxu0 %v7084_v34  ;;  %3917 = vmatprep.subr.bf16.mxu1 %v7086_v38  ;;  %v7133_v34 = vcombine.low %v447_v21, %v451_v24  ;;  %v463_v38 = vld [vmem:[%s10976_s1 + $0xd88] sm:$0xff]  ;;  %v7142_v39 = vcombine.high %v455_v29, %v459_v31 }
  0xbe   :  { %3713 = vmatpush1.bf16.msra.mxu0 %v7083_v41  ;;  %3918 = vmatpush1.bf16.msra.mxu1 %v7085_v42  ;;  %v467_v41 = vld [vmem:[%s10976_s1 + $0xda8] sm:$0xff]  ;;  %v7139_v42 = vcombine.low %v454_v28, %v458_v59 }
  0xbf   :  { %3714 = vmatprep.subr.bf16.mxu0 %v7092_v44  ;;  %3919 = vmatprep.subr.bf16.mxu1 %v7094_v48  ;;  %v7141_v44 = vcombine.low %v455_v29, %v459_v31  ;;  %v471_v48 = vld [vmem:[%s10976_s1 + $0xdc8] sm:$0xff]  ;;  %v7150_v49 = vcombine.high %v463_v38, %v467_v41 }
  0xc2   :  { %3715 = vmatpush1.bf16.msra.mxu0 %v7091_v51  ;;  %3920 = vmatpush1.bf16.msra.mxu1 %v7093_v52  ;;  %v475_v51 = vld [vmem:[%s10976_s1 + $0xde8] sm:$0xff]  ;;  %v7147_v52 = vcombine.low %v462_v36, %v466_v37 }
  0xc3   :  { %3725 = vmatprep.subr.bf16.mxu0 %v7100_v54  ;;  %3930 = vmatprep.subr.bf16.mxu1 %v7102_v58  ;;  %v7149_v54 = vcombine.low %v463_v38, %v467_v41  ;;  %v479_v58 = vld [vmem:[%s10976_s1 + $0xe08] sm:$0xff]  ;;  %v7158_v60 = vcombine.high %v471_v48, %v475_v51 }
  0xc5   :  { %3717 = vmatmul.mubr.bf16.vlgmr.msra.gmra.mrb[0].mxu0 %v8865_v61  ;;  %3922 = vmatmul.mubr.bf16.vlgmr.msra.gmra.mrb[0].mxu1 %v8865_v61 }
  0xc6   :  { %3726 = vmatpush1.bf16.msra.mxu0 %v7099_v62  ;;  %3931 = vmatpush1.bf16.msra.mxu1 %v7101_v0  ;;  %v483_v62 = vld [vmem:[%s10976_s1 + $0xe28] sm:$0xff]  ;;  %v7155_v0 = vcombine.low %v470_v46, %v474_v47 }
  0xc7   :  { %3727 = vmatprep.subr.bf16.mxu0 %v7108_v1  ;;  %3932 = vmatprep.subr.bf16.mxu1 %v7110_v63  ;;  %v7157_v1 = vcombine.low %v471_v48, %v475_v51  ;;  %v487_v63 = vld [vmem:[%s10976_s1 + $0xe48] sm:$0xff]  ;;  %v7166_v5 = vcombine.high %v479_v58, %v483_v62 }
  0xc8   :  { %3757 = vmatprep.mubr.bf16.mxu0 %v8881_v6  ;;  %3962 = vmatprep.mubr.bf16.mxu1 %v8881_v6 }
  0xca   :  { %3728 = vmatpush1.bf16.msra.mxu0 %v7107_v7  ;;  %3933 = vmatpush1.bf16.msra.mxu1 %v7109_v8  ;;  %v491_v7 = vld [vmem:[%s10976_s1 + $0xe68] sm:$0xff]  ;;  %v7163_v8 = vcombine.low %v478_v56, %v482_v57 }
  0xcb   :  { %3729 = vmatprep.subr.bf16.mxu0 %v7116_v10  ;;  %3934 = vmatprep.subr.bf16.mxu1 %v7118_v14  ;;  %v7165_v10 = vcombine.low %v479_v58, %v483_v62  ;;  %v7174_v12 = vcombine.high %v487_v63, %v491_v7  ;;  %v498_v14 = vld [vmem:[%s10976_s1 + $0xea0] sm:$0xff] }
  0xce   :  { %3730 = vmatpush1.bf16.msra.mxu0 %v7115_v16  ;;  %3935 = vmatpush1.bf16.msra.mxu1 %v7117_v17 }
  0xcf   :  { %3731 = vmatprep.subr.bf16.mxu0 %v7124_v18  ;;  %3936 = vmatprep.subr.bf16.mxu1 %v7126_v22 }
  0xd2   :  { %3732 = vmatpush1.bf16.msra.mxu0 %v7123_v25  ;;  %3937 = vmatpush1.bf16.msra.mxu1 %v7125_v26 }
  0xd3   :  { %3733 = vmatprep.subr.bf16.mxu0 %v7132_v27  ;;  %3938 = vmatprep.subr.bf16.mxu1 %v7134_v30 }
  0xd6   :  { %3734 = vmatpush1.bf16.msra.mxu0 %v7131_v32  ;;  %3939 = vmatpush1.bf16.msra.mxu1 %v7133_v34 }
  0xd7   :  { %3735 = vmatprep.subr.bf16.mxu0 %v7140_v35  ;;  %3940 = vmatprep.subr.bf16.mxu1 %v7142_v39 }
  0xda   :  { %3736 = vmatpush1.bf16.msra.mxu0 %v7139_v42  ;;  %3941 = vmatpush1.bf16.msra.mxu1 %v7141_v44 }
  0xdb   :  { %3737 = vmatprep.subr.bf16.mxu0 %v7148_v45  ;;  %3942 = vmatprep.subr.bf16.mxu1 %v7150_v49 }
  0xde   :  { %3738 = vmatpush1.bf16.msra.mxu0 %v7147_v52  ;;  %3943 = vmatpush1.bf16.msra.mxu1 %v7149_v54 }
  0xdf   :  { %3739 = vmatprep.subr.bf16.mxu0 %v7156_v55  ;;  %3944 = vmatprep.subr.bf16.mxu1 %v7158_v60 }
  0xe2   :  { %3740 = vmatpush1.bf16.msra.mxu0 %v7155_v0  ;;  %3945 = vmatpush1.bf16.msra.mxu1 %v7157_v1 }
  0xe3   :  { %3741 = vmatprep.subr.bf16.mxu0 %v7164_v2  ;;  %3946 = vmatprep.subr.bf16.mxu1 %v7166_v5 }
  0xe4   :  { %12 = vsyncpa [#allocation3], 0  ;;  %v495_v15 = vld [vmem:[%s10976_s1 + $0xe88] sm:$0xff]  ;;  %v7171_v17 = vcombine.low %v486_v3, %v490_v4  ;;  %v7173_v18 = vcombine.low %v487_v63, %v491_v7  ;;  %v7180_v19 = vcombine.high %v494_v13, %v498_v14  ;;  %v502_v21 = vld [vmem:[%s10976_s1 + $0xec0] sm:$0xff]  ;;  %v7179_v26 = vcombine.low %v494_v13, %v498_v14  ;;  %s8171_s30 = smov [#allocation2]  }
  0xe5   :  { %v499_v16 = vld [vmem:[%s10976_s1 + $0xea8] sm:$0xff]  ;;  %v506_v22 = vld [vmem:[%s10976_s1 + $0xee0] sm:$0xff]  ;;  %s6706_s8 = sshll.u32 %s8171_s30, 4  ;;  %s6707_s8 = int_to_ptr.vmem [resolvable:$true] %s6706_s8 }
  0xe6   :  { %3742 = vmatpush1.bf16.msra.mxu0 %v7163_v8  ;;  %3947 = vmatpush1.bf16.msra.mxu1 %v7165_v10  ;;  %v7182_v20 = vcombine.high %v495_v15, %v499_v16  ;;  %v503_v24 = vld [vmem:[%s10976_s1 + $0xec8] sm:$0xff]  ;;  %v7181_v27 = vcombine.low %v495_v15, %v499_v16  ;;  %v7188_v28 = vcombine.high %v502_v21, %v506_v22  ;;  %v510_v29 = vld [vmem:[%s10976_s1 + $0xf00] sm:$0xff]  ;;  %s8145_s9 = scalar_lea.vmem %s6707_s8, 32  ;;  %p8150_p1 = scmp.lt.s32.totalorder %s6707_s8, %s6707_s8 }
  0xe7   :  { %3743 = vmatprep.subr.bf16.mxu0 %v7172_v11  ;;  %3948 = vmatprep.subr.bf16.mxu1 %v7174_v12  ;;  %v507_v25 = vld [vmem:[%s10976_s1 + $0xee8] sm:$0xff]  ;;  %v514_v30 = vld [vmem:[%s10976_s1 + $0xf20] sm:$0xff]  ;;  %v7187_v34 = vcombine.low %v502_v21, %v506_v22  ;;  %v9063_v16 = vcombine.high %v8865_v61, %v8865_v61  ;;  %p8146_p0 = scmp.ne.s32.totalorder %s6707_s8, %s8145_s9  ;;  %p8151_p2 = scmp.lt.s32.totalorder %s8145_s9, %s8145_s9 }
  0xe8   :  { %v7190_v59 = vcombine.high %v503_v24, %v507_v25  ;;  %v511_v31 = vld [vmem:[%s10976_s1 + $0xf08] sm:$0xff]  ;;  %v7189_v35 = vcombine.low %v503_v24, %v507_v25  ;;  %v7196_v36 = vcombine.high %v510_v29, %v514_v30  ;;  %v518_v38 = vld [vmem:[%s10976_s1 + $0xf40] sm:$0xff]  ;;  %v7195_v44 = vcombine.low %v510_v29, %v514_v30 }
  0xe9   :  { %v515_v32 = vld [vmem:[%s10976_s1 + $0xf28] sm:$0xff]  ;;  %v522_v39 = vld [vmem:[%s10976_s1 + $0xf60] sm:$0xff]  ;;  %p8152_p3 = por %p8151_p2, %p8150_p1 }
  0xea   :  { %3744 = vmatpush1.bf16.msra.mxu0 %v7171_v17  ;;  %3949 = vmatpush1.bf16.msra.mxu1 %v7173_v18  ;;  %v7198_v37 = vcombine.high %v511_v31, %v515_v32  ;;  %v519_v41 = vld [vmem:[%s10976_s1 + $0xf48] sm:$0xff]  ;;  %v7197_v45 = vcombine.low %v511_v31, %v515_v32  ;;  %v7204_v46 = vcombine.high %v518_v38, %v522_v39  ;;  %v526_v48 = vld [vmem:[%s10976_s1 + $0xf80] sm:$0xff] }
  0xeb   :  { %3745 = vmatprep.subr.bf16.mxu0 %v7180_v19  ;;  %3950 = vmatprep.subr.bf16.mxu1 %v7182_v20  ;;  %v523_v42 = vld [vmem:[%s10976_s1 + $0xf68] sm:$0xff]  ;;  %v530_v49 = vld [vmem:[%s10976_s1 + $0xfa0] sm:$0xff]  ;;  %v7203_v54 = vcombine.low %v518_v38, %v522_v39  ;;  %p8153_p4 = pnand %p8152_p3, %p8146_p0 }
  0xec   :  { %v7206_v47 = vcombine.high %v519_v41, %v523_v42  ;;  %v527_v51 = vld [vmem:[%s10976_s1 + $0xf88] sm:$0xff]  ;;  %v7205_v55 = vcombine.low %v519_v41, %v523_v42  ;;  %v7212_v56 = vcombine.high %v526_v48, %v530_v49  ;;  %v534_v58 = vld [vmem:[%s10976_s1 + $0xfc0] sm:$0xff]  ;;  %v7211_v1 = vcombine.low %v526_v48, %v530_v49 }
  0xed   :  { %v531_v52 = vld [vmem:[%s10976_s1 + $0xfa8] sm:$0xff]  ;;  %v538_v60 = vld [vmem:[%s10976_s1 + $0xfe0] sm:$0xff] }
  0xee   :  { %3746 = vmatpush1.bf16.msra.mxu0 %v7179_v26  ;;  %3951 = vmatpush1.bf16.msra.mxu1 %v7181_v27  ;;  %v7214_v57 = vcombine.high %v527_v51, %v531_v52  ;;  %v535_v62 = vld [vmem:[%s10976_s1 + $0xfc8] sm:$0xff]  ;;  %v7213_v2 = vcombine.low %v527_v51, %v531_v52  ;;  %v7220_v3 = vcombine.high %v534_v58, %v538_v60  ;;  %v542_v63 = vld [vmem:[%s10976_s1 + $0x1000] sm:$0xff] }
  0xef   :  { %3747 = vmatprep.subr.bf16.mxu0 %v7188_v28  ;;  %3952 = vmatprep.subr.bf16.mxu1 %v7190_v59  ;;  %v539_v0 = vld [vmem:[%s10976_s1 + $0xfe8] sm:$0xff]  ;;  %v546_v5 = vld [vmem:[%s10976_s1 + $0x1020] sm:$0xff]  ;;  %v7219_v10 = vcombine.low %v534_v58, %v538_v60 }
  0xf0   :  { %v7222_v4 = vcombine.high %v535_v62, %v539_v0  ;;  %v543_v7 = vld [vmem:[%s10976_s1 + $0x1008] sm:$0xff]  ;;  %v7221_v11 = vcombine.low %v535_v62, %v539_v0  ;;  %v7228_v12 = vcombine.high %v542_v63, %v546_v5  ;;  %v550_v14 = vld [vmem:[%s10976_s1 + $0x1040] sm:$0xff]  ;;  %v7227_v19 = vcombine.low %v542_v63, %v546_v5 }
  0xf1   :  { %v547_v8 = vld [vmem:[%s10976_s1 + $0x1028] sm:$0xff]  ;;  %v554_v15 = vld [vmem:[%s10976_s1 + $0x1060] sm:$0xff] }
  0xf2   :  { %3748 = vmatpush1.bf16.msra.mxu0 %v7187_v34  ;;  %3953 = vmatpush1.bf16.msra.mxu1 %v7189_v35  ;;  %v7230_v13 = vcombine.high %v543_v7, %v547_v8  ;;  %v551_v17 = vld [vmem:[%s10976_s1 + $0x1048] sm:$0xff]  ;;  %v7229_v20 = vcombine.low %v543_v7, %v547_v8  ;;  %v7236_v21 = vcombine.high %v550_v14, %v554_v15  ;;  %v558_v24 = vld [vmem:[%s10976_s1 + $0x1080] sm:$0xff]  ;;  %v8170_v34 = vmov 0  }
  0xf3   :  { %3749 = vmatprep.subr.bf16.mxu0 %v7196_v36  ;;  %3954 = vmatprep.subr.bf16.mxu1 %v7198_v37  ;;  %v555_v18 = vld [vmem:[%s10976_s1 + $0x1068] sm:$0xff]  ;;  %v562_v25 = vld [vmem:[%s10976_s1 + $0x10a0] sm:$0xff]  ;;  %v7235_v28 = vcombine.low %v550_v14, %v554_v15 }
  0xf4   :  { %v7238_v22 = vcombine.high %v551_v17, %v555_v18  ;;  %v559_v26 = vld [vmem:[%s10976_s1 + $0x1088] sm:$0xff]  ;;  %v7237_v59 = vcombine.low %v551_v17, %v555_v18  ;;  %v7244_v29 = vcombine.high %v558_v24, %v562_v25  ;;  %v566_v31 = vld [vmem:[%s10976_s1 + $0x10c0] sm:$0xff]  ;;  %v7243_v37 = vcombine.low %v558_v24, %v562_v25  ;;  %v32_v18 = vld [vmem:[%s10976_s1 + $0x10] sm:$0xff] }
  0xf5   :  { %v563_v27 = vld [vmem:[%s10976_s1 + $0x10a8] sm:$0xff]  ;;  %v570_v32 = vld [vmem:[%s10976_s1 + $0x10e0] sm:$0xff] }
  0xf6   :  { %3750 = vmatpush1.bf16.msra.mxu0 %v7195_v44  ;;  %3955 = vmatpush1.bf16.msra.mxu1 %v7197_v45  ;;  %v7246_v30 = vcombine.high %v559_v26, %v563_v27  ;;  %v567_v35 = vld [vmem:[%s10976_s1 + $0x10c8] sm:$0xff]  ;;  %v7245_v38 = vcombine.low %v559_v26, %v563_v27  ;;  %v7252_v39 = vcombine.high %v566_v31, %v570_v32  ;;  %v574_v42 = vld [vmem:[%s10976_s1 + $0x1100] sm:$0xff] }
  0xf7   :  { %3751 = vmatprep.subr.bf16.mxu0 %v7204_v46  ;;  %3956 = vmatprep.subr.bf16.mxu1 %v7206_v47  ;;  %v571_v36 = vld [vmem:[%s10976_s1 + $0x10e8] sm:$0xff]  ;;  %v578_v44 = vld [vmem:[%s10976_s1 + $0x1120] sm:$0xff]  ;;  %v7251_v47 = vcombine.low %v566_v31, %v570_v32  ;;  %v45_v31 = vld [vmem:[%s10976_s1 + $0x78] sm:$0xff] }
  0xf8   :  { %v7254_v41 = vcombine.high %v567_v35, %v571_v36  ;;  %v575_v45 = vld [vmem:[%s10976_s1 + $0x1108] sm:$0xff]  ;;  %v7253_v48 = vcombine.low %v567_v35, %v571_v36  ;;  %v7260_v49 = vcombine.high %v574_v42, %v578_v44  ;;  %v582_v52 = vld [vmem:[%s10976_s1 + $0x1140] sm:$0xff] }
  0xf9   :  { %v579_v46 = vld [vmem:[%s10976_s1 + $0x1128] sm:$0xff]  ;;  %v590_v0 = vld [vmem:[%s10976_s1 + $0x1180] sm:$0xff] }
  0xfa   :  { %3752 = vmatpush1.bf16.msra.mxu0 %v7203_v54  ;;  %3957 = vmatpush1.bf16.msra.mxu1 %v7205_v55  ;;  %v7262_v51 = vcombine.high %v575_v45, %v579_v46  ;;  %v586_v54 = vld [vmem:[%s10976_s1 + $0x1160] sm:$0xff]  ;;  %v583_v55 = vld [vmem:[%s10976_s1 + $0x1148] sm:$0xff]  ;;  %v7261_v58 = vcombine.low %v575_v45, %v579_v46 }
  0xfb   :  { %3753 = vmatprep.subr.bf16.mxu0 %v7212_v56  ;;  %3958 = vmatprep.subr.bf16.mxu1 %v7214_v57  ;;  %v587_v56 = vld [vmem:[%s10976_s1 + $0x1168] sm:$0xff]  ;;  %v7259_v57 = vcombine.low %v574_v42, %v578_v44  ;;  %v7268_v60 = vcombine.high %v582_v52, %v586_v54  ;;  %v598_v8 = vld [vmem:[%s10976_s1 + $0x11c0] sm:$0xff] }
  0xfc   :  { %v7270_v62 = vcombine.high %v583_v55, %v587_v56  ;;  %v7269_v63 = vcombine.low %v583_v55, %v587_v56  ;;  %v6714_v24 = vld.sshfl [vmem:[%s10975_s0 + $0x8] sm:$0x1 pattern:$0x75316420] }
  0xfe   :  { %3754 = vmatpush1.bf16.msra.mxu0 %v7211_v1  ;;  %3959 = vmatpush1.bf16.msra.mxu1 %v7213_v2  ;;  %v594_v1 = vld [vmem:[%s10976_s1 + $0x11a0] sm:$0xff]  ;;  %v591_v2 = vld [vmem:[%s10976_s1 + $0x1188] sm:$0xff] }
  0xff   :  { %3755 = vmatprep.subr.bf16.mxu0 %v7220_v3  ;;  %3960 = vmatprep.subr.bf16.mxu1 %v7222_v4  ;;  %v595_v3 = vld [vmem:[%s10976_s1 + $0x11a8] sm:$0xff]  ;;  %v7267_v4 = vcombine.low %v582_v52, %v586_v54  ;;  %v7276_v5 = vcombine.high %v590_v0, %v594_v1 }
 0x100   :  { %v7278_v7 = vcombine.high %v591_v2, %v595_v3  ;;  %v7277_v14 = vcombine.low %v591_v2, %v595_v3  ;;  %v72_v3 = vld [vmem:[%s10976_s1 + $0x150] sm:$0xff] }
 0x102   :  { %3756 = vmatpush1.bf16.msra.mxu0 %v7219_v10  ;;  %3961 = vmatpush1.bf16.msra.mxu1 %v7221_v11  ;;  %v602_v10 = vld [vmem:[%s10976_s1 + $0x11e0] sm:$0xff]  ;;  %v599_v11 = vld [vmem:[%s10976_s1 + $0x11c8] sm:$0xff] }
 0x103   :  { %3766 = vmatprep.subr.bf16.mxu0 %v7228_v12  ;;  %3971 = vmatprep.subr.bf16.mxu1 %v7230_v13  ;;  %v603_v12 = vld [vmem:[%s10976_s1 + $0x11e8] sm:$0xff]  ;;  %v7275_v13 = vcombine.low %v590_v0, %v594_v1  ;;  %v7284_v15 = vcombine.high %v598_v8, %v602_v10 }
 0x104   :  { %v7286_v17 = vcombine.high %v599_v11, %v603_v12  ;;  %v7285_v25 = vcombine.low %v599_v11, %v603_v12  ;;  %v80_v12 = vld [vmem:[%s10976_s1 + $0x190] sm:$0xff] }
 0x105   :  { %3758 = vmatmul.mubr.bf16.vlgmr.msra.gmra.mrb[0].mxu0 %v9063_v16  ;;  %3963 = vmatmul.mubr.bf16.vlgmr.msra.gmra.mrb[0].mxu1 %v9063_v16 }
 0x106   :  { %3767 = vmatpush1.bf16.msra.mxu0 %v7227_v19  ;;  %3972 = vmatpush1.bf16.msra.mxu1 %v7229_v20  ;;  %v36_v19 = vld [vmem:[%s10976_s1 + $0x30] sm:$0xff]  ;;  %v33_v20 = vld [vmem:[%s10976_s1 + $0x18] sm:$0xff] }
 0x107   :  { %3768 = vmatprep.subr.bf16.mxu0 %v7236_v21  ;;  %3973 = vmatprep.subr.bf16.mxu1 %v7238_v22  ;;  %v37_v21 = vld [vmem:[%s10976_s1 + $0x38] sm:$0xff]  ;;  %v7283_v22 = vcombine.low %v598_v8, %v602_v10  ;;  %v6720_v26 = vcombine.high %v32_v18, %v36_v19  ;;  %v6719_v32 = vcombine.low %v32_v18, %v36_v19 }
 0x108   :  { %3798 = vmatprep.mubr.bf16.mxu0 %v8170_v34  ;;  %4003 = vmatprep.mubr.bf16.mxu1 %v8170_v34  ;;  %v6722_v27 = vcombine.high %v33_v20, %v37_v21  ;;  %v6721_v35 = vcombine.low %v33_v20, %v37_v21  ;;  %v88_v21 = vld [vmem:[%s10976_s1 + $0x1d0] sm:$0xff] }
 0x10a   :  { %3769 = vmatpush1.bf16.msra.mxu0 %v7235_v28  ;;  %3974 = vmatpush1.bf16.msra.mxu1 %v7237_v59  ;;  %v40_v28 = vld [vmem:[%s10976_s1 + $0x50] sm:$0xff] }
 0x10b   :  { %3770 = vmatprep.subr.bf16.mxu0 %v7244_v29  ;;  %3975 = vmatprep.subr.bf16.mxu1 %v7246_v30  ;;  %v44_v59 = vld [vmem:[%s10976_s1 + $0x70] sm:$0xff]  ;;  %v9169_v29 = vrot.slane %v6714_v24, %v8293_v53  ;;  %v41_v30 = vld [vmem:[%s10976_s1 + $0x58] sm:$0xff] }
 0x10c   :  { %v6728_v36 = vcombine.high %v40_v28, %v44_v59  ;;  %v48_v53 = vld [vmem:[%s10976_s1 + $0x90] sm:$0xff]  ;;  %v6727_v42 = vcombine.low %v40_v28, %v44_v59  ;;  %v6729_v44 = vcombine.low %v41_v30, %v45_v31  ;;  %v89_v24 = vld [vmem:[%s10976_s1 + $0x1d8] sm:$0xff] }
 0x10e   :  { %3771 = vmatpush1.bf16.msra.mxu0 %v7243_v37  ;;  %3976 = vmatpush1.bf16.msra.mxu1 %v7245_v38  ;;  %v6730_v37 = vcombine.high %v41_v30, %v45_v31  ;;  %v52_v38 = vld [vmem:[%s10976_s1 + $0xb0] sm:$0xff] }
 0x10f   :  { %3772 = vmatprep.subr.bf16.mxu0 %v7252_v39  ;;  %3977 = vmatprep.subr.bf16.mxu1 %v7254_v41  ;;  %v49_v39 = vld [vmem:[%s10976_s1 + $0x98] sm:$0xff]  ;;  %v6736_v45 = vcombine.high %v48_v53, %v52_v38  ;;  %v6735_v52 = vcombine.low %v48_v53, %v52_v38  ;;  %v96_v30 = vld [vmem:[%s10976_s1 + $0x210] sm:$0xff] }
 0x110   :  { %v53_v41 = vld [vmem:[%s10976_s1 + $0xb8] sm:$0xff]  ;;  %v100_v31 = vld [vmem:[%s10976_s1 + $0x230] sm:$0xff] }
 0x111   :  { %v6738_v46 = vcombine.high %v49_v39, %v53_v41  ;;  %v6737_v54 = vcombine.low %v49_v39, %v53_v41  ;;  %v6784_v53 = vcombine.high %v96_v30, %v100_v31  ;;  %v104_v39 = vld [vmem:[%s10976_s1 + $0x250] sm:$0xff] }
 0x112   :  { %3773 = vmatpush1.bf16.msra.mxu0 %v7251_v47  ;;  %3978 = vmatpush1.bf16.msra.mxu1 %v7253_v48  ;;  %v56_v47 = vld [vmem:[%s10976_s1 + $0xd0] sm:$0xff] }
 0x113   :  { %3774 = vmatprep.subr.bf16.mxu0 %v7260_v49  ;;  %3979 = vmatprep.subr.bf16.mxu1 %v7262_v51  ;;  %v60_v48 = vld [vmem:[%s10976_s1 + $0xf0] sm:$0xff]  ;;  %v57_v49 = vld [vmem:[%s10976_s1 + $0xd8] sm:$0xff] }
 0x114   :  { %v61_v51 = vld [vmem:[%s10976_s1 + $0xf8] sm:$0xff]  ;;  %v6744_v55 = vcombine.high %v56_v47, %v60_v48  ;;  %v108_v41 = vld [vmem:[%s10976_s1 + $0x270] sm:$0xff] }
 0x115   :  { %v6746_v56 = vcombine.high %v57_v49, %v61_v51  ;;  %v6745_v0 = vcombine.low %v57_v49, %v61_v51  ;;  %v112_v49 = vld [vmem:[%s10976_s1 + $0x290] sm:$0xff] }
 0x116   :  { %3775 = vmatpush1.bf16.msra.mxu0 %v7259_v57  ;;  %3980 = vmatpush1.bf16.msra.mxu1 %v7261_v58  ;;  %v64_v57 = vld [vmem:[%s10976_s1 + $0x110] sm:$0xff] }
 0x117   :  { %3776 = vmatprep.subr.bf16.mxu0 %v7268_v60  ;;  %3981 = vmatprep.subr.bf16.mxu1 %v7270_v62  ;;  %v68_v58 = vld [vmem:[%s10976_s1 + $0x130] sm:$0xff]  ;;  %v69_v60 = vld [vmem:[%s10976_s1 + $0x138] sm:$0xff]  ;;  %v6743_v62 = vcombine.low %v56_v47, %v60_v48  ;;  %v6792_v47 = vcombine.high %v104_v39, %v108_v41 }
 0x118   :  { %v6752_v1 = vcombine.high %v64_v57, %v68_v58  ;;  %v116_v51 = vld [vmem:[%s10976_s1 + $0x2b0] sm:$0xff] }
 0x11a   :  { %3777 = vmatpush1.bf16.msra.mxu0 %v7267_v4  ;;  %3982 = vmatpush1.bf16.msra.mxu1 %v7269_v63  ;;  %v76_v4 = vld [vmem:[%s10976_s1 + $0x170] sm:$0xff]  ;;  %v73_v63 = vld [vmem:[%s10976_s1 + $0x158] sm:$0xff] }
 0x11b   :  { %3778 = vmatprep.subr.bf16.mxu0 %v7276_v5  ;;  %3983 = vmatprep.subr.bf16.mxu1 %v7278_v7  ;;  %v77_v5 = vld [vmem:[%s10976_s1 + $0x178] sm:$0xff]  ;;  %v6751_v7 = vcombine.low %v64_v57, %v68_v58  ;;  %v6760_v10 = vcombine.high %v72_v3, %v76_v4  ;;  %v6800_v57 = vcombine.high %v112_v49, %v116_v51 }
 0x11c   :  { %v6762_v11 = vcombine.high %v73_v63, %v77_v5  ;;  %v6761_v18 = vcombine.low %v73_v63, %v77_v5  ;;  %v128_v63 = vld [vmem:[%s10976_s1 + $0x310] sm:$0xff] }
 0x11d   :  { %v132_v5 = vld [vmem:[%s10976_s1 + $0x330] sm:$0xff] }
 0x11e   :  { %3779 = vmatpush1.bf16.msra.mxu0 %v7275_v13  ;;  %3984 = vmatpush1.bf16.msra.mxu1 %v7277_v14  ;;  %v84_v13 = vld [vmem:[%s10976_s1 + $0x1b0] sm:$0xff]  ;;  %v81_v14 = vld [vmem:[%s10976_s1 + $0x198] sm:$0xff] }
 0x11f   :  { %3780 = vmatprep.subr.bf16.mxu0 %v7284_v15  ;;  %3985 = vmatprep.subr.bf16.mxu1 %v7286_v17  ;;  %v85_v15 = vld [vmem:[%s10976_s1 + $0x1b8] sm:$0xff]  ;;  %v6759_v17 = vcombine.low %v72_v3, %v76_v4  ;;  %v6768_v19 = vcombine.high %v80_v12, %v84_v13 }
 0x120   :  { %v6770_v20 = vcombine.high %v81_v14, %v85_v15 }
 0x122   :  { %3781 = vmatpush1.bf16.msra.mxu0 %v7283_v22  ;;  %3986 = vmatpush1.bf16.msra.mxu1 %v7285_v25  ;;  %v92_v22 = vld [vmem:[%s10976_s1 + $0x1f0] sm:$0xff]  ;;  %v93_v25 = vld [vmem:[%s10976_s1 + $0x1f8] sm:$0xff] }
 0x123   :  { %4012 = vmatprep.subr.bf16.mxu0 %v6720_v26  ;;  %4217 = vmatprep.subr.bf16.mxu1 %v6722_v27  ;;  %v6767_v26 = vcombine.low %v80_v12, %v84_v13  ;;  %v6769_v27 = vcombine.low %v81_v14, %v85_v15  ;;  %v6776_v28 = vcombine.high %v88_v21, %v92_v22  ;;  %v136_v14 = vld [vmem:[%s10976_s1 + $0x350] sm:$0xff] }
 0x124   :  { %v6778_v59 = vcombine.high %v89_v24, %v93_v25  ;;  %v6816_v12 = vcombine.high %v128_v63, %v132_v5  ;;  %v140_v15 = vld [vmem:[%s10976_s1 + $0x370] sm:$0xff] }
 0x125   :  { %3799 = vmatmul.mubr.bf16.vlgmr.msra.gmra.mrb[0].mxu0 %v9169_v29  ;;  %4004 = vmatmul.mubr.bf16.vlgmr.msra.gmra.mrb[0].mxu1 %v9169_v29 }
 0x126   :  { %4013 = vmatpush1.bf16.msra.mxu0 %v6719_v32  ;;  %4218 = vmatpush1.bf16.msra.mxu1 %v6721_v35  ;;  %v97_v32 = vld [vmem:[%s10976_s1 + $0x218] sm:$0xff] }
 0x127   :  { %4014 = vmatprep.subr.bf16.mxu0 %v6728_v36  ;;  %4219 = vmatprep.subr.bf16.mxu1 %v6730_v37  ;;  %v101_v35 = vld [vmem:[%s10976_s1 + $0x238] sm:$0xff]  ;;  %v6775_v36 = vcombine.low %v88_v21, %v92_v22  ;;  %v6777_v37 = vcombine.low %v89_v24, %v93_v25  ;;  %v6824_v21 = vcombine.high %v136_v14, %v140_v15  ;;  %v144_v24 = vld [vmem:[%s10976_s1 + $0x390] sm:$0xff] }
 0x128   :  { %4044 = vmatprep.mubr.bf16.mxu0 %v8331_v9  ;;  %4249 = vmatprep.mubr.bf16.mxu1 %v8331_v9  ;;  %v65_v9 = vld [vmem:[%s10976_s1 + $0x118] sm:$0xff]  ;;  %v6786_v38 = vcombine.high %v97_v32, %v101_v35  ;;  %v148_v25 = vld [vmem:[%s10976_s1 + $0x3b0] sm:$0xff] }
 0x129   :  { %v6754_v2 = vcombine.high %v65_v9, %v69_v60  ;;  %v6753_v8 = vcombine.low %v65_v9, %v69_v60  ;;  %v120_v9 = vld [vmem:[%s10976_s1 + $0x2d0] sm:$0xff] }
 0x12a   :  { %4015 = vmatpush1.bf16.msra.mxu0 %v6727_v42  ;;  %4220 = vmatpush1.bf16.msra.mxu1 %v6729_v44  ;;  %v105_v42 = vld [vmem:[%s10976_s1 + $0x258] sm:$0xff]  ;;  %v124_v60 = vld [vmem:[%s10976_s1 + $0x2f0] sm:$0xff] }
 0x12b   :  { %4016 = vmatprep.subr.bf16.mxu0 %v6736_v45  ;;  %4221 = vmatprep.subr.bf16.mxu1 %v6738_v46  ;;  %v109_v44 = vld [vmem:[%s10976_s1 + $0x278] sm:$0xff]  ;;  %v6783_v45 = vcombine.low %v96_v30, %v100_v31  ;;  %v6785_v46 = vcombine.low %v97_v32, %v101_v35  ;;  %v6808_v3 = vcombine.high %v120_v9, %v124_v60  ;;  %v152_v32 = vld [vmem:[%s10976_s1 + $0x3d0] sm:$0xff] }
 0x12c   :  { %v6794_v48 = vcombine.high %v105_v42, %v109_v44  ;;  %v6832_v30 = vcombine.high %v144_v24, %v148_v25  ;;  %v156_v35 = vld [vmem:[%s10976_s1 + $0x3f0] sm:$0xff] }
 0x12e   :  { %4017 = vmatpush1.bf16.msra.mxu0 %v6735_v52  ;;  %4222 = vmatpush1.bf16.msra.mxu1 %v6737_v54  ;;  %v113_v52 = vld [vmem:[%s10976_s1 + $0x298] sm:$0xff] }
 0x12f   :  { %4018 = vmatprep.subr.bf16.mxu0 %v6744_v55  ;;  %4223 = vmatprep.subr.bf16.mxu1 %v6746_v56  ;;  %v117_v54 = vld [vmem:[%s10976_s1 + $0x2b8] sm:$0xff]  ;;  %v6791_v55 = vcombine.low %v104_v39, %v108_v41  ;;  %v6793_v56 = vcombine.low %v105_v42, %v109_v44  ;;  %v6840_v39 = vcombine.high %v152_v32, %v156_v35  ;;  %v160_v42 = vld [vmem:[%s10976_s1 + $0x410] sm:$0xff] }
 0x130   :  { %v6802_v58 = vcombine.high %v113_v52, %v117_v54  ;;  %v164_v44 = vld [vmem:[%s10976_s1 + $0x430] sm:$0xff] }
 0x132   :  { %4019 = vmatpush1.bf16.msra.mxu0 %v6743_v62  ;;  %4224 = vmatpush1.bf16.msra.mxu1 %v6745_v0  ;;  %v121_v62 = vld [vmem:[%s10976_s1 + $0x2d8] sm:$0xff] }
 0x133   :  { %4020 = vmatprep.subr.bf16.mxu0 %v6752_v1  ;;  %4225 = vmatprep.subr.bf16.mxu1 %v6754_v2  ;;  %v125_v0 = vld [vmem:[%s10976_s1 + $0x2f8] sm:$0xff]  ;;  %v6799_v1 = vcombine.low %v112_v49, %v116_v51  ;;  %v6801_v2 = vcombine.low %v113_v52, %v117_v54  ;;  %v6848_v49 = vcombine.high %v160_v42, %v164_v44  ;;  %v168_v52 = vld [vmem:[%s10976_s1 + $0x450] sm:$0xff] }
 0x134   :  { %v6810_v4 = vcombine.high %v121_v62, %v125_v0  ;;  %v172_v54 = vld [vmem:[%s10976_s1 + $0x470] sm:$0xff] }
 0x136   :  { %4021 = vmatpush1.bf16.msra.mxu0 %v6751_v7  ;;  %4226 = vmatpush1.bf16.msra.mxu1 %v6753_v8  ;;  %v129_v7 = vld [vmem:[%s10976_s1 + $0x318] sm:$0xff] }
 0x137   :  { %4022 = vmatprep.subr.bf16.mxu0 %v6760_v10  ;;  %4227 = vmatprep.subr.bf16.mxu1 %v6762_v11  ;;  %v133_v8 = vld [vmem:[%s10976_s1 + $0x338] sm:$0xff]  ;;  %v6807_v10 = vcombine.low %v120_v9, %v124_v60  ;;  %v6809_v11 = vcombine.low %v121_v62, %v125_v0  ;;  %v6856_v9 = vcombine.high %v168_v52, %v172_v54  ;;  %v176_v62 = vld [vmem:[%s10976_s1 + $0x490] sm:$0xff] }
 0x138   :  { %v6818_v13 = vcombine.high %v129_v7, %v133_v8  ;;  %v180_v0 = vld [vmem:[%s10976_s1 + $0x4b0] sm:$0xff] }
 0x13a   :  { %4023 = vmatpush1.bf16.msra.mxu0 %v6759_v17  ;;  %4228 = vmatpush1.bf16.msra.mxu1 %v6761_v18  ;;  %v137_v17 = vld [vmem:[%s10976_s1 + $0x358] sm:$0xff] }
 0x13b   :  { %4024 = vmatprep.subr.bf16.mxu0 %v6768_v19  ;;  %4229 = vmatprep.subr.bf16.mxu1 %v6770_v20  ;;  %v141_v18 = vld [vmem:[%s10976_s1 + $0x378] sm:$0xff]  ;;  %v6815_v19 = vcombine.low %v128_v63, %v132_v5  ;;  %v6817_v20 = vcombine.low %v129_v7, %v133_v8  ;;  %v6864_v63 = vcombine.high %v176_v62, %v180_v0  ;;  %v184_v7 = vld [vmem:[%s10976_s1 + $0x4d0] sm:$0xff] }
 0x13c   :  { %v6826_v22 = vcombine.high %v137_v17, %v141_v18  ;;  %v188_v8 = vld [vmem:[%s10976_s1 + $0x4f0] sm:$0xff] }
 0x13e   :  { %4025 = vmatpush1.bf16.msra.mxu0 %v6767_v26  ;;  %4230 = vmatpush1.bf16.msra.mxu1 %v6769_v27  ;;  %v145_v26 = vld [vmem:[%s10976_s1 + $0x398] sm:$0xff] }
 0x13f   :  { %4026 = vmatprep.subr.bf16.mxu0 %v6776_v28  ;;  %4231 = vmatprep.subr.bf16.mxu1 %v6778_v59  ;;  %v149_v27 = vld [vmem:[%s10976_s1 + $0x3b8] sm:$0xff]  ;;  %v6823_v28 = vcombine.low %v136_v14, %v140_v15  ;;  %v6825_v59 = vcombine.low %v137_v17, %v141_v18  ;;  %v192_v15 = vld [vmem:[%s10976_s1 + $0x510] sm:$0xff] }
 0x140   :  { %v6834_v31 = vcombine.high %v145_v26, %v149_v27  ;;  %v196_v17 = vld [vmem:[%s10976_s1 + $0x530] sm:$0xff]  ;;  %v197_v18 = vld [vmem:[%s10976_s1 + $0x538] sm:$0xff] }
 0x142   :  { %4027 = vmatpush1.bf16.msra.mxu0 %v6775_v36  ;;  %4232 = vmatpush1.bf16.msra.mxu1 %v6777_v37  ;;  %v153_v36 = vld [vmem:[%s10976_s1 + $0x3d8] sm:$0xff] }
 0x143   :  { %4028 = vmatprep.subr.bf16.mxu0 %v6784_v53  ;;  %4233 = vmatprep.subr.bf16.mxu1 %v6786_v38  ;;  %v157_v37 = vld [vmem:[%s10976_s1 + $0x3f8] sm:$0xff]  ;;  %v6831_v53 = vcombine.low %v144_v24, %v148_v25  ;;  %v6833_v38 = vcombine.low %v145_v26, %v149_v27  ;;  %v200_v24 = vld [vmem:[%s10976_s1 + $0x550] sm:$0xff] }
 0x144   :  { %v6842_v41 = vcombine.high %v153_v36, %v157_v37  ;;  %v204_v25 = vld [vmem:[%s10976_s1 + $0x570] sm:$0xff]  ;;  %v201_v26 = vld [vmem:[%s10976_s1 + $0x558] sm:$0xff] }
 0x145   :  { %v205_v27 = vld [vmem:[%s10976_s1 + $0x578] sm:$0xff] }
 0x146   :  { %4029 = vmatpush1.bf16.msra.mxu0 %v6783_v45  ;;  %4234 = vmatpush1.bf16.msra.mxu1 %v6785_v46  ;;  %v161_v45 = vld [vmem:[%s10976_s1 + $0x418] sm:$0xff] }
 0x147   :  { %4030 = vmatprep.subr.bf16.mxu0 %v6792_v47  ;;  %4235 = vmatprep.subr.bf16.mxu1 %v6794_v48  ;;  %v165_v46 = vld [vmem:[%s10976_s1 + $0x438] sm:$0xff]  ;;  %v6839_v47 = vcombine.low %v152_v32, %v156_v35  ;;  %v6841_v48 = vcombine.low %v153_v36, %v157_v37  ;;  %v208_v32 = vld [vmem:[%s10976_s1 + $0x590] sm:$0xff] }
 0x148   :  { %v6850_v51 = vcombine.high %v161_v45, %v165_v46  ;;  %v212_v35 = vld [vmem:[%s10976_s1 + $0x5b0] sm:$0xff]  ;;  %v209_v36 = vld [vmem:[%s10976_s1 + $0x598] sm:$0xff] }
 0x149   :  { %v213_v37 = vld [vmem:[%s10976_s1 + $0x5b8] sm:$0xff] }
 0x14a   :  { %4031 = vmatpush1.bf16.msra.mxu0 %v6791_v55  ;;  %4236 = vmatpush1.bf16.msra.mxu1 %v6793_v56  ;;  %v169_v55 = vld [vmem:[%s10976_s1 + $0x458] sm:$0xff] }
 0x14b   :  { %4032 = vmatprep.subr.bf16.mxu0 %v6800_v57  ;;  %4237 = vmatprep.subr.bf16.mxu1 %v6802_v58  ;;  %v173_v56 = vld [vmem:[%s10976_s1 + $0x478] sm:$0xff]  ;;  %v6847_v57 = vcombine.low %v160_v42, %v164_v44  ;;  %v6849_v58 = vcombine.low %v161_v45, %v165_v46  ;;  %v216_v42 = vld [vmem:[%s10976_s1 + $0x5d0] sm:$0xff] }
 0x14c   :  { %v6858_v60 = vcombine.high %v169_v55, %v173_v56  ;;  %v220_v44 = vld [vmem:[%s10976_s1 + $0x5f0] sm:$0xff]  ;;  %v217_v45 = vld [vmem:[%s10976_s1 + $0x5d8] sm:$0xff] }
 0x14d   :  { %v221_v46 = vld [vmem:[%s10976_s1 + $0x5f8] sm:$0xff] }
 0x14e   :  { %4033 = vmatpush1.bf16.msra.mxu0 %v6799_v1  ;;  %4238 = vmatpush1.bf16.msra.mxu1 %v6801_v2  ;;  %v177_v1 = vld [vmem:[%s10976_s1 + $0x498] sm:$0xff] }
 0x14f   :  { %4034 = vmatprep.subr.bf16.mxu0 %v6808_v3  ;;  %4239 = vmatprep.subr.bf16.mxu1 %v6810_v4  ;;  %v181_v2 = vld [vmem:[%s10976_s1 + $0x4b8] sm:$0xff]  ;;  %v6855_v3 = vcombine.low %v168_v52, %v172_v54  ;;  %v6857_v4 = vcombine.low %v169_v55, %v173_v56  ;;  %v224_v52 = vld [vmem:[%s10976_s1 + $0x610] sm:$0xff] }
 0x150   :  { %v6866_v5 = vcombine.high %v177_v1, %v181_v2  ;;  %v228_v54 = vld [vmem:[%s10976_s1 + $0x630] sm:$0xff]  ;;  %v225_v55 = vld [vmem:[%s10976_s1 + $0x618] sm:$0xff] }
 0x151   :  { %v229_v56 = vld [vmem:[%s10976_s1 + $0x638] sm:$0xff] }
 0x152   :  { %4035 = vmatpush1.bf16.msra.mxu0 %v6807_v10  ;;  %4240 = vmatpush1.bf16.msra.mxu1 %v6809_v11  ;;  %v189_v10 = vld [vmem:[%s10976_s1 + $0x4f8] sm:$0xff]  ;;  %v6863_v11 = vcombine.low %v176_v62, %v180_v0  ;;  %v232_v62 = vld [vmem:[%s10976_s1 + $0x650] sm:$0xff] }
 0x153   :  { %4036 = vmatprep.subr.bf16.mxu0 %v6816_v12  ;;  %4241 = vmatprep.subr.bf16.mxu1 %v6818_v13  ;;  %v6865_v12 = vcombine.low %v177_v1, %v181_v2  ;;  %v6872_v13 = vcombine.high %v184_v7, %v188_v8  ;;  %v236_v0 = vld [vmem:[%s10976_s1 + $0x670] sm:$0xff]  ;;  %v233_v1 = vld [vmem:[%s10976_s1 + $0x658] sm:$0xff] }
 0x154   :  { %v237_v2 = vld [vmem:[%s10976_s1 + $0x678] sm:$0xff] }
 0x156   :  { %4037 = vmatpush1.bf16.msra.mxu0 %v6815_v19  ;;  %4242 = vmatpush1.bf16.msra.mxu1 %v6817_v20  ;;  %v6871_v19 = vcombine.low %v184_v7, %v188_v8  ;;  %v240_v7 = vld [vmem:[%s10976_s1 + $0x690] sm:$0xff] }
 0x157   :  { %4038 = vmatprep.subr.bf16.mxu0 %v6824_v21  ;;  %4243 = vmatprep.subr.bf16.mxu1 %v6826_v22  ;;  %v6880_v21 = vcombine.high %v192_v15, %v196_v17  ;;  %v244_v8 = vld [vmem:[%s10976_s1 + $0x6b0] sm:$0xff] }
 0x15a   :  { %4039 = vmatpush1.bf16.msra.mxu0 %v6823_v28  ;;  %4244 = vmatpush1.bf16.msra.mxu1 %v6825_v59  ;;  %v6879_v28 = vcombine.low %v192_v15, %v196_v17  ;;  %v248_v15 = vld [vmem:[%s10976_s1 + $0x6d0] sm:$0xff] }
 0x15b   :  { %4040 = vmatprep.subr.bf16.mxu0 %v6832_v30  ;;  %4245 = vmatprep.subr.bf16.mxu1 %v6834_v31  ;;  %v6888_v30 = vcombine.high %v200_v24, %v204_v25  ;;  %v6890_v31 = vcombine.high %v201_v26, %v205_v27  ;;  %v252_v17 = vld [vmem:[%s10976_s1 + $0x6f0] sm:$0xff] }
 0x15e   :  { %4041 = vmatpush1.bf16.msra.mxu0 %v6831_v53  ;;  %4246 = vmatpush1.bf16.msra.mxu1 %v6833_v38  ;;  %v6887_v53 = vcombine.low %v200_v24, %v204_v25  ;;  %v6889_v38 = vcombine.low %v201_v26, %v205_v27  ;;  %v256_v24 = vld [vmem:[%s10976_s1 + $0x710] sm:$0xff]  ;;  %v257_v26 = vld [vmem:[%s10976_s1 + $0x718] sm:$0xff] }
 0x15f   :  { %4042 = vmatprep.subr.bf16.mxu0 %v6840_v39  ;;  %4247 = vmatprep.subr.bf16.mxu1 %v6842_v41  ;;  %v6896_v39 = vcombine.high %v208_v32, %v212_v35  ;;  %v6898_v41 = vcombine.high %v209_v36, %v213_v37  ;;  %v260_v25 = vld [vmem:[%s10976_s1 + $0x730] sm:$0xff]  ;;  %v261_v27 = vld [vmem:[%s10976_s1 + $0x738] sm:$0xff] }
 0x162   :  { %4043 = vmatpush1.bf16.msra.mxu0 %v6839_v47  ;;  %4248 = vmatpush1.bf16.msra.mxu1 %v6841_v48  ;;  %v6895_v47 = vcombine.low %v208_v32, %v212_v35  ;;  %v6897_v48 = vcombine.low %v209_v36, %v213_v37  ;;  %v264_v32 = vld [vmem:[%s10976_s1 + $0x750] sm:$0xff]  ;;  %v265_v36 = vld [vmem:[%s10976_s1 + $0x758] sm:$0xff] }
 0x163   :  { %4053 = vmatprep.subr.bf16.mxu0 %v6848_v49  ;;  %4258 = vmatprep.subr.bf16.mxu1 %v6850_v51  ;;  %v6904_v49 = vcombine.high %v216_v42, %v220_v44  ;;  %v6906_v51 = vcombine.high %v217_v45, %v221_v46  ;;  %v268_v35 = vld [vmem:[%s10976_s1 + $0x770] sm:$0xff]  ;;  %v269_v37 = vld [vmem:[%s10976_s1 + $0x778] sm:$0xff] }
 0x165   :  { %4045 = vmatmul.mubr.bf16.vlgmr.msra.gmra.mrb[4].mxu0 %v8445_v23  ;;  %4250 = vmatmul.mubr.bf16.vlgmr.msra.gmra.mrb[4].mxu1 %v8445_v23  ;;  %v185_v23 = vld [vmem:[%s10976_s1 + $0x4d8] sm:$0xff] }
 0x166   :  { %4054 = vmatpush1.bf16.msra.mxu0 %v6847_v57  ;;  %4259 = vmatpush1.bf16.msra.mxu1 %v6849_v58  ;;  %v6874_v14 = vcombine.high %v185_v23, %v189_v10  ;;  %v6873_v20 = vcombine.low %v185_v23, %v189_v10  ;;  %v6903_v57 = vcombine.low %v216_v42, %v220_v44  ;;  %v241_v23 = vld [vmem:[%s10976_s1 + $0x698] sm:$0xff]  ;;  %v272_v42 = vld [vmem:[%s10976_s1 + $0x790] sm:$0xff] }
 0x167   :  { %4055 = vmatprep.subr.bf16.mxu0 %v6856_v9  ;;  %4260 = vmatprep.subr.bf16.mxu1 %v6858_v60  ;;  %v6905_v58 = vcombine.low %v217_v45, %v221_v46  ;;  %v6912_v9 = vcombine.high %v224_v52, %v228_v54  ;;  %v6914_v60 = vcombine.high %v225_v55, %v229_v56  ;;  %v245_v10 = vld [vmem:[%s10976_s1 + $0x6b8] sm:$0xff]  ;;  %v276_v44 = vld [vmem:[%s10976_s1 + $0x7b0] sm:$0xff] }
 0x168   :  { %4085 = vmatprep.mubr.bf16.mxu0 %v8467_v33  ;;  %4290 = vmatprep.mubr.bf16.mxu1 %v8467_v33  ;;  %v193_v33 = vld [vmem:[%s10976_s1 + $0x518] sm:$0xff] }
 0x169   :  { %v6882_v22 = vcombine.high %v193_v33, %v197_v18  ;;  %v6881_v59 = vcombine.low %v193_v33, %v197_v18  ;;  %v249_v33 = vld [vmem:[%s10976_s1 + $0x6d8] sm:$0xff] }
 0x16a   :  { %4056 = vmatpush1.bf16.msra.mxu0 %v6855_v3  ;;  %4261 = vmatpush1.bf16.msra.mxu1 %v6857_v4  ;;  %v6911_v3 = vcombine.low %v224_v52, %v228_v54  ;;  %v6913_v4 = vcombine.low %v225_v55, %v229_v56  ;;  %v253_v18 = vld [vmem:[%s10976_s1 + $0x6f8] sm:$0xff]  ;;  %v280_v52 = vld [vmem:[%s10976_s1 + $0x7d0] sm:$0xff] }
 0x16b   :  { %4057 = vmatprep.subr.bf16.mxu0 %v6864_v63  ;;  %4262 = vmatprep.subr.bf16.mxu1 %v6866_v5  ;;  %v6920_v63 = vcombine.high %v232_v62, %v236_v0  ;;  %v6922_v5 = vcombine.high %v233_v1, %v237_v2  ;;  %v273_v45 = vld [vmem:[%s10976_s1 + $0x798] sm:$0xff]  ;;  %v284_v54 = vld [vmem:[%s10976_s1 + $0x7f0] sm:$0xff] }
 0x16c   :  { %v277_v46 = vld [vmem:[%s10976_s1 + $0x7b8] sm:$0xff] }
 0x16d   :  { %v281_v55 = vld [vmem:[%s10976_s1 + $0x7d8] sm:$0xff] }
 0x16e   :  { %4058 = vmatpush1.bf16.msra.mxu0 %v6863_v11  ;;  %4263 = vmatpush1.bf16.msra.mxu1 %v6865_v12  ;;  %v6919_v11 = vcombine.low %v232_v62, %v236_v0  ;;  %v6921_v12 = vcombine.low %v233_v1, %v237_v2  ;;  %v285_v56 = vld [vmem:[%s10976_s1 + $0x7f8] sm:$0xff]  ;;  %v288_v62 = vld [vmem:[%s10976_s1 + $0x810] sm:$0xff] }
 0x16f   :  { %4059 = vmatprep.subr.bf16.mxu0 %v6872_v13  ;;  %4264 = vmatprep.subr.bf16.mxu1 %v6874_v14  ;;  %v6928_v13 = vcombine.high %v240_v7, %v244_v8  ;;  %v6930_v14 = vcombine.high %v241_v23, %v245_v10  ;;  %v292_v0 = vld [vmem:[%s10976_s1 + $0x830] sm:$0xff]  ;;  %v289_v1 = vld [vmem:[%s10976_s1 + $0x818] sm:$0xff] }
 0x170   :  { %v293_v2 = vld [vmem:[%s10976_s1 + $0x838] sm:$0xff] }
 0x172   :  { %4060 = vmatpush1.bf16.msra.mxu0 %v6871_v19  ;;  %4265 = vmatpush1.bf16.msra.mxu1 %v6873_v20  ;;  %v6927_v19 = vcombine.low %v240_v7, %v244_v8  ;;  %v6929_v20 = vcombine.low %v241_v23, %v245_v10  ;;  %v296_v7 = vld [vmem:[%s10976_s1 + $0x850] sm:$0xff]  ;;  %v297_v23 = vld [vmem:[%s10976_s1 + $0x858] sm:$0xff] }
 0x173   :  { %4061 = vmatprep.subr.bf16.mxu0 %v6880_v21  ;;  %4266 = vmatprep.subr.bf16.mxu1 %v6882_v22  ;;  %v6936_v21 = vcombine.high %v248_v15, %v252_v17  ;;  %v6938_v22 = vcombine.high %v249_v33, %v253_v18  ;;  %v300_v8 = vld [vmem:[%s10976_s1 + $0x870] sm:$0xff]  ;;  %v301_v10 = vld [vmem:[%s10976_s1 + $0x878] sm:$0xff] }
 0x176   :  { %4062 = vmatpush1.bf16.msra.mxu0 %v6879_v28  ;;  %4267 = vmatpush1.bf16.msra.mxu1 %v6881_v59  ;;  %v6935_v28 = vcombine.low %v248_v15, %v252_v17  ;;  %v6937_v59 = vcombine.low %v249_v33, %v253_v18  ;;  %v304_v15 = vld [vmem:[%s10976_s1 + $0x890] sm:$0xff]  ;;  %v305_v33 = vld [vmem:[%s10976_s1 + $0x898] sm:$0xff] }
 0x177   :  { %4063 = vmatprep.subr.bf16.mxu0 %v6888_v30  ;;  %4268 = vmatprep.subr.bf16.mxu1 %v6890_v31  ;;  %v6944_v30 = vcombine.high %v256_v24, %v260_v25  ;;  %v6946_v31 = vcombine.high %v257_v26, %v261_v27  ;;  %v308_v17 = vld [vmem:[%s10976_s1 + $0x8b0] sm:$0xff]  ;;  %v309_v18 = vld [vmem:[%s10976_s1 + $0x8b8] sm:$0xff] }
 0x17a   :  { %4064 = vmatpush1.bf16.msra.mxu0 %v6887_v53  ;;  %4269 = vmatpush1.bf16.msra.mxu1 %v6889_v38  ;;  %v6943_v53 = vcombine.low %v256_v24, %v260_v25  ;;  %v6945_v38 = vcombine.low %v257_v26, %v261_v27  ;;  %v312_v24 = vld [vmem:[%s10976_s1 + $0x8d0] sm:$0xff]  ;;  %v317_v26 = vld [vmem:[%s10976_s1 + $0x8f8] sm:$0xff]  ;;  %v6991_v27 = vcombine.low %v304_v15, %v308_v17 }
 0x17b   :  { %4065 = vmatprep.subr.bf16.mxu0 %v6896_v39  ;;  %4270 = vmatprep.subr.bf16.mxu1 %v6898_v41  ;;  %v6952_v39 = vcombine.high %v264_v32, %v268_v35  ;;  %v6954_v41 = vcombine.high %v265_v36, %v269_v37  ;;  %v316_v25 = vld [vmem:[%s10976_s1 + $0x8f0] sm:$0xff] }
 0x17e   :  { %4066 = vmatpush1.bf16.msra.mxu0 %v6895_v47  ;;  %4271 = vmatpush1.bf16.msra.mxu1 %v6897_v48  ;;  %v6951_v47 = vcombine.low %v264_v32, %v268_v35  ;;  %v6953_v48 = vcombine.low %v265_v36, %v269_v37  ;;  %v324_v32 = vld [vmem:[%s10976_s1 + $0x930] sm:$0xff]  ;;  %v325_v35 = vld [vmem:[%s10976_s1 + $0x938] sm:$0xff]  ;;  %v6999_v36 = vcombine.low %v312_v24, %v316_v25 }
 0x17f   :  { %4067 = vmatprep.subr.bf16.mxu0 %v6904_v49  ;;  %4272 = vmatprep.subr.bf16.mxu1 %v6906_v51  ;;  %v6960_v49 = vcombine.high %v272_v42, %v276_v44  ;;  %v6962_v51 = vcombine.high %v273_v45, %v277_v46 }
 0x182   :  { %4068 = vmatpush1.bf16.msra.mxu0 %v6903_v57  ;;  %4273 = vmatpush1.bf16.msra.mxu1 %v6905_v58  ;;  %v6959_v57 = vcombine.low %v272_v42, %v276_v44  ;;  %v6961_v58 = vcombine.low %v273_v45, %v277_v46  ;;  %v329_v42 = vld [vmem:[%s10976_s1 + $0x958] sm:$0xff] }
 0x183   :  { %4069 = vmatprep.subr.bf16.mxu0 %v6912_v9  ;;  %4274 = vmatprep.subr.bf16.mxu1 %v6914_v60  ;;  %v6968_v9 = vcombine.high %v280_v52, %v284_v54  ;;  %v6970_v60 = vcombine.high %v281_v55, %v285_v56  ;;  %v333_v44 = vld [vmem:[%s10976_s1 + $0x978] sm:$0xff] }
 0x186   :  { %4070 = vmatpush1.bf16.msra.mxu0 %v6911_v3  ;;  %4275 = vmatpush1.bf16.msra.mxu1 %v6913_v4  ;;  %v6967_v3 = vcombine.low %v280_v52, %v284_v54  ;;  %v6969_v4 = vcombine.low %v281_v55, %v285_v56  ;;  %v337_v52 = vld [vmem:[%s10976_s1 + $0x998] sm:$0xff]  ;;  %v7017_v56 = vcombine.low %v329_v42, %v333_v44 }
 0x187   :  { %4071 = vmatprep.subr.bf16.mxu0 %v6920_v63  ;;  %4276 = vmatprep.subr.bf16.mxu1 %v6922_v5  ;;  %v6976_v63 = vcombine.high %v288_v62, %v292_v0  ;;  %v6978_v5 = vcombine.high %v289_v1, %v293_v2  ;;  %v341_v54 = vld [vmem:[%s10976_s1 + $0x9b8] sm:$0xff] }
 0x18a   :  { %4072 = vmatpush1.bf16.msra.mxu0 %v6919_v11  ;;  %4277 = vmatpush1.bf16.msra.mxu1 %v6921_v12  ;;  %v6975_v11 = vcombine.low %v288_v62, %v292_v0  ;;  %v6977_v12 = vcombine.low %v289_v1, %v293_v2  ;;  %v345_v62 = vld [vmem:[%s10976_s1 + $0x9d8] sm:$0xff]  ;;  %v7025_v2 = vcombine.low %v337_v52, %v341_v54 }
 0x18b   :  { %4073 = vmatprep.subr.bf16.mxu0 %v6928_v13  ;;  %4278 = vmatprep.subr.bf16.mxu1 %v6930_v14  ;;  %v6984_v13 = vcombine.high %v296_v7, %v300_v8  ;;  %v6986_v14 = vcombine.high %v297_v23, %v301_v10  ;;  %v349_v0 = vld [vmem:[%s10976_s1 + $0x9f8] sm:$0xff] }
 0x18e   :  { %4074 = vmatpush1.bf16.msra.mxu0 %v6927_v19  ;;  %4279 = vmatpush1.bf16.msra.mxu1 %v6929_v20  ;;  %v6983_v19 = vcombine.low %v296_v7, %v300_v8  ;;  %v6985_v20 = vcombine.low %v297_v23, %v301_v10  ;;  %v353_v7 = vld [vmem:[%s10976_s1 + $0xa18] sm:$0xff]  ;;  %v7033_v10 = vcombine.low %v345_v62, %v349_v0 }
 0x18f   :  { %4075 = vmatprep.subr.bf16.mxu0 %v6936_v21  ;;  %4280 = vmatprep.subr.bf16.mxu1 %v6938_v22  ;;  %v6992_v21 = vcombine.high %v304_v15, %v308_v17  ;;  %v6994_v22 = vcombine.high %v305_v33, %v309_v18  ;;  %v357_v8 = vld [vmem:[%s10976_s1 + $0xa38] sm:$0xff] }
 0x190   :  { %v361_v15 = vld [vmem:[%s10976_s1 + $0xa58] sm:$0xff] }
 0x191   :  { %v365_v17 = vld [vmem:[%s10976_s1 + $0xa78] sm:$0xff] }
 0x192   :  { %4076 = vmatpush1.bf16.msra.mxu0 %v6935_v28  ;;  %4281 = vmatpush1.bf16.msra.mxu1 %v6937_v59  ;;  %v6993_v28 = vcombine.low %v305_v33, %v309_v18  ;;  %v7000_v59 = vcombine.high %v312_v24, %v316_v25  ;;  %v7041_v18 = vcombine.low %v353_v7, %v357_v8  ;;  %v369_v24 = vld [vmem:[%s10976_s1 + $0xa98] sm:$0xff] }
 0x193   :  { %4077 = vmatprep.subr.bf16.mxu0 %v6944_v30  ;;  %4282 = vmatprep.subr.bf16.mxu1 %v6946_v31  ;;  %v320_v31 = vld [vmem:[%s10976_s1 + $0x910] sm:$0xff]  ;;  %v373_v25 = vld [vmem:[%s10976_s1 + $0xab8] sm:$0xff] }
 0x194   :  { %v7007_v45 = vcombine.low %v320_v31, %v324_v32 }
 0x196   :  { %4078 = vmatpush1.bf16.msra.mxu0 %v6943_v53  ;;  %4283 = vmatpush1.bf16.msra.mxu1 %v6945_v38  ;;  %v7008_v53 = vcombine.high %v320_v31, %v324_v32  ;;  %v377_v31 = vld [vmem:[%s10976_s1 + $0xad8] sm:$0xff] }
 0x197   :  { %4079 = vmatprep.subr.bf16.mxu0 %v6952_v39  ;;  %4284 = vmatprep.subr.bf16.mxu1 %v6954_v41  ;;  %v328_v39 = vld [vmem:[%s10976_s1 + $0x950] sm:$0xff]  ;;  %v381_v32 = vld [vmem:[%s10976_s1 + $0xaf8] sm:$0xff] }
 0x198   :  { %v332_v41 = vld [vmem:[%s10976_s1 + $0x970] sm:$0xff] }
 0x199   :  { %v7015_v55 = vcombine.low %v328_v39, %v332_v41 }
 0x19a   :  { %4080 = vmatpush1.bf16.msra.mxu0 %v6951_v47  ;;  %4285 = vmatpush1.bf16.msra.mxu1 %v6953_v48  ;;  %v7016_v47 = vcombine.high %v328_v39, %v332_v41  ;;  %v7018_v48 = vcombine.high %v329_v42, %v333_v44  ;;  %v385_v39 = vld [vmem:[%s10976_s1 + $0xb18] sm:$0xff]  ;;  %v7065_v44 = vcombine.low %v377_v31, %v381_v32 }
 0x19b   :  { %4081 = vmatprep.subr.bf16.mxu0 %v6960_v49  ;;  %4286 = vmatprep.subr.bf16.mxu1 %v6962_v51  ;;  %v336_v49 = vld [vmem:[%s10976_s1 + $0x990] sm:$0xff]  ;;  %v389_v41 = vld [vmem:[%s10976_s1 + $0xb38] sm:$0xff] }
 0x19c   :  { %v340_v51 = vld [vmem:[%s10976_s1 + $0x9b0] sm:$0xff] }
 0x19d   :  { %v7023_v1 = vcombine.low %v336_v49, %v340_v51 }
 0x19e   :  { %4082 = vmatpush1.bf16.msra.mxu0 %v6959_v57  ;;  %4287 = vmatpush1.bf16.msra.mxu1 %v6961_v58  ;;  %v7024_v57 = vcombine.high %v336_v49, %v340_v51  ;;  %v7026_v58 = vcombine.high %v337_v52, %v341_v54  ;;  %v393_v49 = vld [vmem:[%s10976_s1 + $0xb58] sm:$0xff]  ;;  %v7073_v54 = vcombine.low %v385_v39, %v389_v41 }
 0x19f   :  { %4083 = vmatprep.subr.bf16.mxu0 %v6968_v9  ;;  %4288 = vmatprep.subr.bf16.mxu1 %v6970_v60  ;;  %v344_v9 = vld [vmem:[%s10976_s1 + $0x9d0] sm:$0xff]  ;;  %v397_v51 = vld [vmem:[%s10976_s1 + $0xb78] sm:$0xff] }
 0x1a0   :  { %v348_v60 = vld [vmem:[%s10976_s1 + $0x9f0] sm:$0xff] }
 0x1a1   :  { %v7031_v23 = vcombine.low %v344_v9, %v348_v60 }
 0x1a2   :  { %4084 = vmatpush1.bf16.msra.mxu0 %v6967_v3  ;;  %4289 = vmatpush1.bf16.msra.mxu1 %v6969_v4  ;;  %v7032_v3 = vcombine.high %v344_v9, %v348_v60  ;;  %v7034_v4 = vcombine.high %v345_v62, %v349_v0  ;;  %v401_v9 = vld [vmem:[%s10976_s1 + $0xb98] sm:$0xff]  ;;  %v7081_v0 = vcombine.low %v393_v49, %v397_v51 }
 0x1a3   :  { %4094 = vmatprep.subr.bf16.mxu0 %v6976_v63  ;;  %4299 = vmatprep.subr.bf16.mxu1 %v6978_v5  ;;  %v352_v63 = vld [vmem:[%s10976_s1 + $0xa10] sm:$0xff]  ;;  %v405_v60 = vld [vmem:[%s10976_s1 + $0xbb8] sm:$0xff] }
 0x1a4   :  { %v356_v5 = vld [vmem:[%s10976_s1 + $0xa30] sm:$0xff] }
 0x1a5   :  { %4086 = vmatmul.mubr.bf16.vlgmr.msra.gmra.mrb[4].mxu0 %v8662_v40  ;;  %4291 = vmatmul.mubr.bf16.vlgmr.msra.gmra.mrb[4].mxu1 %v8662_v40  ;;  %v313_v40 = vld [vmem:[%s10976_s1 + $0x8d8] sm:$0xff]  ;;  %v7039_v33 = vcombine.low %v352_v63, %v356_v5 }
 0x1a6   :  { %4095 = vmatpush1.bf16.msra.mxu0 %v6975_v11  ;;  %4300 = vmatpush1.bf16.msra.mxu1 %v6977_v12  ;;  %v7002_v30 = vcombine.high %v313_v40, %v317_v26  ;;  %v7001_v37 = vcombine.low %v313_v40, %v317_v26  ;;  %v7040_v11 = vcombine.high %v352_v63, %v356_v5  ;;  %v409_v63 = vld [vmem:[%s10976_s1 + $0xbd8] sm:$0xff] }
 0x1a7   :  { %4096 = vmatprep.subr.bf16.mxu0 %v6984_v13  ;;  %4301 = vmatprep.subr.bf16.mxu1 %v6986_v14  ;;  %v7042_v12 = vcombine.high %v353_v7, %v357_v8  ;;  %v360_v13 = vld [vmem:[%s10976_s1 + $0xa50] sm:$0xff]  ;;  %v7049_v26 = vcombine.low %v361_v15, %v365_v17  ;;  %v413_v5 = vld [vmem:[%s10976_s1 + $0xbf8] sm:$0xff]  ;;  %v7089_v8 = vcombine.low %v401_v9, %v405_v60 }
 0x1a8   :  { %4126 = vmatprep.mubr.bf16.mxu0 %v8677_v50  ;;  %4331 = vmatprep.mubr.bf16.mxu1 %v8677_v50  ;;  %v321_v50 = vld [vmem:[%s10976_s1 + $0x918] sm:$0xff]  ;;  %v364_v14 = vld [vmem:[%s10976_s1 + $0xa70] sm:$0xff] }
 0x1a9   :  { %v7010_v38 = vcombine.high %v321_v50, %v325_v35  ;;  %v7009_v46 = vcombine.low %v321_v50, %v325_v35  ;;  %v7047_v40 = vcombine.low %v360_v13, %v364_v14  ;;  %v7057_v35 = vcombine.low %v369_v24, %v373_v25 }
 0x1aa   :  { %4097 = vmatpush1.bf16.msra.mxu0 %v6983_v19  ;;  %4302 = vmatpush1.bf16.msra.mxu1 %v6985_v20  ;;  %v7048_v19 = vcombine.high %v360_v13, %v364_v14  ;;  %v7050_v20 = vcombine.high %v361_v15, %v365_v17  ;;  %v417_v13 = vld [vmem:[%s10976_s1 + $0xc18] sm:$0xff]  ;;  %v7097_v17 = vcombine.low %v409_v63, %v413_v5 }
 0x1ab   :  { %4098 = vmatprep.subr.bf16.mxu0 %v6992_v21  ;;  %4303 = vmatprep.subr.bf16.mxu1 %v6994_v22  ;;  %v368_v21 = vld [vmem:[%s10976_s1 + $0xa90] sm:$0xff]  ;;  %v421_v14 = vld [vmem:[%s10976_s1 + $0xc38] sm:$0xff] }
 0x1ac   :  { %v372_v22 = vld [vmem:[%s10976_s1 + $0xab0] sm:$0xff] }
 0x1ad   :  { %v7055_v50 = vcombine.low %v368_v21, %v372_v22 }
 0x1ae   :  { %4099 = vmatpush1.bf16.msra.mxu0 %v6991_v27  ;;  %4304 = vmatpush1.bf16.msra.mxu1 %v6993_v28  ;;  %v7056_v27 = vcombine.high %v368_v21, %v372_v22  ;;  %v7058_v28 = vcombine.high %v369_v24, %v373_v25  ;;  %v425_v21 = vld [vmem:[%s10976_s1 + $0xc58] sm:$0xff]  ;;  %v7105_v25 = vcombine.low %v417_v13, %v421_v14 }
 0x1af   :  { %4100 = vmatprep.subr.bf16.mxu0 %v7000_v59  ;;  %4305 = vmatprep.subr.bf16.mxu1 %v7002_v30  ;;  %v376_v59 = vld [vmem:[%s10976_s1 + $0xad0] sm:$0xff]  ;;  %v429_v22 = vld [vmem:[%s10976_s1 + $0xc78] sm:$0xff] }
 0x1b0   :  { %v380_v30 = vld [vmem:[%s10976_s1 + $0xaf0] sm:$0xff] }
 0x1b1   :  { %v7063_v42 = vcombine.low %v376_v59, %v380_v30 }
 0x1b2   :  { %4101 = vmatpush1.bf16.msra.mxu0 %v6999_v36  ;;  %4306 = vmatpush1.bf16.msra.mxu1 %v7001_v37  ;;  %v7064_v36 = vcombine.high %v376_v59, %v380_v30  ;;  %v7066_v37 = vcombine.high %v377_v31, %v381_v32  ;;  %v433_v59 = vld [vmem:[%s10976_s1 + $0xc98] sm:$0xff]  ;;  %v7113_v32 = vcombine.low %v425_v21, %v429_v22 }
 0x1b3   :  { %4102 = vmatprep.subr.bf16.mxu0 %v7008_v53  ;;  %4307 = vmatprep.subr.bf16.mxu1 %v7010_v38  ;;  %v384_v53 = vld [vmem:[%s10976_s1 + $0xb10] sm:$0xff]  ;;  %v437_v30 = vld [vmem:[%s10976_s1 + $0xcb8] sm:$0xff] }
 0x1b4   :  { %v388_v38 = vld [vmem:[%s10976_s1 + $0xb30] sm:$0xff] }
 0x1b5   :  { %v7071_v52 = vcombine.low %v384_v53, %v388_v38 }
 0x1b6   :  { %4103 = vmatpush1.bf16.msra.mxu0 %v7007_v45  ;;  %4308 = vmatpush1.bf16.msra.mxu1 %v7009_v46  ;;  %v7072_v45 = vcombine.high %v384_v53, %v388_v38  ;;  %v7074_v46 = vcombine.high %v385_v39, %v389_v41  ;;  %v445_v53 = vld [vmem:[%s10976_s1 + $0xcf8] sm:$0xff]  ;;  %v7121_v39 = vcombine.low %v433_v59, %v437_v30 }
 0x1b7   :  { %4104 = vmatprep.subr.bf16.mxu0 %v7016_v47  ;;  %4309 = vmatprep.subr.bf16.mxu1 %v7018_v48  ;;  %v392_v47 = vld [vmem:[%s10976_s1 + $0xb50] sm:$0xff] }
 0x1b8   :  { %v396_v48 = vld [vmem:[%s10976_s1 + $0xb70] sm:$0xff] }
 0x1b9   :  { %v7079_v62 = vcombine.low %v392_v47, %v396_v48 }
 0x1ba   :  { %4105 = vmatpush1.bf16.msra.mxu0 %v7015_v55  ;;  %4310 = vmatpush1.bf16.msra.mxu1 %v7017_v56  ;;  %v7080_v55 = vcombine.high %v392_v47, %v396_v48  ;;  %v7082_v56 = vcombine.high %v393_v49, %v397_v51 }
 0x1bb   :  { %4106 = vmatprep.subr.bf16.mxu0 %v7024_v57  ;;  %4311 = vmatprep.subr.bf16.mxu1 %v7026_v58  ;;  %v400_v57 = vld [vmem:[%s10976_s1 + $0xb90] sm:$0xff] }
 0x1bc   :  { %v404_v58 = vld [vmem:[%s10976_s1 + $0xbb0] sm:$0xff] }
 0x1bd   :  { %v7087_v7 = vcombine.low %v400_v57, %v404_v58 }
 0x1be   :  { %4107 = vmatpush1.bf16.msra.mxu0 %v7023_v1  ;;  %4312 = vmatpush1.bf16.msra.mxu1 %v7025_v2  ;;  %v7088_v1 = vcombine.high %v400_v57, %v404_v58  ;;  %v7090_v2 = vcombine.high %v401_v9, %v405_v60 }
 0x1bf   :  { %4108 = vmatprep.subr.bf16.mxu0 %v7032_v3  ;;  %4313 = vmatprep.subr.bf16.mxu1 %v7034_v4  ;;  %v408_v3 = vld [vmem:[%s10976_s1 + $0xbd0] sm:$0xff] }
 0x1c0   :  { %v412_v4 = vld [vmem:[%s10976_s1 + $0xbf0] sm:$0xff] }
 0x1c1   :  { %v7095_v15 = vcombine.low %v408_v3, %v412_v4 }
 0x1c2   :  { %4109 = vmatpush1.bf16.msra.mxu0 %v7031_v23  ;;  %4314 = vmatpush1.bf16.msra.mxu1 %v7033_v10  ;;  %v7096_v23 = vcombine.high %v408_v3, %v412_v4  ;;  %v7098_v10 = vcombine.high %v409_v63, %v413_v5 }
 0x1c3   :  { %4110 = vmatprep.subr.bf16.mxu0 %v7040_v11  ;;  %4315 = vmatprep.subr.bf16.mxu1 %v7042_v12  ;;  %v416_v11 = vld [vmem:[%s10976_s1 + $0xc10] sm:$0xff] }
 0x1c4   :  { %v420_v12 = vld [vmem:[%s10976_s1 + $0xc30] sm:$0xff] }
 0x1c5   :  { %v7103_v24 = vcombine.low %v416_v11, %v420_v12 }
 0x1c6   :  { %4111 = vmatpush1.bf16.msra.mxu0 %v7039_v33  ;;  %4316 = vmatpush1.bf16.msra.mxu1 %v7041_v18  ;;  %v7104_v33 = vcombine.high %v416_v11, %v420_v12  ;;  %v7106_v18 = vcombine.high %v417_v13, %v421_v14  ;;  %v473_v12 = vld [vmem:[%s10976_s1 + $0xdd8] sm:$0xff] }
 0x1c7   :  { %4112 = vmatprep.subr.bf16.mxu0 %v7048_v19  ;;  %4317 = vmatprep.subr.bf16.mxu1 %v7050_v20  ;;  %v424_v19 = vld [vmem:[%s10976_s1 + $0xc50] sm:$0xff]  ;;  %v477_v13 = vld [vmem:[%s10976_s1 + $0xdf8] sm:$0xff] }
 0x1c8   :  { %v428_v20 = vld [vmem:[%s10976_s1 + $0xc70] sm:$0xff] }
 0x1c9   :  { %v7111_v31 = vcombine.low %v424_v19, %v428_v20 }
 0x1ca   :  { %4113 = vmatpush1.bf16.msra.mxu0 %v7047_v40  ;;  %4318 = vmatpush1.bf16.msra.mxu1 %v7049_v26  ;;  %v7112_v40 = vcombine.high %v424_v19, %v428_v20  ;;  %v7114_v26 = vcombine.high %v425_v21, %v429_v22  ;;  %v7162_v21 = vcombine.high %v473_v12, %v477_v13  ;;  %v480_v22 = vld [vmem:[%s10976_s1 + $0xe10] sm:$0xff] }
 0x1cb   :  { %4114 = vmatprep.subr.bf16.mxu0 %v7056_v27  ;;  %4319 = vmatprep.subr.bf16.mxu1 %v7058_v28  ;;  %v432_v27 = vld [vmem:[%s10976_s1 + $0xc90] sm:$0xff] }
 0x1cc   :  { %v436_v28 = vld [vmem:[%s10976_s1 + $0xcb0] sm:$0xff] }
 0x1cd   :  { %v7119_v38 = vcombine.low %v432_v27, %v436_v28 }
 0x1ce   :  { %4115 = vmatpush1.bf16.msra.mxu0 %v7055_v50  ;;  %4320 = vmatpush1.bf16.msra.mxu1 %v7057_v35  ;;  %v7120_v50 = vcombine.high %v432_v27, %v436_v28  ;;  %v7122_v35 = vcombine.high %v433_v59, %v437_v30  ;;  %v7161_v28 = vcombine.low %v473_v12, %v477_v13 }
 0x1cf   :  { %4116 = vmatprep.subr.bf16.mxu0 %v7064_v36  ;;  %4321 = vmatprep.subr.bf16.mxu1 %v7066_v37  ;;  %v440_v36 = vld [vmem:[%s10976_s1 + $0xcd0] sm:$0xff] }
 0x1d0   :  { %v444_v37 = vld [vmem:[%s10976_s1 + $0xcf0] sm:$0xff] }
 0x1d1   :  { %v7128_v41 = vcombine.high %v440_v36, %v444_v37  ;;  %v7127_v47 = vcombine.low %v440_v36, %v444_v37 }
 0x1d2   :  { %4117 = vmatpush1.bf16.msra.mxu0 %v7063_v42  ;;  %4322 = vmatpush1.bf16.msra.mxu1 %v7065_v44  ;;  %v448_v44 = vld [vmem:[%s10976_s1 + $0xd10] sm:$0xff] }
 0x1d3   :  { %4118 = vmatprep.subr.bf16.mxu0 %v7072_v45  ;;  %4323 = vmatprep.subr.bf16.mxu1 %v7074_v46  ;;  %v452_v45 = vld [vmem:[%s10976_s1 + $0xd30] sm:$0xff]  ;;  %v453_v46 = vld [vmem:[%s10976_s1 + $0xd38] sm:$0xff] }
 0x1d4   :  { %v7136_v49 = vcombine.high %v448_v44, %v452_v45  ;;  %v7135_v57 = vcombine.low %v448_v44, %v452_v45 }
 0x1d6   :  { %4119 = vmatpush1.bf16.msra.mxu0 %v7071_v52  ;;  %4324 = vmatpush1.bf16.msra.mxu1 %v7073_v54  ;;  %v456_v52 = vld [vmem:[%s10976_s1 + $0xd50] sm:$0xff] }
 0x1d7   :  { %4120 = vmatprep.subr.bf16.mxu0 %v7080_v55  ;;  %4325 = vmatprep.subr.bf16.mxu1 %v7082_v56  ;;  %v460_v54 = vld [vmem:[%s10976_s1 + $0xd70] sm:$0xff]  ;;  %v457_v55 = vld [vmem:[%s10976_s1 + $0xd58] sm:$0xff] }
 0x1d8   :  { %v461_v56 = vld [vmem:[%s10976_s1 + $0xd78] sm:$0xff]  ;;  %v7144_v9 = vcombine.high %v456_v52, %v460_v54  ;;  %v7143_v3 = vcombine.low %v456_v52, %v460_v54 }
 0x1d9   :  { %v7146_v60 = vcombine.high %v457_v55, %v461_v56  ;;  %v7145_v4 = vcombine.low %v457_v55, %v461_v56 }
 0x1da   :  { %4121 = vmatpush1.bf16.msra.mxu0 %v7079_v62  ;;  %4326 = vmatpush1.bf16.msra.mxu1 %v7081_v0  ;;  %v464_v62 = vld [vmem:[%s10976_s1 + $0xd90] sm:$0xff] }
 0x1db   :  { %4122 = vmatprep.subr.bf16.mxu0 %v7088_v1  ;;  %4327 = vmatprep.subr.bf16.mxu1 %v7090_v2  ;;  %v468_v0 = vld [vmem:[%s10976_s1 + $0xdb0] sm:$0xff]  ;;  %v465_v1 = vld [vmem:[%s10976_s1 + $0xd98] sm:$0xff] }
 0x1dc   :  { %v469_v2 = vld [vmem:[%s10976_s1 + $0xdb8] sm:$0xff]  ;;  %v7152_v63 = vcombine.high %v464_v62, %v468_v0 }
 0x1dd   :  { %v7153_v19 = vcombine.low %v465_v1, %v469_v2 }
 0x1de   :  { %4123 = vmatpush1.bf16.msra.mxu0 %v7087_v7  ;;  %4328 = vmatpush1.bf16.msra.mxu1 %v7089_v8  ;;  %v7154_v7 = vcombine.high %v465_v1, %v469_v2  ;;  %v472_v8 = vld [vmem:[%s10976_s1 + $0xdd0] sm:$0xff] }
 0x1df   :  { %4124 = vmatprep.subr.bf16.mxu0 %v7096_v23  ;;  %4329 = vmatprep.subr.bf16.mxu1 %v7098_v10  ;;  %v476_v23 = vld [vmem:[%s10976_s1 + $0xdf0] sm:$0xff] }
 0x1e0   :  { %v7160_v20 = vcombine.high %v472_v8, %v476_v23  ;;  %v7159_v27 = vcombine.low %v472_v8, %v476_v23 }
 0x1e2   :  { %4125 = vmatpush1.bf16.msra.mxu0 %v7095_v15  ;;  %4330 = vmatpush1.bf16.msra.mxu1 %v7097_v17  ;;  %v7151_v17 = vcombine.low %v464_v62, %v468_v0 }
 0x1e3   :  { %4135 = vmatprep.subr.bf16.mxu0 %v7104_v33  ;;  %4340 = vmatprep.subr.bf16.mxu1 %v7106_v18 }
 0x1e5   :  { %4127 = vmatmul.mubr.bf16.vlgmr.msra.gmra.mrb[4].mxu0 %v8865_v61  ;;  %4332 = vmatmul.mubr.bf16.vlgmr.msra.gmra.mrb[4].mxu1 %v8865_v61  ;;  %v441_v61 = vld [vmem:[%s10976_s1 + $0xcd8] sm:$0xff] }
 0x1e6   :  { %4136 = vmatpush1.bf16.msra.mxu0 %v7103_v24  ;;  %4341 = vmatpush1.bf16.msra.mxu1 %v7105_v25  ;;  %v7130_v42 = vcombine.high %v441_v61, %v445_v53  ;;  %v7129_v48 = vcombine.low %v441_v61, %v445_v53  ;;  %v484_v24 = vld [vmem:[%s10976_s1 + $0xe30] sm:$0xff] }
 0x1e7   :  { %4137 = vmatprep.subr.bf16.mxu0 %v7112_v40  ;;  %4342 = vmatprep.subr.bf16.mxu1 %v7114_v26  ;;  %v481_v40 = vld [vmem:[%s10976_s1 + $0xe18] sm:$0xff]  ;;  %v7168_v59 = vcombine.high %v480_v22, %v484_v24  ;;  %v7167_v36 = vcombine.low %v480_v22, %v484_v24  ;;  %v536_v24 = vld [vmem:[%s10976_s1 + $0xfd0] sm:$0xff] }
 0x1e8   :  { %4167 = vmatprep.mubr.bf16.mxu0 %v8881_v6  ;;  %4372 = vmatprep.mubr.bf16.mxu1 %v8881_v6  ;;  %v449_v6 = vld [vmem:[%s10976_s1 + $0xd18] sm:$0xff] }
 0x1e9   :  { %v7138_v51 = vcombine.high %v449_v6, %v453_v46  ;;  %v7137_v58 = vcombine.low %v449_v6, %v453_v46  ;;  %v485_v26 = vld [vmem:[%s10976_s1 + $0xe38] sm:$0xff] }
 0x1ea   :  { %4138 = vmatpush1.bf16.msra.mxu0 %v7111_v31  ;;  %4343 = vmatpush1.bf16.msra.mxu1 %v7113_v32  ;;  %v7170_v30 = vcombine.high %v481_v40, %v485_v26  ;;  %v488_v31 = vld [vmem:[%s10976_s1 + $0xe50] sm:$0xff]  ;;  %v7169_v37 = vcombine.low %v481_v40, %v485_v26  ;;  %v537_v40 = vld [vmem:[%s10976_s1 + $0xfd8] sm:$0xff] }
 0x1eb   :  { %4139 = vmatprep.subr.bf16.mxu0 %v7120_v50  ;;  %4344 = vmatprep.subr.bf16.mxu1 %v7122_v35  ;;  %v492_v32 = vld [vmem:[%s10976_s1 + $0xe70] sm:$0xff]  ;;  %v489_v50 = vld [vmem:[%s10976_s1 + $0xe58] sm:$0xff] }
 0x1ec   :  { %v493_v35 = vld [vmem:[%s10976_s1 + $0xe78] sm:$0xff]  ;;  %v7176_v61 = vcombine.high %v488_v31, %v492_v32  ;;  %v7175_v44 = vcombine.low %v488_v31, %v492_v32  ;;  %v544_v31 = vld [vmem:[%s10976_s1 + $0x1010] sm:$0xff] }
 0x1ed   :  { %v7178_v53 = vcombine.high %v489_v50, %v493_v35  ;;  %v7177_v45 = vcombine.low %v489_v50, %v493_v35  ;;  %v541_v26 = vld [vmem:[%s10976_s1 + $0xff8] sm:$0xff]  ;;  %v548_v32 = vld [vmem:[%s10976_s1 + $0x1030] sm:$0xff] }
 0x1ee   :  { %4140 = vmatpush1.bf16.msra.mxu0 %v7119_v38  ;;  %4345 = vmatpush1.bf16.msra.mxu1 %v7121_v39  ;;  %v496_v38 = vld [vmem:[%s10976_s1 + $0xe90] sm:$0xff]  ;;  %v545_v50 = vld [vmem:[%s10976_s1 + $0x1018] sm:$0xff] }
 0x1ef   :  { %4141 = vmatprep.subr.bf16.mxu0 %v7128_v41  ;;  %4346 = vmatprep.subr.bf16.mxu1 %v7130_v42  ;;  %v500_v39 = vld [vmem:[%s10976_s1 + $0xeb0] sm:$0xff]  ;;  %v497_v41 = vld [vmem:[%s10976_s1 + $0xe98] sm:$0xff] }
 0x1f0   :  { %v501_v42 = vld [vmem:[%s10976_s1 + $0xeb8] sm:$0xff]  ;;  %v7184_v6 = vcombine.high %v496_v38, %v500_v39  ;;  %v7183_v52 = vcombine.low %v496_v38, %v500_v39  ;;  %v552_v38 = vld [vmem:[%s10976_s1 + $0x1050] sm:$0xff] }
 0x1f1   :  { %v7186_v46 = vcombine.high %v497_v41, %v501_v42  ;;  %v7185_v54 = vcombine.low %v497_v41, %v501_v42  ;;  %v549_v35 = vld [vmem:[%s10976_s1 + $0x1038] sm:$0xff]  ;;  %v556_v39 = vld [vmem:[%s10976_s1 + $0x1070] sm:$0xff] }
 0x1f2   :  { %4142 = vmatpush1.bf16.msra.mxu0 %v7127_v47  ;;  %4347 = vmatpush1.bf16.msra.mxu1 %v7129_v48  ;;  %v504_v47 = vld [vmem:[%s10976_s1 + $0xed0] sm:$0xff]  ;;  %v553_v41 = vld [vmem:[%s10976_s1 + $0x1058] sm:$0xff] }
 0x1f3   :  { %4143 = vmatprep.subr.bf16.mxu0 %v7136_v49  ;;  %4348 = vmatprep.subr.bf16.mxu1 %v7138_v51  ;;  %v508_v48 = vld [vmem:[%s10976_s1 + $0xef0] sm:$0xff]  ;;  %v505_v49 = vld [vmem:[%s10976_s1 + $0xed8] sm:$0xff] }
 0x1f4   :  { %v509_v51 = vld [vmem:[%s10976_s1 + $0xef8] sm:$0xff]  ;;  %v7192_v55 = vcombine.high %v504_v47, %v508_v48  ;;  %v7191_v62 = vcombine.low %v504_v47, %v508_v48  ;;  %v560_v47 = vld [vmem:[%s10976_s1 + $0x1090] sm:$0xff] }
 0x1f5   :  { %v7194_v56 = vcombine.high %v505_v49, %v509_v51  ;;  %v7193_v0 = vcombine.low %v505_v49, %v509_v51  ;;  %v557_v42 = vld [vmem:[%s10976_s1 + $0x1078] sm:$0xff]  ;;  %v564_v48 = vld [vmem:[%s10976_s1 + $0x10b0] sm:$0xff] }
 0x1f6   :  { %4144 = vmatpush1.bf16.msra.mxu0 %v7135_v57  ;;  %4349 = vmatpush1.bf16.msra.mxu1 %v7137_v58  ;;  %v512_v57 = vld [vmem:[%s10976_s1 + $0xf10] sm:$0xff]  ;;  %v561_v49 = vld [vmem:[%s10976_s1 + $0x1098] sm:$0xff] }
 0x1f7   :  { %4145 = vmatprep.subr.bf16.mxu0 %v7144_v9  ;;  %4350 = vmatprep.subr.bf16.mxu1 %v7146_v60  ;;  %v516_v58 = vld [vmem:[%s10976_s1 + $0xf30] sm:$0xff]  ;;  %v513_v9 = vld [vmem:[%s10976_s1 + $0xf18] sm:$0xff] }
 0x1f8   :  { %v9829_v5 = vpop.f32.mrb[0].mxu0  ;;  %v9837_v10 = vpop.f32.mrb[0].mxu1  ;;  %v517_v60 = vld [vmem:[%s10976_s1 + $0xf38] sm:$0xff]  ;;  %v7200_v1 = vcombine.high %v512_v57, %v516_v58  ;;  %v7199_v8 = vcombine.low %v512_v57, %v516_v58  ;;  %v568_v57 = vld [vmem:[%s10976_s1 + $0x10d0] sm:$0xff] }
 0x1f9   :  { %v9839_v11 = vpop.f32.mrb[1].mxu0  ;;  %v9847_v14 = vpop.f32.mrb[1].mxu1  ;;  %v7202_v2 = vcombine.high %v513_v9, %v517_v60  ;;  %v7201_v23 = vcombine.low %v513_v9, %v517_v60  ;;  %v565_v51 = vld [vmem:[%s10976_s1 + $0x10b8] sm:$0xff]  ;;  %v572_v58 = vld [vmem:[%s10976_s1 + $0x10f0] sm:$0xff]  ;;  %v7247_v60 = vcombine.low %v560_v47, %v564_v48 }
 0x1fa   :  { %v3804_v15 = vpop.f32.mrb[2].mxu0  ;;  %4146 = vmatpush1.bf16.msra.mxu0 %v7143_v3  ;;  %v4009_v33 = vpop.f32.mrb[2].mxu1  ;;  %4351 = vmatpush1.bf16.msra.mxu1 %v7145_v4  ;;  %v520_v3 = vld [vmem:[%s10976_s1 + $0xf50] sm:$0xff]  ;;  %v573_v9 = vld [vmem:[%s10976_s1 + $0x10f8] sm:$0xff] }
 0x1fb   :  { %v3805_v18 = vpop.f32.mrb[3].mxu0  ;;  %4147 = vmatprep.subr.bf16.mxu0 %v7152_v63  ;;  %4352 = vmatprep.subr.bf16.mxu1 %v7154_v7  ;;  %v4010_v25 = vpop.f32.mrb[3].mxu1  ;;  %v524_v4 = vld [vmem:[%s10976_s1 + $0xf70] sm:$0xff]  ;;  %v521_v63 = vld [vmem:[%s10976_s1 + $0xf58] sm:$0xff] }
 0x1fc   :  { %v525_v7 = vld [vmem:[%s10976_s1 + $0xf78] sm:$0xff]  ;;  %v7208_v12 = vcombine.high %v520_v3, %v524_v4  ;;  %v528_v15 = vld [vmem:[%s10976_s1 + $0xf90] sm:$0xff] }
 0x1fd   :  { %v7210_v13 = vcombine.high %v521_v63, %v525_v7  ;;  %v529_v33 = vld [vmem:[%s10976_s1 + $0xf98] sm:$0xff]  ;;  %v540_v25 = vld [vmem:[%s10976_s1 + $0xff0] sm:$0xff] }
 0x1fe   :  { %4148 = vmatpush1.bf16.msra.mxu0 %v7151_v17  ;;  %4353 = vmatpush1.bf16.msra.mxu1 %v7153_v19  ;;  %v532_v17 = vld [vmem:[%s10976_s1 + $0xfb0] sm:$0xff]  ;;  %v533_v18 = vld [vmem:[%s10976_s1 + $0xfb8] sm:$0xff]  ;;  %v7207_v19 = vcombine.low %v520_v3, %v524_v4 }
 0x1ff   :  { %4149 = vmatprep.subr.bf16.mxu0 %v7160_v20  ;;  %4354 = vmatprep.subr.bf16.mxu1 %v7162_v21  ;;  %v7209_v20 = vcombine.low %v521_v63, %v525_v7  ;;  %v7216_v21 = vcombine.high %v528_v15, %v532_v17  ;;  %v7218_v22 = vcombine.high %v529_v33, %v533_v18  ;;  %v580_v3 = vld [vmem:[%s10976_s1 + $0x1130] sm:$0xff]  ;;  %v581_v4 = vld [vmem:[%s10976_s1 + $0x1138] sm:$0xff] }
 0x200   :  { %v7255_v63 = vcombine.low %v568_v57, %v572_v58 }
 0x202   :  { %4150 = vmatpush1.bf16.msra.mxu0 %v7159_v27  ;;  %4355 = vmatpush1.bf16.msra.mxu1 %v7161_v28  ;;  %v7215_v27 = vcombine.low %v528_v15, %v532_v17  ;;  %v7217_v28 = vcombine.low %v529_v33, %v533_v18  ;;  %v585_v15 = vld [vmem:[%s10976_s1 + $0x1158] sm:$0xff]  ;;  %v614_v33 = vsub.s32 1, %v8278_v43 }
 0x203   :  { %4151 = vmatprep.subr.bf16.mxu0 %v7168_v59  ;;  %4356 = vmatprep.subr.bf16.mxu1 %v7170_v30  ;;  %v7224_v59 = vcombine.high %v536_v24, %v540_v25  ;;  %v7226_v30 = vcombine.high %v537_v40, %v541_v26  ;;  %v589_v17 = vld [vmem:[%s10976_s1 + $0x1178] sm:$0xff] }
 0x206   :  { %4152 = vmatpush1.bf16.msra.mxu0 %v7167_v36  ;;  %4357 = vmatpush1.bf16.msra.mxu1 %v7169_v37  ;;  %v7223_v36 = vcombine.low %v536_v24, %v540_v25  ;;  %v7225_v37 = vcombine.low %v537_v40, %v541_v26  ;;  %v592_v24 = vld [vmem:[%s10976_s1 + $0x1190] sm:$0xff]  ;;  %v593_v40 = vld [vmem:[%s10976_s1 + $0x1198] sm:$0xff] }
 0x207   :  { %4153 = vmatprep.subr.bf16.mxu0 %v7176_v61  ;;  %4358 = vmatprep.subr.bf16.mxu1 %v7178_v53  ;;  %v7232_v61 = vcombine.high %v544_v31, %v548_v32  ;;  %v7234_v53 = vcombine.high %v545_v50, %v549_v35  ;;  %v596_v25 = vld [vmem:[%s10976_s1 + $0x11b0] sm:$0xff]  ;;  %v597_v26 = vld [vmem:[%s10976_s1 + $0x11b8] sm:$0xff] }
 0x20a   :  { %4154 = vmatpush1.bf16.msra.mxu0 %v7175_v44  ;;  %4359 = vmatpush1.bf16.msra.mxu1 %v7177_v45  ;;  %v7231_v44 = vcombine.low %v544_v31, %v548_v32  ;;  %v7233_v45 = vcombine.low %v545_v50, %v549_v35  ;;  %v7282_v31 = vcombine.high %v593_v40, %v597_v26  ;;  %v600_v32 = vld [vmem:[%s10976_s1 + $0x11d0] sm:$0xff]  ;;  %v601_v35 = vld [vmem:[%s10976_s1 + $0x11d8] sm:$0xff] }
 0x20b   :  { %4155 = vmatprep.subr.bf16.mxu0 %v7184_v6  ;;  %4360 = vmatprep.subr.bf16.mxu1 %v7186_v46  ;;  %v7240_v6 = vcombine.high %v552_v38, %v556_v39  ;;  %v7242_v46 = vcombine.high %v553_v41, %v557_v42  ;;  %v604_v50 = vld [vmem:[%s10976_s1 + $0x11f0] sm:$0xff] }
 0x20e   :  { %4156 = vmatpush1.bf16.msra.mxu0 %v7183_v52  ;;  %4361 = vmatpush1.bf16.msra.mxu1 %v7185_v54  ;;  %v7239_v52 = vcombine.low %v552_v38, %v556_v39  ;;  %v7241_v54 = vcombine.low %v553_v41, %v557_v42  ;;  %v7288_v38 = vcombine.high %v600_v32, %v604_v50 }
 0x20f   :  { %4157 = vmatprep.subr.bf16.mxu0 %v7192_v55  ;;  %4362 = vmatprep.subr.bf16.mxu1 %v7194_v56  ;;  %v7248_v55 = vcombine.high %v560_v47, %v564_v48  ;;  %v7250_v56 = vcombine.high %v561_v49, %v565_v51  ;;  %v7287_v42 = vcombine.low %v600_v32, %v604_v50  ;;  %v7731_v47 = vld [vmem:[%s10978_s3 + $0x8] ss:$16 sps:$4 sm:$0xff]   ;;  %v7736_v48 = vld [vmem:[%s10978_s3 + $0x24] ss:$16 sps:$4 sm:$0xff]   ;;  %v7799_v50 = vld [vmem:[%s10978_s3 + $0x16c] ss:$16 sps:$4 sm:$0xff]  }
 0x210   :  { %v7796_v32 = vld [vmem:[%s10978_s3 + $0x164] ss:$16 sps:$4 sm:$0xff]  }
 0x212   :  { %4158 = vmatpush1.bf16.msra.mxu0 %v7191_v62  ;;  %4363 = vmatpush1.bf16.msra.mxu1 %v7193_v0  ;;  %v7249_v62 = vcombine.low %v561_v49, %v565_v51  ;;  %v7256_v0 = vcombine.high %v568_v57, %v572_v58  ;;  %v7739_v51 = vld [vmem:[%s10978_s3 + $0x2c] ss:$16 sps:$4 sm:$0xff]   ;;  %v7743_v57 = vld [vmem:[%s10978_s3 + $0x48] ss:$16 sps:$4 sm:$0xff]   ;;  %v7748_v58 = vld [vmem:[%s10978_s3 + $0x64] ss:$16 sps:$4 sm:$0xff]  }
 0x213   :  { %4159 = vmatprep.subr.bf16.mxu0 %v7200_v1  ;;  %4364 = vmatprep.subr.bf16.mxu1 %v7202_v2  ;;  %v576_v2 = vld [vmem:[%s10976_s1 + $0x1110] sm:$0xff] }
 0x214   :  { %v7263_v18 = vcombine.low %v576_v2, %v580_v3 }
 0x216   :  { %4160 = vmatpush1.bf16.msra.mxu0 %v7199_v8  ;;  %4365 = vmatpush1.bf16.msra.mxu1 %v7201_v23  ;;  %v7264_v8 = vcombine.high %v576_v2, %v580_v3  ;;  %v7755_v2 = vld [vmem:[%s10978_s3 + $0x88] ss:$16 sps:$4 sm:$0xff]   ;;  %v7760_v3 = vld [vmem:[%s10978_s3 + $0xa4] ss:$16 sps:$4 sm:$0xff]  }
 0x217   :  { %4161 = vmatprep.subr.bf16.mxu0 %v7208_v12  ;;  %4366 = vmatprep.subr.bf16.mxu1 %v7210_v13  ;;  %v584_v12 = vld [vmem:[%s10976_s1 + $0x1150] sm:$0xff] }
 0x218   :  { %v588_v13 = vld [vmem:[%s10976_s1 + $0x1170] sm:$0xff] }
 0x21a   :  { %4162 = vmatpush1.bf16.msra.mxu0 %v7207_v19  ;;  %4367 = vmatpush1.bf16.msra.mxu1 %v7209_v20  ;;  %v10025_v19 = vld [vmem:[%s10977_s2] sm:$0xff] }
 0x21b   :  { %4163 = vmatprep.subr.bf16.mxu0 %v7216_v21  ;;  %4368 = vmatprep.subr.bf16.mxu1 %v7218_v22  ;;  %v7272_v21 = vcombine.high %v584_v12, %v588_v13  ;;  %v7274_v22 = vcombine.high %v585_v15, %v589_v17 }
 0x21e   :  { %4164 = vmatpush1.bf16.msra.mxu0 %v7215_v27  ;;  %4369 = vmatpush1.bf16.msra.mxu1 %v7217_v28  ;;  %v615_v27 = vrot.slane %v10025_v19, %v614_v33  ;;  %v7271_v28 = vcombine.low %v584_v12, %v588_v13  ;;  %v7767_v12 = vld [vmem:[%s10978_s3 + $0xc8] ss:$16 sps:$4 sm:$0xff]   ;;  %v7772_v13 = vld [vmem:[%s10978_s3 + $0xe4] ss:$16 sps:$4 sm:$0xff]  }
 0x21f   :  { %4165 = vmatprep.subr.bf16.mxu0 %v7224_v59  ;;  %4370 = vmatprep.subr.bf16.mxu1 %v7226_v30  ;;  %v7273_v59 = vcombine.low %v585_v15, %v589_v17  ;;  %v7280_v30 = vcombine.high %v592_v24, %v596_v25  ;;  %v7775_v15 = vld [vmem:[%s10978_s3 + $0xec] ss:$16 sps:$4 sm:$0xff]   ;;  %v7770_v17 = vld [vmem:[%s10978_s3 + $0xe0] ss:$16 sps:$4 sm:$0xff]  }
 0x222   :  { %4166 = vmatpush1.bf16.msra.mxu0 %v7223_v36  ;;  %4371 = vmatpush1.bf16.msra.mxu1 %v7225_v37  ;;  %v605_v36 = vld [vmem:[%s10976_s1 + $0x11f8] sm:$0xff]  ;;  %v7625_v37 = vadd.f32 %v9839_v11, %v615_v27 }
 0x223   :  { %4176 = vmatprep.subr.bf16.mxu0 %v7232_v61  ;;  %4381 = vmatprep.subr.bf16.mxu1 %v7234_v53  ;;  %v7279_v61 = vcombine.low %v592_v24, %v596_v25  ;;  %v7281_v53 = vcombine.low %v593_v40, %v597_v26  ;;  %v7290_v39 = vcombine.high %v601_v35, %v605_v36  ;;  %v7733_v11 = vld [vmem:[%s10978_s3 + $0xc] ss:$16 sps:$4 sm:$0xff]   ;;  %v7779_v24 = vld [vmem:[%s10978_s3 + $0x108] ss:$16 sps:$4 sm:$0xff]   ;;  %v7784_v25 = vld [vmem:[%s10978_s3 + $0x124] ss:$16 sps:$4 sm:$0xff]  }
 0x224   :  { %v4431_v41 = vmul.f32 0.01, %v7625_v37  ;;  %vm4423_vm0 = vcmp.ge.f32.partialorder %v7625_v37, 0.0  ;;  %v7787_v40 = vld [vmem:[%s10978_s3 + $0x12c] ss:$16 sps:$4 sm:$0xff]  }
 0x225   :  { %4168 = vmatmul.mubr.bf16.vlgmr.msra.gmra.mrb[4].mxu0 %v9063_v16  ;;  %4373 = vmatmul.mubr.bf16.vlgmr.msra.gmra.mrb[4].mxu1 %v9063_v16  ;;  %v569_v16 = vld [vmem:[%s10976_s1 + $0x10d8] sm:$0xff]  ;;  %v7782_v26 = vld [vmem:[%s10978_s3 + $0x120] ss:$16 sps:$4 sm:$0xff]  }
 0x226   :  { %4177 = vmatpush1.bf16.msra.mxu0 %v7231_v44  ;;  %4382 = vmatpush1.bf16.msra.mxu1 %v7233_v45  ;;  %v7258_v1 = vcombine.high %v569_v16, %v573_v9  ;;  %v7257_v7 = vcombine.low %v569_v16, %v573_v9  ;;  %v7289_v44 = vcombine.low %v601_v35, %v605_v36  ;;  %v7730_v45 = vld [vmem:[%s10978_s3 + $0x4] ss:$16 sps:$4 sm:$0xff]   ;;  %v7751_v16 = vld [vmem:[%s10978_s3 + $0x6c] ss:$16 sps:$4 sm:$0xff]   ;;  %v7746_v9 = vld [vmem:[%s10978_s3 + $0x60] ss:$16 sps:$4 sm:$0xff]  }
 0x227   :  { %4178 = vmatprep.subr.bf16.mxu0 %v7240_v6  ;;  %4383 = vmatprep.subr.bf16.mxu1 %v7242_v46  ;;  %v7728_v6 = vld [vmem:[%s10978_s3] ss:$16 sps:$4 sm:$0xff]   ;;  %v4439_v46 = vsel %vm4423_vm0, %v7625_v37, %v4431_v41  ;;  %v7785_v27 = vld [vmem:[%s10978_s3 + $0x128] ss:$16 sps:$4 sm:$0xff]   ;;  %v7802_v37 = vld [vmem:[%s10978_s3 + $0x184] ss:$16 sps:$4 sm:$0xff]  }
 0x228   :  { %4208 = vmatprep.mubr.bf16.mxu0 %v8170_v34  ;;  %4413 = vmatprep.mubr.bf16.mxu1 %v8170_v34  ;;  %v577_v34 = vld [vmem:[%s10976_s1 + $0x1118] sm:$0xff]  ;;  %v4447_v49 = vpack.c.bf16 %v4439_v46, %v4439_v46  ;;  %v7794_v35 = vld [vmem:[%s10978_s3 + $0x160] ss:$16 sps:$4 sm:$0xff]  }
 0x229   :  { %v7266_v23 = vcombine.high %v577_v34, %v581_v4  ;;  %v7265_v20 = vcombine.low %v577_v34, %v581_v4  ;;  %v7763_v34 = vld [vmem:[%s10978_s3 + $0xac] ss:$16 sps:$4 sm:$0xff]   ;;  %v7758_v4 = vld [vmem:[%s10978_s3 + $0xa0] ss:$16 sps:$4 sm:$0xff]   ;;  %v7797_v36 = vld [vmem:[%s10978_s3 + $0x168] ss:$16 sps:$4 sm:$0xff]  }
 0x22a   :  { %4179 = vmatpush1.bf16.msra.mxu0 %v7239_v52  ;;  %4384 = vmatpush1.bf16.msra.mxu1 %v7241_v54  ;;  %v7734_v52 = vld [vmem:[%s10978_s3 + $0x20] ss:$16 sps:$4 sm:$0xff]   ;;  %v7737_v54 = vld [vmem:[%s10978_s3 + $0x28] ss:$16 sps:$4 sm:$0xff]  }
 0x22b   :  { %4180 = vmatprep.subr.bf16.mxu0 %v7248_v55  ;;  %4385 = vmatprep.subr.bf16.mxu1 %v7250_v56  ;;  %v7742_v55 = vld [vmem:[%s10978_s3 + $0x44] ss:$16 sps:$4 sm:$0xff]   ;;  %v7740_v56 = vld [vmem:[%s10978_s3 + $0x40] ss:$16 sps:$4 sm:$0xff]   ;;  %v7803_v41 = vld [vmem:[%s10978_s3 + $0x188] ss:$16 sps:$4 sm:$0xff]  }
 0x22c   :  { %v7809_v46 = vld [vmem:[%s10978_s3 + $0x1a8] ss:$16 sps:$4 sm:$0xff]  }
 0x22e   :  { %4181 = vmatpush1.bf16.msra.mxu0 %v7247_v60  ;;  %4386 = vmatpush1.bf16.msra.mxu1 %v7249_v62  ;;  %v7749_v60 = vld [vmem:[%s10978_s3 + $0x68] ss:$16 sps:$4 sm:$0xff]   ;;  %v7754_v62 = vld [vmem:[%s10978_s3 + $0x84] ss:$16 sps:$4 sm:$0xff]  }
 0x22f   :  { %4182 = vmatprep.subr.bf16.mxu0 %v7256_v0  ;;  %4387 = vmatprep.subr.bf16.mxu1 %v7258_v1  ;;  %v7757_v0 = vld [vmem:[%s10978_s3 + $0x8c] ss:$16 sps:$4 sm:$0xff]   ;;  %v7752_v1 = vld [vmem:[%s10978_s3 + $0x80] ss:$16 sps:$4 sm:$0xff]  }
 0x232   :  { %4183 = vmatpush1.bf16.msra.mxu0 %v7255_v63  ;;  %4388 = vmatpush1.bf16.msra.mxu1 %v7257_v7  ;;  %v7761_v63 = vld [vmem:[%s10978_s3 + $0xa8] ss:$16 sps:$4 sm:$0xff]   ;;  %v7766_v7 = vld [vmem:[%s10978_s3 + $0xc4] ss:$16 sps:$4 sm:$0xff]  }
 0x233   :  { %4184 = vmatprep.subr.bf16.mxu0 %v7264_v8  ;;  %4389 = vmatprep.subr.bf16.mxu1 %v7266_v23  ;;  %v7769_v8 = vld [vmem:[%s10978_s3 + $0xcc] ss:$16 sps:$4 sm:$0xff]   ;;  %v7764_v23 = vld [vmem:[%s10978_s3 + $0xc0] ss:$16 sps:$4 sm:$0xff]  }
 0x236   :  { %4185 = vmatpush1.bf16.msra.mxu0 %v7263_v18  ;;  %4390 = vmatpush1.bf16.msra.mxu1 %v7265_v20  ;;  %v7773_v18 = vld [vmem:[%s10978_s3 + $0xe8] ss:$16 sps:$4 sm:$0xff]   ;;  %v7778_v20 = vld [vmem:[%s10978_s3 + $0x104] ss:$16 sps:$4 sm:$0xff]  }
 0x237   :  { %4186 = vmatprep.subr.bf16.mxu0 %v7272_v21  ;;  %4391 = vmatprep.subr.bf16.mxu1 %v7274_v22  ;;  %v7781_v21 = vld [vmem:[%s10978_s3 + $0x10c] ss:$16 sps:$4 sm:$0xff]   ;;  %v7776_v22 = vld [vmem:[%s10978_s3 + $0x100] ss:$16 sps:$4 sm:$0xff]  }
 0x23a   :  { %4187 = vmatpush1.bf16.msra.mxu0 %v7271_v28  ;;  %4392 = vmatpush1.bf16.msra.mxu1 %v7273_v59  ;;  %v7790_v28 = vld [vmem:[%s10978_s3 + $0x144] ss:$16 sps:$4 sm:$0xff]   ;;  %v7793_v59 = vld [vmem:[%s10978_s3 + $0x14c] ss:$16 sps:$4 sm:$0xff]  }
 0x23b   :  { %4188 = vmatprep.subr.bf16.mxu0 %v7280_v30  ;;  %4393 = vmatprep.subr.bf16.mxu1 %v7282_v31  ;;  %v7788_v30 = vld [vmem:[%s10978_s3 + $0x140] ss:$16 sps:$4 sm:$0xff]   ;;  %v7791_v31 = vld [vmem:[%s10978_s3 + $0x148] ss:$16 sps:$4 sm:$0xff]  }
 0x23e   :  { %4189 = vmatpush1.bf16.msra.mxu0 %v7279_v61  ;;  %4394 = vmatpush1.bf16.msra.mxu1 %v7281_v53  ;;  %v610_v61 = vsub.s32 0, %v8278_v43  ;;  %v7805_v53 = vld [vmem:[%s10978_s3 + $0x18c] ss:$16 sps:$4 sm:$0xff]  }
 0x23f   :  { %4190 = vmatprep.subr.bf16.mxu0 %v7288_v38  ;;  %4395 = vmatprep.subr.bf16.mxu1 %v7290_v39  ;;  %v622_v38 = vsub.s32 3, %v8278_v43  ;;  %v7800_v39 = vld [vmem:[%s10978_s3 + $0x180] ss:$16 sps:$4 sm:$0xff]  }
 0x242   :  { %4191 = vmatpush1.bf16.msra.mxu0 %v7287_v42  ;;  %4396 = vmatpush1.bf16.msra.mxu1 %v7289_v44  ;;  %v7808_v42 = vld [vmem:[%s10978_s3 + $0x1a4] ss:$16 sps:$4 sm:$0xff]   ;;  %v611_v44 = vrot.slane %v10025_v19, %v610_v61 }
 0x243   :  { %6012 = vmatprep.subr.bf16.mxu0 %v7730_v45  ;;  %6176 = vmatprep.subr.bf16.mxu1 %v7733_v11  ;;  %v7811_v45 = vld [vmem:[%s10978_s3 + $0x1ac] ss:$16 sps:$4 sm:$0xff]   ;;  %v623_v11 = vrot.slane %v10025_v19, %v622_v38 }
 0x245   :  { %4209 = vmatmul.mubr.bf16.vlgmr.msra.gmra.mrb[4].mxu0 %v9169_v29  ;;  %4414 = vmatmul.mubr.bf16.vlgmr.msra.gmra.mrb[4].mxu1 %v9169_v29  ;;  %v7745_v29 = vld [vmem:[%s10978_s3 + $0x4c] ss:$16 sps:$4 sm:$0xff]  }
 0x246   :  { %6013 = vmatpush1.bf16.msra.mxu0 %v7728_v6  ;;  %6044 = vmatprep.mubr.bf16.mxu0 %v4447_v49  ;;  %v7806_v6 = vld [vmem:[%s10978_s3 + $0x1a0] ss:$16 sps:$4 sm:$0xff]  }
 0x247   :  { %6177 = vmatpush1.bf16.msra.mxu1 %v7731_v47  ;;  %6208 = vmatprep.mubr.bf16.mxu1 %v4447_v49  ;;  %v7814_v47 = vld [vmem:[%s10978_s3 + $0x1c4] ss:$16 sps:$4 sm:$0xff]   ;;  %v7817_v49 = vld [vmem:[%s10978_s3 + $0x1cc] ss:$16 sps:$4 sm:$0xff]  }
 0x248   :  { %6014 = vmatprep.subr.bf16.mxu0 %v7736_v48  ;;  %6178 = vmatprep.subr.bf16.mxu1 %v7739_v51  ;;  %v7624_v48 = vadd.f32 %v9829_v5, %v611_v44  ;;  %v7627_v51 = vadd.f32 %v9847_v14, %v623_v11  ;;  %v7820_v5 = vld [vmem:[%s10978_s3 + $0x1e4] ss:$16 sps:$4 sm:$0xff]   ;;  %v7823_v14 = vld [vmem:[%s10978_s3 + $0x1ec] ss:$16 sps:$4 sm:$0xff]   ;;  %v7881_v11 = vld [vmem:[%s10978_s3 + $0x328] ss:$16 sps:$4 sm:$0xff]  }
 0x249   :  { %v7883_v44 = vld [vmem:[%s10978_s3 + $0x32c] ss:$16 sps:$4 sm:$0xff]  }
 0x24a   :  { %6015 = vmatpush1.bf16.msra.mxu0 %v7734_v52  ;;  %v7812_v52 = vld [vmem:[%s10978_s3 + $0x1c0] ss:$16 sps:$4 sm:$0xff]   ;;  %vm4422_vm1 = vcmp.ge.f32.partialorder %v7624_v48, 0.0  ;;  %vm4425_vm2 = vcmp.ge.f32.partialorder %v7627_v51, 0.0 }
 0x24b   :  { %6179 = vmatpush1.bf16.msra.mxu1 %v7737_v54  ;;  %6016 = vmatprep.subr.bf16.mxu0 %v7742_v55  ;;  %v7815_v54 = vld [vmem:[%s10978_s3 + $0x1c8] ss:$16 sps:$4 sm:$0xff]   ;;  %v4430_v55 = vmul.f32 0.01, %v7624_v48 }
 0x24c   :  { %6180 = vmatprep.subr.bf16.mxu1 %v7745_v29  ;;  %v4433_v29 = vmul.f32 0.01, %v7627_v51 }
 0x24e   :  { %6017 = vmatpush1.bf16.msra.mxu0 %v7740_v56  ;;  %v7818_v56 = vld [vmem:[%s10978_s3 + $0x1e0] ss:$16 sps:$4 sm:$0xff]  }
 0x24f   :  { %6181 = vmatpush1.bf16.msra.mxu1 %v7743_v57  ;;  %6018 = vmatprep.subr.bf16.mxu0 %v7748_v58  ;;  %v7821_v57 = vld [vmem:[%s10978_s3 + $0x1e8] ss:$16 sps:$4 sm:$0xff]   ;;  %v7826_v58 = vld [vmem:[%s10978_s3 + $0x204] ss:$16 sps:$4 sm:$0xff]  }
 0x250   :  { %6182 = vmatprep.subr.bf16.mxu1 %v7751_v16  ;;  %v4438_v16 = vsel %vm4422_vm1, %v7624_v48, %v4430_v55  ;;  %v7887_v48 = vld [vmem:[%s10978_s3 + $0x348] ss:$16 sps:$4 sm:$0xff]   ;;  %v618_v55 = vsub.s32 2, %v8278_v43 }
 0x252   :  { %6019 = vmatpush1.bf16.msra.mxu0 %v7746_v9  ;;  %v7829_v9 = vld [vmem:[%s10978_s3 + $0x20c] ss:$16 sps:$4 sm:$0xff]  }
 0x253   :  { %6183 = vmatpush1.bf16.msra.mxu1 %v7749_v60  ;;  %6020 = vmatprep.subr.bf16.mxu0 %v7754_v62  ;;  %v7824_v60 = vld [vmem:[%s10978_s3 + $0x200] ss:$16 sps:$4 sm:$0xff]   ;;  %v4441_v62 = vsel %vm4425_vm2, %v7627_v51, %v4433_v29  ;;  %v7895_v51 = vld [vmem:[%s10978_s3 + $0x36c] ss:$16 sps:$4 sm:$0xff]  }
 0x254   :  { %6184 = vmatprep.subr.bf16.mxu1 %v7757_v0  ;;  %v4446_v0 = vpack.c.bf16 %v4438_v16, %v4438_v16  ;;  %v7896_v29 = vld [vmem:[%s10978_s3 + $0x380] ss:$16 sps:$4 sm:$0xff]   ;;  %v7907_v16 = vld [vmem:[%s10978_s3 + $0x3ac] ss:$16 sps:$4 sm:$0xff]  }
 0x256   :  { %6021 = vmatpush1.bf16.msra.mxu0 %v7752_v1  ;;  %v7827_v1 = vld [vmem:[%s10978_s3 + $0x208] ss:$16 sps:$4 sm:$0xff]  }
 0x257   :  { %6185 = vmatpush1.bf16.msra.mxu1 %v7755_v2  ;;  %6022 = vmatprep.subr.bf16.mxu0 %v7760_v3  ;;  %v7832_v2 = vld [vmem:[%s10978_s3 + $0x224] ss:$16 sps:$4 sm:$0xff]   ;;  %v4449_v3 = vpack.c.bf16 %v4441_v62, %v4441_v62 }
 0x258   :  { %6186 = vmatprep.subr.bf16.mxu1 %v7763_v34  ;;  %v7835_v34 = vld [vmem:[%s10978_s3 + $0x22c] ss:$16 sps:$4 sm:$0xff]   ;;  %v7910_v62 = vld [vmem:[%s10978_s3 + $0x3c4] ss:$16 sps:$4 sm:$0xff]  }
 0x25a   :  { %6023 = vmatpush1.bf16.msra.mxu0 %v7758_v4  ;;  %v7830_v4 = vld [vmem:[%s10978_s3 + $0x220] ss:$16 sps:$4 sm:$0xff]  }
 0x25b   :  { %6187 = vmatpush1.bf16.msra.mxu1 %v7761_v63  ;;  %6024 = vmatprep.subr.bf16.mxu0 %v7766_v7  ;;  %v7833_v63 = vld [vmem:[%s10978_s3 + $0x228] ss:$16 sps:$4 sm:$0xff]   ;;  %v7838_v7 = vld [vmem:[%s10978_s3 + $0x244] ss:$16 sps:$4 sm:$0xff]  }
 0x25c   :  { %6188 = vmatprep.subr.bf16.mxu1 %v7769_v8  ;;  %v7841_v8 = vld [vmem:[%s10978_s3 + $0x24c] ss:$16 sps:$4 sm:$0xff]  }
 0x25e   :  { %6025 = vmatpush1.bf16.msra.mxu0 %v7764_v23  ;;  %v7836_v23 = vld [vmem:[%s10978_s3 + $0x240] ss:$16 sps:$4 sm:$0xff]  }
 0x25f   :  { %6189 = vmatpush1.bf16.msra.mxu1 %v7767_v12  ;;  %6026 = vmatprep.subr.bf16.mxu0 %v7772_v13  ;;  %v7839_v12 = vld [vmem:[%s10978_s3 + $0x248] ss:$16 sps:$4 sm:$0xff]   ;;  %v7844_v13 = vld [vmem:[%s10978_s3 + $0x264] ss:$16 sps:$4 sm:$0xff]  }
 0x260   :  { %6190 = vmatprep.subr.bf16.mxu1 %v7775_v15  ;;  %v7847_v15 = vld [vmem:[%s10978_s3 + $0x26c] ss:$16 sps:$4 sm:$0xff]  }
 0x262   :  { %6027 = vmatpush1.bf16.msra.mxu0 %v7770_v17  ;;  %v7842_v17 = vld [vmem:[%s10978_s3 + $0x260] ss:$16 sps:$4 sm:$0xff]  }
 0x263   :  { %6191 = vmatpush1.bf16.msra.mxu1 %v7773_v18  ;;  %6028 = vmatprep.subr.bf16.mxu0 %v7778_v20  ;;  %v7845_v18 = vld [vmem:[%s10978_s3 + $0x268] ss:$16 sps:$4 sm:$0xff]   ;;  %v7850_v20 = vld [vmem:[%s10978_s3 + $0x284] ss:$16 sps:$4 sm:$0xff]  }
 0x264   :  { %6192 = vmatprep.subr.bf16.mxu1 %v7781_v21  ;;  %v7853_v21 = vld [vmem:[%s10978_s3 + $0x28c] ss:$16 sps:$4 sm:$0xff]  }
 0x266   :  { %6029 = vmatpush1.bf16.msra.mxu0 %v7776_v22  ;;  %v7848_v22 = vld [vmem:[%s10978_s3 + $0x280] ss:$16 sps:$4 sm:$0xff]  }
 0x267   :  { %6193 = vmatpush1.bf16.msra.mxu1 %v7779_v24  ;;  %6030 = vmatprep.subr.bf16.mxu0 %v7784_v25  ;;  %v7851_v24 = vld [vmem:[%s10978_s3 + $0x288] ss:$16 sps:$4 sm:$0xff]   ;;  %v7856_v25 = vld [vmem:[%s10978_s3 + $0x2a4] ss:$16 sps:$4 sm:$0xff]  }
 0x268   :  { %6194 = vmatprep.subr.bf16.mxu1 %v7787_v40  ;;  %v7859_v40 = vld [vmem:[%s10978_s3 + $0x2ac] ss:$16 sps:$4 sm:$0xff]  }
 0x26a   :  { %6031 = vmatpush1.bf16.msra.mxu0 %v7782_v26  ;;  %v7854_v26 = vld [vmem:[%s10978_s3 + $0x2a0] ss:$16 sps:$4 sm:$0xff]  }
 0x26b   :  { %6195 = vmatpush1.bf16.msra.mxu1 %v7785_v27  ;;  %6032 = vmatprep.subr.bf16.mxu0 %v7790_v28  ;;  %v7857_v27 = vld [vmem:[%s10978_s3 + $0x2a8] ss:$16 sps:$4 sm:$0xff]   ;;  %v7862_v28 = vld [vmem:[%s10978_s3 + $0x2c4] ss:$16 sps:$4 sm:$0xff]  }
 0x26c   :  { %6196 = vmatprep.subr.bf16.mxu1 %v7793_v59  ;;  %v7865_v59 = vld [vmem:[%s10978_s3 + $0x2cc] ss:$16 sps:$4 sm:$0xff]  }
 0x26e   :  { %6033 = vmatpush1.bf16.msra.mxu0 %v7788_v30  ;;  %v7860_v30 = vld [vmem:[%s10978_s3 + $0x2c0] ss:$16 sps:$4 sm:$0xff]  }
 0x26f   :  { %6197 = vmatpush1.bf16.msra.mxu1 %v7791_v31  ;;  %6034 = vmatprep.subr.bf16.mxu0 %v7796_v32  ;;  %v7863_v31 = vld [vmem:[%s10978_s3 + $0x2c8] ss:$16 sps:$4 sm:$0xff]   ;;  %v7868_v32 = vld [vmem:[%s10978_s3 + $0x2e4] ss:$16 sps:$4 sm:$0xff]  }
 0x270   :  { %6198 = vmatprep.subr.bf16.mxu1 %v7799_v50  ;;  %v7871_v50 = vld [vmem:[%s10978_s3 + $0x2ec] ss:$16 sps:$4 sm:$0xff]  }
 0x272   :  { %6035 = vmatpush1.bf16.msra.mxu0 %v7794_v35  ;;  %v7866_v35 = vld [vmem:[%s10978_s3 + $0x2e0] ss:$16 sps:$4 sm:$0xff]  }
 0x273   :  { %6199 = vmatpush1.bf16.msra.mxu1 %v7797_v36  ;;  %6036 = vmatprep.subr.bf16.mxu0 %v7802_v37  ;;  %v7869_v36 = vld [vmem:[%s10978_s3 + $0x2e8] ss:$16 sps:$4 sm:$0xff]   ;;  %v7874_v37 = vld [vmem:[%s10978_s3 + $0x304] ss:$16 sps:$4 sm:$0xff]  }
 0x274   :  { %6200 = vmatprep.subr.bf16.mxu1 %v7805_v53  ;;  %v7877_v53 = vld [vmem:[%s10978_s3 + $0x30c] ss:$16 sps:$4 sm:$0xff]  }
 0x276   :  { %6037 = vmatpush1.bf16.msra.mxu0 %v7800_v39  ;;  %v7872_v39 = vld [vmem:[%s10978_s3 + $0x300] ss:$16 sps:$4 sm:$0xff]  }
 0x277   :  { %6201 = vmatpush1.bf16.msra.mxu1 %v7803_v41  ;;  %6038 = vmatprep.subr.bf16.mxu0 %v7808_v42  ;;  %v7875_v41 = vld [vmem:[%s10978_s3 + $0x308] ss:$16 sps:$4 sm:$0xff]   ;;  %v7880_v42 = vld [vmem:[%s10978_s3 + $0x324] ss:$16 sps:$4 sm:$0xff]  }
 0x278   :  { %6202 = vmatprep.subr.bf16.mxu1 %v7811_v45  ;;  %v7878_v45 = vld [vmem:[%s10978_s3 + $0x320] ss:$16 sps:$4 sm:$0xff]  }
 0x27a   :  { %6039 = vmatpush1.bf16.msra.mxu0 %v7806_v6  ;;  %v7886_v6 = vld [vmem:[%s10978_s3 + $0x344] ss:$16 sps:$4 sm:$0xff]  }
 0x27b   :  { %6203 = vmatpush1.bf16.msra.mxu1 %v7809_v46  ;;  %6040 = vmatprep.subr.bf16.mxu0 %v7814_v47  ;;  %v7889_v46 = vld [vmem:[%s10978_s3 + $0x34c] ss:$16 sps:$4 sm:$0xff]   ;;  %v7884_v47 = vld [vmem:[%s10978_s3 + $0x340] ss:$16 sps:$4 sm:$0xff]  }
 0x27c   :  { %6204 = vmatprep.subr.bf16.mxu1 %v7817_v49  ;;  %v7892_v49 = vld [vmem:[%s10978_s3 + $0x364] ss:$16 sps:$4 sm:$0xff]  }
 0x27e   :  { %6041 = vmatpush1.bf16.msra.mxu0 %v7812_v52  ;;  %v7890_v52 = vld [vmem:[%s10978_s3 + $0x360] ss:$16 sps:$4 sm:$0xff]  }
 0x27f   :  { %6205 = vmatpush1.bf16.msra.mxu1 %v7815_v54  ;;  %6042 = vmatprep.subr.bf16.mxu0 %v7820_v5  ;;  %v7893_v54 = vld [vmem:[%s10978_s3 + $0x368] ss:$16 sps:$4 sm:$0xff]   ;;  %v7898_v5 = vld [vmem:[%s10978_s3 + $0x384] ss:$16 sps:$4 sm:$0xff]  }
 0x280   :  { %6206 = vmatprep.subr.bf16.mxu1 %v7823_v14  ;;  %v7901_v14 = vld [vmem:[%s10978_s3 + $0x38c] ss:$16 sps:$4 sm:$0xff]  }
 0x282   :  { %6043 = vmatpush1.bf16.msra.mxu0 %v7818_v56  ;;  %v7899_v56 = vld [vmem:[%s10978_s3 + $0x388] ss:$16 sps:$4 sm:$0xff]  }
 0x283   :  { %6207 = vmatpush1.bf16.msra.mxu1 %v7821_v57  ;;  %6053 = vmatprep.subr.bf16.mxu0 %v7826_v58  ;;  %v7904_v57 = vld [vmem:[%s10978_s3 + $0x3a4] ss:$16 sps:$4 sm:$0xff]   ;;  %v619_v58 = vrot.slane %v10025_v19, %v618_v55 }
 0x284   :  { %6217 = vmatprep.subr.bf16.mxu1 %v7829_v9  ;;  %v7902_v9 = vld [vmem:[%s10978_s3 + $0x3a0] ss:$16 sps:$4 sm:$0xff]  }
 0x285   :  { %6045 = vmatmul.mubr.bf16.vlgmr.msra.gmra.mrb[8].mxu0 %v4446_v0 }
 0x286   :  { %6209 = vmatmul.mubr.bf16.vlgmr.msra.gmra.mrb[8].mxu1 %v4446_v0  ;;  %6054 = vmatpush1.bf16.msra.mxu0 %v7824_v60  ;;  %v7905_v60 = vld [vmem:[%s10978_s3 + $0x3a8] ss:$16 sps:$4 sm:$0xff]   ;;  %v7626_v0 = vadd.f32 %v9837_v10, %v619_v58  ;;  %v7916_v10 = vld [vmem:[%s10978_s3 + $0x3e4] ss:$16 sps:$4 sm:$0xff]   ;;  %v7980_v58 = vld [vmem:[%s10978_s3 + $0x540] ss:$16 sps:$4 sm:$0xff]  }
 0x287   :  { %6085 = vmatprep.mubr.bf16.mxu0 %v4449_v3  ;;  %6218 = vmatpush1.bf16.msra.mxu1 %v7827_v1  ;;  %v7913_v1 = vld [vmem:[%s10978_s3 + $0x3cc] ss:$16 sps:$4 sm:$0xff]  }
 0x288   :  { %6249 = vmatprep.mubr.bf16.mxu1 %v4449_v3  ;;  %6055 = vmatprep.subr.bf16.mxu0 %v7832_v2  ;;  %v7908_v2 = vld [vmem:[%s10978_s3 + $0x3c0] ss:$16 sps:$4 sm:$0xff]   ;;  %v7911_v3 = vld [vmem:[%s10978_s3 + $0x3c8] ss:$16 sps:$4 sm:$0xff]   ;;  %vm4424_vm3 = vcmp.ge.f32.partialorder %v7626_v0, 0.0 }
 0x289   :  { %6219 = vmatprep.subr.bf16.mxu1 %v7835_v34  ;;  %v4432_v34 = vmul.f32 0.01, %v7626_v0 }
 0x28a   :  { %6056 = vmatpush1.bf16.msra.mxu0 %v7830_v4  ;;  %v7919_v4 = vld [vmem:[%s10978_s3 + $0x3ec] ss:$16 sps:$4 sm:$0xff]  }
 0x28b   :  { %6220 = vmatpush1.bf16.msra.mxu1 %v7833_v63  ;;  %6057 = vmatprep.subr.bf16.mxu0 %v7838_v7  ;;  %v7914_v63 = vld [vmem:[%s10978_s3 + $0x3e0] ss:$16 sps:$4 sm:$0xff]   ;;  %v7917_v7 = vld [vmem:[%s10978_s3 + $0x3e8] ss:$16 sps:$4 sm:$0xff]  }
 0x28c   :  { %6221 = vmatprep.subr.bf16.mxu1 %v7841_v8  ;;  %v7922_v8 = vld [vmem:[%s10978_s3 + $0x404] ss:$16 sps:$4 sm:$0xff]  }
 0x28e   :  { %6058 = vmatpush1.bf16.msra.mxu0 %v7836_v23  ;;  %v4440_v23 = vsel %vm4424_vm3, %v7626_v0, %v4432_v34  ;;  %v7989_v0 = vld [vmem:[%s10978_s3 + $0x568] ss:$16 sps:$4 sm:$0xff]   ;;  %v8000_v34 = vld [vmem:[%s10978_s3 + $0x5a4] ss:$16 sps:$4 sm:$0xff]  }
 0x28f   :  { %6222 = vmatpush1.bf16.msra.mxu1 %v7839_v12  ;;  %6059 = vmatprep.subr.bf16.mxu0 %v7844_v13  ;;  %v7925_v12 = vld [vmem:[%s10978_s3 + $0x40c] ss:$16 sps:$4 sm:$0xff]   ;;  %v7920_v13 = vld [vmem:[%s10978_s3 + $0x400] ss:$16 sps:$4 sm:$0xff]  }
 0x290   :  { %6223 = vmatprep.subr.bf16.mxu1 %v7847_v15  ;;  %v4448_v15 = vpack.c.bf16 %v4440_v23, %v4440_v23  ;;  %v8009_v23 = vld [vmem:[%s10978_s3 + $0x5cc] ss:$16 sps:$4 sm:$0xff]  }
 0x292   :  { %6060 = vmatpush1.bf16.msra.mxu0 %v7842_v17  ;;  %v7923_v17 = vld [vmem:[%s10978_s3 + $0x408] ss:$16 sps:$4 sm:$0xff]  }
 0x293   :  { %6224 = vmatpush1.bf16.msra.mxu1 %v7845_v18  ;;  %6061 = vmatprep.subr.bf16.mxu0 %v7850_v20  ;;  %v7928_v18 = vld [vmem:[%s10978_s3 + $0x424] ss:$16 sps:$4 sm:$0xff]   ;;  %v7931_v20 = vld [vmem:[%s10978_s3 + $0x42c] ss:$16 sps:$4 sm:$0xff]  }
 0x294   :  { %6225 = vmatprep.subr.bf16.mxu1 %v7853_v21  ;;  %v7926_v21 = vld [vmem:[%s10978_s3 + $0x420] ss:$16 sps:$4 sm:$0xff]  }
 0x296   :  { %6062 = vmatpush1.bf16.msra.mxu0 %v7848_v22  ;;  %v7929_v22 = vld [vmem:[%s10978_s3 + $0x428] ss:$16 sps:$4 sm:$0xff]  }
 0x297   :  { %6226 = vmatpush1.bf16.msra.mxu1 %v7851_v24  ;;  %6063 = vmatprep.subr.bf16.mxu0 %v7856_v25  ;;  %v7934_v24 = vld [vmem:[%s10978_s3 + $0x444] ss:$16 sps:$4 sm:$0xff]   ;;  %v7937_v25 = vld [vmem:[%s10978_s3 + $0x44c] ss:$16 sps:$4 sm:$0xff]  }
 0x298   :  { %6227 = vmatprep.subr.bf16.mxu1 %v7859_v40  ;;  %v7932_v40 = vld [vmem:[%s10978_s3 + $0x440] ss:$16 sps:$4 sm:$0xff]  }
 0x29a   :  { %6064 = vmatpush1.bf16.msra.mxu0 %v7854_v26  ;;  %v7935_v26 = vld [vmem:[%s10978_s3 + $0x448] ss:$16 sps:$4 sm:$0xff]  }
 0x29b   :  { %6228 = vmatpush1.bf16.msra.mxu1 %v7857_v27  ;;  %6065 = vmatprep.subr.bf16.mxu0 %v7862_v28  ;;  %v7940_v27 = vld [vmem:[%s10978_s3 + $0x464] ss:$16 sps:$4 sm:$0xff]   ;;  %v7943_v28 = vld [vmem:[%s10978_s3 + $0x46c] ss:$16 sps:$4 sm:$0xff]  }
 0x29c   :  { %6229 = vmatprep.subr.bf16.mxu1 %v7865_v59  ;;  %v7938_v59 = vld [vmem:[%s10978_s3 + $0x460] ss:$16 sps:$4 sm:$0xff]  }
 0x29e   :  { %6066 = vmatpush1.bf16.msra.mxu0 %v7860_v30  ;;  %v7941_v30 = vld [vmem:[%s10978_s3 + $0x468] ss:$16 sps:$4 sm:$0xff]  }
 0x29f   :  { %6230 = vmatpush1.bf16.msra.mxu1 %v7863_v31  ;;  %6067 = vmatprep.subr.bf16.mxu0 %v7868_v32  ;;  %v7946_v31 = vld [vmem:[%s10978_s3 + $0x484] ss:$16 sps:$4 sm:$0xff]   ;;  %v7949_v32 = vld [vmem:[%s10978_s3 + $0x48c] ss:$16 sps:$4 sm:$0xff]  }
 0x2a0   :  { %6231 = vmatprep.subr.bf16.mxu1 %v7871_v50  ;;  %v7944_v50 = vld [vmem:[%s10978_s3 + $0x480] ss:$16 sps:$4 sm:$0xff]  }
 0x2a2   :  { %6068 = vmatpush1.bf16.msra.mxu0 %v7866_v35  ;;  %v7947_v35 = vld [vmem:[%s10978_s3 + $0x488] ss:$16 sps:$4 sm:$0xff]  }
 0x2a3   :  { %6232 = vmatpush1.bf16.msra.mxu1 %v7869_v36  ;;  %6069 = vmatprep.subr.bf16.mxu0 %v7874_v37  ;;  %v7952_v36 = vld [vmem:[%s10978_s3 + $0x4a4] ss:$16 sps:$4 sm:$0xff]   ;;  %v7955_v37 = vld [vmem:[%s10978_s3 + $0x4ac] ss:$16 sps:$4 sm:$0xff]  }
 0x2a4   :  { %6233 = vmatprep.subr.bf16.mxu1 %v7877_v53  ;;  %v7950_v53 = vld [vmem:[%s10978_s3 + $0x4a0] ss:$16 sps:$4 sm:$0xff]  }
 0x2a6   :  { %6070 = vmatpush1.bf16.msra.mxu0 %v7872_v39  ;;  %v7953_v39 = vld [vmem:[%s10978_s3 + $0x4a8] ss:$16 sps:$4 sm:$0xff]  }
 0x2a7   :  { %6234 = vmatpush1.bf16.msra.mxu1 %v7875_v41  ;;  %6071 = vmatprep.subr.bf16.mxu0 %v7880_v42  ;;  %v7958_v41 = vld [vmem:[%s10978_s3 + $0x4c4] ss:$16 sps:$4 sm:$0xff]   ;;  %v7961_v42 = vld [vmem:[%s10978_s3 + $0x4cc] ss:$16 sps:$4 sm:$0xff]  }
 0x2a8   :  { %6235 = vmatprep.subr.bf16.mxu1 %v7883_v44  ;;  %v7956_v44 = vld [vmem:[%s10978_s3 + $0x4c0] ss:$16 sps:$4 sm:$0xff]  }
 0x2aa   :  { %6072 = vmatpush1.bf16.msra.mxu0 %v7878_v45  ;;  %v7959_v45 = vld [vmem:[%s10978_s3 + $0x4c8] ss:$16 sps:$4 sm:$0xff]  }
 0x2ab   :  { %6236 = vmatpush1.bf16.msra.mxu1 %v7881_v11  ;;  %6073 = vmatprep.subr.bf16.mxu0 %v7886_v6  ;;  %v7964_v11 = vld [vmem:[%s10978_s3 + $0x4e4] ss:$16 sps:$4 sm:$0xff]   ;;  %v7967_v6 = vld [vmem:[%s10978_s3 + $0x4ec] ss:$16 sps:$4 sm:$0xff]  }
 0x2ac   :  { %6237 = vmatprep.subr.bf16.mxu1 %v7889_v46  ;;  %v7962_v46 = vld [vmem:[%s10978_s3 + $0x4e0] ss:$16 sps:$4 sm:$0xff]  }
 0x2ae   :  { %6074 = vmatpush1.bf16.msra.mxu0 %v7884_v47  ;;  %v7965_v47 = vld [vmem:[%s10978_s3 + $0x4e8] ss:$16 sps:$4 sm:$0xff]  }
 0x2af   :  { %6238 = vmatpush1.bf16.msra.mxu1 %v7887_v48  ;;  %6075 = vmatprep.subr.bf16.mxu0 %v7892_v49  ;;  %v7970_v48 = vld [vmem:[%s10978_s3 + $0x504] ss:$16 sps:$4 sm:$0xff]   ;;  %v7973_v49 = vld [vmem:[%s10978_s3 + $0x50c] ss:$16 sps:$4 sm:$0xff]  }
 0x2b0   :  { %6239 = vmatprep.subr.bf16.mxu1 %v7895_v51  ;;  %v7968_v51 = vld [vmem:[%s10978_s3 + $0x500] ss:$16 sps:$4 sm:$0xff]  }
 0x2b2   :  { %6076 = vmatpush1.bf16.msra.mxu0 %v7890_v52  ;;  %v7971_v52 = vld [vmem:[%s10978_s3 + $0x508] ss:$16 sps:$4 sm:$0xff]  }
 0x2b3   :  { %6240 = vmatpush1.bf16.msra.mxu1 %v7893_v54  ;;  %6077 = vmatprep.subr.bf16.mxu0 %v7898_v5  ;;  %v7976_v54 = vld [vmem:[%s10978_s3 + $0x524] ss:$16 sps:$4 sm:$0xff]   ;;  %v7979_v5 = vld [vmem:[%s10978_s3 + $0x52c] ss:$16 sps:$4 sm:$0xff]  }
 0x2b4   :  { %6241 = vmatprep.subr.bf16.mxu1 %v7901_v14  ;;  %v7974_v14 = vld [vmem:[%s10978_s3 + $0x520] ss:$16 sps:$4 sm:$0xff]  }
 0x2b6   :  { %6078 = vmatpush1.bf16.msra.mxu0 %v7896_v29  ;;  %v7977_v29 = vld [vmem:[%s10978_s3 + $0x528] ss:$16 sps:$4 sm:$0xff]  }
 0x2b7   :  { %6242 = vmatpush1.bf16.msra.mxu1 %v7899_v56  ;;  %6079 = vmatprep.subr.bf16.mxu0 %v7904_v57  ;;  %v7982_v56 = vld [vmem:[%s10978_s3 + $0x544] ss:$16 sps:$4 sm:$0xff]   ;;  %v7985_v57 = vld [vmem:[%s10978_s3 + $0x54c] ss:$16 sps:$4 sm:$0xff]  }
 0x2b8   :  { %6243 = vmatprep.subr.bf16.mxu1 %v7907_v16  ;;  %v7983_v16 = vld [vmem:[%s10978_s3 + $0x548] ss:$16 sps:$4 sm:$0xff]  }
 0x2ba   :  { %6080 = vmatpush1.bf16.msra.mxu0 %v7902_v9  ;;  %v7988_v9 = vld [vmem:[%s10978_s3 + $0x564] ss:$16 sps:$4 sm:$0xff]  }
 0x2bb   :  { %6244 = vmatpush1.bf16.msra.mxu1 %v7905_v60  ;;  %6081 = vmatprep.subr.bf16.mxu0 %v7910_v62  ;;  %v7991_v60 = vld [vmem:[%s10978_s3 + $0x56c] ss:$16 sps:$4 sm:$0xff]   ;;  %v7986_v62 = vld [vmem:[%s10978_s3 + $0x560] ss:$16 sps:$4 sm:$0xff]  }
 0x2bc   :  { %6245 = vmatprep.subr.bf16.mxu1 %v7913_v1  ;;  %v7994_v1 = vld [vmem:[%s10978_s3 + $0x584] ss:$16 sps:$4 sm:$0xff]  }
 0x2be   :  { %6082 = vmatpush1.bf16.msra.mxu0 %v7908_v2  ;;  %v7997_v2 = vld [vmem:[%s10978_s3 + $0x58c] ss:$16 sps:$4 sm:$0xff]  }
 0x2bf   :  { %6246 = vmatpush1.bf16.msra.mxu1 %v7911_v3  ;;  %6083 = vmatprep.subr.bf16.mxu0 %v7916_v10  ;;  %v7992_v3 = vld [vmem:[%s10978_s3 + $0x580] ss:$16 sps:$4 sm:$0xff]   ;;  %v7995_v10 = vld [vmem:[%s10978_s3 + $0x588] ss:$16 sps:$4 sm:$0xff]  }
 0x2c0   :  { %6247 = vmatprep.subr.bf16.mxu1 %v7919_v4  ;;  %v8003_v4 = vld [vmem:[%s10978_s3 + $0x5ac] ss:$16 sps:$4 sm:$0xff]  }
 0x2c2   :  { %6084 = vmatpush1.bf16.msra.mxu0 %v7914_v63  ;;  %v7998_v63 = vld [vmem:[%s10978_s3 + $0x5a0] ss:$16 sps:$4 sm:$0xff]  }
 0x2c3   :  { %6248 = vmatpush1.bf16.msra.mxu1 %v7917_v7  ;;  %6094 = vmatprep.subr.bf16.mxu0 %v7922_v8  ;;  %v8001_v7 = vld [vmem:[%s10978_s3 + $0x5a8] ss:$16 sps:$4 sm:$0xff]   ;;  %v8006_v8 = vld [vmem:[%s10978_s3 + $0x5c4] ss:$16 sps:$4 sm:$0xff]  }
 0x2c4   :  { %6258 = vmatprep.subr.bf16.mxu1 %v7925_v12  ;;  %v8004_v12 = vld [vmem:[%s10978_s3 + $0x5c0] ss:$16 sps:$4 sm:$0xff]  }
 0x2c5   :  { %6086 = vmatmul.mubr.bf16.vlgmr.msra.gmra.mrb[8].mxu0 %v4448_v15 }
 0x2c6   :  { %6250 = vmatmul.mubr.bf16.vlgmr.msra.gmra.mrb[8].mxu1 %v4448_v15  ;;  %6095 = vmatpush1.bf16.msra.mxu0 %v7920_v13  ;;  %v8007_v13 = vld [vmem:[%s10978_s3 + $0x5c8] ss:$16 sps:$4 sm:$0xff]   ;;  %v8012_v15 = vld [vmem:[%s10978_s3 + $0x5e4] ss:$16 sps:$4 sm:$0xff]  }
 0x2c7   :  { %6259 = vmatpush1.bf16.msra.mxu1 %v7923_v17  ;;  %6096 = vmatprep.subr.bf16.mxu0 %v7928_v18  ;;  %v8015_v17 = vld [vmem:[%s10978_s3 + $0x5ec] ss:$16 sps:$4 sm:$0xff]   ;;  %v8010_v18 = vld [vmem:[%s10978_s3 + $0x5e0] ss:$16 sps:$4 sm:$0xff]  }
 0x2c8   :  { %6260 = vmatprep.subr.bf16.mxu1 %v7931_v20  ;;  %v8013_v20 = vld [vmem:[%s10978_s3 + $0x5e8] ss:$16 sps:$4 sm:$0xff]  }
 0x2ca   :  { %6097 = vmatpush1.bf16.msra.mxu0 %v7926_v21  ;;  %v8018_v21 = vld [vmem:[%s10978_s3 + $0x604] ss:$16 sps:$4 sm:$0xff]  }
 0x2cb   :  { %6261 = vmatpush1.bf16.msra.mxu1 %v7929_v22  ;;  %6098 = vmatprep.subr.bf16.mxu0 %v7934_v24  ;;  %v8021_v22 = vld [vmem:[%s10978_s3 + $0x60c] ss:$16 sps:$4 sm:$0xff]   ;;  %v626_v24 = vsub.s32 4, %v8278_v43 }
 0x2cc   :  { %6262 = vmatprep.subr.bf16.mxu1 %v7937_v25  ;;  %v630_v25 = vsub.s32 5, %v8278_v43 }
 0x2ce   :  { %6099 = vmatpush1.bf16.msra.mxu0 %v7932_v40  ;;  %v638_v40 = vsub.s32 7, %v8278_v43 }
 0x2cf   :  { %6263 = vmatpush1.bf16.msra.mxu1 %v7935_v26  ;;  %6100 = vmatprep.subr.bf16.mxu0 %v7940_v27  ;;  %v627_v26 = vrot.slane %v10025_v19, %v626_v24  ;;  %v631_v27 = vrot.slane %v10025_v19, %v630_v25  ;;  %v8067_v24 = vld [vmem:[%s10978_s3 + $0x708] ss:$16 sps:$4 sm:$0xff]   ;;  %v8072_v25 = vld [vmem:[%s10978_s3 + $0x724] ss:$16 sps:$4 sm:$0xff]  }
 0x2d0   :  { %6264 = vmatprep.subr.bf16.mxu1 %v7943_v28  ;;  %v639_v28 = vrot.slane %v10025_v19, %v638_v40  ;;  %v8075_v40 = vld [vmem:[%s10978_s3 + $0x72c] ss:$16 sps:$4 sm:$0xff]  }
 0x2d2   :  { %6101 = vmatpush1.bf16.msra.mxu0 %v7938_v59 }
 0x2d3   :  { %6265 = vmatpush1.bf16.msra.mxu1 %v7941_v30  ;;  %6102 = vmatprep.subr.bf16.mxu0 %v7946_v31 }
 0x2d4   :  { %6266 = vmatprep.subr.bf16.mxu1 %v7949_v32 }
 0x2d6   :  { %6103 = vmatpush1.bf16.msra.mxu0 %v7944_v50 }
 0x2d7   :  { %6267 = vmatpush1.bf16.msra.mxu1 %v7947_v35  ;;  %6104 = vmatprep.subr.bf16.mxu0 %v7952_v36 }
 0x2d8   :  { %6268 = vmatprep.subr.bf16.mxu1 %v7955_v37 }
 0x2da   :  { %6105 = vmatpush1.bf16.msra.mxu0 %v7950_v53 }
 0x2db   :  { %6269 = vmatpush1.bf16.msra.mxu1 %v7953_v39  ;;  %6106 = vmatprep.subr.bf16.mxu0 %v7958_v41 }
 0x2dc   :  { %6270 = vmatprep.subr.bf16.mxu1 %v7961_v42 }
 0x2de   :  { %6107 = vmatpush1.bf16.msra.mxu0 %v7956_v44 }
 0x2df   :  { %6271 = vmatpush1.bf16.msra.mxu1 %v7959_v45  ;;  %6108 = vmatprep.subr.bf16.mxu0 %v7964_v11 }
 0x2e0   :  { %6272 = vmatprep.subr.bf16.mxu1 %v7967_v6 }
 0x2e2   :  { %6109 = vmatpush1.bf16.msra.mxu0 %v7962_v46  ;;  %v8016_v46 = vld [vmem:[%s10978_s3 + $0x600] ss:$16 sps:$4 sm:$0xff]  }
 0x2e3   :  { %6273 = vmatpush1.bf16.msra.mxu1 %v7965_v47  ;;  %6110 = vmatprep.subr.bf16.mxu0 %v7970_v48  ;;  %v8019_v47 = vld [vmem:[%s10978_s3 + $0x608] ss:$16 sps:$4 sm:$0xff]  }
 0x2e4   :  { %6274 = vmatprep.subr.bf16.mxu1 %v7973_v49 }
 0x2e6   :  { %6111 = vmatpush1.bf16.msra.mxu0 %v7968_v51  ;;  %v8024_v51 = vld [vmem:[%s10978_s3 + $0x624] ss:$16 sps:$4 sm:$0xff]  }
 0x2e7   :  { %6275 = vmatpush1.bf16.msra.mxu1 %v7971_v52  ;;  %6112 = vmatprep.subr.bf16.mxu0 %v7976_v54  ;;  %v8027_v52 = vld [vmem:[%s10978_s3 + $0x62c] ss:$16 sps:$4 sm:$0xff]  }
 0x2e8   :  { %6276 = vmatprep.subr.bf16.mxu1 %v7979_v5  ;;  %v8022_v5 = vld [vmem:[%s10978_s3 + $0x620] ss:$16 sps:$4 sm:$0xff]  }
 0x2ea   :  { %6113 = vmatpush1.bf16.msra.mxu0 %v7974_v14  ;;  %v8025_v14 = vld [vmem:[%s10978_s3 + $0x628] ss:$16 sps:$4 sm:$0xff]  }
 0x2eb   :  { %6277 = vmatpush1.bf16.msra.mxu1 %v7977_v29  ;;  %6114 = vmatprep.subr.bf16.mxu0 %v7982_v56  ;;  %v8030_v29 = vld [vmem:[%s10978_s3 + $0x644] ss:$16 sps:$4 sm:$0xff]   ;;  %v8033_v56 = vld [vmem:[%s10978_s3 + $0x64c] ss:$16 sps:$4 sm:$0xff]  }
 0x2ec   :  { %6278 = vmatprep.subr.bf16.mxu1 %v7985_v57  ;;  %v8028_v57 = vld [vmem:[%s10978_s3 + $0x640] ss:$16 sps:$4 sm:$0xff]  }
 0x2ee   :  { %6115 = vmatpush1.bf16.msra.mxu0 %v7980_v58  ;;  %v8031_v58 = vld [vmem:[%s10978_s3 + $0x648] ss:$16 sps:$4 sm:$0xff]  }
 0x2ef   :  { %6279 = vmatpush1.bf16.msra.mxu1 %v7983_v16  ;;  %6116 = vmatprep.subr.bf16.mxu0 %v7988_v9  ;;  %v8036_v16 = vld [vmem:[%s10978_s3 + $0x664] ss:$16 sps:$4 sm:$0xff]   ;;  %v8039_v9 = vld [vmem:[%s10978_s3 + $0x66c] ss:$16 sps:$4 sm:$0xff]  }
 0x2f0   :  { %6280 = vmatprep.subr.bf16.mxu1 %v7991_v60  ;;  %v8034_v60 = vld [vmem:[%s10978_s3 + $0x660] ss:$16 sps:$4 sm:$0xff]  }
 0x2f2   :  { %6117 = vmatpush1.bf16.msra.mxu0 %v7986_v62  ;;  %v8037_v62 = vld [vmem:[%s10978_s3 + $0x668] ss:$16 sps:$4 sm:$0xff]  }
 0x2f3   :  { %6281 = vmatpush1.bf16.msra.mxu1 %v7989_v0  ;;  %6118 = vmatprep.subr.bf16.mxu0 %v7994_v1  ;;  %v8042_v0 = vld [vmem:[%s10978_s3 + $0x684] ss:$16 sps:$4 sm:$0xff]   ;;  %v8045_v1 = vld [vmem:[%s10978_s3 + $0x68c] ss:$16 sps:$4 sm:$0xff]  }
 0x2f4   :  { %6282 = vmatprep.subr.bf16.mxu1 %v7997_v2  ;;  %v8040_v2 = vld [vmem:[%s10978_s3 + $0x680] ss:$16 sps:$4 sm:$0xff]  }
 0x2f6   :  { %6119 = vmatpush1.bf16.msra.mxu0 %v7992_v3  ;;  %v8043_v3 = vld [vmem:[%s10978_s3 + $0x688] ss:$16 sps:$4 sm:$0xff]  }
 0x2f7   :  { %6283 = vmatpush1.bf16.msra.mxu1 %v7995_v10  ;;  %6120 = vmatprep.subr.bf16.mxu0 %v8000_v34  ;;  %v8048_v10 = vld [vmem:[%s10978_s3 + $0x6a4] ss:$16 sps:$4 sm:$0xff]   ;;  %v8051_v34 = vld [vmem:[%s10978_s3 + $0x6ac] ss:$16 sps:$4 sm:$0xff]  }
 0x2f8   :  { %6284 = vmatprep.subr.bf16.mxu1 %v8003_v4  ;;  %v8046_v4 = vld [vmem:[%s10978_s3 + $0x6a0] ss:$16 sps:$4 sm:$0xff]  }
 0x2fa   :  { %6121 = vmatpush1.bf16.msra.mxu0 %v7998_v63  ;;  %v8049_v63 = vld [vmem:[%s10978_s3 + $0x6a8] ss:$16 sps:$4 sm:$0xff]  }
 0x2fb   :  { %6285 = vmatpush1.bf16.msra.mxu1 %v8001_v7  ;;  %6122 = vmatprep.subr.bf16.mxu0 %v8006_v8  ;;  %v8054_v7 = vld [vmem:[%s10978_s3 + $0x6c4] ss:$16 sps:$4 sm:$0xff]   ;;  %v8057_v8 = vld [vmem:[%s10978_s3 + $0x6cc] ss:$16 sps:$4 sm:$0xff]  }
 0x2fc   :  { %6286 = vmatprep.subr.bf16.mxu1 %v8009_v23  ;;  %v8052_v23 = vld [vmem:[%s10978_s3 + $0x6c0] ss:$16 sps:$4 sm:$0xff]  }
 0x2fe   :  { %6123 = vmatpush1.bf16.msra.mxu0 %v8004_v12  ;;  %v8055_v12 = vld [vmem:[%s10978_s3 + $0x6c8] ss:$16 sps:$4 sm:$0xff]  }
 0x2ff   :  { %6287 = vmatpush1.bf16.msra.mxu1 %v8007_v13  ;;  %6124 = vmatprep.subr.bf16.mxu0 %v8012_v15  ;;  %v8060_v13 = vld [vmem:[%s10978_s3 + $0x6e4] ss:$16 sps:$4 sm:$0xff]   ;;  %v8063_v15 = vld [vmem:[%s10978_s3 + $0x6ec] ss:$16 sps:$4 sm:$0xff]  }
 0x300   :  { %6288 = vmatprep.subr.bf16.mxu1 %v8015_v17  ;;  %v8058_v17 = vld [vmem:[%s10978_s3 + $0x6e0] ss:$16 sps:$4 sm:$0xff]  }
 0x302   :  { %6125 = vmatpush1.bf16.msra.mxu0 %v8010_v18  ;;  %v8061_v18 = vld [vmem:[%s10978_s3 + $0x6e8] ss:$16 sps:$4 sm:$0xff]  }
 0x303   :  { %6289 = vmatpush1.bf16.msra.mxu1 %v8013_v20  ;;  %6135 = vmatprep.subr.bf16.mxu0 %v8018_v21  ;;  %v8066_v20 = vld [vmem:[%s10978_s3 + $0x704] ss:$16 sps:$4 sm:$0xff]   ;;  %v8069_v21 = vld [vmem:[%s10978_s3 + $0x70c] ss:$16 sps:$4 sm:$0xff]  }
 0x304   :  { %6299 = vmatprep.subr.bf16.mxu1 %v8021_v22  ;;  %v8064_v22 = vld [vmem:[%s10978_s3 + $0x700] ss:$16 sps:$4 sm:$0xff]  }
 0x318   :  { %v4210_v59 = vpop.f32.mrb[4].mxu0  ;;  %v10660_v31 = vpop.f32.mrb[4].mxu1 }
 0x319   :  { %v7628_v30 = vadd.f32 %v4210_v59, %v627_v26  ;;  %v4212_v32 = vpop.f32.mrb[5].mxu0  ;;  %v4417_v35 = vpop.f32.mrb[5].mxu1  ;;  %v8070_v26 = vld [vmem:[%s10978_s3 + $0x720] ss:$16 sps:$4 sm:$0xff]   ;;  %v8081_v59 = vld [vmem:[%s10978_s3 + $0x74c] ss:$16 sps:$4 sm:$0xff]  }
 0x31a   :  { %v7629_v50 = vadd.f32 %v4212_v32, %v631_v27  ;;  %v4214_v36 = vpop.f32.mrb[6].mxu0  ;;  %v7631_v53 = vadd.f32 %v4417_v35, %v639_v28  ;;  %v4419_v39 = vpop.f32.mrb[6].mxu1  ;;  %v8073_v27 = vld [vmem:[%s10978_s3 + $0x728] ss:$16 sps:$4 sm:$0xff]   ;;  %v8078_v28 = vld [vmem:[%s10978_s3 + $0x744] ss:$16 sps:$4 sm:$0xff]  }
 0x31b   :  { %vm4426_vm4 = vcmp.ge.f32.partialorder %v7628_v30, 0.0  ;;  %v4434_v37 = vmul.f32 0.01, %v7628_v30  ;;  %v4215_v41 = vpop.f32.mrb[7].mxu0  ;;  %v4420_v11 = vpop.f32.mrb[7].mxu1 }
 0x31c   :  { %vm4427_vm5 = vcmp.ge.f32.partialorder %v7629_v50, 0.0  ;;  %v4435_v42 = vmul.f32 0.01, %v7629_v50  ;;  %vm4429_vm6 = vcmp.ge.f32.partialorder %v7631_v53, 0.0  ;;  %v4437_v45 = vmul.f32 0.01, %v7631_v53 }
 0x31d   :  { %v4442_v44 = vsel %vm4426_vm4, %v7628_v30, %v4434_v37  ;;  %v8076_v30 = vld [vmem:[%s10978_s3 + $0x740] ss:$16 sps:$4 sm:$0xff]   ;;  %v8079_v32 = vld [vmem:[%s10978_s3 + $0x748] ss:$16 sps:$4 sm:$0xff]   ;;  %v8087_v35 = vld [vmem:[%s10978_s3 + $0x76c] ss:$16 sps:$4 sm:$0xff]  }
 0x31e   :  { %v4443_v19 = vsel %vm4427_vm5, %v7629_v50, %v4435_v42  ;;  %v4445_v48 = vsel %vm4429_vm6, %v7631_v53, %v4437_v45  ;;  %v4450_v49 = vpack.c.bf16 %v4442_v44, %v4442_v44  ;;  %v8084_v50 = vld [vmem:[%s10978_s3 + $0x764] ss:$16 sps:$4 sm:$0xff]   ;;  %v8082_v36 = vld [vmem:[%s10978_s3 + $0x760] ss:$16 sps:$4 sm:$0xff]   ;;  %v8085_v37 = vld [vmem:[%s10978_s3 + $0x768] ss:$16 sps:$4 sm:$0xff]  }
 0x31f   :  { %v4451_v6 = vpack.c.bf16 %v4443_v19, %v4443_v19  ;;  %v4453_v54 = vpack.c.bf16 %v4445_v48, %v4445_v48  ;;  %v8090_v53 = vld [vmem:[%s10978_s3 + $0x784] ss:$16 sps:$4 sm:$0xff]   ;;  %v8093_v39 = vld [vmem:[%s10978_s3 + $0x78c] ss:$16 sps:$4 sm:$0xff]   ;;  %v634_v41 = vsub.s32 6, %v8278_v43 }
 0x320   :  { %v8088_v42 = vld [vmem:[%s10978_s3 + $0x780] ss:$16 sps:$4 sm:$0xff]   ;;  %v8091_v44 = vld [vmem:[%s10978_s3 + $0x788] ss:$16 sps:$4 sm:$0xff]   ;;  %v8096_v45 = vld [vmem:[%s10978_s3 + $0x7a4] ss:$16 sps:$4 sm:$0xff]  }
 0x321   :  { %6126 = vmatprep.mubr.bf16.mxu0 %v4451_v6  ;;  %6290 = vmatprep.mubr.bf16.mxu1 %v4451_v6  ;;  %v8099_v11 = vld [vmem:[%s10978_s3 + $0x7ac] ss:$16 sps:$4 sm:$0xff]   ;;  %v8144_v19 = vld [vmem:[%s10977_s2] sm:$0xff] }
 0x322   :  { %6127 = vmatmul.mubr.bf16.vlgmr.msra.gmra.mrb[8].mxu0 %v4450_v49  ;;  %6291 = vmatmul.mubr.bf16.vlgmr.msra.gmra.mrb[8].mxu1 %v4450_v49  ;;  %v635_v6 = vrot.slane %v8144_v19, %v634_v41  ;;  %v8102_v48 = vld [vmem:[%s10978_s3 + $0x7c4] ss:$16 sps:$4 sm:$0xff]   ;;  %v8105_v49 = vld [vmem:[%s10978_s3 + $0x7cc] ss:$16 sps:$4 sm:$0xff]  }
 0x323   :  { %6136 = vmatpush1.bf16.msra.mxu0 %v8016_v46  ;;  %6300 = vmatpush1.bf16.msra.mxu1 %v8019_v47  ;;  %v8094_v46 = vld [vmem:[%s10978_s3 + $0x7a0] ss:$16 sps:$4 sm:$0xff]   ;;  %v8097_v47 = vld [vmem:[%s10978_s3 + $0x7a8] ss:$16 sps:$4 sm:$0xff]  }
 0x324   :  { %6167 = vmatprep.mubr.bf16.mxu0 %v4453_v54  ;;  %6331 = vmatprep.mubr.bf16.mxu1 %v4453_v54  ;;  %v8103_v54 = vld [vmem:[%s10978_s3 + $0x7c8] ss:$16 sps:$4 sm:$0xff]  }
 0x325   :  { %6137 = vmatprep.subr.bf16.mxu0 %v8024_v51  ;;  %6301 = vmatprep.subr.bf16.mxu1 %v8027_v52  ;;  %v7630_v51 = vadd.f32 %v10660_v31, %v635_v6  ;;  %v8100_v52 = vld [vmem:[%s10978_s3 + $0x7c0] ss:$16 sps:$4 sm:$0xff]   ;;  %v8111_v31 = vld [vmem:[%s10978_s3 + $0x7ec] ss:$16 sps:$4 sm:$0xff]  }
 0x327   :  { %6138 = vmatpush1.bf16.msra.mxu0 %v8022_v5  ;;  %6302 = vmatpush1.bf16.msra.mxu1 %v8025_v14  ;;  %v8108_v5 = vld [vmem:[%s10978_s3 + $0x7e4] ss:$16 sps:$4 sm:$0xff]   ;;  %v4436_v14 = vmul.f32 0.01, %v7630_v51  ;;  %vm4428_vm7 = vcmp.ge.f32.partialorder %v7630_v51, 0.0 }
 0x328   :  { %6139 = vmatprep.subr.bf16.mxu0 %v8030_v29  ;;  %6303 = vmatprep.subr.bf16.mxu1 %v8033_v56  ;;  %v8106_v29 = vld [vmem:[%s10978_s3 + $0x7e0] ss:$16 sps:$4 sm:$0xff]   ;;  %v8109_v56 = vld [vmem:[%s10978_s3 + $0x7e8] ss:$16 sps:$4 sm:$0xff]  }
 0x32b   :  { %6140 = vmatpush1.bf16.msra.mxu0 %v8028_v57  ;;  %6304 = vmatpush1.bf16.msra.mxu1 %v8031_v58  ;;  %v8112_v57 = vld [vmem:[%s10980_s5 + $0x40] sm:$0xff]  }
 0x32c   :  { %6141 = vmatprep.subr.bf16.mxu0 %v8036_v16  ;;  %6305 = vmatprep.subr.bf16.mxu1 %v8039_v9  ;;  %v8113_v58 = vld [vmem:[%s10980_s5 + $0xc0] sm:$0xff]   ;;  %v4444_v16 = vsel %vm4428_vm7, %v7630_v51, %v4436_v14 }
 0x32d   :  { %v8114_v9 = vld [vmem:[%s10980_s5] sm:$0xff]  }
 0x32f   :  { %6142 = vmatpush1.bf16.msra.mxu0 %v8034_v60  ;;  %6306 = vmatpush1.bf16.msra.mxu1 %v8037_v62  ;;  %v8115_v60 = vld [vmem:[%s10980_s5 + $0x80] sm:$0xff]   ;;  %v4452_v62 = vpack.c.bf16 %v4444_v16, %v4444_v16 }
 0x330   :  { %6143 = vmatprep.subr.bf16.mxu0 %v8042_v0  ;;  %6307 = vmatprep.subr.bf16.mxu1 %v8045_v1  ;;  %v8116_v0 = vld [vmem:[%s10980_s5 + $0x48] sm:$0xff]  }
 0x331   :  { %v8117_v1 = vld [vmem:[%s10980_s5 + $0xc8] sm:$0xff]  }
 0x333   :  { %6144 = vmatpush1.bf16.msra.mxu0 %v8040_v2  ;;  %6308 = vmatpush1.bf16.msra.mxu1 %v8043_v3  ;;  %v8118_v2 = vld [vmem:[%s10980_s5 + $0x8] sm:$0xff]  }
 0x334   :  { %6145 = vmatprep.subr.bf16.mxu0 %v8048_v10  ;;  %6309 = vmatprep.subr.bf16.mxu1 %v8051_v34  ;;  %v8119_v3 = vld [vmem:[%s10980_s5 + $0x88] sm:$0xff]   ;;  %v8120_v10 = vld [vmem:[%s10980_s5 + $0x50] sm:$0xff]  }
 0x335   :  { %v8121_v34 = vld [vmem:[%s10980_s5 + $0xd0] sm:$0xff]  }
 0x337   :  { %6146 = vmatpush1.bf16.msra.mxu0 %v8046_v4  ;;  %6310 = vmatpush1.bf16.msra.mxu1 %v8049_v63  ;;  %v8122_v4 = vld [vmem:[%s10980_s5 + $0x10] sm:$0xff]  }
 0x338   :  { %6147 = vmatprep.subr.bf16.mxu0 %v8054_v7  ;;  %6311 = vmatprep.subr.bf16.mxu1 %v8057_v8  ;;  %v8123_v63 = vld [vmem:[%s10980_s5 + $0x90] sm:$0xff]   ;;  %v8124_v7 = vld [vmem:[%s10980_s5 + $0x58] sm:$0xff]  }
 0x339   :  { %v8125_v8 = vld [vmem:[%s10980_s5 + $0xd8] sm:$0xff]  }
 0x33b   :  { %6148 = vmatpush1.bf16.msra.mxu0 %v8052_v23  ;;  %6312 = vmatpush1.bf16.msra.mxu1 %v8055_v12  ;;  %v8126_v23 = vld [vmem:[%s10980_s5 + $0x18] sm:$0xff]  }
 0x33c   :  { %6149 = vmatprep.subr.bf16.mxu0 %v8060_v13  ;;  %6313 = vmatprep.subr.bf16.mxu1 %v8063_v15  ;;  %v8127_v12 = vld [vmem:[%s10980_s5 + $0x98] sm:$0xff]   ;;  %v8128_v13 = vld [vmem:[%s10980_s5 + $0x60] sm:$0xff]  }
 0x33d   :  { %v8129_v15 = vld [vmem:[%s10980_s5 + $0xe0] sm:$0xff]  }
 0x33f   :  { %6150 = vmatpush1.bf16.msra.mxu0 %v8058_v17  ;;  %6314 = vmatpush1.bf16.msra.mxu1 %v8061_v18  ;;  %v8130_v17 = vld [vmem:[%s10980_s5 + $0x20] sm:$0xff]  }
 0x340   :  { %6151 = vmatprep.subr.bf16.mxu0 %v8066_v20  ;;  %6315 = vmatprep.subr.bf16.mxu1 %v8069_v21  ;;  %v8131_v18 = vld [vmem:[%s10980_s5 + $0xa0] sm:$0xff]   ;;  %v8132_v20 = vld [vmem:[%s10980_s5 + $0x68] sm:$0xff]  }
 0x341   :  { %v8133_v21 = vld [vmem:[%s10980_s5 + $0xe8] sm:$0xff]  }
 0x343   :  { %6152 = vmatpush1.bf16.msra.mxu0 %v8064_v22  ;;  %6316 = vmatpush1.bf16.msra.mxu1 %v8067_v24  ;;  %v8134_v22 = vld [vmem:[%s10980_s5 + $0x28] sm:$0xff]  }
 0x344   :  { %6153 = vmatprep.subr.bf16.mxu0 %v8072_v25  ;;  %6317 = vmatprep.subr.bf16.mxu1 %v8075_v40  ;;  %v8135_v24 = vld [vmem:[%s10980_s5 + $0xa8] sm:$0xff]   ;;  %v8136_v25 = vld [vmem:[%s10980_s5 + $0x70] sm:$0xff]  }
 0x345   :  { %v8137_v40 = vld [vmem:[%s10980_s5 + $0xf0] sm:$0xff]  }
 0x347   :  { %6154 = vmatpush1.bf16.msra.mxu0 %v8070_v26  ;;  %6318 = vmatpush1.bf16.msra.mxu1 %v8073_v27  ;;  %v8138_v26 = vld [vmem:[%s10980_s5 + $0x30] sm:$0xff]  }
 0x348   :  { %6155 = vmatprep.subr.bf16.mxu0 %v8078_v28  ;;  %6319 = vmatprep.subr.bf16.mxu1 %v8081_v59  ;;  %v8139_v27 = vld [vmem:[%s10980_s5 + $0xb0] sm:$0xff]   ;;  %v8140_v28 = vld [vmem:[%s10980_s5 + $0x78] sm:$0xff]  }
 0x349   :  { %v8141_v59 = vld [vmem:[%s10980_s5 + $0xf8] sm:$0xff]  }
 0x34b   :  { %6156 = vmatpush1.bf16.msra.mxu0 %v8076_v30  ;;  %6320 = vmatpush1.bf16.msra.mxu1 %v8079_v32  ;;  %v8142_v30 = vld [vmem:[%s10980_s5 + $0x38] sm:$0xff]  }
 0x34c   :  { %6157 = vmatprep.subr.bf16.mxu0 %v8084_v50  ;;  %6321 = vmatprep.subr.bf16.mxu1 %v8087_v35  ;;  %v8143_v32 = vld [vmem:[%s10980_s5 + $0xb8] sm:$0xff]   ;;  %v4710_v50 = vld [vmem:[%s10979_s4] sm:$0xf] }
 0x34d   :  { %v4715_v35 = vrot.slane %v4710_v50, %v610_v61 }
 0x34f   :  { %6158 = vmatpush1.bf16.msra.mxu0 %v8082_v36  ;;  %6322 = vmatpush1.bf16.msra.mxu1 %v8085_v37  ;;  %v4723_v36 = vrot.slane %v4710_v50, %v618_v55  ;;  %v4719_v37 = vrot.slane %v4710_v50, %v614_v33 }
 0x350   :  { %6159 = vmatprep.subr.bf16.mxu0 %v8090_v53  ;;  %6323 = vmatprep.subr.bf16.mxu1 %v8093_v39  ;;  %v4727_v53 = vrot.slane %v4710_v50, %v622_v38 }
 0x353   :  { %6160 = vmatpush1.bf16.msra.mxu0 %v8088_v42  ;;  %6324 = vmatpush1.bf16.msra.mxu1 %v8091_v44 }
 0x354   :  { %6161 = vmatprep.subr.bf16.mxu0 %v8096_v45  ;;  %6325 = vmatprep.subr.bf16.mxu1 %v8099_v11 }
 0x357   :  { %6162 = vmatpush1.bf16.msra.mxu0 %v8094_v46  ;;  %6326 = vmatpush1.bf16.msra.mxu1 %v8097_v47 }
 0x358   :  { %6163 = vmatprep.subr.bf16.mxu0 %v8102_v48  ;;  %6327 = vmatprep.subr.bf16.mxu1 %v8105_v49 }
 0x35b   :  { %6164 = vmatpush1.bf16.msra.mxu0 %v8100_v52  ;;  %6328 = vmatpush1.bf16.msra.mxu1 %v8103_v54 }
 0x35c   :  { %6165 = vmatprep.subr.bf16.mxu0 %v8108_v5  ;;  %6329 = vmatprep.subr.bf16.mxu1 %v8111_v31 }
 0x35f   :  { %6166 = vmatpush1.bf16.msra.mxu0 %v8106_v29  ;;  %6330 = vmatpush1.bf16.msra.mxu1 %v8109_v56 }
 0x360   :  { %7580 = vmatprep.subr.bf16.mxu0 %v8112_v57  ;;  %7602 = vmatprep.subr.bf16.mxu1 %v8113_v58  ;;  %v7547_v58 = vld [vmem:[%s10981_s6] ss:$0 sm:$0xff] }
 0x362   :  { %6168 = vmatmul.mubr.bf16.vlgmr.msra.gmra.mrb[8].mxu0 %v4452_v62  ;;  %6332 = vmatmul.mubr.bf16.vlgmr.msra.gmra.mrb[8].mxu1 %v4452_v62 }
 0x363   :  { %7581 = vmatpush3.bf16.msra.mxu0 %v8114_v9  ;;  %7603 = vmatpush3.bf16.msra.mxu1 %v8115_v60 }
 0x364   :  { %7582 = vmatprep.subr.bf16.mxu0 %v8116_v0  ;;  %7604 = vmatprep.subr.bf16.mxu1 %v8117_v1 }
 0x367   :  { %7583 = vmatpush3.bf16.msra.mxu0 %v8118_v2  ;;  %7605 = vmatpush3.bf16.msra.mxu1 %v8119_v3 }
 0x368   :  { %7584 = vmatprep.subr.bf16.mxu0 %v8120_v10  ;;  %7606 = vmatprep.subr.bf16.mxu1 %v8121_v34 }
 0x36b   :  { %7585 = vmatpush3.bf16.msra.mxu0 %v8122_v4  ;;  %7607 = vmatpush3.bf16.msra.mxu1 %v8123_v63 }
 0x36c   :  { %7586 = vmatprep.subr.bf16.mxu0 %v8124_v7  ;;  %7608 = vmatprep.subr.bf16.mxu1 %v8125_v8 }
 0x36f   :  { %7587 = vmatpush3.bf16.msra.mxu0 %v8126_v23  ;;  %7609 = vmatpush3.bf16.msra.mxu1 %v8127_v12 }
 0x370   :  { %7588 = vmatprep.subr.bf16.mxu0 %v8128_v13  ;;  %7610 = vmatprep.subr.bf16.mxu1 %v8129_v15 }
 0x373   :  { %7589 = vmatpush3.bf16.msra.mxu0 %v8130_v17  ;;  %7611 = vmatpush3.bf16.msra.mxu1 %v8131_v18 }
 0x374   :  { %7590 = vmatprep.subr.bf16.mxu0 %v8132_v20  ;;  %7612 = vmatprep.subr.bf16.mxu1 %v8133_v21 }
 0x377   :  { %7591 = vmatpush3.bf16.msra.mxu0 %v8134_v22  ;;  %7613 = vmatpush3.bf16.msra.mxu1 %v8135_v24 }
 0x378   :  { %7592 = vmatprep.subr.bf16.mxu0 %v8136_v25  ;;  %7614 = vmatprep.subr.bf16.mxu1 %v8137_v40 }
 0x37b   :  { %7593 = vmatpush3.bf16.msra.mxu0 %v8138_v26  ;;  %7615 = vmatpush3.bf16.msra.mxu1 %v8139_v27 }
 0x37c   :  { %7594 = vmatprep.subr.bf16.mxu0 %v8140_v28  ;;  %7616 = vmatprep.subr.bf16.mxu1 %v8141_v59 }
 0x37f   :  { %7595 = vmatpush3.bf16.msra.mxu0 %v8142_v30  ;;  %7617 = vmatpush3.bf16.msra.mxu1 %v8143_v32 }
 0x435   :  { %v6169_v39 = vpop.f32.mrb[8].mxu0  ;;  %v6333_v41 = vpop.f32.mrb[8].mxu1 }
 0x436   :  { %v7632_v42 = vadd.f32 %v6169_v39, %v4715_v35  ;;  %v7634_v44 = vadd.f32 %v6333_v41, %v4723_v36  ;;  %v6171_v45 = vpop.f32.mrb[9].mxu0  ;;  %v6335_v11 = vpop.f32.mrb[9].mxu1 }
 0x437   :  { %v7633_v19 = vadd.f32 %v6171_v45, %v4719_v37  ;;  %v7635_v6 = vadd.f32 %v6335_v11, %v4727_v53  ;;  %v6173_v46 = vpop.f32.mrb[10].mxu0  ;;  %v6337_v47 = vpop.f32.mrb[10].mxu1 }
 0x438   :  { %vm6340_vm8 = vcmp.ge.f32.partialorder %v7632_v42, 0.0  ;;  %v6344_v61 = vmul.f32 0.01, %v7632_v42  ;;  %vm6342_vm9 = vcmp.ge.f32.partialorder %v7634_v44, 0.0  ;;  %v6346_v55 = vmul.f32 0.01, %v7634_v44 }
 0x439   :  { %vm6341_vm10 = vcmp.ge.f32.partialorder %v7633_v19, 0.0  ;;  %v6345_v48 = vmul.f32 0.01, %v7633_v19  ;;  %vm6343_vm11 = vcmp.ge.f32.partialorder %v7635_v6, 0.0  ;;  %v6347_v33 = vmul.f32 0.01, %v7635_v6 }
 0x43a   :  { %v6348_v43 = vsel %vm6340_vm8, %v7632_v42, %v6344_v61  ;;  %v6350_v38 = vsel %vm6342_vm9, %v7634_v44, %v6346_v55  ;;  %v6174_v49 = vpop.f32.mrb[11].mxu0  ;;  %v6338_v51 = vpop.f32.mrb[11].mxu1 }
 0x43b   :  { %v6349_v52 = vsel %vm6341_vm10, %v7633_v19, %v6345_v48  ;;  %v6351_v54 = vsel %vm6343_vm11, %v7635_v6, %v6347_v33  ;;  %v6352_v14 = vpack.c.bf16 %v6348_v43, %v6348_v43  ;;  %v6354_v29 = vpack.c.bf16 %v6350_v38, %v6350_v38 }
 0x43c   :  { %v6353_v5 = vpack.c.bf16 %v6349_v52, %v6349_v52  ;;  %v6355_v31 = vpack.c.bf16 %v6351_v54, %v6351_v54 }
 0x43e   :  { %6651 = vmatprep.mubr.bf16.mxu0 %v6353_v5  ;;  %6691 = vmatprep.mubr.bf16.mxu1 %v6355_v31 }
 0x43f   :  { %6652 = vmatmul.mubr.bf16.vlgmr.msra.gmra.mrb[12].mxu0 %v6352_v14  ;;  %6692 = vmatmul.mubr.bf16.vlgmr.msra.gmra.mrb[12].mxu1 %v6354_v29 }
 0x512   :  { %v7596_v56 = vpop.f32.mrb[12].mxu0  ;;  %v7618_v57 = vpop.f32.mrb[12].mxu1 }
 0x513   :  { %v7597_v16 = vpop.f32.mrb[13].mxu0  ;;  %v7619_v9 = vpop.f32.mrb[13].mxu1 }
 0x514   :  { %v7598_v60 = vadd.f32 %v7597_v16, %v7596_v56  ;;  %v7620_v62 = vadd.f32 %v7619_v9, %v7618_v57  ;;  %v7599_v0 = vpop.f32.mrb[14].mxu0  ;;  %v7621_v1 = vpop.f32.mrb[14].mxu1 }
 0x515   :  { %v7600_v2 = vpop.f32.mrb[15].mxu0  ;;  %v7622_v3 = vpop.f32.mrb[15].mxu1 }
 0x516   :  { %v6654_v10 = vadd.f32 %v7598_v60, %v7547_v58 }
 0x518   :  { %v6694_v34 = vadd.f32 %v7620_v62, %v6654_v10 }
 0x51a   :  { %6699 = vst [vmem:[#allocation2] sm:$0x3] %v6694_v34 }
 0x51b   :  { %8156 = shalt.err (!%p8153_p4)
}
 0x51c   :  { %s8157_s1 = scalar_lea.hbm %s10982_s7, 32 }
 0x51d   :  { %p8158_p5 = scmp.ne.s32.totalorder %s10982_s7, %s8157_s1  ;;  %p8161_p6 = scmp.lt.u32.totalorder %s8157_s1, %s10982_s7 }
 0x51f   :  { %p8163_p7 = pnand %p8161_p6, %p8158_p5 }
 0x521   :  { %8166 = shalt.err (!%p8163_p7)
}
 0x522   :  { %6709 = dma.vmem_to_hbm [thread:$0]  %s6707_s8, 32, %s10982_s7, [#allocation3]  }
 0x523   :  { %8167 = dma.done.wait [#allocation3], 32  }
 0x524   :  { %8168 = vsyncadd [#allocation3], 4294967264 }
 0x525   :  { %6713 = vsyncpa [#allocation3], 1 }

</bundles_post_ra>
